<compile_context>
chip_gen: v6e
topology: v6e:2x2x1
jax: 0.10.0
libtpu: 0.0.40
codegen_flags: <defaults>
</compile_context>

<pallas_src>
import jax
import jax.numpy as jnp
from jax.experimental import pallas as pl
from jax.experimental.pallas import tpu as pltpu

EPS = 1e-8  # matches nn.LayerNorm(input_, eps=1e-08) in the module


def residual_block_kernel(x_ref, ln_ref, red_ref, exp_ref, b_ref,
                          w1_ref, w2_ref, w3_ref, o_ref):
    # Per-grid-step shapes (T = Bt * L lanes in this batch tile):
    #   x_ref  : (C_in, T)          lane-packed input, lane k = b_local*L + l
    #   ln_ref : (6, T)             rows = g1, be1, g2, be2, g3, be3 (pre-tiled)
    #   red_ref: (T, Bt)            segment-averaging reduce operator (1/L)
    #   exp_ref: (Bt, T)            0/1 segment-expansion operator
    #   b_ref  : (C_mid + C_out, 1) [b1 ; b3]
    #   w1_ref : (C_mid, C_in), w2_ref: (C_mid, C_mid), w3_ref: (C_out, C_mid)
    #   o_ref  : (C_out, T)
    C_mid = w1_ref.shape[0]
    C_out = w3_ref.shape[0]

    x = x_ref[...]
    ln = ln_ref[...]
    red_op = red_ref[...]           # small: T x Bt  (a few vregs)
    exp_op = exp_ref[...]           # small: Bt x T
    b_all = b_ref[...]
    w1 = w1_ref[...]
    w2 = w2_ref[...]
    w3 = w3_ref[...]

    b1 = b_all[0:C_mid, :]                      # (C_mid, 1)
    b3 = b_all[C_mid:C_mid + C_out, :]          # (C_out, 1)

    def layer_norm(h, g, be):
        # One stacked MXU dot gives E[x] and E[x^2] per (channel, segment);
        # rsqrt is done on the narrow (C, Bt) stats, then mean/rstd are
        # broadcast back across each L-lane segment with a tiny 0/1 expand dot.
        C = h.shape[0]
        s = jnp.concatenate([h, h * h], axis=0)                   # (2C, T)
        stats = jnp.dot(s, red_op,
                        preferred_element_type=jnp.float32,
                        precision=jax.lax.Precision.HIGHEST)      # (2C, Bt)
        mu = stats[0:C, :]
        # NOTE: E[x^2] - mu^2 cancels when |mean| >> std; fine for these
        # activations, validated against the two-pass f32 reference below.
        var = jnp.maximum(stats[C:2 * C, :] - mu * mu, 0.0)
        rstd = jax.lax.rsqrt(var + EPS)
        mre = jnp.dot(jnp.concatenate([mu, rstd], axis=0), exp_op,
                      preferred_element_type=jnp.float32,
                      precision=jax.lax.Precision.HIGHEST)        # (2C, T)
        return (h - mre[0:C, :]) * mre[C:2 * C, :] * g + be

    def mix(w, h):
        # (O, C) x (C, T) channel contraction on the VPU (K = 5 / 20 keeps the
        # MXU <1% fed). Partial products are combined with a pairwise tree so
        # the dependent add chain is ~log2(C) deep instead of C.
        terms = [w[:, c:c + 1] * h[c:c + 1, :] for c in range(w.shape[1])]
        while len(terms) > 1:
            nxt = [terms[i] + terms[i + 1] for i in range(0, len(terms) - 1, 2)]
            if len(terms) % 2:
                nxt.append(terms[-1])
            terms = nxt
        return terms[0]

    out = jnp.maximum(layer_norm(x, ln[0:1, :], ln[1:2, :]), 0.0)    # LN1+ReLU
    out = mix(w1, out) + b1                                          # conv1
    out = jnp.maximum(layer_norm(out, ln[2:3, :], ln[3:4, :]), 0.0)  # LN2+ReLU
    out = mix(w2, out)                                               # conv2
    out = jnp.maximum(layer_norm(out, ln[4:5, :], ln[5:6, :]), 0.0)  # LN3+ReLU
    out = mix(w3, out) + b3                                          # conv3
    o_ref[...] = out + x                                             # residual


def _pick_batch_tile(N, L):
    """Batch tile so lanes/tile is a multiple of 256 (v6e/v7x MXU), else 128."""
    if L >= 256:
        return 1
    for lanes in (256, 512, 128):
        if lanes % L == 0:
            bt = lanes // L
            if 1 <= bt <= N and N % bt == 0:
                return bt
    return N


def residual_block(x, params):
    """x: (N, C_in, L) float32.  params: dict of deterministic weights."""
    N, C_in, L = x.shape
    C_mid = params["w1"].shape[0]
    C_out = params["w3"].shape[0]
    assert C_out == C_in, "residual add requires output_channels == input_channel"
    NL = N * L

    Bt = _pick_batch_tile(N, L)      # batch elements per grid step
    T = Bt * L                       # lanes per grid step
    grid = (N // Bt,)

    # Lane-pack: channels on sublanes, batch*length on lanes (dense last dim).
    x_packed = jnp.transpose(x, (1, 0, 2)).reshape(C_in, NL)

    # Six LayerNorm parameter vectors as one (6, T) slab, pre-tiled across the
    # batch tile so in-kernel application is pure elementwise.
    ln = jnp.stack([params["g1"], params["be1"],
                    params["g2"], params["be2"],
                    params["g3"], params["be3"]], axis=0)            # (6, L)
    ln = jnp.tile(ln, (1, Bt)).astype(jnp.float32)                   # (6, T)

    # Factored segment operators (per tile, identical for every grid step):
    #   red_op[k, s] = 1/L if k // L == s   -> per-segment mean via one dot
    #   exp_op[s, k] = 1   if k // L == s   -> broadcast stats back to lanes
    seg_of_lane = jnp.arange(T) // L
    exp_op = (jnp.arange(Bt)[:, None] == seg_of_lane[None, :]).astype(
        jnp.float32)                                                 # (Bt, T)
    red_op = jnp.transpose(exp_op) / float(L)                        # (T, Bt)

    # Two conv biases consolidated into one column.
    biases = jnp.concatenate([params["b1"], params["b3"]]).reshape(
        C_mid + C_out, 1).astype(jnp.float32)

    def full(shape):
        return pl.BlockSpec(shape, lambda i: (0, 0))

    out_packed = pl.pallas_call(
        residual_block_kernel,
        out_shape=jax.ShapeDtypeStruct((C_out, NL), jnp.float32),
        grid=grid,
        in_specs=[
            pl.BlockSpec((C_in, T), lambda i: (0, i)),   # x (batch-tiled lanes)
            full((6, T)),                                # ln slab
            full((T, Bt)),                               # reduce operator
            full((Bt, T)),                               # expand operator
            full((C_mid + C_out, 1)),                    # biases
            full((C_mid, C_in)),                         # w1
            full((C_mid, C_mid)),                        # w2
            full((C_out, C_mid)),                        # w3
        ],
        out_specs=pl.BlockSpec((C_out, T), lambda i: (0, i)),
        input_output_aliases={0: 0},                     # out reuses x_packed's HBM
        compiler_params=pltpu.CompilerParams(
            dimension_semantics=("parallel",)),
    )(x_packed, ln, red_op, exp_op, biases,
      params["w1"], params["w2"], params["w3"])

    # Unpack back to the module's (N, C_out, L) layout.
    return out_packed.reshape(C_out, N, L).transpose(1, 0, 2)


def residual_block_ref(x, p):
    """Pure-JAX reference mirroring the PyTorch forward (two-pass LN var)."""
    hi = jax.lax.Precision.HIGHEST

    def ln(h, g, b):
        mu = jnp.mean(h, axis=-1, keepdims=True)
        var = jnp.mean((h - mu) ** 2, axis=-1, keepdims=True)
        return (h - mu) / jnp.sqrt(var + EPS) * g + b

    out = jax.nn.relu(ln(x, p["g1"], p["be1"]))
    out = jnp.einsum("oc,ncl->nol", p["w1"], out, precision=hi) \
        + p["b1"][None, :, None]
    out = jax.nn.relu(ln(out, p["g2"], p["be2"]))
    out = jnp.einsum("oc,ncl->nol", p["w2"], out, precision=hi)
    out = jax.nn.relu(ln(out, p["g3"], p["be3"]))
    out = jnp.einsum("oc,ncl->nol", p["w3"], out, precision=hi) \
        + p["b3"][None, :, None]
    return out + x


if __name__ == "__main__":
    # Module config: input_ = L = 16, input_channel = 5 (== output_channels so
    # the residual add is shape-valid), interm_channels = 20, kernel_size = 1.
    # N = 32 keeps shapes small while giving 2 grid steps of 256 lanes each.
    N, C_in, C_mid, C_out, L = 32, 5, 20, 5, 16

    key = jax.random.PRNGKey(0)
    ks = jax.random.split(key, 12)
    params = {
        "g1": 1.0 + 0.1 * jax.random.normal(ks[0], (L,), jnp.float32),
        "be1": 0.1 * jax.random.normal(ks[1], (L,), jnp.float32),
        "g2": 1.0 + 0.1 * jax.random.normal(ks[2], (L,), jnp.float32),
        "be2": 0.1 * jax.random.normal(ks[3], (L,), jnp.float32),
        "g3": 1.0 + 0.1 * jax.random.normal(ks[4], (L,), jnp.float32),
        "be3": 0.1 * jax.random.normal(ks[5], (L,), jnp.float32),
        "w1": 0.2 * jax.random.normal(ks[6], (C_mid, C_in), jnp.float32),
        "b1": 0.1 * jax.random.normal(ks[7], (C_mid,), jnp.float32),
        "w2": 0.2 * jax.random.normal(ks[8], (C_mid, C_mid), jnp.float32),
        "w3": 0.2 * jax.random.normal(ks[9], (C_out, C_mid), jnp.float32),
        "b3": 0.1 * jax.random.normal(ks[10], (C_out,), jnp.float32),
    }
    x = jax.random.normal(ks[11], (N, C_in, L), jnp.float32)

    # jit the wrapper so the input/output aliasing actually takes effect and the
    # pack/unpack layout shuffles live inside the same compiled program.
    out = jax.block_until_ready(jax.jit(residual_block)(x, params))
    ref = residual_block_ref(x, params)

    assert out.shape == (N, C_out, L)
    assert jnp.allclose(out, ref, atol=1e-4, rtol=1e-4), (
        "mismatch vs reference, max abs err = %.3e"
        % float(jnp.max(jnp.abs(out - ref))))

    print("KERNEL_OK")
</pallas_src>

<mosaic_0001>
module attributes {stable_mosaic.version = 11 : i64} {
  func.func @residual_block_kernel(%arg0: i32, %arg1: memref<5x256xf32, #tpu.memory_space<vmem>>, %arg2: memref<6x256xf32, #tpu.memory_space<vmem>>, %arg3: memref<256x16xf32, #tpu.memory_space<vmem>>, %arg4: memref<16x256xf32, #tpu.memory_space<vmem>>, %arg5: memref<25x1xf32, #tpu.memory_space<vmem>>, %arg6: memref<20x5xf32, #tpu.memory_space<vmem>>, %arg7: memref<20x20xf32, #tpu.memory_space<vmem>>, %arg8: memref<5x20xf32, #tpu.memory_space<vmem>>, %arg9: memref<5x256xf32, #tpu.memory_space<vmem>>) attributes {dimension_semantics = [#tpu.dimension_semantics<parallel>], iteration_bounds = array<i64: 2>, scalar_prefetch = 0 : i64, scratch_operands = 0 : i64, tpu.core_type = #tpu.core_type<tc>, window_params = [{transform_indices = @transform_0, window_bounds = array<i64: 5, 256>}, {pipeline_mode = #tpu.pipeline_mode<synchronous>, transform_indices = @transform_1, window_bounds = array<i64: 6, 256>}, {pipeline_mode = #tpu.pipeline_mode<synchronous>, transform_indices = @transform_2, window_bounds = array<i64: 256, 16>}, {pipeline_mode = #tpu.pipeline_mode<synchronous>, transform_indices = @transform_3, window_bounds = array<i64: 16, 256>}, {pipeline_mode = #tpu.pipeline_mode<synchronous>, transform_indices = @transform_4, window_bounds = array<i64: 25, 1>}, {pipeline_mode = #tpu.pipeline_mode<synchronous>, transform_indices = @transform_5, window_bounds = array<i64: 20, 5>}, {pipeline_mode = #tpu.pipeline_mode<synchronous>, transform_indices = @transform_6, window_bounds = array<i64: 20, 20>}, {pipeline_mode = #tpu.pipeline_mode<synchronous>, transform_indices = @transform_7, window_bounds = array<i64: 5, 20>}, {transform_indices = @transform_8, window_bounds = array<i64: 5, 256>}]} {
    %c0 = arith.constant 0 : index
    %c0_0 = arith.constant 0 : index
    %0 = vector.load %arg1[%c0, %c0_0] : memref<5x256xf32, #tpu.memory_space<vmem>>, vector<5x256xf32>
    %c0_1 = arith.constant 0 : index
    %c0_2 = arith.constant 0 : index
    %1 = vector.load %arg2[%c0_1, %c0_2] : memref<6x256xf32, #tpu.memory_space<vmem>>, vector<6x256xf32>
    %c0_3 = arith.constant 0 : index
    %c0_4 = arith.constant 0 : index
    %2 = vector.load %arg3[%c0_3, %c0_4] : memref<256x16xf32, #tpu.memory_space<vmem>>, vector<256x16xf32>
    %c0_5 = arith.constant 0 : index
    %c0_6 = arith.constant 0 : index
    %3 = vector.load %arg4[%c0_5, %c0_6] : memref<16x256xf32, #tpu.memory_space<vmem>>, vector<16x256xf32>
    %c0_7 = arith.constant 0 : index
    %c0_8 = arith.constant 0 : index
    %4 = vector.load %arg5[%c0_7, %c0_8] : memref<25x1xf32, #tpu.memory_space<vmem>>, vector<25x1xf32>
    %c0_9 = arith.constant 0 : index
    %c0_10 = arith.constant 0 : index
    %5 = vector.load %arg6[%c0_9, %c0_10] : memref<20x5xf32, #tpu.memory_space<vmem>>, vector<20x5xf32>
    %c0_11 = arith.constant 0 : index
    %c0_12 = arith.constant 0 : index
    %6 = vector.load %arg7[%c0_11, %c0_12] : memref<20x20xf32, #tpu.memory_space<vmem>>, vector<20x20xf32>
    %c0_13 = arith.constant 0 : index
    %c0_14 = arith.constant 0 : index
    %7 = vector.load %arg8[%c0_13, %c0_14] : memref<5x20xf32, #tpu.memory_space<vmem>>, vector<5x20xf32>
    %8 = vector.extract_strided_slice %4 {offsets = [0, 0], sizes = [20, 1], strides = [1, 1]} : vector<25x1xf32> to vector<20x1xf32>
    %9 = vector.extract_strided_slice %4 {offsets = [20, 0], sizes = [5, 1], strides = [1, 1]} : vector<25x1xf32> to vector<5x1xf32>
    %10 = vector.extract_strided_slice %1 {offsets = [0, 0], sizes = [1, 256], strides = [1, 1]} : vector<6x256xf32> to vector<1x256xf32>
    %11 = vector.extract_strided_slice %1 {offsets = [1, 0], sizes = [1, 256], strides = [1, 1]} : vector<6x256xf32> to vector<1x256xf32>
    %12 = arith.mulf %0, %0 : vector<5x256xf32>
    %13 = tpu.concatenate %0, %12 in 0 : vector<5x256xf32>, vector<5x256xf32> -> vector<10x256xf32>
    %cst = arith.constant dense<0.000000e+00> : vector<10x16xf32>
    %14 = tpu.matmul %13, %2, %cst {dimension_numbers = #tpu.dot_dimension_numbers<[1], [0], [0], [1], [0, 0, 1, 1], [], []>, precision = #tpu.contract_precision<fp32>} : vector<10x256xf32>, vector<256x16xf32>, vector<10x16xf32> -> vector<10x16xf32>
    %15 = vector.extract_strided_slice %14 {offsets = [0, 0], sizes = [5, 16], strides = [1, 1]} : vector<10x16xf32> to vector<5x16xf32>
    %16 = vector.extract_strided_slice %14 {offsets = [5, 0], sizes = [5, 16], strides = [1, 1]} : vector<10x16xf32> to vector<5x16xf32>
    %17 = arith.mulf %15, %15 : vector<5x16xf32>
    %18 = arith.subf %16, %17 : vector<5x16xf32>
    %cst_15 = arith.constant 0.000000e+00 : f32
    %19 = vector.broadcast %cst_15 : f32 to vector<5x16xf32>
    %20 = arith.maximumf %18, %19 : vector<5x16xf32>
    %cst_16 = arith.constant 9.99999993E-9 : f32
    %21 = vector.broadcast %cst_16 : f32 to vector<5x16xf32>
    %22 = arith.addf %20, %21 : vector<5x16xf32>
    %23 = math.rsqrt %22 : vector<5x16xf32>
    %24 = tpu.concatenate %15, %23 in 0 : vector<5x16xf32>, vector<5x16xf32> -> vector<10x16xf32>
    %cst_17 = arith.constant dense<0.000000e+00> : vector<10x256xf32>
    %25 = tpu.matmul %24, %3, %cst_17 {dimension_numbers = #tpu.dot_dimension_numbers<[1], [0], [0], [1], [0, 0, 1, 1], [], []>, precision = #tpu.contract_precision<fp32>} : vector<10x16xf32>, vector<16x256xf32>, vector<10x256xf32> -> vector<10x256xf32>
    %26 = vector.extract_strided_slice %25 {offsets = [0, 0], sizes = [5, 256], strides = [1, 1]} : vector<10x256xf32> to vector<5x256xf32>
    %27 = arith.subf %0, %26 : vector<5x256xf32>
    %28 = vector.extract_strided_slice %25 {offsets = [5, 0], sizes = [5, 256], strides = [1, 1]} : vector<10x256xf32> to vector<5x256xf32>
    %29 = arith.mulf %27, %28 : vector<5x256xf32>
    %30 = vector.broadcast %10 : vector<1x256xf32> to vector<5x256xf32>
    %31 = arith.mulf %29, %30 : vector<5x256xf32>
    %32 = vector.broadcast %11 : vector<1x256xf32> to vector<5x256xf32>
    %33 = arith.addf %31, %32 : vector<5x256xf32>
    %cst_18 = arith.constant 0.000000e+00 : f32
    %34 = vector.broadcast %cst_18 : f32 to vector<5x256xf32>
    %35 = arith.maximumf %33, %34 : vector<5x256xf32>
    %36 = vector.extract_strided_slice %5 {offsets = [0, 0], sizes = [20, 1], strides = [1, 1]} : vector<20x5xf32> to vector<20x1xf32>
    %37 = vector.extract_strided_slice %35 {offsets = [0, 0], sizes = [1, 256], strides = [1, 1]} : vector<5x256xf32> to vector<1x256xf32>
    %38 = vector.broadcast %36 : vector<20x1xf32> to vector<20x256xf32>
    %39 = vector.broadcast %37 : vector<1x256xf32> to vector<20x256xf32>
    %40 = arith.mulf %38, %39 : vector<20x256xf32>
    %41 = vector.extract_strided_slice %5 {offsets = [0, 1], sizes = [20, 1], strides = [1, 1]} : vector<20x5xf32> to vector<20x1xf32>
    %42 = vector.extract_strided_slice %35 {offsets = [1, 0], sizes = [1, 256], strides = [1, 1]} : vector<5x256xf32> to vector<1x256xf32>
    %43 = vector.broadcast %41 : vector<20x1xf32> to vector<20x256xf32>
    %44 = vector.broadcast %42 : vector<1x256xf32> to vector<20x256xf32>
    %45 = arith.mulf %43, %44 : vector<20x256xf32>
    %46 = vector.extract_strided_slice %5 {offsets = [0, 2], sizes = [20, 1], strides = [1, 1]} : vector<20x5xf32> to vector<20x1xf32>
    %47 = vector.extract_strided_slice %35 {offsets = [2, 0], sizes = [1, 256], strides = [1, 1]} : vector<5x256xf32> to vector<1x256xf32>
    %48 = vector.broadcast %46 : vector<20x1xf32> to vector<20x256xf32>
    %49 = vector.broadcast %47 : vector<1x256xf32> to vector<20x256xf32>
    %50 = arith.mulf %48, %49 : vector<20x256xf32>
    %51 = vector.extract_strided_slice %5 {offsets = [0, 3], sizes = [20, 1], strides = [1, 1]} : vector<20x5xf32> to vector<20x1xf32>
    %52 = vector.extract_strided_slice %35 {offsets = [3, 0], sizes = [1, 256], strides = [1, 1]} : vector<5x256xf32> to vector<1x256xf32>
    %53 = vector.broadcast %51 : vector<20x1xf32> to vector<20x256xf32>
    %54 = vector.broadcast %52 : vector<1x256xf32> to vector<20x256xf32>
    %55 = arith.mulf %53, %54 : vector<20x256xf32>
    %56 = vector.extract_strided_slice %5 {offsets = [0, 4], sizes = [20, 1], strides = [1, 1]} : vector<20x5xf32> to vector<20x1xf32>
    %57 = vector.extract_strided_slice %35 {offsets = [4, 0], sizes = [1, 256], strides = [1, 1]} : vector<5x256xf32> to vector<1x256xf32>
    %58 = vector.broadcast %56 : vector<20x1xf32> to vector<20x256xf32>
    %59 = vector.broadcast %57 : vector<1x256xf32> to vector<20x256xf32>
    %60 = arith.mulf %58, %59 : vector<20x256xf32>
    %61 = arith.addf %40, %45 : vector<20x256xf32>
    %62 = arith.addf %50, %55 : vector<20x256xf32>
    %63 = arith.addf %61, %62 : vector<20x256xf32>
    %64 = arith.addf %63, %60 : vector<20x256xf32>
    %65 = vector.broadcast %8 : vector<20x1xf32> to vector<20x256xf32>
    %66 = arith.addf %64, %65 : vector<20x256xf32>
    %67 = vector.extract_strided_slice %1 {offsets = [2, 0], sizes = [1, 256], strides = [1, 1]} : vector<6x256xf32> to vector<1x256xf32>
    %68 = vector.extract_strided_slice %1 {offsets = [3, 0], sizes = [1, 256], strides = [1, 1]} : vector<6x256xf32> to vector<1x256xf32>
    %69 = arith.mulf %66, %66 : vector<20x256xf32>
    %70 = tpu.concatenate %66, %69 in 0 : vector<20x256xf32>, vector<20x256xf32> -> vector<40x256xf32>
    %cst_19 = arith.constant dense<0.000000e+00> : vector<40x16xf32>
    %71 = tpu.matmul %70, %2, %cst_19 {dimension_numbers = #tpu.dot_dimension_numbers<[1], [0], [0], [1], [0, 0, 1, 1], [], []>, precision = #tpu.contract_precision<fp32>} : vector<40x256xf32>, vector<256x16xf32>, vector<40x16xf32> -> vector<40x16xf32>
    %72 = vector.extract_strided_slice %71 {offsets = [0, 0], sizes = [20, 16], strides = [1, 1]} : vector<40x16xf32> to vector<20x16xf32>
    %73 = vector.extract_strided_slice %71 {offsets = [20, 0], sizes = [20, 16], strides = [1, 1]} : vector<40x16xf32> to vector<20x16xf32>
    %74 = arith.mulf %72, %72 : vector<20x16xf32>
    %75 = arith.subf %73, %74 : vector<20x16xf32>
    %cst_20 = arith.constant 0.000000e+00 : f32
    %76 = vector.broadcast %cst_20 : f32 to vector<20x16xf32>
    %77 = arith.maximumf %75, %76 : vector<20x16xf32>
    %cst_21 = arith.constant 9.99999993E-9 : f32
    %78 = vector.broadcast %cst_21 : f32 to vector<20x16xf32>
    %79 = arith.addf %77, %78 : vector<20x16xf32>
    %80 = math.rsqrt %79 : vector<20x16xf32>
    %81 = tpu.concatenate %72, %80 in 0 : vector<20x16xf32>, vector<20x16xf32> -> vector<40x16xf32>
    %cst_22 = arith.constant dense<0.000000e+00> : vector<40x256xf32>
    %82 = tpu.matmul %81, %3, %cst_22 {dimension_numbers = #tpu.dot_dimension_numbers<[1], [0], [0], [1], [0, 0, 1, 1], [], []>, precision = #tpu.contract_precision<fp32>} : vector<40x16xf32>, vector<16x256xf32>, vector<40x256xf32> -> vector<40x256xf32>
    %83 = vector.extract_strided_slice %82 {offsets = [0, 0], sizes = [20, 256], strides = [1, 1]} : vector<40x256xf32> to vector<20x256xf32>
    %84 = arith.subf %66, %83 : vector<20x256xf32>
    %85 = vector.extract_strided_slice %82 {offsets = [20, 0], sizes = [20, 256], strides = [1, 1]} : vector<40x256xf32> to vector<20x256xf32>
    %86 = arith.mulf %84, %85 : vector<20x256xf32>
    %87 = vector.broadcast %67 : vector<1x256xf32> to vector<20x256xf32>
    %88 = arith.mulf %86, %87 : vector<20x256xf32>
    %89 = vector.broadcast %68 : vector<1x256xf32> to vector<20x256xf32>
    %90 = arith.addf %88, %89 : vector<20x256xf32>
    %cst_23 = arith.constant 0.000000e+00 : f32
    %91 = vector.broadcast %cst_23 : f32 to vector<20x256xf32>
    %92 = arith.maximumf %90, %91 : vector<20x256xf32>
    %93 = vector.extract_strided_slice %6 {offsets = [0, 0], sizes = [20, 1], strides = [1, 1]} : vector<20x20xf32> to vector<20x1xf32>
    %94 = vector.extract_strided_slice %92 {offsets = [0, 0], sizes = [1, 256], strides = [1, 1]} : vector<20x256xf32> to vector<1x256xf32>
    %95 = vector.broadcast %93 : vector<20x1xf32> to vector<20x256xf32>
    %96 = vector.broadcast %94 : vector<1x256xf32> to vector<20x256xf32>
    %97 = arith.mulf %95, %96 : vector<20x256xf32>
    %98 = vector.extract_strided_slice %6 {offsets = [0, 1], sizes = [20, 1], strides = [1, 1]} : vector<20x20xf32> to vector<20x1xf32>
    %99 = vector.extract_strided_slice %92 {offsets = [1, 0], sizes = [1, 256], strides = [1, 1]} : vector<20x256xf32> to vector<1x256xf32>
    %100 = vector.broadcast %98 : vector<20x1xf32> to vector<20x256xf32>
    %101 = vector.broadcast %99 : vector<1x256xf32> to vector<20x256xf32>
    %102 = arith.mulf %100, %101 : vector<20x256xf32>
    %103 = vector.extract_strided_slice %6 {offsets = [0, 2], sizes = [20, 1], strides = [1, 1]} : vector<20x20xf32> to vector<20x1xf32>
    %104 = vector.extract_strided_slice %92 {offsets = [2, 0], sizes = [1, 256], strides = [1, 1]} : vector<20x256xf32> to vector<1x256xf32>
    %105 = vector.broadcast %103 : vector<20x1xf32> to vector<20x256xf32>
    %106 = vector.broadcast %104 : vector<1x256xf32> to vector<20x256xf32>
    %107 = arith.mulf %105, %106 : vector<20x256xf32>
    %108 = vector.extract_strided_slice %6 {offsets = [0, 3], sizes = [20, 1], strides = [1, 1]} : vector<20x20xf32> to vector<20x1xf32>
    %109 = vector.extract_strided_slice %92 {offsets = [3, 0], sizes = [1, 256], strides = [1, 1]} : vector<20x256xf32> to vector<1x256xf32>
    %110 = vector.broadcast %108 : vector<20x1xf32> to vector<20x256xf32>
    %111 = vector.broadcast %109 : vector<1x256xf32> to vector<20x256xf32>
    %112 = arith.mulf %110, %111 : vector<20x256xf32>
    %113 = vector.extract_strided_slice %6 {offsets = [0, 4], sizes = [20, 1], strides = [1, 1]} : vector<20x20xf32> to vector<20x1xf32>
    %114 = vector.extract_strided_slice %92 {offsets = [4, 0], sizes = [1, 256], strides = [1, 1]} : vector<20x256xf32> to vector<1x256xf32>
    %115 = vector.broadcast %113 : vector<20x1xf32> to vector<20x256xf32>
    %116 = vector.broadcast %114 : vector<1x256xf32> to vector<20x256xf32>
    %117 = arith.mulf %115, %116 : vector<20x256xf32>
    %118 = vector.extract_strided_slice %6 {offsets = [0, 5], sizes = [20, 1], strides = [1, 1]} : vector<20x20xf32> to vector<20x1xf32>
    %119 = vector.extract_strided_slice %92 {offsets = [5, 0], sizes = [1, 256], strides = [1, 1]} : vector<20x256xf32> to vector<1x256xf32>
    %120 = vector.broadcast %118 : vector<20x1xf32> to vector<20x256xf32>
    %121 = vector.broadcast %119 : vector<1x256xf32> to vector<20x256xf32>
    %122 = arith.mulf %120, %121 : vector<20x256xf32>
    %123 = vector.extract_strided_slice %6 {offsets = [0, 6], sizes = [20, 1], strides = [1, 1]} : vector<20x20xf32> to vector<20x1xf32>
    %124 = vector.extract_strided_slice %92 {offsets = [6, 0], sizes = [1, 256], strides = [1, 1]} : vector<20x256xf32> to vector<1x256xf32>
    %125 = vector.broadcast %123 : vector<20x1xf32> to vector<20x256xf32>
    %126 = vector.broadcast %124 : vector<1x256xf32> to vector<20x256xf32>
    %127 = arith.mulf %125, %126 : vector<20x256xf32>
    %128 = vector.extract_strided_slice %6 {offsets = [0, 7], sizes = [20, 1], strides = [1, 1]} : vector<20x20xf32> to vector<20x1xf32>
    %129 = vector.extract_strided_slice %92 {offsets = [7, 0], sizes = [1, 256], strides = [1, 1]} : vector<20x256xf32> to vector<1x256xf32>
    %130 = vector.broadcast %128 : vector<20x1xf32> to vector<20x256xf32>
    %131 = vector.broadcast %129 : vector<1x256xf32> to vector<20x256xf32>
    %132 = arith.mulf %130, %131 : vector<20x256xf32>
    %133 = vector.extract_strided_slice %6 {offsets = [0, 8], sizes = [20, 1], strides = [1, 1]} : vector<20x20xf32> to vector<20x1xf32>
    %134 = vector.extract_strided_slice %92 {offsets = [8, 0], sizes = [1, 256], strides = [1, 1]} : vector<20x256xf32> to vector<1x256xf32>
    %135 = vector.broadcast %133 : vector<20x1xf32> to vector<20x256xf32>
    %136 = vector.broadcast %134 : vector<1x256xf32> to vector<20x256xf32>
    %137 = arith.mulf %135, %136 : vector<20x256xf32>
    %138 = vector.extract_strided_slice %6 {offsets = [0, 9], sizes = [20, 1], strides = [1, 1]} : vector<20x20xf32> to vector<20x1xf32>
    %139 = vector.extract_strided_slice %92 {offsets = [9, 0], sizes = [1, 256], strides = [1, 1]} : vector<20x256xf32> to vector<1x256xf32>
    %140 = vector.broadcast %138 : vector<20x1xf32> to vector<20x256xf32>
    %141 = vector.broadcast %139 : vector<1x256xf32> to vector<20x256xf32>
    %142 = arith.mulf %140, %141 : vector<20x256xf32>
    %143 = vector.extract_strided_slice %6 {offsets = [0, 10], sizes = [20, 1], strides = [1, 1]} : vector<20x20xf32> to vector<20x1xf32>
    %144 = vector.extract_strided_slice %92 {offsets = [10, 0], sizes = [1, 256], strides = [1, 1]} : vector<20x256xf32> to vector<1x256xf32>
    %145 = vector.broadcast %143 : vector<20x1xf32> to vector<20x256xf32>
    %146 = vector.broadcast %144 : vector<1x256xf32> to vector<20x256xf32>
    %147 = arith.mulf %145, %146 : vector<20x256xf32>
    %148 = vector.extract_strided_slice %6 {offsets = [0, 11], sizes = [20, 1], strides = [1, 1]} : vector<20x20xf32> to vector<20x1xf32>
    %149 = vector.extract_strided_slice %92 {offsets = [11, 0], sizes = [1, 256], strides = [1, 1]} : vector<20x256xf32> to vector<1x256xf32>
    %150 = vector.broadcast %148 : vector<20x1xf32> to vector<20x256xf32>
    %151 = vector.broadcast %149 : vector<1x256xf32> to vector<20x256xf32>
    %152 = arith.mulf %150, %151 : vector<20x256xf32>
    %153 = vector.extract_strided_slice %6 {offsets = [0, 12], sizes = [20, 1], strides = [1, 1]} : vector<20x20xf32> to vector<20x1xf32>
    %154 = vector.extract_strided_slice %92 {offsets = [12, 0], sizes = [1, 256], strides = [1, 1]} : vector<20x256xf32> to vector<1x256xf32>
    %155 = vector.broadcast %153 : vector<20x1xf32> to vector<20x256xf32>
    %156 = vector.broadcast %154 : vector<1x256xf32> to vector<20x256xf32>
    %157 = arith.mulf %155, %156 : vector<20x256xf32>
    %158 = vector.extract_strided_slice %6 {offsets = [0, 13], sizes = [20, 1], strides = [1, 1]} : vector<20x20xf32> to vector<20x1xf32>
    %159 = vector.extract_strided_slice %92 {offsets = [13, 0], sizes = [1, 256], strides = [1, 1]} : vector<20x256xf32> to vector<1x256xf32>
    %160 = vector.broadcast %158 : vector<20x1xf32> to vector<20x256xf32>
    %161 = vector.broadcast %159 : vector<1x256xf32> to vector<20x256xf32>
    %162 = arith.mulf %160, %161 : vector<20x256xf32>
    %163 = vector.extract_strided_slice %6 {offsets = [0, 14], sizes = [20, 1], strides = [1, 1]} : vector<20x20xf32> to vector<20x1xf32>
    %164 = vector.extract_strided_slice %92 {offsets = [14, 0], sizes = [1, 256], strides = [1, 1]} : vector<20x256xf32> to vector<1x256xf32>
    %165 = vector.broadcast %163 : vector<20x1xf32> to vector<20x256xf32>
    %166 = vector.broadcast %164 : vector<1x256xf32> to vector<20x256xf32>
    %167 = arith.mulf %165, %166 : vector<20x256xf32>
    %168 = vector.extract_strided_slice %6 {offsets = [0, 15], sizes = [20, 1], strides = [1, 1]} : vector<20x20xf32> to vector<20x1xf32>
    %169 = vector.extract_strided_slice %92 {offsets = [15, 0], sizes = [1, 256], strides = [1, 1]} : vector<20x256xf32> to vector<1x256xf32>
    %170 = vector.broadcast %168 : vector<20x1xf32> to vector<20x256xf32>
    %171 = vector.broadcast %169 : vector<1x256xf32> to vector<20x256xf32>
    %172 = arith.mulf %170, %171 : vector<20x256xf32>
    %173 = vector.extract_strided_slice %6 {offsets = [0, 16], sizes = [20, 1], strides = [1, 1]} : vector<20x20xf32> to vector<20x1xf32>
    %174 = vector.extract_strided_slice %92 {offsets = [16, 0], sizes = [1, 256], strides = [1, 1]} : vector<20x256xf32> to vector<1x256xf32>
    %175 = vector.broadcast %173 : vector<20x1xf32> to vector<20x256xf32>
    %176 = vector.broadcast %174 : vector<1x256xf32> to vector<20x256xf32>
    %177 = arith.mulf %175, %176 : vector<20x256xf32>
    %178 = vector.extract_strided_slice %6 {offsets = [0, 17], sizes = [20, 1], strides = [1, 1]} : vector<20x20xf32> to vector<20x1xf32>
    %179 = vector.extract_strided_slice %92 {offsets = [17, 0], sizes = [1, 256], strides = [1, 1]} : vector<20x256xf32> to vector<1x256xf32>
    %180 = vector.broadcast %178 : vector<20x1xf32> to vector<20x256xf32>
    %181 = vector.broadcast %179 : vector<1x256xf32> to vector<20x256xf32>
    %182 = arith.mulf %180, %181 : vector<20x256xf32>
    %183 = vector.extract_strided_slice %6 {offsets = [0, 18], sizes = [20, 1], strides = [1, 1]} : vector<20x20xf32> to vector<20x1xf32>
    %184 = vector.extract_strided_slice %92 {offsets = [18, 0], sizes = [1, 256], strides = [1, 1]} : vector<20x256xf32> to vector<1x256xf32>
    %185 = vector.broadcast %183 : vector<20x1xf32> to vector<20x256xf32>
    %186 = vector.broadcast %184 : vector<1x256xf32> to vector<20x256xf32>
    %187 = arith.mulf %185, %186 : vector<20x256xf32>
    %188 = vector.extract_strided_slice %6 {offsets = [0, 19], sizes = [20, 1], strides = [1, 1]} : vector<20x20xf32> to vector<20x1xf32>
    %189 = vector.extract_strided_slice %92 {offsets = [19, 0], sizes = [1, 256], strides = [1, 1]} : vector<20x256xf32> to vector<1x256xf32>
    %190 = vector.broadcast %188 : vector<20x1xf32> to vector<20x256xf32>
    %191 = vector.broadcast %189 : vector<1x256xf32> to vector<20x256xf32>
    %192 = arith.mulf %190, %191 : vector<20x256xf32>
    %193 = arith.addf %97, %102 : vector<20x256xf32>
    %194 = arith.addf %107, %112 : vector<20x256xf32>
    %195 = arith.addf %117, %122 : vector<20x256xf32>
    %196 = arith.addf %127, %132 : vector<20x256xf32>
    %197 = arith.addf %137, %142 : vector<20x256xf32>
    %198 = arith.addf %147, %152 : vector<20x256xf32>
    %199 = arith.addf %157, %162 : vector<20x256xf32>
    %200 = arith.addf %167, %172 : vector<20x256xf32>
    %201 = arith.addf %177, %182 : vector<20x256xf32>
    %202 = arith.addf %187, %192 : vector<20x256xf32>
    %203 = arith.addf %193, %194 : vector<20x256xf32>
    %204 = arith.addf %195, %196 : vector<20x256xf32>
    %205 = arith.addf %197, %198 : vector<20x256xf32>
    %206 = arith.addf %199, %200 : vector<20x256xf32>
    %207 = arith.addf %201, %202 : vector<20x256xf32>
    %208 = arith.addf %203, %204 : vector<20x256xf32>
    %209 = arith.addf %205, %206 : vector<20x256xf32>
    %210 = arith.addf %208, %209 : vector<20x256xf32>
    %211 = arith.addf %210, %207 : vector<20x256xf32>
    %212 = vector.extract_strided_slice %1 {offsets = [4, 0], sizes = [1, 256], strides = [1, 1]} : vector<6x256xf32> to vector<1x256xf32>
    %213 = vector.extract_strided_slice %1 {offsets = [5, 0], sizes = [1, 256], strides = [1, 1]} : vector<6x256xf32> to vector<1x256xf32>
    %214 = arith.mulf %211, %211 : vector<20x256xf32>
    %215 = tpu.concatenate %211, %214 in 0 : vector<20x256xf32>, vector<20x256xf32> -> vector<40x256xf32>
    %cst_24 = arith.constant dense<0.000000e+00> : vector<40x16xf32>
    %216 = tpu.matmul %215, %2, %cst_24 {dimension_numbers = #tpu.dot_dimension_numbers<[1], [0], [0], [1], [0, 0, 1, 1], [], []>, precision = #tpu.contract_precision<fp32>} : vector<40x256xf32>, vector<256x16xf32>, vector<40x16xf32> -> vector<40x16xf32>
    %217 = vector.extract_strided_slice %216 {offsets = [0, 0], sizes = [20, 16], strides = [1, 1]} : vector<40x16xf32> to vector<20x16xf32>
    %218 = vector.extract_strided_slice %216 {offsets = [20, 0], sizes = [20, 16], strides = [1, 1]} : vector<40x16xf32> to vector<20x16xf32>
    %219 = arith.mulf %217, %217 : vector<20x16xf32>
    %220 = arith.subf %218, %219 : vector<20x16xf32>
    %cst_25 = arith.constant 0.000000e+00 : f32
    %221 = vector.broadcast %cst_25 : f32 to vector<20x16xf32>
    %222 = arith.maximumf %220, %221 : vector<20x16xf32>
    %cst_26 = arith.constant 9.99999993E-9 : f32
    %223 = vector.broadcast %cst_26 : f32 to vector<20x16xf32>
    %224 = arith.addf %222, %223 : vector<20x16xf32>
    %225 = math.rsqrt %224 : vector<20x16xf32>
    %226 = tpu.concatenate %217, %225 in 0 : vector<20x16xf32>, vector<20x16xf32> -> vector<40x16xf32>
    %cst_27 = arith.constant dense<0.000000e+00> : vector<40x256xf32>
    %227 = tpu.matmul %226, %3, %cst_27 {dimension_numbers = #tpu.dot_dimension_numbers<[1], [0], [0], [1], [0, 0, 1, 1], [], []>, precision = #tpu.contract_precision<fp32>} : vector<40x16xf32>, vector<16x256xf32>, vector<40x256xf32> -> vector<40x256xf32>
    %228 = vector.extract_strided_slice %227 {offsets = [0, 0], sizes = [20, 256], strides = [1, 1]} : vector<40x256xf32> to vector<20x256xf32>
    %229 = arith.subf %211, %228 : vector<20x256xf32>
    %230 = vector.extract_strided_slice %227 {offsets = [20, 0], sizes = [20, 256], strides = [1, 1]} : vector<40x256xf32> to vector<20x256xf32>
    %231 = arith.mulf %229, %230 : vector<20x256xf32>
    %232 = vector.broadcast %212 : vector<1x256xf32> to vector<20x256xf32>
    %233 = arith.mulf %231, %232 : vector<20x256xf32>
    %234 = vector.broadcast %213 : vector<1x256xf32> to vector<20x256xf32>
    %235 = arith.addf %233, %234 : vector<20x256xf32>
    %cst_28 = arith.constant 0.000000e+00 : f32
    %236 = vector.broadcast %cst_28 : f32 to vector<20x256xf32>
    %237 = arith.maximumf %235, %236 : vector<20x256xf32>
    %238 = vector.extract_strided_slice %7 {offsets = [0, 0], sizes = [5, 1], strides = [1, 1]} : vector<5x20xf32> to vector<5x1xf32>
    %239 = vector.extract_strided_slice %237 {offsets = [0, 0], sizes = [1, 256], strides = [1, 1]} : vector<20x256xf32> to vector<1x256xf32>
    %240 = vector.broadcast %238 : vector<5x1xf32> to vector<5x256xf32>
    %241 = vector.broadcast %239 : vector<1x256xf32> to vector<5x256xf32>
    %242 = arith.mulf %240, %241 : vector<5x256xf32>
    %243 = vector.extract_strided_slice %7 {offsets = [0, 1], sizes = [5, 1], strides = [1, 1]} : vector<5x20xf32> to vector<5x1xf32>
    %244 = vector.extract_strided_slice %237 {offsets = [1, 0], sizes = [1, 256], strides = [1, 1]} : vector<20x256xf32> to vector<1x256xf32>
    %245 = vector.broadcast %243 : vector<5x1xf32> to vector<5x256xf32>
    %246 = vector.broadcast %244 : vector<1x256xf32> to vector<5x256xf32>
    %247 = arith.mulf %245, %246 : vector<5x256xf32>
    %248 = vector.extract_strided_slice %7 {offsets = [0, 2], sizes = [5, 1], strides = [1, 1]} : vector<5x20xf32> to vector<5x1xf32>
    %249 = vector.extract_strided_slice %237 {offsets = [2, 0], sizes = [1, 256], strides = [1, 1]} : vector<20x256xf32> to vector<1x256xf32>
    %250 = vector.broadcast %248 : vector<5x1xf32> to vector<5x256xf32>
    %251 = vector.broadcast %249 : vector<1x256xf32> to vector<5x256xf32>
    %252 = arith.mulf %250, %251 : vector<5x256xf32>
    %253 = vector.extract_strided_slice %7 {offsets = [0, 3], sizes = [5, 1], strides = [1, 1]} : vector<5x20xf32> to vector<5x1xf32>
    %254 = vector.extract_strided_slice %237 {offsets = [3, 0], sizes = [1, 256], strides = [1, 1]} : vector<20x256xf32> to vector<1x256xf32>
    %255 = vector.broadcast %253 : vector<5x1xf32> to vector<5x256xf32>
    %256 = vector.broadcast %254 : vector<1x256xf32> to vector<5x256xf32>
    %257 = arith.mulf %255, %256 : vector<5x256xf32>
    %258 = vector.extract_strided_slice %7 {offsets = [0, 4], sizes = [5, 1], strides = [1, 1]} : vector<5x20xf32> to vector<5x1xf32>
    %259 = vector.extract_strided_slice %237 {offsets = [4, 0], sizes = [1, 256], strides = [1, 1]} : vector<20x256xf32> to vector<1x256xf32>
    %260 = vector.broadcast %258 : vector<5x1xf32> to vector<5x256xf32>
    %261 = vector.broadcast %259 : vector<1x256xf32> to vector<5x256xf32>
    %262 = arith.mulf %260, %261 : vector<5x256xf32>
    %263 = vector.extract_strided_slice %7 {offsets = [0, 5], sizes = [5, 1], strides = [1, 1]} : vector<5x20xf32> to vector<5x1xf32>
    %264 = vector.extract_strided_slice %237 {offsets = [5, 0], sizes = [1, 256], strides = [1, 1]} : vector<20x256xf32> to vector<1x256xf32>
    %265 = vector.broadcast %263 : vector<5x1xf32> to vector<5x256xf32>
    %266 = vector.broadcast %264 : vector<1x256xf32> to vector<5x256xf32>
    %267 = arith.mulf %265, %266 : vector<5x256xf32>
    %268 = vector.extract_strided_slice %7 {offsets = [0, 6], sizes = [5, 1], strides = [1, 1]} : vector<5x20xf32> to vector<5x1xf32>
    %269 = vector.extract_strided_slice %237 {offsets = [6, 0], sizes = [1, 256], strides = [1, 1]} : vector<20x256xf32> to vector<1x256xf32>
    %270 = vector.broadcast %268 : vector<5x1xf32> to vector<5x256xf32>
    %271 = vector.broadcast %269 : vector<1x256xf32> to vector<5x256xf32>
    %272 = arith.mulf %270, %271 : vector<5x256xf32>
    %273 = vector.extract_strided_slice %7 {offsets = [0, 7], sizes = [5, 1], strides = [1, 1]} : vector<5x20xf32> to vector<5x1xf32>
    %274 = vector.extract_strided_slice %237 {offsets = [7, 0], sizes = [1, 256], strides = [1, 1]} : vector<20x256xf32> to vector<1x256xf32>
    %275 = vector.broadcast %273 : vector<5x1xf32> to vector<5x256xf32>
    %276 = vector.broadcast %274 : vector<1x256xf32> to vector<5x256xf32>
    %277 = arith.mulf %275, %276 : vector<5x256xf32>
    %278 = vector.extract_strided_slice %7 {offsets = [0, 8], sizes = [5, 1], strides = [1, 1]} : vector<5x20xf32> to vector<5x1xf32>
    %279 = vector.extract_strided_slice %237 {offsets = [8, 0], sizes = [1, 256], strides = [1, 1]} : vector<20x256xf32> to vector<1x256xf32>
    %280 = vector.broadcast %278 : vector<5x1xf32> to vector<5x256xf32>
    %281 = vector.broadcast %279 : vector<1x256xf32> to vector<5x256xf32>
    %282 = arith.mulf %280, %281 : vector<5x256xf32>
    %283 = vector.extract_strided_slice %7 {offsets = [0, 9], sizes = [5, 1], strides = [1, 1]} : vector<5x20xf32> to vector<5x1xf32>
    %284 = vector.extract_strided_slice %237 {offsets = [9, 0], sizes = [1, 256], strides = [1, 1]} : vector<20x256xf32> to vector<1x256xf32>
    %285 = vector.broadcast %283 : vector<5x1xf32> to vector<5x256xf32>
    %286 = vector.broadcast %284 : vector<1x256xf32> to vector<5x256xf32>
    %287 = arith.mulf %285, %286 : vector<5x256xf32>
    %288 = vector.extract_strided_slice %7 {offsets = [0, 10], sizes = [5, 1], strides = [1, 1]} : vector<5x20xf32> to vector<5x1xf32>
    %289 = vector.extract_strided_slice %237 {offsets = [10, 0], sizes = [1, 256], strides = [1, 1]} : vector<20x256xf32> to vector<1x256xf32>
    %290 = vector.broadcast %288 : vector<5x1xf32> to vector<5x256xf32>
    %291 = vector.broadcast %289 : vector<1x256xf32> to vector<5x256xf32>
    %292 = arith.mulf %290, %291 : vector<5x256xf32>
    %293 = vector.extract_strided_slice %7 {offsets = [0, 11], sizes = [5, 1], strides = [1, 1]} : vector<5x20xf32> to vector<5x1xf32>
    %294 = vector.extract_strided_slice %237 {offsets = [11, 0], sizes = [1, 256], strides = [1, 1]} : vector<20x256xf32> to vector<1x256xf32>
    %295 = vector.broadcast %293 : vector<5x1xf32> to vector<5x256xf32>
    %296 = vector.broadcast %294 : vector<1x256xf32> to vector<5x256xf32>
    %297 = arith.mulf %295, %296 : vector<5x256xf32>
    %298 = vector.extract_strided_slice %7 {offsets = [0, 12], sizes = [5, 1], strides = [1, 1]} : vector<5x20xf32> to vector<5x1xf32>
    %299 = vector.extract_strided_slice %237 {offsets = [12, 0], sizes = [1, 256], strides = [1, 1]} : vector<20x256xf32> to vector<1x256xf32>
    %300 = vector.broadcast %298 : vector<5x1xf32> to vector<5x256xf32>
    %301 = vector.broadcast %299 : vector<1x256xf32> to vector<5x256xf32>
    %302 = arith.mulf %300, %301 : vector<5x256xf32>
    %303 = vector.extract_strided_slice %7 {offsets = [0, 13], sizes = [5, 1], strides = [1, 1]} : vector<5x20xf32> to vector<5x1xf32>
    %304 = vector.extract_strided_slice %237 {offsets = [13, 0], sizes = [1, 256], strides = [1, 1]} : vector<20x256xf32> to vector<1x256xf32>
    %305 = vector.broadcast %303 : vector<5x1xf32> to vector<5x256xf32>
    %306 = vector.broadcast %304 : vector<1x256xf32> to vector<5x256xf32>
    %307 = arith.mulf %305, %306 : vector<5x256xf32>
    %308 = vector.extract_strided_slice %7 {offsets = [0, 14], sizes = [5, 1], strides = [1, 1]} : vector<5x20xf32> to vector<5x1xf32>
    %309 = vector.extract_strided_slice %237 {offsets = [14, 0], sizes = [1, 256], strides = [1, 1]} : vector<20x256xf32> to vector<1x256xf32>
    %310 = vector.broadcast %308 : vector<5x1xf32> to vector<5x256xf32>
    %311 = vector.broadcast %309 : vector<1x256xf32> to vector<5x256xf32>
    %312 = arith.mulf %310, %311 : vector<5x256xf32>
    %313 = vector.extract_strided_slice %7 {offsets = [0, 15], sizes = [5, 1], strides = [1, 1]} : vector<5x20xf32> to vector<5x1xf32>
    %314 = vector.extract_strided_slice %237 {offsets = [15, 0], sizes = [1, 256], strides = [1, 1]} : vector<20x256xf32> to vector<1x256xf32>
    %315 = vector.broadcast %313 : vector<5x1xf32> to vector<5x256xf32>
    %316 = vector.broadcast %314 : vector<1x256xf32> to vector<5x256xf32>
    %317 = arith.mulf %315, %316 : vector<5x256xf32>
    %318 = vector.extract_strided_slice %7 {offsets = [0, 16], sizes = [5, 1], strides = [1, 1]} : vector<5x20xf32> to vector<5x1xf32>
    %319 = vector.extract_strided_slice %237 {offsets = [16, 0], sizes = [1, 256], strides = [1, 1]} : vector<20x256xf32> to vector<1x256xf32>
    %320 = vector.broadcast %318 : vector<5x1xf32> to vector<5x256xf32>
    %321 = vector.broadcast %319 : vector<1x256xf32> to vector<5x256xf32>
    %322 = arith.mulf %320, %321 : vector<5x256xf32>
    %323 = vector.extract_strided_slice %7 {offsets = [0, 17], sizes = [5, 1], strides = [1, 1]} : vector<5x20xf32> to vector<5x1xf32>
    %324 = vector.extract_strided_slice %237 {offsets = [17, 0], sizes = [1, 256], strides = [1, 1]} : vector<20x256xf32> to vector<1x256xf32>
    %325 = vector.broadcast %323 : vector<5x1xf32> to vector<5x256xf32>
    %326 = vector.broadcast %324 : vector<1x256xf32> to vector<5x256xf32>
    %327 = arith.mulf %325, %326 : vector<5x256xf32>
    %328 = vector.extract_strided_slice %7 {offsets = [0, 18], sizes = [5, 1], strides = [1, 1]} : vector<5x20xf32> to vector<5x1xf32>
    %329 = vector.extract_strided_slice %237 {offsets = [18, 0], sizes = [1, 256], strides = [1, 1]} : vector<20x256xf32> to vector<1x256xf32>
    %330 = vector.broadcast %328 : vector<5x1xf32> to vector<5x256xf32>
    %331 = vector.broadcast %329 : vector<1x256xf32> to vector<5x256xf32>
    %332 = arith.mulf %330, %331 : vector<5x256xf32>
    %333 = vector.extract_strided_slice %7 {offsets = [0, 19], sizes = [5, 1], strides = [1, 1]} : vector<5x20xf32> to vector<5x1xf32>
    %334 = vector.extract_strided_slice %237 {offsets = [19, 0], sizes = [1, 256], strides = [1, 1]} : vector<20x256xf32> to vector<1x256xf32>
    %335 = vector.broadcast %333 : vector<5x1xf32> to vector<5x256xf32>
    %336 = vector.broadcast %334 : vector<1x256xf32> to vector<5x256xf32>
    %337 = arith.mulf %335, %336 : vector<5x256xf32>
    %338 = arith.addf %242, %247 : vector<5x256xf32>
    %339 = arith.addf %252, %257 : vector<5x256xf32>
    %340 = arith.addf %262, %267 : vector<5x256xf32>
    %341 = arith.addf %272, %277 : vector<5x256xf32>
    %342 = arith.addf %282, %287 : vector<5x256xf32>
    %343 = arith.addf %292, %297 : vector<5x256xf32>
    %344 = arith.addf %302, %307 : vector<5x256xf32>
    %345 = arith.addf %312, %317 : vector<5x256xf32>
    %346 = arith.addf %322, %327 : vector<5x256xf32>
    %347 = arith.addf %332, %337 : vector<5x256xf32>
    %348 = arith.addf %338, %339 : vector<5x256xf32>
    %349 = arith.addf %340, %341 : vector<5x256xf32>
    %350 = arith.addf %342, %343 : vector<5x256xf32>
    %351 = arith.addf %344, %345 : vector<5x256xf32>
    %352 = arith.addf %346, %347 : vector<5x256xf32>
    %353 = arith.addf %348, %349 : vector<5x256xf32>
    %354 = arith.addf %350, %351 : vector<5x256xf32>
    %355 = arith.addf %353, %354 : vector<5x256xf32>
    %356 = arith.addf %355, %352 : vector<5x256xf32>
    %357 = vector.broadcast %9 : vector<5x1xf32> to vector<5x256xf32>
    %358 = arith.addf %356, %357 : vector<5x256xf32>
    %359 = arith.addf %358, %0 : vector<5x256xf32>
    %c0_29 = arith.constant 0 : index
    %c0_30 = arith.constant 0 : index
    %360 = vector.load %arg9[%c0_29, %c0_30] : memref<5x256xf32, #tpu.memory_space<vmem>>, vector<5x256xf32>
    tpu.vector_store %arg9[%c0_29, %c0_30], %359 {strides = array<i32>} : memref<5x256xf32, #tpu.memory_space<vmem>>, vector<5x256xf32>,
    return
  }
  func.func @transform_0(%arg0: i32) -> (i32, i32) {
    %c0_i32 = arith.constant 0 : i32
    %c0_i32_0 = arith.constant 0 : i32
    return %c0_i32, %arg0 : i32, i32
  }
  func.func @transform_1(%arg0: i32) -> (i32, i32) {
    %c0_i32 = arith.constant 0 : i32
    %c0_i32_0 = arith.constant 0 : i32
    %c0_i32_1 = arith.constant 0 : i32
    return %c0_i32, %c0_i32_0 : i32, i32
  }
  func.func @transform_2(%arg0: i32) -> (i32, i32) {
    %c0_i32 = arith.constant 0 : i32
    %c0_i32_0 = arith.constant 0 : i32
    %c0_i32_1 = arith.constant 0 : i32
    return %c0_i32, %c0_i32_0 : i32, i32
  }
  func.func @transform_3(%arg0: i32) -> (i32, i32) {
    %c0_i32 = arith.constant 0 : i32
    %c0_i32_0 = arith.constant 0 : i32
    %c0_i32_1 = arith.constant 0 : i32
    return %c0_i32, %c0_i32_0 : i32, i32
  }
  func.func @transform_4(%arg0: i32) -> (i32, i32) {
    %c0_i32 = arith.constant 0 : i32
    %c0_i32_0 = arith.constant 0 : i32
    %c0_i32_1 = arith.constant 0 : i32
    return %c0_i32, %c0_i32_0 : i32, i32
  }
  func.func @transform_5(%arg0: i32) -> (i32, i32) {
    %c0_i32 = arith.constant 0 : i32
    %c0_i32_0 = arith.constant 0 : i32
    %c0_i32_1 = arith.constant 0 : i32
    return %c0_i32, %c0_i32_0 : i32, i32
  }
  func.func @transform_6(%arg0: i32) -> (i32, i32) {
    %c0_i32 = arith.constant 0 : i32
    %c0_i32_0 = arith.constant 0 : i32
    %c0_i32_1 = arith.constant 0 : i32
    return %c0_i32, %c0_i32_0 : i32, i32
  }
  func.func @transform_7(%arg0: i32) -> (i32, i32) {
    %c0_i32 = arith.constant 0 : i32
    %c0_i32_0 = arith.constant 0 : i32
    %c0_i32_1 = arith.constant 0 : i32
    return %c0_i32, %c0_i32_0 : i32, i32
  }
  func.func @transform_8(%arg0: i32) -> (i32, i32) {
    %c0_i32 = arith.constant 0 : i32
    %c0_i32_0 = arith.constant 0 : i32
    return %c0_i32, %arg0 : i32, i32
  }
}

</mosaic_0001>

<bundles_post_ra>
// kernel: tile.9
= control target key start
LH: loop header
LB: loop body
LE: loop exit
PB: predicated region body
PF: predicated region fallthrough
CT: control target
= control target key end

     0   :  { %vm27_vm0 = vcmask 1043458   ;;  %s83_s6 = smov 3  ;;  %s86_s9 = smov 12  ;;  %vm32_vm1 = vcmask 1045508   ;;  %vm37_vm2 = vcmask 1047558   ;;  %vm4_vm3 = vcmask 1047556   ;;  %s619_s0 = inlined_call_operand.vmem [shape: f32[6,16,16], index: 0, kind: input, shape index: {}]   ;;  %s620_s1 = inlined_call_operand.vmem [shape: f32[6,256], index: 1, kind: output, shape index: {}]  }
   0x1   :  { %v299_v0 = vld [vmem:[%s619_s0 + $0x2e] ss:$16 sm:%s83_s6]   ;;  %s46_s12 = smov 3  ;;  %s49_s13 = smov 12  ;;  %vm6_vm4 = vcmask 130048   ;;  %vm41_vm5 = vcmask 1048448  }
   0x2   :  { %v300_v1 = vld [vmem:[%s619_s0 + $0x2e] ss:$16 sm:%s86_s9]   ;;  %v291_v3 = vld [vmem:[%s619_s0 + $0x2f] ss:$16 sm:%s46_s12]   ;;  %s59_s18 = smov 3  ;;  %s62_s19 = smov 12 }
   0x3   :  { %v89_v2 = vsel %vm27_vm0, %v300_v1, %v299_v0  ;;  %v292_v4 = vld [vmem:[%s619_s0 + $0x2f] ss:$16 sm:%s49_s13]   ;;  %s349_s20 = smov 96   ;;  %v294_v6 = vld [vmem:[%s619_s0 + $0x6] ss:$16 sm:%s59_s18]   ;;  %s67_s23 = smov 48 }
   0x4   :  { %90 = vrot.lane.b32.xlu1 %v89_v2, %s349_s20  ;;  %v52_v5 = vsel %vm27_vm0, %v292_v4, %v291_v3  ;;  %s72_s24 = smov 192  ;;  %s350_s25 = smov 112   ;;  %v295_v7 = vld [vmem:[%s619_s0 + $0x6] ss:$16 sm:%s62_s19]   ;;  %vm78_vm6 = vcmask 917248   ;;  %vm115_vm7 = vcmask 786048  }
   0x5   :  { %53 = vrot.lane.b32.xlu0 %v52_v5, %s350_s25  ;;  %s22_s28 = smov 3  ;;  %s25_s29 = smov 12  ;;  %v65_v8 = vsel %vm27_vm0, %v295_v7, %v294_v6  ;;  %v296_v9 = vld [vmem:[%s619_s0 + $0x6] ss:$16 sm:%s67_s23]   ;;  %vm152_vm8 = vcmask 654848   ;;  %vm189_vm9 = vcmask 523648  }
   0x6   :  { %v297_v10 = vld [vmem:[%s619_s0 - $0x52] ss:$16 sm:%s72_s24]   ;;  %s30_s5 = smov 48  ;;  %s35_s6 = smov 192  ;;  %v70_v11 = vsel %vm32_vm1, %v296_v9, %v65_v8  ;;  %v286_v12 = vld [vmem:[%s619_s0 + $0x7] ss:$16 sm:%s22_s28]  }
   0x7   :  { %v287_v13 = vld [vmem:[%s619_s0 + $0x7] ss:$16 sm:%s25_s29]   ;;  %s120_s11 = smov 3  ;;  %v75_v14 = vsel %vm37_vm2, %v297_v10, %v70_v11  ;;  %v289_v17 = vld [vmem:[%s619_s0 - $0x51] ss:$16 sm:%s35_s6]   ;;  %s123_s16 = smov 12 }
   0x8   :  { %v28_v15 = vsel %vm27_vm0, %v287_v13, %v286_v12  ;;  %v288_v16 = vld [vmem:[%s619_s0 + $0x7] ss:$16 sm:%s30_s5]   ;;  %s96_s17 = smov 3  ;;  %76 = vrot.lane.b32.xlu1 %v75_v14, %s349_s20  ;;  %s99_s20 = smov 12  ;;  %vm226_vm10 = vcmask 392448   ;;  %vm263_vm11 = vcmask 261248  }
   0x9   :  { %v33_v18 = vsel %vm32_vm1, %v288_v16, %v28_v15  ;;  %v307_v19 = vld [vmem:[%s619_s0 + $0x2d] ss:$16 sm:%s120_s11]   ;;  %s104_s21 = smov 48  ;;  %v302_v22 = vld [vmem:[%s619_s0 + $0x5] ss:$16 sm:%s96_s17]   ;;  %s109_s27 = smov 192 }
   0xa   :  { %v38_v20 = vsel %vm37_vm2, %v289_v17, %v33_v18  ;;  %v308_v21 = vld [vmem:[%s619_s0 + $0x2d] ss:$16 sm:%s123_s16]   ;;  %v303_v24 = vld [vmem:[%s619_s0 + $0x5] ss:$16 sm:%s99_s20]   ;;  %s157_s29 = smov 3  ;;  %s160_s30 = smov 12 }
   0xb   :  { %39 = vrot.lane.b32.xlu0 %v38_v20, %s350_s25  ;;  %v126_v23 = vsel %vm27_vm0, %v308_v21, %v307_v19  ;;  %v102_v25 = vsel %vm27_vm0, %v303_v24, %v302_v22  ;;  %v304_v26 = vld [vmem:[%s619_s0 + $0x5] ss:$16 sm:%s104_s21]   ;;  %s133_s6 = smov 3  ;;  %s136_s7 = smov 12 }
   0xc   :  { %v305_v27 = vld [vmem:[%s619_s0 - $0x53] ss:$16 sm:%s109_s27]   ;;  %s351_s8 = smov 80   ;;  %v107_v28 = vsel %vm32_vm1, %v304_v26, %v102_v25  ;;  %v315_v29 = vld [vmem:[%s619_s0 + $0x2c] ss:$16 sm:%s157_s29]   ;;  %s141_s11 = smov 48 }
   0xd   :  { %127 = vrot.lane.b32.xlu1 %v126_v23, %s351_s8  ;;  %s146_s12 = smov 192  ;;  %v112_v30 = vsel %vm37_vm2, %v305_v27, %v107_v28  ;;  %v316_v31 = vld [vmem:[%s619_s0 + $0x2c] ss:$16 sm:%s160_s30]   ;;  %s194_s17 = smov 3 }
   0xe   :  { %v310_v32 = vld [vmem:[%s619_s0 + $0x4] ss:$16 sm:%s133_s6]   ;;  %v163_v33 = vsel %vm27_vm0, %v316_v31, %v315_v29  ;;  %s197_s20 = smov 12  ;;  %s170_s21 = smov 3  ;;  %v313_v37 = vld [vmem:[%s619_s0 - $0x54] ss:$16 sm:%s146_s12]  }
   0xf   :  { %113 = vrot.lane.b32.xlu0 %v112_v30, %s351_s8  ;;  %v311_v34 = vld [vmem:[%s619_s0 + $0x4] ss:$16 sm:%s136_s7]   ;;  %s173_s27 = smov 12  ;;  %s352_s25 = smov 64  }
  0x10   :  { %v139_v35 = vsel %vm27_vm0, %v311_v34, %v310_v32  ;;  %v312_v36 = vld [vmem:[%s619_s0 + $0x4] ss:$16 sm:%s141_s11]   ;;  %v323_v39 = vld [vmem:[%s619_s0 + $0x2b] ss:$16 sm:%s194_s17]   ;;  %s178_s30 = smov 48  ;;  %s183_s2 = smov 192 }
  0x11   :  { %164 = vrot.lane.b32.xlu1 %v163_v33, %s352_s25  ;;  %v144_v38 = vsel %vm32_vm1, %v312_v36, %v139_v35  ;;  %v324_v41 = vld [vmem:[%s619_s0 + $0x2b] ss:$16 sm:%s197_s20]   ;;  %s231_s7 = smov 3  ;;  %s234_s10 = smov 12 }
  0x12   :  { %v149_v40 = vsel %vm37_vm2, %v313_v37, %v144_v38  ;;  %v318_v42 = vld [vmem:[%s619_s0 + $0x3] ss:$16 sm:%s170_s21]   ;;  %v200_v43 = vsel %vm27_vm0, %v324_v41, %v323_v39  ;;  %s207_s11 = smov 3  ;;  %v321_v47 = vld [vmem:[%s619_s0 - $0x55] ss:$16 sm:%s183_s2]   ;;  %s210_s16 = smov 12 }
  0x13   :  { %150 = vrot.lane.b32.xlu0 %v149_v40, %s352_s25  ;;  %v319_v44 = vld [vmem:[%s619_s0 + $0x3] ss:$16 sm:%s173_s27]   ;;  %s353_s17 = smov 48   ;;  %s215_s20 = smov 48 }
  0x14   :  { %v176_v45 = vsel %vm27_vm0, %v319_v44, %v318_v42  ;;  %v320_v46 = vld [vmem:[%s619_s0 + $0x3] ss:$16 sm:%s178_s30]   ;;  %v331_v49 = vld [vmem:[%s619_s0 + $0x2a] ss:$16 sm:%s231_s7]   ;;  %s220_s21 = smov 192  ;;  %s268_s27 = smov 3 }
  0x15   :  { %201 = vrot.lane.b32.xlu1 %v200_v43, %s353_s17  ;;  %v181_v48 = vsel %vm32_vm1, %v320_v46, %v176_v45  ;;  %v332_v51 = vld [vmem:[%s619_s0 + $0x2a] ss:$16 sm:%s234_s10]   ;;  %s271_s29 = smov 12  ;;  %s244_s30 = smov 3 }
  0x16   :  { %v186_v50 = vsel %vm37_vm2, %v321_v47, %v181_v48  ;;  %v326_v52 = vld [vmem:[%s619_s0 + $0x2] ss:$16 sm:%s207_s11]   ;;  %v237_v53 = vsel %vm27_vm0, %v332_v51, %v331_v49  ;;  %v329_v57 = vld [vmem:[%s619_s0 - $0x56] ss:$16 sm:%s220_s21]   ;;  %s247_s6 = smov 12  ;;  %s252_s7 = smov 48 }
  0x17   :  { %187 = vrot.lane.b32.xlu0 %v186_v50, %s353_s17  ;;  %v327_v54 = vld [vmem:[%s619_s0 + $0x2] ss:$16 sm:%s210_s16]   ;;  %s354_s8 = smov 32   ;;  %s257_s11 = smov 192 }
  0x18   :  { %v213_v55 = vsel %vm27_vm0, %v327_v54, %v326_v52  ;;  %v328_v56 = vld [vmem:[%s619_s0 + $0x2] ss:$16 sm:%s215_s20]   ;;  %v339_v59 = vld [vmem:[%s619_s0 + $0x29] ss:$16 sm:%s268_s27]   ;;  %s355_s27 = smov 16  }
  0x19   :  { %238 = vrot.lane.b32.xlu1 %v237_v53, %s354_s8  ;;  %v218_v58 = vsel %vm32_vm1, %v328_v56, %v213_v55  ;;  %v2_v60 = vld [vmem:[%s619_s0] ss:$8 sm:$0xf]   ;;  %v340_v62 = vld [vmem:[%s619_s0 + $0x29] ss:$16 sm:%s271_s29]  }
  0x1a   :  { %v223_v61 = vsel %vm37_vm2, %v329_v57, %v218_v58  ;;  %v334_v63 = vld [vmem:[%s619_s0 + $0x1] ss:$16 sm:%s244_s30]   ;;  %v274_v0 = vsel %vm27_vm0, %v340_v62, %v339_v59  ;;  %v3_v2 = vld [vmem:[%s619_s0] ss:$8 sm:$0xf0]  }
  0x1b   :  { %224 = vrot.lane.b32.xlu0 %v223_v61, %s354_s8  ;;  %v335_v1 = vld [vmem:[%s619_s0 + $0x1] ss:$16 sm:%s247_s6]   ;;  %v5_v6 = vsel %vm4_vm3, %v3_v2, %v2_v60  ;;  %v283_v8 = vld [vmem:[%s619_s0 + $0x40] ss:$8 sm:$0xf]  }
  0x1c   :  { %v250_v3 = vsel %vm27_vm0, %v335_v1, %v334_v63  ;;  %v336_v4 = vld [vmem:[%s619_s0 + $0x1] ss:$16 sm:%s252_s7]   ;;  %v337_v5 = vld [vmem:[%s619_s0 - $0x57] ss:$16 sm:%s257_s11]  }
  0x1d   :  { %275 = vrot.lane.b32.xlu1 %v274_v0, %s355_s27  ;;  %v255_v7 = vsel %vm32_vm1, %v336_v4, %v250_v3  ;;  %281 = vst.msk [vmem:[%s620_s1 - $0x1e] ss:$8 sm:$0x30] %vm6_vm4, %v5_v6   ;;  %282 = vst.msk [vmem:[%s620_s1 - $0x2d] ss:$8 sm:$0xc0] %vm6_vm4, %v5_v6  }
  0x1e   :  { %7 = vst.msk [vmem:[%s620_s1] ss:$8 sm:$0x3] %vm6_vm4, %v5_v6   ;;  %280 = vst.msk [vmem:[%s620_s1 - $0xf] ss:$8 sm:$0xc] %vm6_vm4, %v5_v6   ;;  %v260_v9 = vsel %vm37_vm2, %v337_v5, %v255_v7 }
  0x1f   :  { %284 = vst.msk [vmem:[%s620_s1 + $0x4] ss:$8 sm:$0x3] %vm6_vm4, %v283_v8   ;;  %285 = vst.msk [vmem:[%s620_s1 - $0xb] ss:$8 sm:$0xc] %vm6_vm4, %v283_v8   ;;  %261 = vrot.lane.b32.xlu0 %v260_v9, %s355_s27 }
  0x76   :  { %v91_v10 = vpop.permute.xlu1 %90  }
  0x77   :  { %v54_v11 = vpop.permute.xlu0 %53  }
  0x78   :  { %293 = vst.msk [vmem:[%s620_s1 + $0xa] sm:$0xf] %vm41_vm5, %v54_v11  }
  0x79   :  { %301 = vst.msk [vmem:[%s620_s1 + $0xa] sm:$0xf] %vm78_vm6, %v91_v10  }
  0x7a   :  { %v77_v12 = vpop.permute.xlu1 %76  }
  0x7d   :  { %v40_v13 = vpop.permute.xlu0 %39  }
  0x7e   :  { %290 = vst.msk [vmem:[%s620_s1 + $0x2] sm:$0xc0] %vm41_vm5, %v40_v13   ;;  %42 = vst.msk [vmem:[%s620_s1] sm:$0x3f] %vm41_vm5, %v40_v13  }
  0x7f   :  { %298 = vst.msk [vmem:[%s620_s1 + $0x2] sm:$0xc0] %vm78_vm6, %v77_v12   ;;  %v128_v14 = vpop.permute.xlu1 %127   ;;  %79 = vst.msk [vmem:[%s620_s1] sm:$0x3f] %vm78_vm6, %v77_v12  }
  0x80   :  { %309 = vst.msk [vmem:[%s620_s1 + $0xa] sm:$0xf] %vm115_vm7, %v128_v14  }
  0x81   :  { %v114_v15 = vpop.permute.xlu0 %113  }
  0x82   :  { %116 = vst.msk [vmem:[%s620_s1] sm:$0x3f] %vm115_vm7, %v114_v15   ;;  %306 = vst.msk [vmem:[%s620_s1 + $0x2] sm:$0xc0] %vm115_vm7, %v114_v15  }
  0x83   :  { %v165_v16 = vpop.permute.xlu1 %164  }
  0x84   :  { %317 = vst.msk [vmem:[%s620_s1 + $0xa] sm:$0xf] %vm152_vm8, %v165_v16  }
  0x85   :  { %v151_v17 = vpop.permute.xlu0 %150  }
  0x86   :  { %153 = vst.msk [vmem:[%s620_s1] sm:$0x3f] %vm152_vm8, %v151_v17   ;;  %314 = vst.msk [vmem:[%s620_s1 + $0x2] sm:$0xc0] %vm152_vm8, %v151_v17  }
  0x87   :  { %v202_v18 = vpop.permute.xlu1 %201  }
  0x88   :  { %325 = vst.msk [vmem:[%s620_s1 + $0xa] sm:$0xf] %vm189_vm9, %v202_v18  }
  0x89   :  { %v188_v19 = vpop.permute.xlu0 %187  }
  0x8a   :  { %190 = vst.msk [vmem:[%s620_s1] sm:$0x3f] %vm189_vm9, %v188_v19   ;;  %322 = vst.msk [vmem:[%s620_s1 + $0x2] sm:$0xc0] %vm189_vm9, %v188_v19  }
  0x8b   :  { %v239_v20 = vpop.permute.xlu1 %238  }
  0x8c   :  { %333 = vst.msk [vmem:[%s620_s1 + $0xa] sm:$0xf] %vm226_vm10, %v239_v20  }
  0x8d   :  { %v225_v21 = vpop.permute.xlu0 %224  }
  0x8e   :  { %227 = vst.msk [vmem:[%s620_s1] sm:$0x3f] %vm226_vm10, %v225_v21   ;;  %330 = vst.msk [vmem:[%s620_s1 + $0x2] sm:$0xc0] %vm226_vm10, %v225_v21  }
  0x8f   :  { %v276_v22 = vpop.permute.xlu1 %275  }
  0x90   :  { %341 = vst.msk [vmem:[%s620_s1 + $0xa] sm:$0xf] %vm263_vm11, %v276_v22  }
  0x91   :  { %v262_v23 = vpop.permute.xlu0 %261  }
  0x92   :  { %264 = vst.msk [vmem:[%s620_s1] sm:$0x3f] %vm263_vm11, %v262_v23   ;;  %338 = vst.msk [vmem:[%s620_s1 + $0x2] sm:$0xc0] %vm263_vm11, %v262_v23  }

// kernel: residual_block.1
= control target key start
LH: loop header
LB: loop body
LE: loop exit
PB: predicated region body
PF: predicated region fallthrough
CT: control target
= control target key end

     0   :  { %s7943_s27 = smov 0   ;;  %s11127_s0 = inlined_call_operand.vmem [shape: f32[5,512], index: 0, kind: input, shape index: {}, may-alias: {0,8}]   ;;  %s11128_s1 = inlined_call_operand.vmem [shape: f32[6,256], index: 1, kind: input, shape index: {}]   ;;  %s11129_s2 = inlined_call_operand.vmem [shape: f32[256,16], index: 2, kind: input, shape index: {}]   ;;  %s11130_s3 = inlined_call_operand.vmem [shape: f32[16,256], index: 3, kind: input, shape index: {}]   ;;  %s11131_s4 = inlined_call_operand.vmem [shape: f32[25,1], index: 4, kind: input, shape index: {}]   ;;  %s11132_s5 = inlined_call_operand.vmem [shape: f32[20,5], index: 5, kind: input, shape index: {}]   ;;  %s11133_s6 = inlined_call_operand.vmem [shape: f32[20,20], index: 6, kind: input, shape index: {}]   ;;  %s11134_s7 = inlined_call_operand.vmem [shape: f32[5,20], index: 7, kind: input, shape index: {}]   ;;  %s11135_s8 = inlined_call_operand.vmem [shape: f32[5,512], index: 8, kind: output, shape index: {}, may-alias: {0,8}]  }
   0x1 LB: > { %s6919_s28 = sadd.s32 4294967295, %s7875_s27   ;;  %p6923_p0 = scmp.ge.s32.totalorder %s7875_s27, 1  ;;  %s7875_s27 = sphi %s7943_s27, %s18_s27  }
   0x2   : > { %p263_p1 = scmp.lt.s32.totalorder %s7875_s27, 3 }
   0x4   : > { %p264_p2 = pnand %p6923_p0, %p263_p1 }
   0x6   : > { %267 = sbr.rel (%p264_p2) target bundleno = 1931 (0x78b), region = 52 }
   0xb   : > { %v344_v0 = vld [vmem:[%s11129_s2 + $0xf8] sm:$0xff]  ;;  %v343_v2 = vld [vmem:[%s11129_s2 + $0xf0] sm:$0xff]  ;;  %v342_v7 = vld [vmem:[%s11129_s2 + $0xe8] sm:$0xff]  ;;  %s8155_s29 = sshll.u32 %s6919_s28, 1  ;;  %vm368_vm0 = vcmask 1044480   ;;  %vm1302_vm1 = vcmask 130048  }
   0xc   : > { %v328_v1 = vld [vmem:[%s11129_s2 + $0x78] sm:$0xff]  ;;  %v7960_v3 = vand.u32 4294901760, %v344_v0  ;;  %v7964_v5 = vand.u32 4294901760, %v343_v2  ;;  %v327_v6 = vld [vmem:[%s11129_s2 + $0x70] sm:$0xff]  ;;  %v326_v8 = vld [vmem:[%s11129_s2 + $0x68] sm:$0xff]  ;;  %v7977_v10 = vand.u32 4294901760, %v342_v7 }
   0xd   : > { %v7962_v4 = vand.u32 4294901760, %v328_v1  ;;  %v7975_v9 = vand.u32 4294901760, %v327_v6  ;;  %v7979_v11 = vand.u32 4294901760, %v326_v8  ;;  %v341_v12 = vld [vmem:[%s11129_s2 + $0xe0] sm:$0xff]  ;;  %v7990_v14 = vld [vmem:[%s11129_s2 + $0xd8] sm:$0xff]  ;;  %v8011_v20 = vld [vmem:[%s11129_s2 + $0xd0] sm:$0xff] }
   0xe   : > { %11685 = vst [vmem:[#allocation2_spill] sm:$0xff] %v7960_v3  ;;  %11687 = vst [vmem:[#allocation4_spill] sm:$0xff] %v7964_v5  ;;  %v325_v13 = vld [vmem:[%s11129_s2 + $0x60] sm:$0xff]  ;;  %6930 = vmatprep.subr.mxu0 %v7960_v3  ;;  %v7993_v15 = vand.u32 4294901760, %v341_v12  ;;  %v7998_v17 = vand.u32 4294901760, %v7990_v14  ;;  %v8001_v18 = vsub.f32 %v344_v0, %v7960_v3  ;;  %v8006_v19 = vld [vmem:[%s11129_s2 + $0x58] sm:$0xff]  ;;  %v8029_v25 = vsub.f32 %v343_v2, %v7964_v5 }
   0xf   : > { %11686 = vst [vmem:[#allocation3_spill] sm:$0xff] %v7962_v4  ;;  %11688 = vst [vmem:[#allocation5_spill] sm:$0xff] %v7975_v9  ;;  %v7995_v16 = vand.u32 4294901760, %v325_v13  ;;  %v8016_v21 = vld [vmem:[%s11129_s2 + $0x50] sm:$0xff]  ;;  %6931 = vmatpush3.msra.mxu0 %v7962_v4  ;;  %v8020_v22 = vand.u32 4294901760, %v8006_v19  ;;  %v8023_v23 = vsub.f32 %v328_v1, %v7962_v4  ;;  %v8026_v24 = vand.u32 4294901760, %v8011_v20 }
  0x10   : > { %11689 = vst [vmem:[#allocation6_spill] sm:$0xff] %v7977_v10  ;;  %11690 = vst [vmem:[#allocation7_spill] sm:$0xff] %v7979_v11  ;;  %v8034_v26 = vld [vmem:[%s11129_s2 + $0xc8] sm:$0xff]  ;;  %v8044_v28 = vld [vmem:[%s11129_s2 + $0xc0] sm:$0xff]  ;;  %6932 = vmatprep.subr.mxu0 %v7964_v5  ;;  %v8048_v29 = vand.u32 4294901760, %v8001_v18  ;;  %v8051_v30 = vand.u32 4294901760, %v8016_v21  ;;  %v8054_v31 = vsub.f32 %v327_v6, %v7975_v9  ;;  %v8067_v35 = vsub.f32 %v342_v7, %v7977_v10 }
  0x11   : > { %11691 = vst [vmem:[#allocation8_spill] sm:$0xff] %v7993_v15  ;;  %11692 = vst [vmem:[#allocation9_spill] sm:$0xff] %v7995_v16  ;;  %v8039_v27 = vld [vmem:[%s11129_s2 + $0x48] sm:$0xff]  ;;  %v8057_v32 = vand.u32 4294901760, %v8034_v26  ;;  %6933 = vmatpush3.msra.mxu0 %v7975_v9  ;;  %v8061_v33 = vand.u32 4294901760, %v8023_v23  ;;  %v8064_v34 = vand.u32 4294901760, %v8029_v25  ;;  %v8084_v40 = vsub.f32 %v326_v8, %v7979_v11 }
  0x12   : > { %11693 = vst [vmem:[#allocation10_spill] sm:$0xff] %v7998_v17  ;;  %11694 = vst [vmem:[#allocation11_spill] sm:$0xff] %v8001_v18  ;;  %v8070_v36 = vand.u32 4294901760, %v8039_v27  ;;  %v8075_v37 = vld [vmem:[%s11129_s2 + $0x40] sm:$0xff]  ;;  %6934 = vmatprep.subr.mxu0 %v7977_v10  ;;  %v614_v38 = vsub.f32 %v8001_v18, %v8048_v29  ;;  %v8081_v39 = vand.u32 4294901760, %v8054_v31  ;;  %v8087_v41 = vand.u32 4294901760, %v8044_v28 }
  0x13   : > { %11695 = vst [vmem:[#allocation12_spill] sm:$0xff] %v8020_v22  ;;  %11696 = vst [vmem:[#allocation13_spill] sm:$0xff] %v8023_v23  ;;  %6935 = vmatpush3.msra.mxu0 %v7979_v11  ;;  %v502_v42 = vsub.f32 %v8023_v23, %v8061_v33  ;;  %v621_v43 = vsub.f32 %v8029_v25, %v8064_v34  ;;  %v8095_v44 = vand.u32 4294901760, %v8067_v35  ;;  %v8103_v46 = vld [vmem:[%s11129_s2 + $0xb8] sm:$0xff]  ;;  %v8111_v49 = vand.u32 4294901760, %v8084_v40  ;;  %v8134_v56 = vld [vmem:[%s11129_s2 + $0xb0] sm:$0xff] }
  0x14   : > { %11697 = vst [vmem:[#allocation14_spill] sm:$0xff] %v8026_v24  ;;  %11698 = vst [vmem:[#allocation15_spill] sm:$0xff] %v8029_v25  ;;  %v8098_v45 = vsub.f32 %v341_v12, %v7993_v15  ;;  %6936 = vmatprep.subr.mxu0 %v7993_v15  ;;  %v8106_v47 = vand.u32 4294901760, %v614_v38  ;;  %v509_v48 = vsub.f32 %v8054_v31, %v8081_v39  ;;  %v8114_v50 = vand.u32 4294901760, %v8075_v37  ;;  %v8119_v51 = vld [vmem:[%s11129_s2 + $0x38] sm:$0xff]  ;;  %v8151_v61 = vld [vmem:[%s11129_s2 + $0x30] sm:$0xff] }
  0x15   : > { %11699 = vst [vmem:[#allocation16_spill] sm:$0xff] %v8048_v29  ;;  %11700 = vst [vmem:[#allocation17_spill] sm:$0xff] %v8051_v30  ;;  %6937 = vmatpush3.msra.mxu0 %v7995_v16  ;;  %v8122_v52 = vand.u32 4294901760, %v502_v42  ;;  %v8124_v53 = vand.u32 4294901760, %v621_v43  ;;  %v628_v54 = vsub.f32 %v8067_v35, %v8095_v44  ;;  %v516_v58 = vsub.f32 %v8084_v40, %v8111_v49  ;;  %v8173_v2 = vld [vmem:[%s11129_s2 + $0xa8] sm:$0xff]  ;;  %p298_p3 = scmp.lt.s32.totalorder %s8155_s29, 3 }
  0x16   : > { %11701 = vst [vmem:[#allocation18_spill] sm:$0xff] %v8054_v31  ;;  %11702 = vst [vmem:[#allocation19_spill] sm:$0xff] %v8057_v32  ;;  %v8129_v55 = vand.u32 4294901760, %v8098_v45  ;;  %6938 = vmatprep.subr.mxu0 %v7998_v17  ;;  %6968 = vmatprep.subr.mxu1 %v8106_v47  ;;  %v8138_v57 = vand.u32 4294901760, %v509_v48  ;;  %v8143_v59 = vsub.f32 %v325_v13, %v7995_v16  ;;  %v8146_v60 = vand.u32 4294901760, %v8103_v46  ;;  %v8192_v13 = vld [vmem:[%s11129_s2 + $0x28] sm:$0xff] }
  0x17   : > { %11703 = vst [vmem:[#allocation20_spill] sm:$0xff] %v8061_v33  ;;  %11704 = vst [vmem:[#allocation21_spill] sm:$0xff] %v8064_v34  ;;  %6939 = vmatpush3.msra.mxu0 %v8020_v22  ;;  %6969 = vmatpush3.msra.mxu1 %v8122_v52  ;;  %v8159_v62 = vand.u32 4294901760, %v628_v54  ;;  %v8165_v0 = vsub.f32 %v7990_v14, %v7998_v17  ;;  %v8168_v1 = vand.u32 4294901760, %v8119_v51  ;;  %v8177_v6 = vand.u32 4294901760, %v516_v58  ;;  %v8226_v58 = vld [vmem:[%s11129_s2 + $0xa0] sm:$0xff] }
  0x18   : > { %11705 = vst [vmem:[#allocation22_spill] sm:$0xff] %v8067_v35  ;;  %11706 = vst [vmem:[#allocation23_spill] sm:$0xff] %v8070_v36  ;;  %v635_v63 = vsub.f32 %v8098_v45, %v8129_v55  ;;  %6940 = vmatprep.subr.mxu0 %v8026_v24  ;;  %6970 = vmatprep.subr.mxu1 %v8124_v53  ;;  %v8180_v7 = vand.u32 4294901760, %v8143_v59  ;;  %v8184_v8 = vsub.f32 %v8006_v19, %v8020_v22  ;;  %s12559_s29 = smov (!%p298_p3, %s8155_s29), 3  ;;  %v8351_v33 = vld [vmem:[%s11129_s2 + $0x88] sm:$0xff]  ;;  %vm1855_vm2 = vcmask 1042432  }
  0x19   : > { %11707 = vst [vmem:[#allocation24_spill] sm:$0xff] %v8081_v39  ;;  %11708 = vst [vmem:[#allocation25_spill] sm:$0xff] %v8084_v40  ;;  %v8187_v12 = vand.u32 4294901760, %v8134_v56  ;;  %6941 = vmatpush3.msra.mxu0 %v8051_v30  ;;  %6971 = vmatpush3.msra.mxu1 %v8138_v57  ;;  %v8199_v38 = vand.u32 4294901760, %v8165_v0  ;;  %v8203_v19 = vsub.f32 %v8011_v20, %v8026_v24  ;;  %v8206_v42 = vand.u32 4294901760, %v8151_v61  ;;  %v8332_v39 = vld [vmem:[%s11129_s2 + $0x10] sm:$0xff] }
  0x1a   : > { %11709 = vst [vmem:[#allocation26_spill] sm:$0xff] %v8087_v41  ;;  %11710 = vst [vmem:[#allocation27_spill] sm:$0xff] %v8095_v44  ;;  %v8196_v14 = vand.u32 4294901760, %v635_v63  ;;  %6942 = vmatprep.subr.mxu0 %v8057_v32  ;;  %6972 = vmatprep.subr.mxu1 %v8159_v62  ;;  %v523_v43 = vsub.f32 %v8143_v59, %v8180_v7  ;;  %v8214_v48 = vand.u32 4294901760, %v8184_v8  ;;  %v8221_v20 = vand.u32 4294901760, %v8173_v2  ;;  %v8315_v44 = vld [vmem:[%s11129_s2 + $0x90] sm:$0xff] }
  0x1b   : > { %11711 = vst [vmem:[#allocation28_spill] sm:$0xff] %v8098_v45  ;;  %11712 = vst [vmem:[#allocation29_spill] sm:$0xff] %v8106_v47  ;;  %v8218_v54 = vsub.f32 %v8016_v21, %v8051_v30  ;;  %6943 = vmatpush3.msra.mxu0 %v8070_v36  ;;  %6973 = vmatpush3.msra.mxu1 %v8177_v6  ;;  %v642_v63 = vsub.f32 %v8165_v0, %v8199_v38  ;;  %s6925_s25 = sshll.u32 %s12559_s29, 3  ;;  %v8365_v29 = vand.u32 4294901760, %v8315_v44  ;;  %vm2078_vm3 = vcmask 1043456  }
  0x1c   : > { %11713 = vst [vmem:[#allocation30_spill] sm:$0xff] %v8111_v49  ;;  %11714 = vst [vmem:[#allocation31_spill] sm:$0xff] %v8114_v50  ;;  %v8237_v21 = vsub.f32 %v8034_v26, %v8057_v32  ;;  %6944 = vmatprep.subr.mxu0 %v8087_v41  ;;  %6974 = vmatprep.subr.mxu1 %v8196_v14  ;;  %v8253_v47 = vsub.f32 %v8039_v27, %v8070_v36  ;;  %v8258_v26 = vld [vmem:[%s11129_s2 + $0x20] sm:$0xff]  ;;  %v8274_v27 = vld [vmem:[%s11129_s2 + $0x98] sm:$0xff]  ;;  %s8410_s12 = scalar_lea.vmem %s11127_s0, %s6925_s25  ;;  %s307_s13 = scalar_lea.vmem %s11135_s8, %s6925_s25 }
  0x1d   : > { %11715 = vst [vmem:[#allocation32_spill] sm:$0xff] %v8122_v52  ;;  %11716 = vst [vmem:[#allocation33_spill] sm:$0xff] %v8124_v53  ;;  %v530_v53 = vsub.f32 %v8184_v8, %v8214_v48  ;;  %v8249_v52 = vand.u32 4294901760, %v8218_v54  ;;  %6945 = vmatpush3.msra.mxu0 %v8114_v50  ;;  %v8297_v49 = vld [vmem:[%s11129_s2 + $0x18] sm:$0xff] }
  0x1e   : > { %11717 = vst [vmem:[#allocation34_spill] sm:$0xff] %v8129_v55  ;;  %11718 = vst [vmem:[#allocation35_spill] sm:$0xff] %v8138_v57  ;;  %v8240_v57 = vand.u32 4294901760, %v8192_v13  ;;  %6946 = vmatprep.subr.mxu0 %v8146_v60  ;;  %v8292_v55 = vsub.f32 %v8044_v28, %v8087_v41  ;;  %v8310_v28 = vsub.f32 %v8075_v37, %v8114_v50  ;;  %v8327_v37 = vand.u32 4294901760, %v8274_v27 }
  0x1f   : > { %11719 = vst [vmem:[#allocation36_spill] sm:$0xff] %v8143_v59  ;;  %11720 = vst [vmem:[#allocation37_spill] sm:$0xff] %v8146_v60  ;;  %6947 = vmatpush3.msra.mxu0 %v8168_v1  ;;  %v8346_v34 = vand.u32 4294901760, %v8297_v49 }
  0x20   : > { %11721 = vst [vmem:[#allocation38_spill] sm:$0xff] %v8159_v62  ;;  %11722 = vst [vmem:[#allocation39_spill] sm:$0xff] %v8165_v0  ;;  %v8233_v62 = vand.u32 4294901760, %v8203_v19  ;;  %6948 = vmatprep.subr.mxu0 %v8187_v12  ;;  %v8436_v41 = vsub.f32 %v8192_v13, %v8240_v57 }
  0x21   : > { %11723 = vst [vmem:[#allocation40_spill] sm:$0xff] %v8168_v1  ;;  %11724 = vst [vmem:[#allocation41_spill] sm:$0xff] %v8177_v6  ;;  %v8244_v6 = vand.u32 4294901760, %v523_v43  ;;  %6949 = vmatpush3.msra.mxu0 %v8206_v42 }
  0x22   : > { %11725 = vst [vmem:[#allocation42_spill] sm:$0xff] %v8180_v7  ;;  %11726 = vst [vmem:[#allocation43_spill] sm:$0xff] %v8184_v8  ;;  %v649_v43 = vsub.f32 %v8203_v19, %v8233_v62  ;;  %v8288_v7 = vand.u32 4294901760, %v8253_v47  ;;  %6950 = vmatprep.subr.mxu0 %v8221_v20 }
  0x23   : > { %11727 = vst [vmem:[#allocation44_spill] sm:$0xff] %v8187_v12  ;;  %11728 = vst [vmem:[#allocation45_spill] sm:$0xff] %v8196_v14  ;;  %v8261_v14 = vand.u32 4294901760, %v642_v63  ;;  %6975 = vmatpush3.msra.mxu1 %v8244_v6  ;;  %v8283_v63 = vand.u32 4294901760, %v530_v53  ;;  %6951 = vmatpush3.msra.mxu0 %v8240_v57 }
  0x24   : > { %11729 = vst [vmem:[#allocation46_spill] sm:$0xff] %v8199_v38  ;;  %11730 = vst [vmem:[#allocation47_spill] sm:$0xff] %v8203_v19  ;;  %v8269_v38 = vand.u32 4294901760, %v8226_v58  ;;  %v8301_v53 = vand.u32 4294901760, %v649_v43 }
  0x25   : > { %11731 = vst [vmem:[#allocation48_spill] sm:$0xff] %v8206_v42  ;;  %11732 = vst [vmem:[#allocation49_spill] sm:$0xff] %v8214_v48  ;;  %v8266_v48 = vand.u32 4294901760, %v8237_v21  ;;  %6976 = vmatprep.subr.mxu1 %v8261_v14 }
  0x26   : > { %11733 = vst [vmem:[#allocation50_spill] sm:$0xff] %v8218_v54  ;;  %11734 = vst [vmem:[#allocation51_spill] sm:$0xff] %v8221_v20  ;;  %6977 = vmatpush3.msra.mxu1 %v8283_v63  ;;  %6952 = vmatprep.subr.mxu0 %v8269_v38 }
  0x27   : > { %11735 = vst [vmem:[#allocation52_spill] sm:$0xff] %v8233_v62  ;;  %11736 = vst [vmem:[#allocation53_spill] sm:$0xff] %v8237_v21  ;;  %v537_v62 = vsub.f32 %v8218_v54, %v8249_v52  ;;  %6978 = vmatprep.subr.mxu1 %v8301_v53 }
  0x28   : > { %11737 = vst [vmem:[#allocation54_spill] sm:$0xff] %v8240_v57  ;;  %11738 = vst [vmem:[#allocation55_spill] sm:$0xff] %v8244_v6  ;;  %v656_v6 = vsub.f32 %v8237_v21, %v8266_v48  ;;  %v310_v57 = vld [vmem:[%s8410_s12 + $0x8] sm:$0x1f] }
  0x29   : > { %11739 = vst [vmem:[#allocation56_spill] sm:$0xff] %v8249_v52  ;;  %11740 = vst [vmem:[#allocation57_spill] sm:$0xff] %v8253_v47  ;;  %v8306_v52 = vand.u32 4294901760, %v8258_v26  ;;  %v8319_v43 = vand.u32 4294901760, %v537_v62 }
  0x2a   : > { %11741 = vst [vmem:[#allocation58_spill] sm:$0xff] %v8261_v14  ;;  %11742 = vst [vmem:[#allocation59_spill] sm:$0xff] %v8266_v48  ;;  %v544_v14 = vsub.f32 %v8253_v47, %v8288_v7  ;;  %v8324_v48 = vand.u32 4294901760, %v8292_v55  ;;  %v8336_v62 = vand.u32 4294901760, %v656_v6 }
  0x2b   : > { %11743 = vst [vmem:[#allocation60_spill] sm:$0xff] %v8269_v38  ;;  %11744 = vst [vmem:[#allocation61_spill] sm:$0xff] %v8283_v63  ;;  %v8339_v63 = vand.u32 4294901760, %v8310_v28  ;;  %6979 = vmatpush3.msra.mxu1 %v8319_v43  ;;  %6953 = vmatpush3.msra.mxu0 %v8306_v52 }
  0x2c   : > { %11745 = vst [vmem:[#allocation62_spill] sm:$0xff] %v8288_v7  ;;  %11746 = vst [vmem:[#allocation63_spill] sm:$0xff] %v8292_v55  ;;  %v8343_v7 = vsub.f32 %v8103_v46, %v8146_v60  ;;  %v8356_v6 = vand.u32 4294901760, %v544_v14  ;;  %v8362_v46 = vsub.f32 %v8119_v51, %v8168_v1  ;;  %6980 = vmatprep.subr.mxu1 %v8336_v62  ;;  %v8379_v51 = vand.u32 4294901760, %v8332_v39  ;;  %v8384_v1 = vld [vmem:[%s11129_s2 + $0x8] sm:$0xff]  ;;  %v8403_v60 = vld [vmem:[%s11129_s2 + $0x80] sm:$0xff] }
  0x2d   : > { %11747 = vst [vmem:[#allocation64_spill] sm:$0xff] %v8301_v53  ;;  %11748 = vst [vmem:[#allocation65_spill] sm:$0xff] %v8306_v52  ;;  %v663_v53 = vsub.f32 %v8292_v55, %v8324_v48  ;;  %6954 = vmatprep.subr.mxu0 %v8327_v37  ;;  %v8453_v13 = vand.u32 4294901760, %v8403_v60 }
  0x2e   : > { %11749 = vst [vmem:[#allocation66_spill] sm:$0xff] %v8310_v28  ;;  %11750 = vst [vmem:[#allocation67_spill] sm:$0xff] %v8319_v43  ;;  %v551_v43 = vsub.f32 %v8310_v28, %v8339_v63  ;;  %v8372_v14 = vand.u32 4294901760, %v8343_v7  ;;  %6981 = vmatpush3.msra.mxu1 %v8356_v6  ;;  %6955 = vmatpush3.msra.mxu0 %v8346_v34 }
  0x2f   : > { %11751 = vst [vmem:[#allocation68_spill] sm:$0xff] %v8324_v48  ;;  %11752 = vst [vmem:[#allocation69_spill] sm:$0xff] %v8327_v37  ;;  %v8376_v48 = vsub.f32 %v8134_v56, %v8187_v12  ;;  %v8395_v56 = vsub.f32 %v8151_v61, %v8206_v42  ;;  %v8398_v12 = vand.u32 4294901760, %v8351_v33  ;;  %v8422_v42 = vsub.f32 %v8173_v2, %v8221_v20  ;;  %v8441_v2 = vld [vmem:[%s11129_s2] sm:$0xff] }
  0x30   : > { %11753 = vst [vmem:[#allocation70_spill] sm:$0xff] %v8336_v62  ;;  %11754 = vst [vmem:[#allocation71_spill] sm:$0xff] %v8339_v63  ;;  %v8388_v62 = vand.u32 4294901760, %v663_v53  ;;  %v8391_v63 = vand.u32 4294901760, %v8362_v46  ;;  %v8413_v53 = vand.u32 4294901760, %v551_v43  ;;  %v670_v61 = vsub.f32 %v8343_v7, %v8372_v14  ;;  %6956 = vmatprep.subr.mxu0 %v8365_v29 }
  0x31   : > { %11755 = vst [vmem:[#allocation72_spill] sm:$0xff] %v8343_v7  ;;  %11756 = vst [vmem:[#allocation73_spill] sm:$0xff] %v8346_v34  ;;  %v8429_v43 = vand.u32 4294901760, %v8395_v56  ;;  %v8450_v20 = vand.u32 4294901760, %v8422_v42  ;;  %6957 = vmatpush3.msra.mxu0 %v8379_v51  ;;  %v8476_v32 = vand.u32 4294901760, %v8441_v2 }
  0x32   : > { %11757 = vst [vmem:[#allocation74_spill] sm:$0xff] %v8356_v6  ;;  %11758 = vst [vmem:[#allocation75_spill] sm:$0xff] %v8362_v46  ;;  %v8418_v6 = vand.u32 4294901760, %v8376_v48  ;;  %6982 = vmatprep.subr.mxu1 %v8388_v62  ;;  %v558_v50 = vsub.f32 %v8362_v46, %v8391_v63  ;;  %6958 = vmatprep.subr.mxu0 %v8398_v12 }
  0x33   : > { %11759 = vst [vmem:[#allocation76_spill] sm:$0xff] %v8365_v29  ;;  %11760 = vst [vmem:[#allocation77_spill] sm:$0xff] %v8372_v14  ;;  %v8432_v14 = vand.u32 4294901760, %v8384_v1  ;;  %6983 = vmatpush3.msra.mxu1 %v8413_v53 }
  0x34   : > { %11761 = vst [vmem:[#allocation78_spill] sm:$0xff] %v8376_v48  ;;  %11762 = vst [vmem:[#allocation79_spill] sm:$0xff] %v8379_v51  ;;  %v8456_v36 = vand.u32 4294901760, %v558_v50  ;;  %v684_v50 = vsub.f32 %v8422_v42, %v8450_v20 }
  0x35   : > { %11763 = vst [vmem:[#allocation80_spill] sm:$0xff] %v8388_v62  ;;  %11764 = vst [vmem:[#allocation81_spill] sm:$0xff] %v8391_v63  ;;  %v8444_v62 = vand.u32 4294901760, %v670_v61  ;;  %v677_v63 = vsub.f32 %v8376_v48, %v8418_v6  ;;  %v565_v61 = vsub.f32 %v8395_v56, %v8429_v43  ;;  %v309_v48 = vld [vmem:[%s8410_s12] sm:$0x1f]  ;;  %6959 = vmatpush3.msra.mxu0 %v8432_v14 }
  0x36   : > { %11765 = vst [vmem:[#allocation82_spill] sm:$0xff] %v8395_v56  ;;  %11766 = vst [vmem:[#allocation83_spill] sm:$0xff] %v8398_v12  ;;  %6960 = vmatprep.subr.mxu0 %v8453_v13 }
  0x37   : > { %11767 = vst [vmem:[#allocation84_spill] sm:$0xff] %v8413_v53  ;;  %11768 = vst [vmem:[#allocation85_spill] sm:$0xff] %v8418_v6  ;;  %v8462_v53 = vand.u32 4294901760, %v8436_v41  ;;  %v8466_v6 = vsub.f32 %v8226_v58, %v8269_v38  ;;  %6984 = vmatprep.subr.mxu1 %v8444_v62  ;;  %v8470_v46 = vand.u32 4294901760, %v677_v63  ;;  %v8483_v58 = vand.u32 4294901760, %v565_v61  ;;  %6961 = vmatpush3.msra.mxu0 %v8476_v32 }
  0x38   : > { %11769 = vst [vmem:[#allocation86_spill] sm:$0xff] %v8422_v42  ;;  %11770 = vst [vmem:[#allocation87_spill] sm:$0xff] %v8429_v43  ;;  %v8480_v43 = vsub.f32 %v8258_v26, %v8306_v52  ;;  %6985 = vmatpush3.msra.mxu1 %v8456_v36  ;;  %v8492_v38 = vand.u32 4294901760, %v684_v50  ;;  %v8500_v61 = vsub.f32 %v8274_v27, %v8327_v37  ;;  %7006 = vmatprep.subr.mxu0 %v8001_v18 }
  0x39   : > { %11771 = vst [vmem:[#allocation88_spill] sm:$0xff] %v8432_v14  ;;  %11772 = vst [vmem:[#allocation89_spill] sm:$0xff] %v8436_v41  ;;  %v572_v63 = vsub.f32 %v8436_v41, %v8462_v53  ;;  %6986 = vmatprep.subr.mxu1 %v8470_v46  ;;  %v8512_v52 = vsub.f32 %v8297_v49, %v8346_v34 }
  0x3a   : > { %11773 = vst [vmem:[#allocation90_spill] sm:$0xff] %v8444_v62  ;;  %11774 = vst [vmem:[#allocation91_spill] sm:$0xff] %v8450_v20  ;;  %v8489_v62 = vand.u32 4294901760, %v8466_v6  ;;  %v361_v20 = vmul.f32 %v310_v57, %v310_v57  ;;  %v8496_v26 = vand.u32 4294901760, %v8480_v43  ;;  %6987 = vmatpush3.msra.mxu1 %v8483_v58 }
  0x3b   : > { %11775 = vst [vmem:[#allocation92_spill] sm:$0xff] %v8453_v13  ;;  %11776 = vst [vmem:[#allocation93_spill] sm:$0xff] %v8456_v36  ;;  %v360_v36 = vmul.f32 %v309_v48, %v309_v48  ;;  %6988 = vmatprep.subr.mxu1 %v8492_v38 }
  0x3c   : > { %11777 = vst [vmem:[#allocation94_spill] sm:$0xff] %v8462_v53  ;;  %11778 = vst [vmem:[#allocation95_spill] sm:$0xff] %v8466_v6  ;;  %v8503_v53 = vand.u32 4294901760, %v572_v63  ;;  %v691_v50 = vsub.f32 %v8466_v6, %v8489_v62  ;;  %v579_v27 = vsub.f32 %v8480_v43, %v8496_v26  ;;  %v8519_v63 = vand.u32 4294901760, %v8500_v61 }
  0x3d   : > { %11779 = vst [vmem:[#allocation96_spill] sm:$0xff] %v8470_v46  ;;  %11780 = vst [vmem:[#allocation97_spill] sm:$0xff] %v8476_v32  ;;  %v8508_v46 = vrot.slane %v361_v20, 3  ;;  %v8525_v20 = vsub.f32 %v8315_v44, %v8365_v29 }
  0x3e   : > { %11781 = vst [vmem:[#allocation98_spill] sm:$0xff] %v8480_v43  ;;  %11782 = vst [vmem:[#allocation99_spill] sm:$0xff] %v8483_v58  ;;  %v8521_v58 = vrot.slane %v360_v36, 3  ;;  %6989 = vmatpush3.msra.mxu1 %v8503_v53  ;;  %v8528_v49 = vand.u32 4294901760, %v691_v50  ;;  %v698_v44 = vsub.f32 %v8500_v61, %v8519_v63 }
  0x3f   : > { %11783 = vst [vmem:[#allocation100_spill] sm:$0xff] %v8489_v62  ;;  %11784 = vst [vmem:[#allocation101_spill] sm:$0xff] %v8492_v38  ;;  %v370_v38 = vsel %vm368_vm0, %v310_v57, %v8508_v46  ;;  %v8536_v62 = vand.u32 4294901760, %v579_v27  ;;  %v8550_v18 = vand.u32 4294901760, %v8525_v20  ;;  %v8554_v27 = vsub.f32 %v8332_v39, %v8379_v51 }
  0x40   : > { %11785 = vst [vmem:[#allocation102_spill] sm:$0xff] %v8496_v26  ;;  %11786 = vst [vmem:[#allocation103_spill] sm:$0xff] %v8500_v61  ;;  %v8534_v26 = vand.u32 4294901760, %v8512_v52  ;;  %v8538_v36 = vand.u32 4294901760, %v370_v38  ;;  %6990 = vmatprep.subr.mxu1 %v8528_v49 }
  0x41   : > { %11787 = vst [vmem:[#allocation104_spill] sm:$0xff] %v8503_v53  ;;  %11788 = vst [vmem:[#allocation105_spill] sm:$0xff] %v8512_v52  ;;  %v369_v53 = vsel %vm368_vm0, %v309_v48, %v8521_v58  ;;  %6991 = vmatpush3.msra.mxu1 %v8536_v62  ;;  %v8560_v48 = vand.u32 4294901760, %v698_v44  ;;  %v8579_v44 = vand.u32 4294901760, %v8554_v27 }
  0x42   : > { %11789 = vst [vmem:[#allocation106_spill] sm:$0xff] %v8519_v63  ;;  %11790 = vst [vmem:[#allocation107_spill] sm:$0xff] %v8525_v20  ;;  %v8545_v50 = vand.u32 4294901760, %v369_v53  ;;  %v586_v57 = vsub.f32 %v8512_v52, %v8534_v26  ;;  %v8558_v63 = vsub.f32 %v370_v38, %v8538_v36  ;;  %723 = vmatprep.mubr.f32.mxu1 %v8538_v36 }
  0x43   : > { %11791 = vst [vmem:[#allocation108_spill] sm:$0xff] %v8528_v49  ;;  %11792 = vst [vmem:[#allocation109_spill] sm:$0xff] %v8534_v26  ;;  %v8564_v49 = vsub.f32 %v8351_v33, %v8398_v12  ;;  %v8568_v26 = vsub.f32 %v8384_v1, %v8432_v14  ;;  %v705_v38 = vsub.f32 %v8525_v20, %v8550_v18  ;;  %6992 = vmatprep.subr.mxu1 %v8560_v48 }
  0x44   : > { %11793 = vst [vmem:[#allocation110_spill] sm:$0xff] %v8536_v62  ;;  %11794 = vst [vmem:[#allocation111_spill] sm:$0xff] %v8538_v36  ;;  %v8572_v39 = vsub.f32 %v369_v53, %v8545_v50  ;;  %v8574_v51 = vand.u32 4294901760, %v586_v57  ;;  %v8591_v53 = vsub.f32 %v8403_v60, %v8453_v13  ;;  %v593_v33 = vsub.f32 %v8554_v27, %v8579_v44 }
  0x45   : > { %11795 = vst [vmem:[#allocation112_spill] sm:$0xff] %v8550_v18  ;;  %11796 = vst [vmem:[#allocation113_spill] sm:$0xff] %v8554_v27  ;;  %v8584_v1 = vand.u32 4294901760, %v8564_v49  ;;  %v8587_v62 = vand.u32 4294901760, %v8568_v26  ;;  %v8595_v36 = vand.u32 4294901760, %v705_v38  ;;  %v11807_v18 = vand.u32 4294901760, %v8558_v63 }
  0x46   : > { %11797 = vst [vmem:[#allocation114_spill] sm:$0xff] %v8560_v48  ;;  %11798 = vst [vmem:[#allocation115_spill] sm:$0xff] %v8564_v49  ;;  %6993 = vmatpush3.msra.mxu1 %v8574_v51  ;;  %v8601_v48 = vsub.f32 %v8441_v2, %v8476_v32  ;;  %v8611_v38 = vand.u32 4294901760, %v8591_v53  ;;  %v8617_v2 = vand.u32 4294901760, %v593_v33 }
  0x47   : > { %11799 = vst [vmem:[#allocation116_spill] sm:$0xff] %v8568_v26  ;;  %11800 = vst [vmem:[#allocation117_spill] sm:$0xff] %v8574_v51  ;;  %v470_v14 = vsub.f32 %v8558_v63, %v11807_v18  ;;  %v712_v60 = vsub.f32 %v8564_v49, %v8584_v1  ;;  %v600_v57 = vsub.f32 %v8568_v26, %v8587_v62  ;;  %v11809_v51 = vand.u32 4294901760, %v8572_v39 }
  0x48   : > { %11801 = vst [vmem:[#allocation118_spill] sm:$0xff] %v8579_v44  ;;  %11802 = vst [vmem:[#allocation119_spill] sm:$0xff] %v8584_v1  ;;  %6994 = vmatprep.subr.mxu1 %v8595_v36  ;;  %v8620_v32 = vand.u32 4294901760, %v8601_v48 }
  0x49   : > { %11803 = vst [vmem:[#allocation120_spill] sm:$0xff] %v8587_v62  ;;  %11804 = vst [vmem:[#allocation121_spill] sm:$0xff] %v8591_v53  ;;  %v476_v44 = vsub.f32 %v8572_v39, %v11809_v51  ;;  %v471_v18 = vand.u32 4294901760, %v470_v14  ;;  %v8622_v13 = vand.u32 4294901760, %v712_v60  ;;  %v8624_v1 = vand.u32 4294901760, %v600_v57  ;;  %6995 = vmatpush3.msra.mxu1 %v8617_v2 }
  0x4a   : > { %11805 = vst [vmem:[#allocation122_spill] sm:$0xff] %v8595_v36  ;;  %11806 = vst [vmem:[#allocation123_spill] sm:$0xff] %v8601_v48  ;;  %v719_v62 = vsub.f32 %v8591_v53, %v8611_v38  ;;  %v607_v51 = vsub.f32 %v8601_v48, %v8620_v32 }
  0x4b   : > { %11808 = vst [vmem:[#allocation124_spill] sm:$0xff] %v8611_v38  ;;  %11810 = vst [vmem:[#allocation125_spill] sm:$0xff] %v8617_v2  ;;  %v477_v12 = vand.u32 4294901760, %v476_v44  ;;  %472 = vmatprep.mubr.f32.mxu0 %v471_v18  ;;  %6996 = vmatprep.subr.mxu1 %v8622_v13  ;;  %v8642_v44 = vand.u32 4294901760, %v8508_v46  ;;  %v11816_v18 = vld [vmem:[#allocation19_spill] sm:$0xff] }
  0x4c   : > { %11811 = vst [vmem:[#allocation126_spill] sm:$0xff] %v8620_v32  ;;  %11812 = vst [vmem:[#allocation127_spill] sm:$0xff] %v8622_v13  ;;  %v8632_v33 = vand.u32 4294901760, %v719_v62  ;;  %6997 = vmatpush3.msra.mxu1 %v8624_v1  ;;  %v8635_v14 = vand.u32 4294901760, %v607_v51  ;;  %v11817_v51 = vld [vmem:[#allocation75_spill] sm:$0xff] }
  0x4d   : > { %11813 = vst [vmem:[#allocation128_spill] sm:$0xff] %v8624_v1  ;;  %478 = vmatmul.mubr.f32.vlgmr.msra.gmra.mxu0 %v477_v12  ;;  %v8653_v12 = vand.u32 4294901760, %v8521_v58  ;;  %v8659_v62 = vsub.f32 %v8508_v46, %v8642_v44 }
  0x4e   : > { %11814 = vst [vmem:[#allocation129_spill] sm:$0xff] %v8632_v33  ;;  %11815 = vst [vmem:[#allocation130_spill] sm:$0xff] %v8635_v14  ;;  %7007 = vmatpush3.msra.mxu0 %v8023_v23  ;;  %6998 = vmatprep.subr.mxu1 %v8632_v33 }
  0x4f   : > { %7008 = vmatprep.subr.mxu0 %v8029_v25  ;;  %6999 = vmatpush3.msra.mxu1 %v8635_v14  ;;  %v8669_v57 = vsub.f32 %v8521_v58, %v8653_v12  ;;  %v11300_v46 = vand.u32 4294901760, %v8659_v62  ;;  %v350_v25 = vld [vmem:[%s11131_s4 + $0x8] sm:$0xff] }
  0x50   : > { %7009 = vmatpush3.msra.mxu0 %v8054_v31  ;;  %725 = vmatmul.mubr.f32.vlgmr.msra.gmra.mxu1 %v8545_v50 }
  0x51   : > { %7010 = vmatprep.subr.mxu0 %v8067_v35  ;;  %7044 = vmatprep.subr.mxu1 %v7960_v3  ;;  %v11305_v58 = vand.u32 4294901760, %v8669_v57  ;;  %v485_v60 = vsub.f32 %v8659_v62, %v11300_v46  ;;  %v11890_v35 = vmov 4  }
  0x52   : > { %7011 = vmatpush3.msra.mxu0 %v8084_v40  ;;  %7045 = vmatpush3.msra.mxu1 %v7962_v4  ;;  %v354_v40 = vld [vmem:[%s11132_s5 + $0x8] sm:$0xff] }
  0x53   : > { %7012 = vmatprep.subr.mxu0 %v8098_v45  ;;  %7046 = vmatprep.subr.mxu1 %v7964_v5  ;;  %v486_v46 = vand.u32 4294901760, %v485_v60  ;;  %v11826_v60 = vld [vmem:[#allocation51_spill] sm:$0xff] }
  0x54   : > { %7013 = vmatpush3.msra.mxu0 %v8143_v59  ;;  %7047 = vmatpush3.msra.mxu1 %v7975_v9 }
  0x55   : > { %7014 = vmatprep.subr.mxu0 %v8165_v0  ;;  %7048 = vmatprep.subr.mxu1 %v7977_v10 }
  0x56   : > { %7015 = vmatpush3.msra.mxu0 %v8184_v8  ;;  %7049 = vmatpush3.msra.mxu1 %v7979_v11 }
  0x57   : > { %7016 = vmatprep.subr.mxu0 %v8203_v19  ;;  %7050 = vmatprep.subr.mxu1 %v7993_v15 }
  0x58   : > { %7017 = vmatpush3.msra.mxu0 %v8218_v54  ;;  %7051 = vmatpush3.msra.mxu1 %v7995_v16  ;;  %v11821_v54 = vld [vmem:[#allocation31_spill] sm:$0xff] }
  0x59   : > { %7018 = vmatprep.subr.mxu0 %v8237_v21  ;;  %7052 = vmatprep.subr.mxu1 %v7998_v17  ;;  %v11820_v21 = vld [vmem:[#allocation26_spill] sm:$0xff] }
  0x5a   : > { %7019 = vmatpush3.msra.mxu0 %v8253_v47  ;;  %7053 = vmatpush3.msra.mxu1 %v8020_v22  ;;  %v11818_v47 = vld [vmem:[#allocation23_spill] sm:$0xff] }
  0x5b   : > { %7020 = vmatprep.subr.mxu0 %v8292_v55  ;;  %7054 = vmatprep.subr.mxu1 %v8026_v24  ;;  %v11819_v55 = vld [vmem:[#allocation78_spill] sm:$0xff] }
  0x5c   : > { %7021 = vmatpush3.msra.mxu0 %v8310_v28  ;;  %7055 = vmatpush3.msra.mxu1 %v8051_v30  ;;  %v491_v28 = vsub.f32 %v8669_v57, %v11305_v58  ;;  %v11825_v58 = vld [vmem:[#allocation48_spill] sm:$0xff] }
  0x5d   : > { %7022 = vmatprep.subr.mxu0 %v8343_v7  ;;  %7056 = vmatprep.subr.mxu1 %v11816_v18  ;;  %v11822_v7 = vld [vmem:[#allocation37_spill] sm:$0xff] }
  0x5e   : > { %7023 = vmatpush3.msra.mxu0 %v11817_v51  ;;  %7057 = vmatpush3.msra.mxu1 %v11818_v47  ;;  %v11823_v51 = vld [vmem:[#allocation40_spill] sm:$0xff]  ;;  %v492_v19 = vand.u32 4294901760, %v491_v28 }
  0x5f   : > { %7024 = vmatprep.subr.mxu0 %v11819_v55  ;;  %7058 = vmatprep.subr.mxu1 %v11820_v21  ;;  %v11824_v55 = vld [vmem:[#allocation44_spill] sm:$0xff] }
  0x60   : > { %7025 = vmatpush3.msra.mxu0 %v8395_v56  ;;  %7059 = vmatpush3.msra.mxu1 %v11821_v54  ;;  %v11828_v28 = vld [vmem:[#allocation60_spill] sm:$0xff] }
  0x61   : > { %7026 = vmatprep.subr.mxu0 %v8422_v42  ;;  %7060 = vmatprep.subr.mxu1 %v11822_v7  ;;  %v11845_v42 = vld [vmem:[#allocation46_spill] sm:$0xff] }
  0x62   : > { %7027 = vmatpush3.msra.mxu0 %v8436_v41  ;;  %7061 = vmatpush3.msra.mxu1 %v11823_v51  ;;  %v11844_v41 = vand.u32 4294901760, %v8572_v39 }
  0x63   : > { %7028 = vmatprep.subr.mxu0 %v8466_v6  ;;  %7062 = vmatprep.subr.mxu1 %v11824_v55  ;;  %v11827_v6 = vld [vmem:[#allocation54_spill] sm:$0xff] }
  0x64   : > { %7029 = vmatpush3.msra.mxu0 %v8480_v43  ;;  %487 = vmatprep.mubr.f32.mxu0 %v486_v46  ;;  %v11829_v46 = vld [vmem:[#allocation65_spill] sm:$0xff]  ;;  %v11842_v43 = vand.u32 4294901760, %v8558_v63 }
  0x65   : > { %7030 = vmatprep.subr.mxu0 %v8500_v61  ;;  %7063 = vmatpush3.msra.mxu1 %v11825_v58  ;;  %v11840_v61 = vld [vmem:[#allocation34_spill] sm:$0xff] }
  0x66   : > { %7031 = vmatpush3.msra.mxu0 %v8512_v52  ;;  %7064 = vmatprep.subr.mxu1 %v11826_v60  ;;  %v11838_v52 = vld [vmem:[#allocation30_spill] sm:$0xff] }
  0x67   : > { %7032 = vmatprep.subr.mxu0 %v8525_v20  ;;  %493 = vmatmul.mubr.f32.gmra.mxu0 %v492_v19  ;;  %v11830_v19 = vld [vmem:[#allocation16_spill] sm:$0xff] }
  0x68   : > { %7033 = vmatpush3.msra.mxu0 %v8554_v27  ;;  %7065 = vmatpush3.msra.mxu1 %v11827_v6  ;;  %v11835_v27 = vld [vmem:[#allocation83_spill] sm:$0xff]  ;;  %v11837_v20 = vld [vmem:[#allocation88_spill] sm:$0xff] }
  0x69   : > { %7034 = vmatprep.subr.mxu0 %v8564_v49  ;;  %7066 = vmatprep.subr.mxu1 %v11828_v28  ;;  %v11834_v49 = vld [vmem:[#allocation24_spill] sm:$0xff] }
  0x6a   : > { %7035 = vmatpush3.msra.mxu0 %v8568_v26  ;;  %867 = vmatprep.mubr.f32.mxu0 %v8558_v63  ;;  %v11831_v26 = vld [vmem:[#allocation20_spill] sm:$0xff]  ;;  %v11848_v63 = vand.u32 4294901760, %v8659_v62 }
  0x6b   : > { %7036 = vmatprep.subr.mxu0 %v8591_v53  ;;  %7067 = vmatpush3.msra.mxu1 %v11829_v46  ;;  %v11832_v53 = vld [vmem:[#allocation21_spill] sm:$0xff] }
  0x6c   : > { %7037 = vmatpush3.msra.mxu0 %v8601_v48  ;;  %730 = vmatprep.mubr.f32.mxu1 %v8642_v44  ;;  %v11833_v48 = vld [vmem:[#allocation79_spill] sm:$0xff] }
  0x6d   : > { %870 = vmatmul.mubr.f32.vlgmr.msra.gmra.mxu0 %v8572_v39  ;;  %7068 = vmatprep.subr.mxu1 %v8327_v37  ;;  %v11851_v39 = vand.u32 4294901760, %v8669_v57 }
  0x6e   : > { %7082 = vmatprep.subr.mxu0 %v11830_v19  ;;  %732 = vmatmul.mubr.f32.gmra.mxu1 %v8653_v12  ;;  %v11836_v19 = vld [vmem:[#allocation27_spill] sm:$0xff] }
  0x6f   : > { %7069 = vmatpush3.msra.mxu1 %v8346_v34  ;;  %7083 = vmatpush3.msra.mxu0 %v11831_v26  ;;  %v11839_v26 = vld [vmem:[#allocation92_spill] sm:$0xff] }
  0x70   : > { %7070 = vmatprep.subr.mxu1 %v8365_v29  ;;  %7084 = vmatprep.subr.mxu0 %v11832_v53  ;;  %v11841_v53 = vld [vmem:[#allocation97_spill] sm:$0xff] }
  0x71   : > { %876 = vmatprep.mubr.f32.mxu0 %v8659_v62  ;;  %7071 = vmatpush3.msra.mxu1 %v11833_v48  ;;  %v11854_v62 = vld [vmem:[#allocation71_spill] sm:$0xff] }
  0x72   : > { %7085 = vmatpush3.msra.mxu0 %v11834_v49  ;;  %7072 = vmatprep.subr.mxu1 %v11835_v27  ;;  %v11843_v49 = vld [vmem:[#allocation42_spill] sm:$0xff] }
  0x73   : > { %879 = vmatmul.mubr.f32.gmra.mxu0 %v8669_v57  ;;  %7086 = vmatprep.subr.mxu0 %v11836_v19  ;;  %v11846_v19 = vld [vmem:[#allocation49_spill] sm:$0xff] }
  0x74   : > { %7073 = vmatpush3.msra.mxu1 %v11837_v20  ;;  %7087 = vmatpush3.msra.mxu0 %v11838_v52  ;;  %v11847_v52 = vld [vmem:[#allocation52_spill] sm:$0xff]  ;;  %v11856_v57 = vld [vmem:[#allocation81_spill] sm:$0xff] }
  0x75   : > { %7074 = vmatprep.subr.mxu1 %v11839_v26  ;;  %7088 = vmatprep.subr.mxu0 %v11840_v61 }
  0x76   : > { %7075 = vmatpush3.msra.mxu1 %v11841_v53  ;;  %983 = vmatprep.mubr.f32.mxu1 %v11842_v43  ;;  %v11849_v43 = vld [vmem:[#allocation56_spill] sm:$0xff] }
  0x77   : > { %7089 = vmatpush3.msra.mxu0 %v11843_v49  ;;  %987 = vmatmul.mubr.f32.vlgmr.msra.gmra.mxu1 %v11844_v41  ;;  %v11850_v41 = vld [vmem:[#allocation59_spill] sm:$0xff]  ;;  %v11340_v49 = vmov 0  }
  0x78   : > { %7090 = vmatprep.subr.mxu0 %v11845_v42  ;;  %7120 = vmatprep.subr.mxu1 %v7960_v3 }
  0x79   : > { %7091 = vmatpush3.msra.mxu0 %v11846_v19  ;;  %7121 = vmatpush3.msra.mxu1 %v7962_v4  ;;  %v11852_v19 = vld [vmem:[#allocation62_spill] sm:$0xff] }
  0x7a   : > { %7092 = vmatprep.subr.mxu0 %v11847_v52  ;;  %7122 = vmatprep.subr.mxu1 %v7964_v5  ;;  %v11853_v52 = vld [vmem:[#allocation68_spill] sm:$0xff] }
  0x7b   : > { %994 = vmatprep.mubr.f32.mxu1 %v11848_v63  ;;  %7093 = vmatpush3.msra.mxu0 %v11849_v43  ;;  %v11855_v63 = vld [vmem:[#allocation77_spill] sm:$0xff] }
  0x7c   : > { %7123 = vmatpush3.msra.mxu1 %v7975_v9  ;;  %7094 = vmatprep.subr.mxu0 %v11850_v41 }
  0x7d   : > { %998 = vmatmul.mubr.f32.gmra.mxu1 %v11851_v39  ;;  %7124 = vmatprep.subr.mxu1 %v7977_v10  ;;  %v11857_v39 = vld [vmem:[#allocation85_spill] sm:$0xff] }
  0x7e   : > { %7095 = vmatpush3.msra.mxu0 %v11852_v19  ;;  %7125 = vmatpush3.msra.mxu1 %v7979_v11  ;;  %v11858_v19 = vld [vmem:[#allocation87_spill] sm:$0xff] }
  0x7f   : > { %7096 = vmatprep.subr.mxu0 %v11853_v52  ;;  %7126 = vmatprep.subr.mxu1 %v7993_v15  ;;  %v11859_v52 = vld [vmem:[#allocation91_spill] sm:$0xff] }
  0x80   : > { %7097 = vmatpush3.msra.mxu0 %v11854_v62  ;;  %7127 = vmatpush3.msra.mxu1 %v7995_v16  ;;  %v11860_v62 = vld [vmem:[#allocation94_spill] sm:$0xff] }
  0x81   : > { %7098 = vmatprep.subr.mxu0 %v11855_v63  ;;  %7128 = vmatprep.subr.mxu1 %v7998_v17  ;;  %v11861_v63 = vld [vmem:[#allocation100_spill] sm:$0xff] }
  0x82   : > { %7099 = vmatpush3.msra.mxu0 %v11856_v57  ;;  %7129 = vmatpush3.msra.mxu1 %v8020_v22  ;;  %v11862_v57 = vld [vmem:[#allocation102_spill] sm:$0xff] }
  0x83   : > { %7100 = vmatprep.subr.mxu0 %v11857_v39  ;;  %7130 = vmatprep.subr.mxu1 %v8026_v24  ;;  %v11863_v39 = vld [vmem:[#allocation106_spill] sm:$0xff] }
  0x84   : > { %7101 = vmatpush3.msra.mxu0 %v11858_v19  ;;  %7131 = vmatpush3.msra.mxu1 %v8051_v30  ;;  %v11864_v19 = vld [vmem:[#allocation109_spill] sm:$0xff] }
  0x85   : > { %7102 = vmatprep.subr.mxu0 %v11859_v52  ;;  %7132 = vmatprep.subr.mxu1 %v11816_v18  ;;  %v11865_v52 = vld [vmem:[#allocation112_spill] sm:$0xff] }
  0x86   : > { %7103 = vmatpush3.msra.mxu0 %v11860_v62  ;;  %7133 = vmatpush3.msra.mxu1 %v11818_v47  ;;  %v11866_v62 = vld [vmem:[#allocation118_spill] sm:$0xff] }
  0x87   : > { %7104 = vmatprep.subr.mxu0 %v11861_v63  ;;  %7134 = vmatprep.subr.mxu1 %v11820_v21  ;;  %v11867_v63 = vld [vmem:[#allocation119_spill] sm:$0xff] }
  0x88   : > { %7105 = vmatpush3.msra.mxu0 %v11862_v57  ;;  %7135 = vmatpush3.msra.mxu1 %v11821_v54  ;;  %v11868_v57 = vld [vmem:[#allocation120_spill] sm:$0xff] }
  0x89   : > { %7106 = vmatprep.subr.mxu0 %v11863_v39  ;;  %7136 = vmatprep.subr.mxu1 %v11822_v7  ;;  %v11338_v39 = vmov 0.0  }
  0x8a   : > { %7107 = vmatpush3.msra.mxu0 %v11864_v19  ;;  %7137 = vmatpush3.msra.mxu1 %v11823_v51 }
  0x8b   : > { %7108 = vmatprep.subr.mxu0 %v11865_v52  ;;  %7138 = vmatprep.subr.mxu1 %v11824_v55  ;;  %v11869_v52 = vld [vmem:[#allocation111_spill] sm:$0xff] }
  0x8c   : > { %7109 = vmatpush3.msra.mxu0 %v11866_v62  ;;  %7139 = vmatpush3.msra.mxu1 %v11825_v58 }
  0x8d   : > { %7110 = vmatprep.subr.mxu0 %v11867_v63  ;;  %7140 = vmatprep.subr.mxu1 %v11826_v60  ;;  %v11336_v63 = vmov 2   ;;  %v11891_v60 = vmov 6  }
  0x8e   : > { %7111 = vmatpush3.msra.mxu0 %v11868_v57  ;;  %7141 = vmatpush3.msra.mxu1 %v11827_v6 }
  0x8f   : > { %7112 = vmatprep.subr.mxu0 %v8611_v38  ;;  %7142 = vmatprep.subr.mxu1 %v11828_v28  ;;  %v11334_v38 = vmov 1  }
  0x90   : > { %7113 = vmatpush3.msra.mxu0 %v8620_v32  ;;  %1164 = vmatprep.mubr.f32.mxu0 %v11869_v52  ;;  %v348_v32 = vld [vmem:[%s11130_s3 + $0x18] sm:$0xff] }
  0x91   : > { %7143 = vmatpush3.msra.mxu1 %v11829_v46  ;;  %1166 = vmatmul.mubr.f32.vlgmr.msra.gmra.mxu0 %v8545_v50  ;;  %v8820_v57 = vand.u32 4294901760, %v348_v32 }
  0x92   : > { %7144 = vmatprep.subr.mxu1 %v8327_v37  ;;  %1171 = vmatprep.mubr.f32.mxu0 %v8642_v44 }
  0x93   : > { %7145 = vmatpush3.msra.mxu1 %v8346_v34  ;;  %1275 = vmatprep.mubr.f32.mxu1 %v11869_v52  ;;  %v8814_v52 = vld [vmem:[%s11132_s5] sm:$0xff]  ;;  %11870 = vst [vmem:[#allocation111_spill] sm:$0xff] %v8820_v57  ;;  %v8841_v41 = vsub.f32 %v348_v32, %v8820_v57 }
  0x94   : > { %7146 = vmatprep.subr.mxu1 %v8365_v29  ;;  %7751 = vset.pattern.permute.xlu0 %v11334_v38 }
  0x95   : > { %7147 = vmatpush3.msra.mxu1 %v11833_v48  ;;  %1173 = vmatmul.mubr.f32.gmra.mxu0 %v8653_v12  ;;  %11874 = vst [vmem:[#allocation134_spill] sm:$0xff] %v8841_v41  ;;  %v8857_v32 = vand.u32 4294901760, %v8841_v41  ;;  %v11402_v48 = vmov 11  }
  0x96   : > { %7148 = vmatprep.subr.mxu1 %v11835_v27  ;;  %7753 = vset.pattern.permute.xlu1 %v11336_v63 }
  0x97   : > { %7149 = vmatpush3.msra.mxu1 %v11837_v20  ;;  %1918 = vperm.xlu0 %7751, %v8814_v52   ;;  %11878 = vst [vmem:[#allocation138_spill] sm:$0xff] %v8857_v32 }
  0x98   : > { %7150 = vmatprep.subr.mxu1 %v11839_v26  ;;  %1338 = vmatprep.subr.mxu0 %v8820_v57  ;;  %v11393_v26 = vmov 8  }
  0x99   : > { %7151 = vmatpush3.msra.mxu1 %v11841_v53  ;;  %1377 = vmatprep.mubr.f32.mxu0 %v11338_v39 }
  0x9a   : > { %1277 = vmatmul.mubr.f32.vlgmr.msra.gmra.mxu1 %v8545_v50  ;;  %v347_v50 = vld [vmem:[%s11130_s3 + $0x10] sm:$0xff]  ;;  %1944 = vperm.xlu1 %7753, %v8814_v52  }
  0x9b   : > { %1282 = vmatprep.mubr.f32.mxu1 %v8642_v44  ;;  %v346_v44 = vld [vmem:[%s11130_s3 + $0x8] sm:$0xff]  ;;  %v8833_v38 = vand.u32 4294901760, %v347_v50  ;;  %7752 = vset.pattern.permute.xlu0 %v11340_v49  ;;  %v349_v49 = vld [vmem:[%s11131_s4] sm:$0xff] }
  0x9c   : > { %v8835_v62 = vand.u32 4294901760, %v346_v44  ;;  %1890 = vperm.xlu0 %7752, %v8814_v52  }
  0x9d   : > { %11871 = vst [vmem:[#allocation131_spill] sm:$0xff] %v8833_v38  ;;  %v8846_v63 = vsub.f32 %v347_v50, %v8833_v38  ;;  %1340 = vmatpush1.msra.mxu0 %v8833_v38 }
  0x9e   : > { %1284 = vmatmul.mubr.f32.gmra.mxu1 %v8653_v12  ;;  %v345_v12 = vld [vmem:[%s11130_s3] sm:$0xff]  ;;  %11872 = vst [vmem:[#allocation132_spill] sm:$0xff] %v8835_v62  ;;  %v8849_v43 = vsub.f32 %v346_v44, %v8835_v62  ;;  %1342 = vmatprep.subr.mxu0 %v8835_v62 }
  0x9f   : > { %v8837_v19 = vand.u32 4294901760, %v345_v12  ;;  %1484 = vmatprep.mubr.f32.mxu1 %v11338_v39  ;;  %11875 = vst [vmem:[#allocation135_spill] sm:$0xff] %v8846_v63  ;;  %v8862_v50 = vand.u32 4294901760, %v8846_v63  ;;  %v1431_v39 = vsub.f32 %v8841_v41, %v8857_v32 }
  0xa0   : > { %11876 = vst [vmem:[#allocation136_spill] sm:$0xff] %v8849_v43  ;;  %v8865_v44 = vand.u32 4294901760, %v8849_v43  ;;  %2047 = vperm.xlu0 %7752, %v349_v49   ;;  %v351_v49 = vld [vmem:[%s11131_s4 + $0x10] sm:$0xff] }
  0xa1   : > { %11873 = vst [vmem:[#allocation133_spill] sm:$0xff] %v8837_v19  ;;  %v8852_v42 = vsub.f32 %v345_v12, %v8837_v19  ;;  %11879 = vst [vmem:[#allocation139_spill] sm:$0xff] %v8862_v50  ;;  %1344 = vmatpush1.msra.mxu0 %v8837_v19  ;;  %v1437_v61 = vsub.f32 %v8846_v63, %v8862_v50  ;;  %v8884_v0 = vand.u32 4294901760, %v1431_v39  ;;  %v11886_v39 = vmov 2  }
  0xa2   : > { %11880 = vst [vmem:[#allocation140_spill] sm:$0xff] %v8865_v44  ;;  %1529 = vmatprep.subr.mxu0 %v8841_v41  ;;  %v1443_v56 = vsub.f32 %v8849_v43, %v8865_v44 }
  0xa3   : > { %11877 = vst [vmem:[#allocation137_spill] sm:$0xff] %v8852_v42  ;;  %v8868_v12 = vand.u32 4294901760, %v8852_v42  ;;  %11882 = vst [vmem:[#allocation142_spill] sm:$0xff] %v8884_v0  ;;  %v8886_v59 = vand.u32 4294901760, %v1437_v61  ;;  %1433 = vmatprep.subr.mxu1 %v8884_v0  ;;  %v11374_v61 = vmov 4   ;;  %v11368_v0 = vmov 9  }
  0xa4   : > { %v8888_v45 = vand.u32 4294901760, %v1443_v56  ;;  %7758 = vset.pattern.permute.xlu0 %v11886_v39  ;;  %v355_v56 = vld [vmem:[%s11132_s5 + $0x10] sm:$0xf] }
  0xa5   : > { %11881 = vst [vmem:[#allocation141_spill] sm:$0xff] %v8868_v12  ;;  %v1449_v8 = vsub.f32 %v8852_v42, %v8868_v12  ;;  %11883 = vst [vmem:[#allocation143_spill] sm:$0xff] %v8886_v59  ;;  %1439 = vmatpush1.msra.mxu1 %v8886_v59  ;;  %1948 = vperm.xlu0 %7758, %v354_v40   ;;  %v11364_v59 = vmov 3  }
  0xa6   : > { %11884 = vst [vmem:[#allocation144_spill] sm:$0xff] %v8888_v45  ;;  %1445 = vmatprep.subr.mxu1 %v8888_v45  ;;  %v8913_v45 = vld [vmem:[%s11133_s6 + $0x8] sm:$0xff]  ;;  %7754 = vset.pattern.permute.xlu1 %v11364_v59 }
  0xa7   : > { %v8890_v41 = vand.u32 4294901760, %v1449_v8  ;;  %v11887_v8 = vmov 1   ;;  %1970 = vperm.xlu1 %7754, %v8814_v52  }
  0xa9   : > { %11885 = vst [vmem:[#allocation145_spill] sm:$0xff] %v8890_v41  ;;  %1451 = vmatpush1.msra.mxu1 %v8890_v41  ;;  %7761 = vset.pattern.permute.xlu0 %v11887_v8  ;;  %v11888_v41 = vmov 0  }
  0xaa   : > { %1617 = vmatprep.subr.mxu1 %v8820_v57  ;;  %1926 = vperm.xlu0 %7761, %v355_v56  }
  0xab   : > { %7755 = vset.pattern.permute.xlu1 %v11374_v61 }
  0xac   : > { %1996 = vperm.xlu1 %7755, %v8814_v52   ;;  %v11889_v52 = vmov 3  }
  0xae   : > { %7764 = vset.pattern.permute.xlu0 %v11374_v61 }
  0xaf   : > { %2000 = vperm.xlu0 %7764, %v354_v40  }
  0xb0   : > { %7756 = vset.pattern.permute.xlu1 %v11888_v41 }
  0xb1   : > { %1895 = vperm.xlu1 %7756, %v354_v40  }
  0xb3   : > { %7767 = vset.pattern.permute.xlu0 %v11888_v41 }
  0xb4   : > { %2057 = vperm.xlu0 %7767, %v351_v49   ;;  %v11366_v49 = vmov 6  }
  0xb5   : > { %7757 = vset.pattern.permute.xlu1 %v11887_v8 }
  0xb6   : > { %1922 = vperm.xlu1 %7757, %v354_v40  }
  0xb8   : > { %3987 = vperm.xlu0 %7767, %v8913_v45  }
  0xba   : > { %7759 = vset.pattern.permute.xlu1 %v11889_v52 }
  0xbb   : > { %1974 = vperm.xlu1 %7759, %v354_v40   ;;  %v8944_v40 = vld [vmem:[%s11133_s6 + $0x10] sm:$0xf] }
  0xbc   : > { %7783 = vset.pattern.permute.xlu0 %v11364_v59  ;;  %v11372_v59 = vmov 12  }
  0xbd   : > { %4066 = vperm.xlu0 %7783, %v8913_v45  }
  0xbf   : > { %7760 = vset.pattern.permute.xlu1 %v11888_v41 }
  0xc0   : > { %1900 = vperm.xlu1 %7760, %v355_v56  }
  0xc1   : > { %7786 = vset.pattern.permute.xlu0 %v11366_v49  ;;  %v11370_v49 = vmov 15  }
  0xc2   : > { %4144 = vperm.xlu0 %7786, %v8913_v45  }
  0xc4   : > { %7762 = vset.pattern.permute.xlu1 %v11886_v39 }
  0xc5   : > { %1952 = vperm.xlu1 %7762, %v355_v56  }
  0xc6   : > { %7789 = vset.pattern.permute.xlu0 %v11368_v0  ;;  %v8937_v0 = vld [vmem:[%s11133_s6] sm:$0xff] }
  0xc7   : > { %4222 = vperm.xlu0 %7789, %v8913_v45  }
  0xc9   : > { %7763 = vset.pattern.permute.xlu1 %v11889_v52 }
  0xca   : > { %1978 = vperm.xlu1 %7763, %v355_v56  }
  0xcb   : > { %7792 = vset.pattern.permute.xlu0 %v11372_v59  ;;  %v11386_v59 = vmov 5  }
  0xcc   : > { %4300 = vperm.xlu0 %7792, %v8913_v45  }
  0xce   : > { %7765 = vset.pattern.permute.xlu1 %v11890_v35 }
  0xcf   : > { %2004 = vperm.xlu1 %7765, %v355_v56  }
  0xd0   : > { %7795 = vset.pattern.permute.xlu0 %v11370_v49 }
  0xd1   : > { %4378 = vperm.xlu0 %7795, %v8913_v45  }
  0xd3   : > { %7766 = vset.pattern.permute.xlu1 %v11888_v41 }
  0xd4   : > { %2052 = vperm.xlu1 %7766, %v350_v25  }
  0xd5   : > { %7796 = vset.pattern.permute.xlu0 %v11886_v39 }
  0xd6   : > { %4036 = vperm.xlu0 %7796, %v8937_v0  }
  0xd8   : > { %3982 = vperm.xlu1 %7766, %v8937_v0  }
  0xda   : > { %4044 = vperm.xlu0 %7796, %v8944_v40  }
  0xdc   : > { %7768 = vset.pattern.permute.xlu1 %v11887_v8  ;;  %v11419_v8 = vmov 14  }
  0xdd   : > { %4010 = vperm.xlu1 %7768, %v8937_v0  }
  0xde   : > { %7799 = vset.pattern.permute.xlu0 %v11386_v59 }
  0xdf   : > { %4114 = vperm.xlu0 %7799, %v8937_v0  }
  0xe1   : > { %7769 = vset.pattern.permute.xlu1 %v11889_v52 }
  0xe2   : > { %4062 = vperm.xlu1 %7769, %v8937_v0  }
  0xe3   : > { %4122 = vperm.xlu0 %7799, %v8944_v40  }
  0xe6   : > { %7770 = vset.pattern.permute.xlu1 %v11890_v35 }
  0xe7   : > { %7802 = vset.pattern.permute.xlu0 %v11393_v26  ;;  %4088 = vperm.xlu1 %7770, %v8937_v0  }
  0xe8   : > { %4192 = vperm.xlu0 %7802, %v8937_v0  }
  0xeb   : > { %7771 = vset.pattern.permute.xlu1 %v11891_v60 }
  0xec   : > { %4200 = vperm.xlu0 %7802, %v8944_v40   ;;  %4140 = vperm.xlu1 %7771, %v8937_v0  }
  0xf0   : > { %7805 = vset.pattern.permute.xlu0 %v11402_v48 }
  0xf1   : > { %4270 = vperm.xlu0 %7805, %v8937_v0  }
  0xf5   : > { %4278 = vperm.xlu0 %7805, %v8944_v40  }
  0xf9   : > { %7808 = vset.pattern.permute.xlu0 %v11419_v8 }
  0xfa   : > { %4348 = vperm.xlu0 %7808, %v8937_v0  }
  0xfe   : > { %4356 = vperm.xlu0 %7808, %v8944_v40  }
 0x10d   : > { %v6962_v49 = vpop.f32.mrf.mxu0 }
 0x10f   : > { %v6963_v61 = vpop.f32.mrf.mxu0 }
 0x110   : > { %v7000_v53 = vpop.f32.mrf.mxu1  ;;  %v6964_v52 = vadd.f32 %v6963_v61, %v6962_v49 }
 0x112   : > { %v7001_v20 = vpop.f32.mrf.mxu1 }
 0x113   : > { %v7002_v48 = vadd.f32 %v7001_v20, %v7000_v53 }
 0x115   : > { %v727_v36 = vadd.f32 %v7002_v48, %v6964_v52 }
 0x127   : > { %v6965_v31 = vpop.f32.mrf.mxu0 }
 0x129   : > { %v6966_v23 = vpop.f32.mrf.mxu0 }
 0x12a   : > { %v6967_v13 = vadd.f32 %v6966_v23, %v6965_v31  ;;  %v11425_v31 = vmov 17  }
 0x12b   : > { %7811 = vset.pattern.permute.xlu0 %v11425_v31 }
 0x12c   : > { %4426 = vperm.xlu0 %7811, %v8937_v0  }
 0x12d   : > { %v7038_v59 = vpop.f32.mrf.mxu0 }
 0x12e   : > { %v7003_v56 = vpop.f32.mrf.mxu1 }
 0x12f   : > { %v7039_v27 = vpop.f32.mrf.mxu0 }
 0x130   : > { %v7004_v14 = vpop.f32.mrf.mxu1  ;;  %v7040_v46 = vadd.f32 %v7039_v27, %v7038_v59  ;;  %4430 = vperm.xlu0 %7811, %v8913_v45   ;;  %v359_v45 = vld [vmem:[%s11134_s7] sm:$0x1f] }
 0x131   : > { %v7005_v2 = vadd.f32 %v7004_v14, %v7003_v56  ;;  %v11893_v56 = vmov 8  }
 0x132   : > { %v872_v20 = vadd.f32 %v7040_v46, %v727_v36 }
 0x133   : > { %v7041_v25 = vpop.f32.mrf.mxu0  ;;  %v734_v53 = vadd.f32 %v7005_v2, %v6967_v13  ;;  %v11428_v2 = vmov 16  }
 0x134   : > { %7816 = vset.pattern.permute.xlu0 %v11428_v2  ;;  %v11924_v2 = vld [vmem:[#allocation114_spill] sm:$0xff] }
 0x135   : > { %v7042_v29 = vpop.f32.mrf.mxu0  ;;  %4408 = vperm.xlu0 %7816, %v8944_v40  }
 0x136   : > { %v7043_v35 = vadd.f32 %v7042_v29, %v7041_v25 }
 0x137   : > { %v7076_v26 = vpop.f32.mrf.mxu1 }
 0x139   : > { %v7077_v33 = vpop.f32.mrf.mxu1 }
 0x13a   : > { %v7078_v6 = vadd.f32 %v7077_v33, %v7076_v26  ;;  %v881_v26 = vadd.f32 %v7043_v35, %v734_v53 }
 0x13c   : > { %v989_v61 = vadd.f32 %v7078_v6, %v872_v20 }
 0x13d   : > { %v7079_v37 = vpop.f32.mrf.mxu1 }
 0x13f   : > { %v7080_v8 = vpop.f32.mrf.mxu1 }
 0x140   : > { %v7081_v23 = vadd.f32 %v7080_v8, %v7079_v37  ;;  %v11892_v8 = vmov 5  }
 0x142   : > { %v1000_v49 = vadd.f32 %v7081_v23, %v881_v26 }
 0x151   : > { %v7114_v34 = vpop.f32.mrf.mxu0 }
 0x153   : > { %v7115_v1 = vpop.f32.mrf.mxu0 }
 0x154   : > { %v7116_v58 = vadd.f32 %v7115_v1, %v7114_v34 }
 0x155   : > { %v7117_v28 = vpop.f32.mrf.mxu0 }
 0x156   : > { %v1168_v27 = vadd.f32 %v7116_v58, %v989_v61 }
 0x157   : > { %v7118_v55 = vpop.f32.mrf.mxu0 }
 0x158   : > { %v7119_v48 = vadd.f32 %v7118_v55, %v7117_v28  ;;  %v11426_v28 = vmov 19  }
 0x159   : > { %7819 = vset.pattern.permute.xlu0 %v11426_v28  ;;  %v11923_v28 = vld [vmem:[#allocation48_spill] sm:$0xff] }
 0x15a   : > { %v7152_v51 = vpop.f32.mrf.mxu1  ;;  %v1175_v29 = vadd.f32 %v7119_v48, %v1000_v49  ;;  %4486 = vperm.xlu0 %7819, %v8944_v40   ;;  %v11895_v48 = vmov 0.0  }
 0x15c   : > { %v7153_v59 = vpop.f32.mrf.mxu1 }
 0x15d   : > { %v7154_v33 = vadd.f32 %v7153_v59, %v7152_v51 }
 0x15e   : > { %v7155_v14 = vpop.f32.mrf.mxu1  ;;  %7822 = vset.pattern.permute.xlu0 %v11886_v39 }
 0x15f   : > { %v1279_v36 = vadd.f32 %v7154_v33, %v1168_v27  ;;  %6560 = vperm.xlu0 %7822, %v359_v45   ;;  %v11894_v27 = vmov 11  }
 0x160   : > { %v7156_v13 = vpop.f32.mrf.mxu1 }
 0x161   : > { %v7157_v34 = vadd.f32 %v7156_v13, %v7155_v14  ;;  %v1289_v6 = vmul.f32 %v1279_v36, %v1279_v36 }
 0x163   : > { %v1286_v37 = vadd.f32 %v7157_v34, %v1175_v29  ;;  %v1291_v1 = vrot.slane %v1289_v6, 3  ;;  %7825 = vset.pattern.permute.xlu0 %v11892_v8  ;;  %v11896_v29 = vmov 14   ;;  %v352_v6 = vld [vmem:[%s11131_s4 + $0x18] sm:$0x1] }
 0x164   : > { %6602 = vperm.xlu0 %7825, %v359_v45  }
 0x165   : > { %v1293_v46 = vsub.f32 %v1279_v36, %v1291_v1  ;;  %v1294_v0 = vsub.f32 %v1286_v37, %v1291_v1  ;;  %v11897_v37 = vld [vmem:[#allocation29_spill] sm:$0xff]  ;;  %v11898_v1 = vld [vmem:[#allocation32_spill] sm:$0xff] }
 0x167   : > { %v1295_v35 = vmax.f32 %v1293_v46, 0.0  ;;  %v1296_v55 = vmax.f32 %v1294_v0, 0.0  ;;  %v11899_v46 = vld [vmem:[#allocation33_spill] sm:$0xff]  ;;  %v11900_v0 = vld [vmem:[#allocation35_spill] sm:$0xff] }
 0x168   : > { %7828 = vset.pattern.permute.xlu0 %v11893_v56 }
 0x169   : > { %v1297_v58 = vadd.f32 1e-08, %v1295_v35  ;;  %v1298_v51 = vadd.f32 1e-08, %v1296_v55  ;;  %6644 = vperm.xlu0 %7828, %v359_v45   ;;  %v11901_v35 = vld [vmem:[#allocation38_spill] sm:$0xff]  ;;  %v11902_v55 = vld [vmem:[#allocation41_spill] sm:$0xff] }
 0x16b   : > { %7841 = vrsqrt.f32 %v1297_v58  ;;  %v11903_v58 = vld [vmem:[#allocation45_spill] sm:$0xff] }
 0x16c   : > { %7843 = vrsqrt.f32 %v1298_v51  ;;  %v11904_v51 = vld [vmem:[#allocation55_spill] sm:$0xff] }
 0x16d   : > { %7831 = vset.pattern.permute.xlu0 %v11894_v27 }
 0x16e   : > { %6686 = vperm.xlu0 %7831, %v359_v45  }
 0x172   : > { %7834 = vset.pattern.permute.xlu0 %v11896_v29 }
 0x173   : > { %6728 = vperm.xlu0 %7834, %v359_v45  }
 0x177   : > { %7837 = vset.pattern.permute.xlu0 %v11425_v31  ;;  %v11922_v31 = vld [vmem:[#allocation110_spill] sm:$0xff] }
 0x178   : > { %v7842_v52 = vpop.eup %7841  ;;  %6770 = vperm.xlu0 %7837, %v359_v45   ;;  %v11905_v45 = vld [vmem:[#allocation58_spill] sm:$0xff] }
 0x179   : > { %v7844_v25 = vpop.eup %7843  ;;  %v1301_v20 = vsel %vm368_vm0, %v1279_v36, %v7842_v52  ;;  %v11906_v52 = vld [vmem:[#allocation61_spill] sm:$0xff] }
 0x17a   : > { %v1304_v40 = vsel %vm1302_vm1, %v1301_v20, 0  ;;  %v1307_v53 = vsel %vm1302_vm1, %v7844_v25, 0  ;;  %v11907_v25 = vld [vmem:[#allocation64_spill] sm:$0xff]  ;;  %v11908_v20 = vld [vmem:[#allocation67_spill] sm:$0xff] }
 0x17b   : > { %v1378_v61 = vand.u32 4294901760, %v1304_v40  ;;  %v1389_v23 = vand.u32 4294901760, %v1307_v53 }
 0x17c   : > { %7840 = vset.pattern.permute.xlu0 %v11888_v41 }
 0x17d   : > { %v1379_v59 = vsub.f32 %v1304_v40, %v1378_v61  ;;  %1486 = vmatmul.mubr.f32.vlgmr.msra.gmra.mxu1 %v1378_v61  ;;  %v1390_v26 = vsub.f32 %v1307_v53, %v1389_v23  ;;  %6851 = vperm.xlu0 %7840, %v352_v6   ;;  %v11909_v40 = vld [vmem:[#allocation70_spill] sm:$0xff]  ;;  %v11921_v6 = vld [vmem:[#allocation44_spill] sm:$0xff] }
 0x17e   : > { %1491 = vmatprep.mubr.f32.mxu1 %v11895_v48  ;;  %1619 = vmatpush1.msra.mxu1 %v8833_v38  ;;  %v11910_v53 = vld [vmem:[#allocation74_spill] sm:$0xff] }
 0x17f   : > { %1621 = vmatprep.subr.mxu1 %v8835_v62  ;;  %v1380_v33 = vand.u32 4294901760, %v1379_v59  ;;  %v1391_v14 = vand.u32 4294901760, %v1390_v26 }
 0x180   : > { %1623 = vmatpush1.msra.mxu1 %v8837_v19 }
 0x181   : > { %1493 = vmatmul.mubr.f32.gmra.mxu1 %v1389_v23  ;;  %v1381_v49 = vsub.f32 %v1379_v59, %v1380_v33  ;;  %1795 = vmatprep.subr.mxu1 %v8820_v57  ;;  %v1392_v13 = vsub.f32 %v1390_v26, %v1391_v14 }
 0x182   : > { %1656 = vmatprep.mubr.f32.mxu1 %v11895_v48 }
 0x183   : > { %v1382_v36 = vand.u32 4294901760, %v1381_v49  ;;  %v1393_v34 = vand.u32 4294901760, %v1392_v13  ;;  %v11917_v49 = vld [vmem:[#allocation101_spill] sm:$0xff]  ;;  %v11919_v13 = vld [vmem:[#allocation40_spill] sm:$0xff] }
 0x185   : > { %1383 = vmatmul.mubr.f32.vlgmr.msra.gmra.mxu0 %v1382_v36  ;;  %1660 = vmatmul.mubr.f32.vlgmr.msra.gmra.mxu1 %v1380_v33  ;;  %v11915_v33 = vld [vmem:[#allocation96_spill] sm:$0xff] }
 0x186   : > { %1532 = vmatpush1.msra.mxu0 %v8846_v63  ;;  %1388 = vmatprep.mubr.f32.mxu0 %v11895_v48  ;;  %v11918_v36 = vld [vmem:[#allocation104_spill] sm:$0xff] }
 0x187   : > { %1535 = vmatprep.subr.mxu0 %v8849_v43  ;;  %1665 = vmatprep.mubr.f32.mxu1 %v11895_v48 }
 0x188   : > { %1538 = vmatpush1.msra.mxu0 %v8852_v42  ;;  %1797 = vmatpush1.msra.mxu1 %v8833_v38 }
 0x189   : > { %1394 = vmatmul.mubr.f32.gmra.mxu0 %v1393_v34  ;;  %1669 = vmatmul.mubr.f32.gmra.mxu1 %v1391_v14  ;;  %v11916_v14 = vld [vmem:[#allocation99_spill] sm:$0xff]  ;;  %v11920_v34 = vld [vmem:[#allocation108_spill] sm:$0xff] }
 0x18a   : > { %1799 = vmatprep.subr.mxu1 %v8835_v62  ;;  %1571 = vmatprep.mubr.f32.mxu0 %v11895_v48 }
 0x18b   : > { %1706 = vmatprep.subr.mxu0 %v8857_v32  ;;  %1801 = vmatpush1.msra.mxu1 %v8837_v19  ;;  %v9098_v19 = vpop.permute.xlu0 %1918 }
 0x18c   : > { %1834 = vmatprep.mubr.f32.mxu1 %v11895_v48  ;;  %7205 = vmatprep.subr.mxu1 %v11897_v37 }
 0x18d   : > { %1574 = vmatmul.mubr.f32.vlgmr.msra.gmra.mxu0 %v1379_v59  ;;  %1836 = vmatmul.mubr.f32.vlgmr.msra.gmra.mxu1 %v1378_v61  ;;  %v11913_v59 = vld [vmem:[#allocation90_spill] sm:$0xff] }
 0x18e   : > { %1710 = vmatpush1.msra.mxu0 %v8862_v50  ;;  %1579 = vmatprep.mubr.f32.mxu0 %v11895_v48 }
 0x18f   : > { %1714 = vmatprep.subr.mxu0 %v8865_v44  ;;  %1841 = vmatprep.mubr.f32.mxu1 %v11895_v48 }
 0x190   : > { %1718 = vmatpush1.msra.mxu0 %v8868_v12  ;;  %7206 = vmatpush3.msra.mxu1 %v11898_v1 }
 0x191   : > { %1582 = vmatmul.mubr.f32.gmra.mxu0 %v1390_v26  ;;  %1843 = vmatmul.mubr.f32.gmra.mxu1 %v1389_v23  ;;  %v11914_v26 = vld [vmem:[#allocation93_spill] sm:$0xff] }
 0x192   : > { %1751 = vmatprep.mubr.f32.mxu0 %v11895_v48  ;;  %7158 = vmatprep.subr.mxu0 %v7960_v3 }
 0x193   : > { %7207 = vmatprep.subr.mxu1 %v11899_v46 }
 0x194   : > { %7208 = vmatpush3.msra.mxu1 %v11900_v0 }
 0x195   : > { %1753 = vmatmul.mubr.f32.vlgmr.msra.gmra.mxu0 %v1378_v61  ;;  %7209 = vmatprep.subr.mxu1 %v11901_v35  ;;  %v11911_v61 = vld [vmem:[#allocation80_spill] sm:$0xff] }
 0x196   : > { %1758 = vmatprep.mubr.f32.mxu0 %v11895_v48  ;;  %7159 = vmatpush3.msra.mxu0 %v7962_v4  ;;  %v1866_v48 = vlaneseq }
 0x197   : > { %7210 = vmatpush3.msra.mxu1 %v11902_v55  ;;  %7160 = vmatprep.subr.mxu0 %v7964_v5 }
 0x198   : > { %7211 = vmatprep.subr.mxu1 %v11903_v58  ;;  %7161 = vmatpush3.msra.mxu0 %v7975_v9 }
 0x199   : > { %1760 = vmatmul.mubr.f32.gmra.mxu0 %v1389_v23  ;;  %7212 = vmatpush3.msra.mxu1 %v11904_v51  ;;  %v11912_v23 = vld [vmem:[#allocation84_spill] sm:$0xff] }
 0x19a   : > { %7213 = vmatprep.subr.mxu1 %v11905_v45  ;;  %7162 = vmatprep.subr.mxu0 %v7977_v10 }
 0x19b   : > { %7214 = vmatpush3.msra.mxu1 %v11906_v52  ;;  %7163 = vmatpush3.msra.mxu0 %v7979_v11  ;;  %v9088_v52 = vpop.permute.xlu1 %1944 }
 0x19c   : > { %7215 = vmatprep.subr.mxu1 %v11907_v25  ;;  %7164 = vmatprep.subr.mxu0 %v7993_v15  ;;  %v11943_v25 = vld [vmem:[#allocation97_spill] sm:$0xff] }
 0x19d   : > { %7216 = vmatpush3.msra.mxu1 %v11908_v20  ;;  %7165 = vmatpush3.msra.mxu0 %v7995_v16  ;;  %v11941_v20 = vld [vmem:[#allocation88_spill] sm:$0xff] }
 0x19e   : > { %7217 = vmatprep.subr.mxu1 %v11909_v40  ;;  %7166 = vmatprep.subr.mxu0 %v7998_v17  ;;  %v11938_v40 = vld [vmem:[#allocation130_spill] sm:$0xff] }
 0x19f   : > { %7218 = vmatpush3.msra.mxu1 %v11910_v53  ;;  %7167 = vmatpush3.msra.mxu0 %v8020_v22  ;;  %v11936_v53 = vld [vmem:[#allocation129_spill] sm:$0xff]  ;;  %v9090_v51 = vpop.permute.xlu1 %1970 }
 0x1a0   : > { %7219 = vmatprep.subr.mxu1 %v11911_v61  ;;  %7168 = vmatprep.subr.mxu0 %v8026_v24  ;;  %v11934_v61 = vld [vmem:[#allocation128_spill] sm:$0xff] }
 0x1a1   : > { %7220 = vmatpush3.msra.mxu1 %v11912_v23  ;;  %7169 = vmatpush3.msra.mxu0 %v8051_v30  ;;  %v11932_v23 = vld [vmem:[#allocation127_spill] sm:$0xff] }
 0x1a2   : > { %7221 = vmatprep.subr.mxu1 %v11913_v59  ;;  %7170 = vmatprep.subr.mxu0 %v11816_v18  ;;  %v11930_v59 = vld [vmem:[#allocation125_spill] sm:$0xff] }
 0x1a3   : > { %7222 = vmatpush3.msra.mxu1 %v11914_v26  ;;  %7171 = vmatpush3.msra.mxu0 %v11818_v47  ;;  %v11928_v26 = vld [vmem:[#allocation122_spill] sm:$0xff]  ;;  %v9092_v0 = vpop.permute.xlu1 %1996 }
 0x1a4   : > { %7223 = vmatprep.subr.mxu1 %v11915_v33  ;;  %7172 = vmatprep.subr.mxu0 %v11820_v21  ;;  %v11926_v33 = vld [vmem:[#allocation117_spill] sm:$0xff] }
 0x1a5   : > { %7224 = vmatpush3.msra.mxu1 %v11916_v14  ;;  %7173 = vmatpush3.msra.mxu0 %v11821_v54  ;;  %v11925_v14 = vld [vmem:[#allocation51_spill] sm:$0xff] }
 0x1a6   : > { %7225 = vmatprep.subr.mxu1 %v11917_v49  ;;  %7174 = vmatprep.subr.mxu0 %v11822_v7  ;;  %v11927_v49 = vld [vmem:[#allocation54_spill] sm:$0xff] }
 0x1a7   : > { %7226 = vmatpush3.msra.mxu1 %v11918_v36  ;;  %7175 = vmatpush3.msra.mxu0 %v11919_v13  ;;  %v11929_v36 = vld [vmem:[#allocation60_spill] sm:$0xff]  ;;  %v9094_v37 = vpop.permute.xlu1 %1895 }
 0x1a8   : > { %7227 = vmatprep.subr.mxu1 %v11920_v34  ;;  %7176 = vmatprep.subr.mxu0 %v11921_v6  ;;  %v11931_v34 = vld [vmem:[#allocation65_spill] sm:$0xff] }
 0x1a9   : > { %7228 = vmatpush3.msra.mxu1 %v11922_v31  ;;  %7177 = vmatpush3.msra.mxu0 %v11923_v28  ;;  %v11933_v31 = vld [vmem:[#allocation69_spill] sm:$0xff] }
 0x1aa   : > { %7229 = vmatprep.subr.mxu1 %v11924_v2  ;;  %7178 = vmatprep.subr.mxu0 %v11925_v14  ;;  %v11935_v2 = vld [vmem:[#allocation73_spill] sm:$0xff] }
 0x1ab   : > { %7230 = vmatpush3.msra.mxu1 %v11926_v33  ;;  %7179 = vmatpush3.msra.mxu0 %v11927_v49  ;;  %v11937_v33 = vld [vmem:[#allocation76_spill] sm:$0xff]  ;;  %v9096_v8 = vpop.permute.xlu1 %1922 }
 0x1ac   : > { %7231 = vmatprep.subr.mxu1 %v11928_v26  ;;  %7180 = vmatprep.subr.mxu0 %v11929_v36  ;;  %v11939_v26 = vld [vmem:[#allocation79_spill] sm:$0xff] }
 0x1ad   : > { %7232 = vmatpush3.msra.mxu1 %v11930_v59  ;;  %7181 = vmatpush3.msra.mxu0 %v11931_v34  ;;  %v11940_v59 = vld [vmem:[#allocation83_spill] sm:$0xff] }
 0x1ae   : > { %7233 = vmatprep.subr.mxu1 %v11932_v23  ;;  %7182 = vmatprep.subr.mxu0 %v11933_v31  ;;  %v11942_v23 = vld [vmem:[#allocation92_spill] sm:$0xff] }
 0x1af   : > { %7234 = vmatpush3.msra.mxu1 %v11934_v61  ;;  %7183 = vmatpush3.msra.mxu0 %v11935_v2  ;;  %v11944_v61 = vld [vmem:[#allocation11_spill] sm:$0xff] }
 0x1b0   : > { %7235 = vmatprep.subr.mxu1 %v11936_v53  ;;  %7184 = vmatprep.subr.mxu0 %v11937_v33 }
 0x1b1   : > { %7236 = vmatpush3.msra.mxu1 %v11938_v40  ;;  %7185 = vmatpush3.msra.mxu0 %v11939_v26 }
 0x1b2   : > { %7299 = vmatprep.subr.mxu1 %v7960_v3  ;;  %7186 = vmatprep.subr.mxu0 %v11940_v59 }
 0x1b3   : > { %7187 = vmatpush3.msra.mxu0 %v11941_v20 }
 0x1b4   : > { %7188 = vmatprep.subr.mxu0 %v11942_v23 }
 0x1b5   : > { %7189 = vmatpush3.msra.mxu0 %v11943_v25 }
 0x1b6   : > { %7252 = vmatprep.subr.mxu0 %v11944_v61 }
 0x23d   : > { %v1487_v53 = vpop.f32.mrf.mxu1 }
 0x23f   : > { %v1489_v45 = vpop.f32.mrf.mxu1 }
 0x241   : > { %v1494_v40 = vpop.f32.mrf.mxu1 }
 0x243   : > { %v1496_v58 = vpop.f32.mrf.mxu1 }
 0x245   : > { %v1384_v55 = vpop.f32.mrf.mxu0  ;;  %v1661_v35 = vpop.f32.mrf.mxu1 }
 0x246   : > { %v1488_v42 = vadd.f32 %v1487_v53, %v1384_v55 }
 0x247   : > { %v1386_v46 = vpop.f32.mrf.mxu0  ;;  %v1663_v1 = vpop.f32.mrf.mxu1 }
 0x248   : > { %v1490_v63 = vadd.f32 %v1489_v45, %v1386_v46 }
 0x249   : > { %v1395_v12 = vpop.f32.mrf.mxu0  ;;  %v1670_v44 = vpop.f32.mrf.mxu1 }
 0x24a   : > { %v1495_v27 = vadd.f32 %v1494_v40, %v1395_v12  ;;  %v1891_v40 = vpop.permute.xlu0 %1890 }
 0x24b   : > { %v1397_v50 = vpop.f32.mrf.mxu0  ;;  %v1672_v61 = vpop.f32.mrf.mxu1 }
 0x24c   : > { %v1497_v62 = vadd.f32 %v1496_v58, %v1397_v50 }
 0x24d   : > { %v1575_v32 = vpop.f32.mrf.mxu0  ;;  %v1837_v41 = vpop.f32.mrf.mxu1 }
 0x24e   : > { %v1576_v60 = vadd.f32 %v1575_v32, %v1488_v42  ;;  %v9100_v42 = vshrl.u32 %v1866_v48, 7 }
 0x24f   : > { %v1577_v43 = vpop.f32.mrf.mxu0  ;;  %v1839_v3 = vpop.f32.mrf.mxu1 }
 0x250   : > { %v1578_v56 = vadd.f32 %v1577_v43, %v1490_v63  ;;  %v1662_v57 = vadd.f32 %v1661_v35, %v1576_v60  ;;  %11945 = vst [vmem:[#allocation146_spill] sm:$0xff] %v9100_v42  ;;  %v9102_v43 = vpop.permute.xlu1 %1974  ;;  %v9105_v60 = vsub.s32 0, %v9100_v42  ;;  %v7857_v35 = vld [vmem:[%s8410_s12] sm:$0x1f] }
 0x251   : > { %v1583_v29 = vpop.f32.mrf.mxu0  ;;  %v1844_v63 = vpop.f32.mrf.mxu1 }
 0x252   : > { %v1584_v38 = vadd.f32 %v1583_v29, %v1495_v27  ;;  %v1664_v53 = vadd.f32 %v1663_v1, %v1578_v56  ;;  %11946 = vst [vmem:[#allocation147_spill] sm:$0xff] %v9105_v60  ;;  %v9111_v27 = vsub.s32 1, %v9100_v42  ;;  %v312_v29 = vld [vmem:[%s11128_s1 + $0x8] sm:$0x3f] }
 0x253   : > { %v1585_v39 = vpop.f32.mrf.mxu0 }
 0x254   : > { %v1586_v23 = vadd.f32 %v1585_v39, %v1497_v62  ;;  %v1671_v12 = vadd.f32 %v1670_v44, %v1584_v38  ;;  %v311_v39 = vld [vmem:[%s11128_s1] sm:$0x3f]  ;;  %v1846_v44 = vpop.f32.mrf.mxu1  ;;  %11947 = vst [vmem:[#allocation148_spill] sm:$0xff] %v9111_v27 }
 0x255   : > { %v1754_v25 = vpop.f32.mrf.mxu0 }
 0x256   : > { %v1755_v55 = vadd.f32 %v1754_v25, %v1662_v57  ;;  %v1673_v50 = vadd.f32 %v1672_v61, %v1586_v23  ;;  %v1869_v25 = vrot.slane %v311_v39, %v9105_v60  ;;  %v9118_v61 = vpop.permute.xlu0 %2047 }
 0x257   : > { %v1756_v46 = vpop.f32.mrf.mxu0 }
 0x258   : > { %v1757_v32 = vadd.f32 %v1756_v46, %v1664_v53  ;;  %v1838_v20 = vadd.f32 %v1837_v41, %v1755_v55  ;;  %v7858_v53 = vld [vmem:[%s8410_s12 + $0x8] sm:$0x1f] }
 0x259   : > { %v1761_v45 = vpop.f32.mrf.mxu0 }
 0x25a   : > { %v1762_v59 = vadd.f32 %v1761_v45, %v1671_v12  ;;  %v1840_v57 = vadd.f32 %v1839_v3, %v1757_v32  ;;  %v1856_v41 = vrot.slane %v1838_v20, 5  ;;  %v1901_v3 = vpop.permute.xlu1 %1900  ;;  %v1849_v58 = vsub.f32 %v7857_v35, %v1838_v20 }
 0x25b   : > { %v1763_v62 = vpop.f32.mrf.mxu0  ;;  %v1879_v12 = vrot.slane %v311_v39, %v9111_v27  ;;  %v1883_v20 = vrot.slane %v312_v29, %v9111_v27  ;;  %v9133_v35 = vsub.s32 4, %v9100_v42 }
 0x25c   : > { %v1845_v56 = vadd.f32 %v1844_v63, %v1762_v59  ;;  %v1764_v38 = vadd.f32 %v1763_v62, %v1673_v50  ;;  %v1859_v23 = vrot.slane %v1840_v57, 5  ;;  %v1850_v46 = vsub.f32 %v7858_v53, %v1840_v57 }
 0x25d   : > { %v1873_v63 = vrot.slane %v312_v29, %v9105_v60  ;;  %11950 = vst [vmem:[#allocation151_spill] sm:$0xff] %v9133_v35 }
 0x25e   : > { %v1857_v48 = vrot.slane %v1845_v56, 5  ;;  %v1847_v1 = vadd.f32 %v1846_v44, %v1764_v38  ;;  %v1953_v56 = vpop.permute.xlu1 %1952  ;;  %v9127_v44 = vsub.s32 2, %v9100_v42 }
 0x260   : > { %v1858_v59 = vsel %vm1855_vm2, %v1856_v41, %v1857_v48  ;;  %v1860_v55 = vrot.slane %v1847_v1, 5  ;;  %11948 = vst [vmem:[#allocation149_spill] sm:$0xff] %v9127_v44  ;;  %v9130_v41 = vsub.s32 3, %v9100_v42  ;;  %v1949_v48 = vpop.permute.xlu0 %1948 }
 0x261   : > { %v1864_v32 = vmul.f32 %v1858_v59, %v1849_v58 }
 0x262   : > { %v1861_v45 = vsel %vm1855_vm2, %v1859_v23, %v1860_v55  ;;  %11949 = vst [vmem:[#allocation150_spill] sm:$0xff] %v9130_v41  ;;  %v1979_v55 = vpop.permute.xlu1 %1978 }
 0x263   : > { %v1874_v50 = vmul.f32 %v1869_v25, %v1864_v32  ;;  %v1865_v62 = vmul.f32 %v1861_v45, %v1850_v46 }
 0x265   : > { %v1884_v38 = vadd.f32 %v1879_v12, %v1874_v50  ;;  %v1875_v57 = vmul.f32 %v1873_v63, %v1865_v62  ;;  %v1927_v63 = vpop.permute.xlu0 %1926 }
 0x267   : > { %v1886_v1 = vmax.f32 %v1884_v38, 0.0  ;;  %v1885_v39 = vadd.f32 %v1883_v20, %v1875_v57 }
 0x269   : > { %v1958_v58 = vrot.slane %v1886_v1, %v9127_v44  ;;  %v1984_v25 = vrot.slane %v1886_v1, %v9130_v41  ;;  %v1887_v29 = vmax.f32 %v1885_v39, 0.0  ;;  %v1906_v23 = vrot.slane %v1886_v1, %v9105_v60 }
 0x26a   : > { %v1932_v59 = vrot.slane %v1886_v1, %v9111_v27  ;;  %v2010_v42 = vrot.slane %v1886_v1, %v9133_v35 }
 0x26b   : > { %v1963_v53 = vmul.f32 %v1958_v58, %v9088_v52  ;;  %v1965_v46 = vmul.f32 %v1958_v58, %v1949_v48  ;;  %v1989_v32 = vmul.f32 %v1984_v25, %v9090_v51  ;;  %v1991_v12 = vmul.f32 %v1984_v25, %v9102_v43 }
 0x26c   : > { %v1910_v45 = vrot.slane %v1887_v29, %v9105_v60  ;;  %v1911_v50 = vmul.f32 %v1906_v23, %v1891_v40  ;;  %v1915_v62 = vmul.f32 %v1906_v23, %v1901_v3  ;;  %v1936_v20 = vrot.slane %v1887_v29, %v9111_v27 }
 0x26d   : > { %v2027_v38 = vadd.f32 %v1989_v32, %v1963_v53  ;;  %v1937_v57 = vmul.f32 %v1932_v59, %v9098_v19  ;;  %v1941_v39 = vmul.f32 %v1932_v59, %v1927_v63  ;;  %v2029_v34 = vadd.f32 %v1991_v12, %v1965_v46  ;;  %v2005_v32 = vpop.permute.xlu1 %2004 }
 0x26e   : > { %v1912_v26 = vmul.f32 %v1910_v45, %v1891_v40  ;;  %v1916_v33 = vmul.f32 %v1910_v45, %v1901_v3  ;;  %v1938_v2 = vmul.f32 %v1936_v20, %v9098_v19  ;;  %v1942_v31 = vmul.f32 %v1936_v20, %v1927_v63  ;;  %v2001_v63 = vpop.permute.xlu0 %2000 }
 0x26f   : > { %v2021_v36 = vadd.f32 %v1937_v57, %v1911_v50  ;;  %v1962_v49 = vrot.slane %v1887_v29, %v9127_v44  ;;  %v1967_v60 = vmul.f32 %v1958_v58, %v1953_v56  ;;  %v2025_v28 = vadd.f32 %v1941_v39, %v1915_v62 }
 0x270   : > { %v2022_v14 = vadd.f32 %v1938_v2, %v1912_v26  ;;  %v1988_v27 = vrot.slane %v1887_v29, %v9130_v41  ;;  %v1993_v53 = vmul.f32 %v1984_v25, %v1979_v55  ;;  %v2026_v6 = vadd.f32 %v1942_v31, %v1916_v33 }
 0x271   : > { %v1964_v13 = vmul.f32 %v1962_v49, %v9088_v52  ;;  %v1968_v1 = vmul.f32 %v1962_v49, %v1953_v56  ;;  %v2014_v40 = vrot.slane %v1887_v29, %v9133_v35  ;;  %v2015_v12 = vmul.f32 %v2010_v42, %v9092_v0  ;;  %v11997_v35 = vld [vmem:[#allocation103_spill] sm:$0xff] }
 0x272   : > { %v1990_v19 = vmul.f32 %v1988_v27, %v9090_v51  ;;  %v1994_v3 = vmul.f32 %v1988_v27, %v1979_v55  ;;  %v2031_v46 = vadd.f32 %v1993_v53, %v1967_v60  ;;  %v2019_v26 = vmul.f32 %v2010_v42, %v2005_v32 }
 0x273   : > { %v2016_v2 = vmul.f32 %v2014_v40, %v9092_v0  ;;  %v2033_v58 = vadd.f32 %v2027_v38, %v2021_v36  ;;  %v1913_v25 = vmul.f32 %v1906_v23, %v9094_v37  ;;  %v1914_v52 = vmul.f32 %v1910_v45, %v9094_v37  ;;  %v9162_v45 = vpop.permute.xlu0 %2057 }
 0x274   : > { %v2028_v50 = vadd.f32 %v1990_v19, %v1964_v13  ;;  %v2032_v31 = vadd.f32 %v1994_v3, %v1968_v1  ;;  %v2037_v33 = vadd.f32 %v2031_v46, %v2025_v28  ;;  %v1939_v29 = vmul.f32 %v1932_v59, %v9096_v8  ;;  %11952 = vst [vmem:[#allocation153_spill] sm:$0xff] %v9162_v45 }
 0x275   : > { %v2039_v56 = vadd.f32 %v2033_v58, %v2015_v12  ;;  %v1940_v51 = vmul.f32 %v1936_v20, %v9096_v8  ;;  %v1966_v60 = vmul.f32 %v1962_v49, %v1949_v48  ;;  %v2020_v55 = vmul.f32 %v2014_v40, %v2005_v32 }
 0x276   : > { %v2034_v62 = vadd.f32 %v2028_v50, %v2022_v14  ;;  %v2038_v57 = vadd.f32 %v2032_v31, %v2026_v6  ;;  %v1992_v0 = vmul.f32 %v1988_v27, %v9102_v43  ;;  %v2043_v39 = vadd.f32 %v2037_v33, %v2019_v26  ;;  %v2053_v6 = vpop.permute.xlu1 %2052 }
 0x277   : > { %v9160_v36 = vadd.f32 %v9118_v61, %v2039_v56  ;;  %v2023_v13 = vadd.f32 %v1939_v29, %v1913_v25  ;;  %v2017_v38 = vmul.f32 %v2010_v42, %v2001_v63  ;;  %v2024_v37 = vadd.f32 %v1940_v51, %v1914_v52 }
 0x278   : > { %v2040_v23 = vadd.f32 %v2034_v62, %v2016_v2  ;;  %v2044_v28 = vadd.f32 %v2038_v57, %v2020_v55  ;;  %v2030_v59 = vadd.f32 %v1992_v0, %v1966_v60  ;;  %v2018_v43 = vmul.f32 %v2014_v40, %v2001_v63 }
 0x279   : > { %11951 = vst [vmem:[#allocation152_spill] sm:$0xff] %v9160_v36  ;;  %v2035_v53 = vadd.f32 %v2029_v34, %v2023_v13  ;;  %v9165_v8 = vand.u32 4294901760, %v9160_v36  ;;  %v2066_v14 = vmul.f32 %v9160_v36, %v9160_v36  ;;  %v9180_v32 = vadd.f32 %v9162_v45, %v2043_v39 }
 0x27a   : > { %v9170_v49 = vadd.f32 %v9162_v45, %v2044_v28  ;;  %v9173_v27 = vadd.f32 %v9118_v61, %v2040_v23  ;;  %v2036_v42 = vadd.f32 %v2030_v59, %v2024_v37  ;;  %v11968_v45 = vld [vmem:[#allocation47_spill] sm:$0xff] }
 0x27b   : > { %v2041_v48 = vadd.f32 %v2035_v53, %v2017_v38  ;;  %v9177_v20 = vsub.f32 %v9160_v36, %v9165_v8  ;;  %v2079_v34 = vrot.slane %v2066_v14, 4  ;;  %11955 = vst [vmem:[#allocation156_spill] sm:$0xff] %v9180_v32  ;;  %v2070_v50 = vmul.f32 %v9180_v32, %v9180_v32 }
 0x27c   : > { %11953 = vst [vmem:[#allocation154_spill] sm:$0xff] %v9170_v49  ;;  %11954 = vst [vmem:[#allocation155_spill] sm:$0xff] %v9173_v27  ;;  %v9183_v1 = vand.u32 4294901760, %v9173_v27  ;;  %v2067_v19 = vmul.f32 %v9173_v27, %v9173_v27  ;;  %v2042_v40 = vadd.f32 %v2036_v42, %v2018_v43  ;;  %v2071_v46 = vmul.f32 %v9170_v49, %v9170_v49 }
 0x27d   : > { %v9187_v61 = vadd.f32 %v2053_v6, %v2041_v48  ;;  %v11468_v3 = vand.u32 4294901760, %v9177_v20  ;;  %v2095_v25 = vsel %vm2078_vm3, %v9180_v32, %v2079_v34  ;;  %v2085_v43 = vrot.slane %v2070_v50, 4 }
 0x27e   : > { %2494 = vmatprep.mubr.f32.mxu1 %v9183_v1  ;;  %v2080_v12 = vrot.slane %v2067_v19, 4  ;;  %v9195_v63 = vsub.f32 %v9173_v27, %v9183_v1  ;;  %v9197_v2 = vadd.f32 %v2053_v6, %v2042_v40  ;;  %v2087_v55 = vrot.slane %v2071_v46, 4 }
 0x27f   : > { %11956 = vst [vmem:[#allocation157_spill] sm:$0xff] %v9187_v61  ;;  %v2068_v26 = vmul.f32 %v9187_v61, %v9187_v61  ;;  %2496 = vmatmul.mubr.f32.vlgmr.msra.gmra.mxu1 %v9165_v8  ;;  %v9203_v58 = vand.u32 4294901760, %v9187_v61  ;;  %v2202_v52 = vsub.f32 %v9177_v20, %v11468_v3  ;;  %v9228_v57 = vand.u32 4294901760, %v2095_v25  ;;  %v11966_v3 = vld [vmem:[#allocation43_spill] sm:$0xff] }
 0x280   : > { %11957 = vst [vmem:[#allocation158_spill] sm:$0xff] %v9197_v2  ;;  %7300 = vmatpush3.msra.mxu1 %v7962_v4  ;;  %v2096_v31 = vsel %vm2078_vm3, %v9170_v49, %v2080_v12  ;;  %v11469_v33 = vand.u32 4294901760, %v9195_v63  ;;  %v2069_v56 = vmul.f32 %v9197_v2, %v9197_v2  ;;  %v9219_v51 = vand.u32 4294901760, %v9197_v2 }
 0x281   : > { %v2081_v29 = vrot.slane %v2068_v26, 4  ;;  %7301 = vmatprep.subr.mxu1 %v7964_v5  ;;  %v9222_v60 = vand.u32 4294901760, %v2096_v31  ;;  %v9232_v0 = vsub.f32 %v9187_v61, %v9203_v58  ;;  %v2203_v38 = vand.u32 4294901760, %v2202_v52  ;;  %v11959_v52 = vld [vmem:[#allocation15_spill] sm:$0xff] }
 0x282   : > { %7302 = vmatpush3.msra.mxu1 %v7975_v9  ;;  %v2196_v62 = vsub.f32 %v9195_v63, %v11469_v33  ;;  %v2083_v39 = vrot.slane %v2069_v56, 4  ;;  %2501 = vmatprep.mubr.f32.mxu1 %v9219_v51  ;;  %v9238_v13 = vsub.f32 %v9197_v2, %v9219_v51  ;;  %v9256_v19 = vsub.f32 %v2095_v25, %v9228_v57  ;;  %v11958_v25 = vld [vmem:[#allocation13_spill] sm:$0xff] }
 0x283   : > { %7303 = vmatprep.subr.mxu1 %v7977_v10  ;;  %v9241_v23 = vsub.f32 %v2096_v31, %v9222_v60  ;;  %2503 = vmatmul.mubr.f32.gmra.mxu1 %v9203_v58  ;;  %v11465_v37 = vand.u32 4294901760, %v9232_v0  ;;  %v2082_v14 = vsel %vm2078_vm3, %v2079_v34, %v2081_v29  ;;  %v12000_v2 = vld [vmem:[#allocation105_spill] sm:$0xff]  ;;  %v12066_v61 = vmov 5  }
 0x284   : > { %v2197_v28 = vand.u32 4294901760, %v2196_v62  ;;  %7304 = vmatpush3.msra.mxu1 %v7979_v11  ;;  %2508 = vmatprep.mubr.f32.mxu1 %v9222_v60  ;;  %v11467_v59 = vand.u32 4294901760, %v9238_v13  ;;  %v2084_v53 = vsel %vm2078_vm3, %v2080_v12, %v2083_v39  ;;  %v2088_v48 = vsel %vm2078_vm3, %v2083_v39, %v2087_v55  ;;  %v11960_v62 = vld [vmem:[#allocation18_spill] sm:$0xff] }
 0x285   : > { %v11463_v6 = vand.u32 4294901760, %v9241_v23  ;;  %7305 = vmatprep.subr.mxu1 %v7993_v15  ;;  %v9252_v42 = vand.u32 4294901760, %v2084_v53  ;;  %v2217_v40 = vsub.f32 %v9232_v0, %v11465_v37  ;;  %v9267_v46 = vand.u32 4294901760, %v2082_v14  ;;  %v11965_v37 = vld [vmem:[#allocation39_spill] sm:$0xff] }
 0x286   : > { %2198 = vmatprep.mubr.f32.mxu0 %v2197_v28  ;;  %7306 = vmatpush3.msra.mxu1 %v7995_v16  ;;  %v2211_v34 = vsub.f32 %v9238_v13, %v11467_v59  ;;  %v9277_v31 = vand.u32 4294901760, %v2088_v48  ;;  %v11464_v56 = vand.u32 4294901760, %v9256_v19  ;;  %v2086_v55 = vsel %vm2078_vm3, %v2081_v29, %v2085_v43 }
 0x287   : > { %2204 = vmatmul.mubr.f32.vlgmr.msra.gmra.mxu0 %v2203_v38  ;;  %7307 = vmatprep.subr.mxu1 %v7998_v17  ;;  %v2226_v12 = vsub.f32 %v9241_v23, %v11463_v6  ;;  %v9273_v26 = vsub.f32 %v2084_v53, %v9252_v42  ;;  %v2218_v39 = vand.u32 4294901760, %v2217_v40  ;;  %v9288_v53 = vsub.f32 %v2082_v14, %v9267_v46  ;;  %v11962_v40 = vld [vmem:[#allocation25_spill] sm:$0xff] }
 0x288   : > { %2510 = vmatmul.mubr.f32.gmra.mxu1 %v9228_v57  ;;  %7253 = vmatpush3.msra.mxu0 %v11958_v25  ;;  %v2212_v50 = vand.u32 4294901760, %v2211_v34  ;;  %v11961_v34 = vld [vmem:[#allocation22_spill] sm:$0xff]  ;;  %v9292_v6 = vand.u32 4294901760, %v2086_v55  ;;  %v9295_v29 = vsub.f32 %v2088_v48, %v9277_v31  ;;  %v2232_v43 = vsub.f32 %v9256_v19, %v11464_v56  ;;  %v11964_v56 = vld [vmem:[#allocation36_spill] sm:$0xff]  ;;  %v11993_v25 = vld [vmem:[#allocation95_spill] sm:$0xff] }
 0x289   : > { %7308 = vmatpush3.msra.mxu1 %v8020_v22  ;;  %2515 = vmatprep.mubr.f32.mxu1 %v9252_v42  ;;  %v2227_v28 = vand.u32 4294901760, %v2226_v12  ;;  %v11466_v38 = vand.u32 4294901760, %v9273_v26  ;;  %v11471_v48 = vand.u32 4294901760, %v9288_v53  ;;  %v11963_v12 = vld [vmem:[#allocation28_spill] sm:$0xff]  ;;  %v12067_v36 = vmov 7  }
 0x28a   : > { %7254 = vmatprep.subr.mxu0 %v11959_v52  ;;  %2213 = vmatprep.mubr.f32.mxu0 %v2212_v50  ;;  %v11472_v50 = vand.u32 4294901760, %v9295_v29  ;;  %v11991_v52 = vld [vmem:[#allocation89_spill] sm:$0xff] }
 0x28b   : > { %7309 = vmatprep.subr.mxu1 %v8026_v24  ;;  %7255 = vmatpush3.msra.mxu0 %v11960_v62  ;;  %v2241_v14 = vsub.f32 %v9273_v26, %v11466_v38  ;;  %v2247_v59 = vsub.f32 %v9288_v53, %v11471_v48  ;;  %v11972_v48 = vld [vmem:[#allocation48_spill] sm:$0xff]  ;;  %v11982_v62 = vld [vmem:[#allocation69_spill] sm:$0xff] }
 0x28c   : > { %7310 = vmatpush3.msra.mxu1 %v8051_v30  ;;  %7256 = vmatprep.subr.mxu0 %v11961_v34 }
 0x28d   : > { %7311 = vmatprep.subr.mxu1 %v11816_v18  ;;  %2219 = vmatmul.mubr.f32.gmra.mxu0 %v2218_v39  ;;  %v9312_v39 = vsub.f32 %v2086_v55, %v9292_v6  ;;  %v2242_v38 = vand.u32 4294901760, %v2241_v14  ;;  %v11967_v55 = vld [vmem:[#allocation40_spill] sm:$0xff]  ;;  %v11970_v14 = vand.u32 4294901760, %v9195_v63 }
 0x28e   : > { %2517 = vmatmul.mubr.f32.gmra.mxu1 %v9267_v46  ;;  %7257 = vmatpush3.msra.mxu0 %v11962_v40  ;;  %v11976_v40 = vld [vmem:[#allocation57_spill] sm:$0xff] }
 0x28f   : > { %7312 = vmatpush3.msra.mxu1 %v11818_v47  ;;  %2228 = vmatprep.mubr.f32.mxu0 %v2227_v28  ;;  %v2233_v28 = vand.u32 4294901760, %v2232_v43  ;;  %v2256_v43 = vsub.f32 %v9295_v29, %v11472_v50  ;;  %v11473_v33 = vand.u32 4294901760, %v9312_v39 }
 0x290   : > { %2522 = vmatprep.mubr.f32.mxu1 %v9277_v31  ;;  %7258 = vmatprep.subr.mxu0 %v11963_v12  ;;  %v11974_v12 = vld [vmem:[#allocation51_spill] sm:$0xff] }
 0x291   : > { %7313 = vmatprep.subr.mxu1 %v11820_v21  ;;  %7259 = vmatpush3.msra.mxu0 %v11964_v56  ;;  %v11973_v56 = vld [vmem:[#allocation53_spill] sm:$0xff]  ;;  %v2257_v50 = vand.u32 4294901760, %v2256_v43  ;;  %v11981_v43 = vld [vmem:[#allocation72_spill] sm:$0xff] }
 0x292   : > { %7314 = vmatpush3.msra.mxu1 %v11821_v54  ;;  %7260 = vmatprep.subr.mxu0 %v11965_v37  ;;  %v11971_v37 = vld [vmem:[#allocation50_spill] sm:$0xff] }
 0x293   : > { %7315 = vmatprep.subr.mxu1 %v11822_v7  ;;  %2234 = vmatmul.mubr.f32.gmra.mxu0 %v2233_v28  ;;  %v11969_v28 = vld [vmem:[#allocation44_spill] sm:$0xff] }
 0x294   : > { %2524 = vmatmul.mubr.f32.gmra.mxu1 %v9292_v6  ;;  %7261 = vmatpush3.msra.mxu0 %v11966_v3  ;;  %v2248_v3 = vand.u32 4294901760, %v2247_v59  ;;  %v11979_v59 = vld [vmem:[#allocation66_spill] sm:$0xff] }
 0x295   : > { %7316 = vmatpush3.msra.mxu1 %v11967_v55  ;;  %2243 = vmatprep.mubr.f32.mxu0 %v2242_v38  ;;  %v2262_v38 = vsub.f32 %v9312_v39, %v11473_v33  ;;  %v11984_v33 = vld [vmem:[#allocation75_spill] sm:$0xff] }
 0x296   : > { %7262 = vmatprep.subr.mxu0 %v11968_v45  ;;  %7317 = vmatprep.subr.mxu1 %v11969_v28  ;;  %v11975_v45 = vld [vmem:[#allocation54_spill] sm:$0xff] }
 0x297   : > { %2802 = vmatprep.mubr.f32.mxu1 %v11970_v14  ;;  %7263 = vmatpush3.msra.mxu0 %v11971_v37  ;;  %v11977_v14 = vld [vmem:[#allocation63_spill] sm:$0xff]  ;;  %v11978_v37 = vld [vmem:[#allocation60_spill] sm:$0xff]  ;;  %v2263_v34 = vand.u32 4294901760, %v2262_v38  ;;  %v11989_v38 = vld [vmem:[#allocation86_spill] sm:$0xff] }
 0x298   : > { %7318 = vmatpush3.msra.mxu1 %v11972_v48  ;;  %7264 = vmatprep.subr.mxu0 %v11973_v56  ;;  %v11980_v56 = vld [vmem:[#allocation65_spill] sm:$0xff] }
 0x299   : > { %7319 = vmatprep.subr.mxu1 %v11974_v12  ;;  %2249 = vmatmul.mubr.f32.gmra.mxu0 %v2248_v3  ;;  %v11983_v3 = vld [vmem:[#allocation73_spill] sm:$0xff] }
 0x29a   : > { %7320 = vmatpush3.msra.mxu1 %v11975_v45  ;;  %7265 = vmatpush3.msra.mxu0 %v11976_v40  ;;  %v11987_v40 = vld [vmem:[#allocation82_spill] sm:$0xff] }
 0x29b   : > { %2258 = vmatprep.mubr.f32.mxu0 %v2257_v50  ;;  %7266 = vmatprep.subr.mxu0 %v11977_v14  ;;  %v11985_v50 = vld [vmem:[#allocation78_spill] sm:$0xff]  ;;  %v11986_v14 = vld [vmem:[#allocation76_spill] sm:$0xff] }
 0x29c   : > { %7321 = vmatprep.subr.mxu1 %v11978_v37  ;;  %7267 = vmatpush3.msra.mxu0 %v11979_v59  ;;  %v11988_v59 = vld [vmem:[#allocation79_spill] sm:$0xff] }
 0x29d   : > { %7322 = vmatpush3.msra.mxu1 %v11980_v56  ;;  %7268 = vmatprep.subr.mxu0 %v11981_v43  ;;  %v11990_v43 = vld [vmem:[#allocation83_spill] sm:$0xff] }
 0x29e   : > { %7323 = vmatprep.subr.mxu1 %v11982_v62  ;;  %2264 = vmatmul.mubr.f32.gmra.mxu0 %v2263_v34  ;;  %v11992_v34 = vld [vmem:[#allocation88_spill] sm:$0xff] }
 0x29f   : > { %7324 = vmatpush3.msra.mxu1 %v11983_v3  ;;  %7269 = vmatpush3.msra.mxu0 %v11984_v33  ;;  %v11994_v33 = vld [vmem:[#allocation92_spill] sm:$0xff] }
 0x2a0   : > { %2659 = vmatprep.mubr.f32.mxu0 %v9195_v63  ;;  %7270 = vmatprep.subr.mxu0 %v11985_v50  ;;  %v11995_v63 = vld [vmem:[#allocation98_spill] sm:$0xff]  ;;  %v11996_v50 = vld [vmem:[#allocation97_spill] sm:$0xff] }
 0x2a1   : > { %7325 = vmatprep.subr.mxu1 %v11986_v14  ;;  %7271 = vmatpush3.msra.mxu0 %v11987_v40  ;;  %v11998_v40 = vand.u32 4294901760, %v9177_v20 }
 0x2a2   : > { %7326 = vmatpush3.msra.mxu1 %v11988_v59  ;;  %7272 = vmatprep.subr.mxu0 %v11989_v38  ;;  %v11999_v38 = vld [vmem:[#allocation2_spill] sm:$0xff] }
 0x2a3   : > { %7327 = vmatprep.subr.mxu1 %v11990_v43  ;;  %7273 = vmatpush3.msra.mxu0 %v11991_v52  ;;  %v12001_v52 = vand.u32 4294901760, %v9238_v13 }
 0x2a4   : > { %7328 = vmatpush3.msra.mxu1 %v11992_v34  ;;  %7274 = vmatprep.subr.mxu0 %v11993_v25  ;;  %v12002_v25 = vld [vmem:[#allocation107_spill] sm:$0xff] }
 0x2a5   : > { %7329 = vmatprep.subr.mxu1 %v11994_v33  ;;  %7275 = vmatpush3.msra.mxu0 %v11995_v63  ;;  %v12003_v63 = vld [vmem:[#allocation113_spill] sm:$0xff] }
 0x2a6   : > { %7330 = vmatpush3.msra.mxu1 %v11996_v50  ;;  %7276 = vmatprep.subr.mxu0 %v11997_v35  ;;  %v12004_v35 = vld [vmem:[#allocation115_spill] sm:$0xff] }
 0x2a7   : > { %2806 = vmatmul.mubr.f32.vlgmr.msra.gmra.mxu1 %v11998_v40  ;;  %7393 = vmatprep.subr.mxu1 %v11999_v38  ;;  %v12005_v40 = vand.u32 4294901760, %v9232_v0 }
 0x2a8   : > { %7277 = vmatpush3.msra.mxu0 %v12000_v2  ;;  %2813 = vmatprep.mubr.f32.mxu1 %v12001_v52  ;;  %v12006_v2 = vld [vmem:[#allocation116_spill] sm:$0xff]  ;;  %v12007_v52 = vand.u32 4294901760, %v9241_v23 }
 0x2a9   : > { %7394 = vmatpush3.msra.mxu1 %v7962_v4  ;;  %7278 = vmatprep.subr.mxu0 %v12002_v25  ;;  %v12008_v25 = vld [vmem:[#allocation121_spill] sm:$0xff] }
 0x2aa   : > { %7395 = vmatprep.subr.mxu1 %v7964_v5  ;;  %7279 = vmatpush3.msra.mxu0 %v12003_v63  ;;  %v12009_v63 = vld [vmem:[#allocation123_spill] sm:$0xff] }
 0x2ab   : > { %7396 = vmatpush3.msra.mxu1 %v7975_v9  ;;  %7280 = vmatprep.subr.mxu0 %v12004_v35  ;;  %v12011_v35 = vld [vmem:[#allocation16_spill] sm:$0xff] }
 0x2ac   : > { %2817 = vmatmul.mubr.f32.gmra.mxu1 %v12005_v40  ;;  %7397 = vmatprep.subr.mxu1 %v7977_v10  ;;  %v12010_v40 = vand.u32 4294901760, %v9256_v19 }
 0x2ad   : > { %7281 = vmatpush3.msra.mxu0 %v12006_v2  ;;  %2824 = vmatprep.mubr.f32.mxu1 %v12007_v52  ;;  %v12012_v52 = vand.u32 4294901760, %v9273_v26 }
 0x2ae   : > { %7398 = vmatpush3.msra.mxu1 %v7979_v11  ;;  %7282 = vmatprep.subr.mxu0 %v12008_v25  ;;  %v12013_v25 = vld [vmem:[#allocation20_spill] sm:$0xff] }
 0x2af   : > { %7399 = vmatprep.subr.mxu1 %v7993_v15  ;;  %7283 = vmatpush3.msra.mxu0 %v12009_v63  ;;  %v12014_v63 = vld [vmem:[#allocation21_spill] sm:$0xff] }
 0x2b0   : > { %7400 = vmatpush3.msra.mxu1 %v7995_v16  ;;  %2662 = vmatmul.mubr.f32.vlgmr.msra.gmra.mxu0 %v9177_v20  ;;  %v12015_v20 = vld [vmem:[#allocation24_spill] sm:$0xff] }
 0x2b1   : > { %2828 = vmatmul.mubr.f32.gmra.mxu1 %v12010_v40  ;;  %7346 = vmatprep.subr.mxu0 %v12011_v35  ;;  %v12016_v40 = vand.u32 4294901760, %v9288_v53  ;;  %v12065_v35 = vmov 4  }
 0x2b2   : > { %7401 = vmatprep.subr.mxu1 %v7998_v17  ;;  %2668 = vmatprep.mubr.f32.mxu0 %v9238_v13  ;;  %v12017_v13 = vld [vmem:[#allocation27_spill] sm:$0xff] }
 0x2b3   : > { %2835 = vmatprep.mubr.f32.mxu1 %v12012_v52  ;;  %7347 = vmatpush3.msra.mxu0 %v12013_v25  ;;  %v12018_v52 = vand.u32 4294901760, %v9295_v29 }
 0x2b4   : > { %7402 = vmatpush3.msra.mxu1 %v8020_v22  ;;  %7348 = vmatprep.subr.mxu0 %v12014_v63  ;;  %v12019_v63 = vld [vmem:[#allocation30_spill] sm:$0xff]  ;;  %v12074_v22 = vmov 3  }
 0x2b5   : > { %7403 = vmatprep.subr.mxu1 %v8026_v24  ;;  %7349 = vmatpush3.msra.mxu0 %v12015_v20  ;;  %v12020_v20 = vld [vmem:[#allocation34_spill] sm:$0xff] }
 0x2b6   : > { %7404 = vmatpush3.msra.mxu1 %v8051_v30  ;;  %2671 = vmatmul.mubr.f32.gmra.mxu0 %v9232_v0  ;;  %v12021_v0 = vld [vmem:[#allocation42_spill] sm:$0xff] }
 0x2b7   : > { %2839 = vmatmul.mubr.f32.gmra.mxu1 %v12016_v40  ;;  %7350 = vmatprep.subr.mxu0 %v12017_v13  ;;  %v12022_v40 = vand.u32 4294901760, %v9312_v39  ;;  %v12064_v13 = vmov 2  }
 0x2b8   : > { %7405 = vmatprep.subr.mxu1 %v11816_v18  ;;  %2677 = vmatprep.mubr.f32.mxu0 %v9241_v23  ;;  %v12023_v23 = vld [vmem:[#allocation46_spill] sm:$0xff] }
 0x2b9   : > { %2846 = vmatprep.mubr.f32.mxu1 %v12018_v52  ;;  %7351 = vmatpush3.msra.mxu0 %v12019_v63  ;;  %v12024_v52 = vld [vmem:[#allocation49_spill] sm:$0xff] }
 0x2ba   : > { %7406 = vmatpush3.msra.mxu1 %v11818_v47  ;;  %7352 = vmatprep.subr.mxu0 %v12020_v20  ;;  %v9519_v20 = vld [vmem:[%s11133_s6 + $0x8] sm:$0xff]  ;;  %v9578_v47 = vld [vmem:[%s11133_s6 + $0x10] sm:$0xf] }
 0x2bb   : > { %7407 = vmatprep.subr.mxu1 %v11820_v21  ;;  %7353 = vmatpush3.msra.mxu0 %v12021_v0  ;;  %v12025_v0 = vld [vmem:[#allocation52_spill] sm:$0xff]  ;;  %12063 = vst [vmem:[#allocation159_spill] sm:$0xff] %v9519_v20  ;;  %v12073_v21 = vmov 0  }
 0x2bc   : > { %7408 = vmatpush3.msra.mxu1 %v11821_v54  ;;  %2680 = vmatmul.mubr.f32.gmra.mxu0 %v9256_v19  ;;  %v12026_v19 = vld [vmem:[#allocation56_spill] sm:$0xff] }
 0x2bd   : > { %2850 = vmatmul.mubr.f32.gmra.mxu1 %v12022_v40  ;;  %7354 = vmatprep.subr.mxu0 %v12023_v23  ;;  %v12027_v40 = vld [vmem:[#allocation59_spill] sm:$0xff]  ;;  %v12062_v23 = vmov 1  }
 0x2be   : > { %7409 = vmatprep.subr.mxu1 %v11822_v7  ;;  %2686 = vmatprep.mubr.f32.mxu0 %v9273_v26  ;;  %v12028_v26 = vld [vmem:[#allocation62_spill] sm:$0xff] }
 0x2bf   : > { %7355 = vmatpush3.msra.mxu0 %v12024_v52  ;;  %7410 = vmatpush3.msra.mxu1 %v11967_v55  ;;  %v12029_v52 = vld [vmem:[#allocation68_spill] sm:$0xff] }
 0x2c0   : > { %3148 = vmatprep.mubr.f32.mxu1 %v9183_v1  ;;  %7356 = vmatprep.subr.mxu0 %v12025_v0  ;;  %v12030_v0 = vld [vmem:[#allocation71_spill] sm:$0xff] }
 0x2c1   : > { %7411 = vmatprep.subr.mxu1 %v11969_v28  ;;  %7357 = vmatpush3.msra.mxu0 %v12026_v19  ;;  %v12049_v19 = vld [vmem:[#allocation126_spill] sm:$0xff]  ;;  %v12072_v28 = vmov 14  }
 0x2c2   : > { %7412 = vmatpush3.msra.mxu1 %v11972_v48  ;;  %2689 = vmatmul.mubr.f32.gmra.mxu0 %v9288_v53  ;;  %v12031_v53 = vld [vmem:[#allocation77_spill] sm:$0xff] }
 0x2c3   : > { %7358 = vmatprep.subr.mxu0 %v12027_v40  ;;  %7413 = vmatprep.subr.mxu1 %v11974_v12  ;;  %v12032_v40 = vld [vmem:[#allocation81_spill] sm:$0xff] }
 0x2c4   : > { %2695 = vmatprep.mubr.f32.mxu0 %v9295_v29  ;;  %7359 = vmatpush3.msra.mxu0 %v12028_v26  ;;  %v12033_v29 = vld [vmem:[#allocation85_spill] sm:$0xff]  ;;  %v12045_v26 = vld [vmem:[#allocation119_spill] sm:$0xff] }
 0x2c5   : > { %7414 = vmatpush3.msra.mxu1 %v11975_v45  ;;  %7360 = vmatprep.subr.mxu0 %v12029_v52  ;;  %v12034_v52 = vld [vmem:[#allocation87_spill] sm:$0xff]  ;;  %v12071_v45 = vmov 13  }
 0x2c6   : > { %7415 = vmatprep.subr.mxu1 %v11978_v37  ;;  %7361 = vmatpush3.msra.mxu0 %v12030_v0  ;;  %v12035_v0 = vld [vmem:[#allocation91_spill] sm:$0xff] }
 0x2c7   : > { %7416 = vmatpush3.msra.mxu1 %v11980_v56  ;;  %2698 = vmatmul.mubr.f32.gmra.mxu0 %v9312_v39  ;;  %v12036_v39 = vld [vmem:[#allocation94_spill] sm:$0xff]  ;;  %v12070_v56 = vmov 11  }
 0x2c8   : > { %7362 = vmatprep.subr.mxu0 %v12031_v53  ;;  %7417 = vmatprep.subr.mxu1 %v11982_v62  ;;  %v12043_v53 = vld [vmem:[#allocation118_spill] sm:$0xff] }
 0x2c9   : > { %7363 = vmatpush3.msra.mxu0 %v12032_v40  ;;  %3016 = vmatprep.mubr.f32.mxu0 %v9183_v1  ;;  %v12037_v40 = vld [vmem:[#allocation100_spill] sm:$0xff]  ;;  %v12038_v1 = vld [vmem:[#allocation102_spill] sm:$0xff] }
 0x2ca   : > { %7418 = vmatpush3.msra.mxu1 %v11983_v3  ;;  %7364 = vmatprep.subr.mxu0 %v12033_v29  ;;  %v12039_v29 = vld [vmem:[#allocation106_spill] sm:$0xff] }
 0x2cb   : > { %7419 = vmatprep.subr.mxu1 %v11986_v14  ;;  %7365 = vmatpush3.msra.mxu0 %v12034_v52  ;;  %v12040_v52 = vld [vmem:[#allocation109_spill] sm:$0xff] }
 0x2cc   : > { %7420 = vmatpush3.msra.mxu1 %v11988_v59  ;;  %7366 = vmatprep.subr.mxu0 %v12035_v0  ;;  %v12041_v0 = vld [vmem:[#allocation112_spill] sm:$0xff]  ;;  %v12069_v59 = vmov 10  }
 0x2cd   : > { %7421 = vmatprep.subr.mxu1 %v11990_v43  ;;  %7367 = vmatpush3.msra.mxu0 %v12036_v39  ;;  %v12042_v39 = vld [vmem:[#allocation142_spill] sm:$0xff] }
 0x2ce   : > { %7422 = vmatpush3.msra.mxu1 %v11992_v34  ;;  %7368 = vmatprep.subr.mxu0 %v12037_v40  ;;  %v12044_v40 = vld [vmem:[#allocation143_spill] sm:$0xff] }
 0x2cf   : > { %7423 = vmatprep.subr.mxu1 %v11994_v33  ;;  %7369 = vmatpush3.msra.mxu0 %v12038_v1  ;;  %v12046_v1 = vld [vmem:[#allocation120_spill] sm:$0xff]  ;;  %v12068_v33 = vmov 8  }
 0x2d0   : > { %7424 = vmatpush3.msra.mxu1 %v11996_v50  ;;  %7370 = vmatprep.subr.mxu0 %v12039_v29  ;;  %v12047_v29 = vld [vmem:[#allocation124_spill] sm:$0xff] }
 0x2d1   : > { %3150 = vmatmul.mubr.f32.vlgmr.msra.gmra.mxu1 %v9165_v8  ;;  %7371 = vmatpush3.msra.mxu0 %v12040_v52  ;;  %v12048_v52 = vld [vmem:[#allocation144_spill] sm:$0xff] }
 0x2d2   : > { %3155 = vmatprep.mubr.f32.mxu1 %v9219_v51  ;;  %7372 = vmatprep.subr.mxu0 %v12041_v0  ;;  %v12050_v0 = vld [vmem:[#allocation145_spill] sm:$0xff] }
 0x2d3   : > { %3382 = vmatprep.subr.mxu1 %v12042_v39  ;;  %7373 = vmatpush3.msra.mxu0 %v12043_v53 }
 0x2d4   : > { %3388 = vmatpush1.msra.mxu1 %v12044_v40  ;;  %7374 = vmatprep.subr.mxu0 %v12045_v26  ;;  %v12051_v40 = vld [vmem:[#allocation111_spill] sm:$0xff] }
 0x2d5   : > { %3157 = vmatmul.mubr.f32.gmra.mxu1 %v9203_v58  ;;  %7375 = vmatpush3.msra.mxu0 %v12046_v1  ;;  %v12052_v1 = vld [vmem:[#allocation131_spill] sm:$0xff] }
 0x2d6   : > { %3162 = vmatprep.mubr.f32.mxu1 %v9222_v60  ;;  %7376 = vmatprep.subr.mxu0 %v12047_v29  ;;  %v12061_v29 = vmov 19  }
 0x2d7   : > { %3394 = vmatprep.subr.mxu1 %v12048_v52  ;;  %7377 = vmatpush3.msra.mxu0 %v12049_v19  ;;  %v12056_v52 = vld [vmem:[#allocation134_spill] sm:$0xff]  ;;  %v11483_v19 = vmov 18  }
 0x2d8   : > { %3400 = vmatpush1.msra.mxu1 %v12050_v0  ;;  %3018 = vmatmul.mubr.f32.vlgmr.msra.gmra.mxu0 %v9165_v8  ;;  %v12053_v8 = vld [vmem:[#allocation132_spill] sm:$0xff]  ;;  %v12054_v0 = vld [vmem:[#allocation133_spill] sm:$0xff] }
 0x2d9   : > { %3164 = vmatmul.mubr.f32.gmra.mxu1 %v9228_v57  ;;  %3023 = vmatprep.mubr.f32.mxu0 %v9219_v51  ;;  %v12055_v51 = vmov 0.0  }
 0x2da   : > { %3169 = vmatprep.mubr.f32.mxu1 %v9252_v42  ;;  %3254 = vmatprep.subr.mxu0 %v12051_v40 }
 0x2db   : > { %3611 = vmatprep.subr.mxu1 %v12051_v40  ;;  %3256 = vmatpush1.msra.mxu0 %v12052_v1 }
 0x2dc   : > { %3025 = vmatmul.mubr.f32.gmra.mxu0 %v9203_v58  ;;  %3258 = vmatprep.subr.mxu0 %v12053_v8  ;;  %v11477_v58 = vmov 7  }
 0x2dd   : > { %3171 = vmatmul.mubr.f32.gmra.mxu1 %v9267_v46  ;;  %3030 = vmatprep.mubr.f32.mxu0 %v9222_v60  ;;  %v7859_v60 = vld [vmem:[%s11133_s6] sm:$0xff] }
 0x2de   : > { %3176 = vmatprep.mubr.f32.mxu1 %v9277_v31  ;;  %3260 = vmatpush1.msra.mxu0 %v12054_v0 }
 0x2df   : > { %3499 = vmatprep.subr.mxu0 %v12056_v52  ;;  %7772 = vset.pattern.permute.xlu1 %v11477_v58  ;;  %v12060_v58 = vmov 16  }
 0x2e0   : > { %3032 = vmatmul.mubr.f32.gmra.mxu0 %v9228_v57  ;;  %4166 = vperm.xlu1 %7772, %v7859_v60   ;;  %v12057_v57 = vmov 9  }
 0x2e1   : > { %3178 = vmatmul.mubr.f32.gmra.mxu1 %v9292_v6  ;;  %3037 = vmatprep.mubr.f32.mxu0 %v9252_v42  ;;  %v11479_v42 = vmov 10  }
 0x2e2   : > { %3433 = vmatprep.mubr.f32.mxu1 %v12055_v51 }
 0x2e4   : > { %3039 = vmatmul.mubr.f32.gmra.mxu0 %v9267_v46  ;;  %7773 = vset.pattern.permute.xlu1 %v12057_v57  ;;  %v12058_v46 = vmov 12  }
 0x2e5   : > { %3044 = vmatprep.mubr.f32.mxu0 %v9277_v31  ;;  %4218 = vperm.xlu1 %7773, %v7859_v60   ;;  %v12059_v31 = vmov 15  }
 0x2e8   : > { %3046 = vmatmul.mubr.f32.gmra.mxu0 %v9292_v6  ;;  %v11481_v6 = vmov 13  }
 0x2e9   : > { %3293 = vmatprep.mubr.f32.mxu0 %v12055_v51  ;;  %7774 = vset.pattern.permute.xlu1 %v11479_v42 }
 0x2ea   : > { %4244 = vperm.xlu1 %7774, %v7859_v60  }
 0x2ee   : > { %7775 = vset.pattern.permute.xlu1 %v12058_v46 }
 0x2ef   : > { %4296 = vperm.xlu1 %7775, %v7859_v60  }
 0x2f3   : > { %7776 = vset.pattern.permute.xlu1 %v11481_v6 }
 0x2f4   : > { %4322 = vperm.xlu1 %7776, %v7859_v60  }
 0x2f8   : > { %7777 = vset.pattern.permute.xlu1 %v12059_v31 }
 0x2f9   : > { %4374 = vperm.xlu1 %7777, %v7859_v60  }
 0x2fd   : > { %7778 = vset.pattern.permute.xlu1 %v12060_v58 }
 0x2fe   : > { %4400 = vperm.xlu1 %7778, %v7859_v60  }
 0x302   : > { %7779 = vset.pattern.permute.xlu1 %v11483_v19 }
 0x303   : > { %4452 = vperm.xlu1 %7779, %v7859_v60  }
 0x307   : > { %7780 = vset.pattern.permute.xlu1 %v12061_v29 }
 0x308   : > { %4478 = vperm.xlu1 %7780, %v7859_v60  }
 0x30c   : > { %7781 = vset.pattern.permute.xlu1 %v12062_v23 }
 0x30d   : > { %4014 = vperm.xlu1 %7781, %v9519_v20  }
 0x311   : > { %7782 = vset.pattern.permute.xlu1 %v12064_v13 }
 0x312   : > { %4040 = vperm.xlu1 %7782, %v9519_v20  }
 0x316   : > { %7784 = vset.pattern.permute.xlu1 %v12065_v35 }
 0x317   : > { %4092 = vperm.xlu1 %7784, %v9519_v20  }
 0x31b   : > { %7785 = vset.pattern.permute.xlu1 %v12066_v61 }
 0x31c   : > { %4118 = vperm.xlu1 %7785, %v9519_v20  }
 0x320   : > { %7787 = vset.pattern.permute.xlu1 %v12067_v36 }
 0x321   : > { %4170 = vperm.xlu1 %7787, %v9519_v20  }
 0x325   : > { %7788 = vset.pattern.permute.xlu1 %v12068_v33 }
 0x326   : > { %4196 = vperm.xlu1 %7788, %v9519_v20  }
 0x32a   : > { %7790 = vset.pattern.permute.xlu1 %v12069_v59 }
 0x32b   : > { %4248 = vperm.xlu1 %7790, %v9519_v20  }
 0x32f   : > { %7791 = vset.pattern.permute.xlu1 %v12070_v56 }
 0x330   : > { %4274 = vperm.xlu1 %7791, %v9519_v20  }
 0x334   : > { %7793 = vset.pattern.permute.xlu1 %v12071_v45 }
 0x335   : > { %4326 = vperm.xlu1 %7793, %v9519_v20  }
 0x339   : > { %7794 = vset.pattern.permute.xlu1 %v12072_v28 }
 0x33a   : > { %4352 = vperm.xlu1 %7794, %v9519_v20   ;;  %v12075_v20 = vmov 6  }
 0x33e   : > { %7797 = vset.pattern.permute.xlu1 %v12073_v21 }
 0x33f   : > { %v9503_v52 = vpop.f32.mrf.mxu1  ;;  %3992 = vperm.xlu1 %7797, %v9578_v47  }
 0x341   : > { %v9506_v42 = vpop.f32.mrf.mxu1 }
 0x342   : > { %v7239_v5 = vadd.f32 %v9506_v42, %v9503_v52 }
 0x343   : > { %v9509_v26 = vpop.f32.mrf.mxu1  ;;  %7798 = vset.pattern.permute.xlu1 %v12062_v23 }
 0x344   : > { %4018 = vperm.xlu1 %7798, %v9578_v47  }
 0x345   : > { %v9513_v39 = vpop.f32.mrf.mxu1 }
 0x347   : > { %v9511_v6 = vpop.f32.mrf.mxu0 }
 0x348   : > { %v9522_v19 = vpop.f32.mrf.mxu1  ;;  %7800 = vset.pattern.permute.xlu1 %v12074_v22 }
 0x349   : > { %v7191_v53 = vpop.f32.mrf.mxu0  ;;  %4070 = vperm.xlu1 %7800, %v9578_v47  }
 0x34a   : > { %v9528_v60 = vpop.f32.mrf.mxu1  ;;  %v7192_v11 = vadd.f32 %v7191_v53, %v9511_v6  ;;  %v7242_v53 = vadd.f32 %v9513_v39, %v9509_v26 }
 0x34c   : > { %v2498_v22 = vadd.f32 %v7239_v5, %v7192_v11  ;;  %v7245_v11 = vadd.f32 %v9528_v60, %v9522_v19 }
 0x34d   : > { %v9524_v63 = vpop.f32.mrf.mxu0  ;;  %7801 = vset.pattern.permute.xlu1 %v12065_v35 }
 0x34e   : > { %v9532_v2 = vpop.f32.mrf.mxu1  ;;  %4096 = vperm.xlu1 %7801, %v9578_v47  }
 0x34f   : > { %v7194_v25 = vpop.f32.mrf.mxu0 }
 0x350   : > { %v9537_v32 = vpop.f32.mrf.mxu1  ;;  %v7195_v38 = vadd.f32 %v7194_v25, %v9524_v63 }
 0x352   : > { %7803 = vset.pattern.permute.xlu1 %v12075_v20 }
 0x353   : > { %v9534_v49 = vpop.f32.mrf.mxu0  ;;  %4148 = vperm.xlu1 %7803, %v9578_v47  }
 0x354   : > { %v9542_v13 = vpop.f32.mrf.mxu1 }
 0x355   : > { %v9539_v27 = vpop.f32.mrf.mxu0 }
 0x356   : > { %v9548_v44 = vpop.f32.mrf.mxu1  ;;  %v7198_v58 = vadd.f32 %v9539_v27, %v9534_v49 }
 0x357   : > { %7804 = vset.pattern.permute.xlu1 %v12067_v36 }
 0x358   : > { %4174 = vperm.xlu1 %7804, %v9578_v47  }
 0x359   : > { %v9544_v41 = vpop.f32.mrf.mxu0 }
 0x35b   : > { %v9550_v50 = vpop.f32.mrf.mxu0 }
 0x35c   : > { %7806 = vset.pattern.permute.xlu1 %v12057_v57 }
 0x35d   : > { %4226 = vperm.xlu1 %7806, %v9578_v47  }
 0x35e   : > { %v9554_v34 = vpop.f32.mrf.mxu0 }
 0x360   : > { %v9558_v14 = vpop.f32.mrf.mxu0 }
 0x361   : > { %7807 = vset.pattern.permute.xlu1 %v12069_v59 }
 0x362   : > { %4252 = vperm.xlu1 %7807, %v9578_v47  }
 0x366   : > { %7809 = vset.pattern.permute.xlu1 %v12058_v46 }
 0x367   : > { %v7331_v61 = vpop.f32.mrf.mxu1  ;;  %4304 = vperm.xlu1 %7809, %v9578_v47  }
 0x369   : > { %v7332_v43 = vpop.f32.mrf.mxu1 }
 0x36a   : > { %v7333_v5 = vadd.f32 %v7332_v43, %v7331_v61  ;;  %v7248_v43 = vadd.f32 %v9537_v32, %v9532_v2 }
 0x36b   : > { %7810 = vset.pattern.permute.xlu1 %v12071_v45 }
 0x36c   : > { %v9560_v3 = vpop.f32.mrf.mxu1  ;;  %4330 = vperm.xlu1 %7810, %v9578_v47  }
 0x36e   : > { %v7335_v33 = vpop.f32.mrf.mxu1 }
 0x36f   : > { %v7336_v49 = vadd.f32 %v7335_v33, %v9560_v3 }
 0x370   : > { %v7284_v62 = vpop.f32.mrf.mxu0 }
 0x371   : > { %v9566_v12 = vpop.f32.mrf.mxu1 }
 0x372   : > { %v7285_v37 = vpop.f32.mrf.mxu0 }
 0x373   : > { %v9569_v55 = vpop.f32.mrf.mxu1  ;;  %v7286_v4 = vadd.f32 %v7285_v37, %v7284_v62  ;;  %v2505_v62 = vadd.f32 %v7242_v53, %v7195_v38 }
 0x375   : > { %v2664_v6 = vadd.f32 %v7286_v4, %v2498_v22  ;;  %v2512_v4 = vadd.f32 %v7245_v11, %v7198_v58  ;;  %v7201_v22 = vadd.f32 %v9550_v50, %v9544_v41  ;;  %v7204_v41 = vadd.f32 %v9558_v14, %v9554_v34 }
 0x376   : > { %v7287_v48 = vpop.f32.mrf.mxu0  ;;  %v7339_v50 = vadd.f32 %v9569_v55, %v9566_v12 }
 0x377   : > { %v9572_v54 = vpop.f32.mrf.mxu1  ;;  %v2808_v31 = vadd.f32 %v7333_v5, %v2664_v6 }
 0x378   : > { %v7288_v7 = vpop.f32.mrf.mxu0 }
 0x379   : > { %v9581_v18 = vpop.f32.mrf.mxu1  ;;  %v7289_v35 = vadd.f32 %v7288_v7, %v7287_v48 }
 0x37b   : > { %v2673_v20 = vadd.f32 %v7289_v35, %v2505_v62 }
 0x37c   : > { %v7290_v56 = vpop.f32.mrf.mxu0 }
 0x37d   : > { %v9585_v30 = vpop.f32.mrf.mxu1  ;;  %v2819_v61 = vadd.f32 %v7336_v49, %v2673_v20 }
 0x37e   : > { %v7291_v28 = vpop.f32.mrf.mxu0 }
 0x37f   : > { %v9589_v17 = vpop.f32.mrf.mxu1  ;;  %v7292_v25 = vadd.f32 %v7291_v28, %v7290_v56  ;;  %v2519_v56 = vadd.f32 %v7248_v43, %v7201_v22 }
 0x381   : > { %v2682_v38 = vadd.f32 %v7292_v25, %v2512_v4 }
 0x382   : > { %v7293_v24 = vpop.f32.mrf.mxu0 }
 0x383   : > { %v2830_v14 = vadd.f32 %v7339_v50, %v2682_v38 }
 0x384   : > { %v7294_v16 = vpop.f32.mrf.mxu0 }
 0x385   : > { %v7295_v35 = vadd.f32 %v7294_v16, %v7293_v24  ;;  %v7251_v16 = vadd.f32 %v9548_v44, %v9542_v13 }
 0x387   : > { %v7296_v10 = vpop.f32.mrf.mxu0  ;;  %v2691_v24 = vadd.f32 %v7295_v35, %v2519_v56  ;;  %v2526_v28 = vadd.f32 %v7251_v16, %v7204_v41  ;;  %v12077_v16 = vld [vmem:[#allocation136_spill] sm:$0xff] }
 0x389   : > { %v7297_v21 = vpop.f32.mrf.mxu0 }
 0x391   : > { %v7425_v15 = vpop.f32.mrf.mxu1 }
 0x393   : > { %v7426_v9 = vpop.f32.mrf.mxu1 }
 0x394   : > { %v7427_v27 = vadd.f32 %v7426_v9, %v7425_v15 }
 0x395   : > { %v7428_v23 = vpop.f32.mrf.mxu1 }
 0x397   : > { %v7429_v29 = vpop.f32.mrf.mxu1 }
 0x398   : > { %v7378_v52 = vpop.f32.mrf.mxu0  ;;  %v7430_v9 = vadd.f32 %v7429_v29, %v7428_v23  ;;  %v7342_v23 = vadd.f32 %v9581_v18, %v9572_v54 }
 0x399   : > { %v7431_v37 = vpop.f32.mrf.mxu1 }
 0x39a   : > { %v7379_v63 = vpop.f32.mrf.mxu0  ;;  %v2841_v18 = vadd.f32 %v7342_v23, %v2691_v24  ;;  %v12080_v23 = vmov 15  }
 0x39b   : > { %v7432_v42 = vpop.f32.mrf.mxu1  ;;  %v7380_v26 = vadd.f32 %v7379_v63, %v7378_v52  ;;  %v7345_v63 = vadd.f32 %v9589_v17, %v9585_v30  ;;  %7812 = vset.pattern.permute.xlu1 %v12080_v23 }
 0x39c   : > { %v7381_v7 = vpop.f32.mrf.mxu0  ;;  %v7433_v44 = vadd.f32 %v7432_v42, %v7431_v37  ;;  %4382 = vperm.xlu1 %7812, %v9578_v47  }
 0x39d   : > { %v3020_v48 = vadd.f32 %v7380_v26, %v2808_v31  ;;  %v7434_v19 = vpop.f32.mrf.mxu1  ;;  %v7298_v31 = vadd.f32 %v7297_v21, %v7296_v10 }
 0x39e   : > { %v7382_v39 = vpop.f32.mrf.mxu0 }
 0x39f   : > { %v3152_v60 = vadd.f32 %v7427_v27, %v3020_v48  ;;  %v7383_v58 = vadd.f32 %v7382_v39, %v7381_v7  ;;  %v7435_v20 = vpop.f32.mrf.mxu1  ;;  %v2700_v37 = vadd.f32 %v7298_v31, %v2526_v28  ;;  %v12079_v31 = vld [vmem:[#allocation138_spill] sm:$0xff] }
 0x3a0   : > { %v7384_v3 = vpop.f32.mrf.mxu0  ;;  %v7436_v7 = vadd.f32 %v7435_v20, %v7434_v19 }
 0x3a1   : > { %v3211_v15 = vsel %vm1302_vm1, %v3152_v60, 0  ;;  %v3027_v32 = vadd.f32 %v7383_v58, %v2819_v61  ;;  %v3183_v12 = vmul.f32 %v3152_v60, %v3152_v60  ;;  %v7437_v54 = vpop.f32.mrf.mxu1  ;;  %v2852_v60 = vadd.f32 %v7345_v63, %v2700_v37 }
 0x3a2   : > { %v9621_v2 = vand.u32 4294901760, %v3211_v15  ;;  %v7385_v34 = vpop.f32.mrf.mxu0 }
 0x3a3   : > { %v3159_v55 = vadd.f32 %v7430_v9, %v3027_v32  ;;  %v7386_v33 = vadd.f32 %v7385_v34, %v7384_v3  ;;  %v3189_v5 = vrot.slane %v3183_v12, 4  ;;  %v7438_v17 = vpop.f32.mrf.mxu1 }
 0x3a4   : > { %v9626_v29 = vsub.f32 %v3211_v15, %v9621_v2  ;;  %v7387_v53 = vpop.f32.mrf.mxu0  ;;  %3435 = vmatmul.mubr.f32.vlgmr.msra.gmra.mxu1 %v9621_v2  ;;  %v7439_v50 = vadd.f32 %v7438_v17, %v7437_v54  ;;  %v12076_v15 = vld [vmem:[#allocation135_spill] sm:$0xff] }
 0x3a5   : > { %v3184_v13 = vmul.f32 %v3159_v55, %v3159_v55  ;;  %v3214_v6 = vsel %vm1302_vm1, %v3159_v55, 0  ;;  %v3034_v52 = vadd.f32 %v7386_v33, %v2830_v14  ;;  %3440 = vmatprep.mubr.f32.mxu1 %v12055_v51  ;;  %3613 = vmatpush1.msra.mxu1 %v12052_v1  ;;  %v12078_v14 = vld [vmem:[#allocation137_spill] sm:$0xff] }
 0x3a6   : > { %v3296_v10 = vand.u32 4294901760, %v9626_v29  ;;  %v9633_v21 = vand.u32 4294901760, %v3214_v6  ;;  %v7388_v62 = vpop.f32.mrf.mxu0  ;;  %3615 = vmatprep.subr.mxu1 %v12053_v8 }
 0x3a7   : > { %v3166_v11 = vadd.f32 %v7433_v44, %v3034_v52  ;;  %v7389_v25 = vadd.f32 %v7388_v62, %v7387_v53  ;;  %3617 = vmatpush1.msra.mxu1 %v12054_v0  ;;  %v3190_v26 = vrot.slane %v3184_v13, 4  ;;  %v12081_v53 = vmov 16   ;;  %v12082_v13 = vld [vmem:[#allocation159_spill] sm:$0xff] }
 0x3a8   : > { %v3297_v42 = vsub.f32 %v9626_v29, %v3296_v10  ;;  %v9645_v4 = vsub.f32 %v3214_v6, %v9633_v21  ;;  %v7390_v22 = vpop.f32.mrf.mxu0  ;;  %3442 = vmatmul.mubr.f32.gmra.mxu1 %v9633_v21  ;;  %3837 = vmatprep.subr.mxu1 %v12051_v40  ;;  %v12083_v62 = vmov 18  }
 0x3a9   : > { %v3185_v49 = vmul.f32 %v3166_v11, %v3166_v11  ;;  %v3197_v27 = vsub.f32 %v3166_v11, %v3189_v5  ;;  %v3041_v48 = vadd.f32 %v7389_v25, %v2841_v18  ;;  %3447 = vmatprep.mubr.f32.mxu1 %v12055_v51  ;;  %v3191_v56 = vsel %vm2078_vm3, %v3189_v5, %v3190_v26 }
 0x3aa   : > { %v7391_v30 = vpop.f32.mrf.mxu0  ;;  %v3298_v43 = vand.u32 4294901760, %v3297_v42  ;;  %v3307_v38 = vand.u32 4294901760, %v9645_v4  ;;  %7813 = vset.pattern.permute.xlu1 %v12081_v53 }
 0x3ab   : > { %v3200_v35 = vmax.f32 %v3197_v27, 0.0  ;;  %v3173_v39 = vadd.f32 %v7436_v7, %v3041_v48  ;;  %v7392_v61 = vadd.f32 %v7391_v30, %v7390_v22  ;;  %v3192_v58 = vrot.slane %v3185_v49, 4  ;;  %4404 = vperm.xlu1 %7813, %v12082_v13  }
 0x3ac   : > { %3299 = vmatmul.mubr.f32.vlgmr.msra.gmra.mxu0 %v3298_v43  ;;  %v3308_v19 = vsub.f32 %v9645_v4, %v3307_v38  ;;  %v12084_v7 = vmov 19  }
 0x3ad   : > { %v3203_v41 = vadd.f32 1e-08, %v3200_v35  ;;  %v3198_v3 = vsub.f32 %v3173_v39, %v3191_v56  ;;  %v3048_v9 = vadd.f32 %v7392_v61, %v2852_v60  ;;  %3304 = vmatprep.mubr.f32.mxu0 %v12055_v51  ;;  %3502 = vmatpush1.msra.mxu0 %v12076_v15  ;;  %v3193_v34 = vsel %vm2078_vm3, %v3190_v26, %v3192_v58  ;;  %v12087_v58 = vld [vmem:[#allocation139_spill] sm:$0xff]  ;;  %v12089_v56 = vld [vmem:[#allocation141_spill] sm:$0xff] }
 0x3ae   : > { %v3309_v32 = vand.u32 4294901760, %v3308_v19  ;;  %3505 = vmatprep.subr.mxu0 %v12077_v16  ;;  %v12085_v39 = vmov 17   ;;  %v12090_v19 = vmov 0  }
 0x3af   : > { %7845 = vrsqrt.f32 %v3203_v41  ;;  %v3201_v24 = vmax.f32 %v3198_v3, 0.0  ;;  %v3180_v20 = vadd.f32 %v7439_v50, %v3048_v9  ;;  %3508 = vmatpush1.msra.mxu0 %v12078_v14  ;;  %7814 = vset.pattern.permute.xlu1 %v12083_v62  ;;  %v12093_v41 = vld [vmem:[#allocation32_spill] sm:$0xff]  ;;  %v12094_v50 = vld [vmem:[#allocation33_spill] sm:$0xff]  ;;  %v12095_v3 = vmov 3   ;;  %v12096_v9 = vld [vmem:[#allocation35_spill] sm:$0xff] }
 0x3b0   : > { %3310 = vmatmul.mubr.f32.gmra.mxu0 %v3309_v32  ;;  %3727 = vmatprep.subr.mxu0 %v12079_v31  ;;  %v12097_v32 = vld [vmem:[#allocation38_spill] sm:$0xff] }
 0x3b1   : > { %v3204_v12 = vadd.f32 1e-08, %v3201_v24  ;;  %v3199_v55 = vsub.f32 %v3180_v20, %v3193_v34  ;;  %3315 = vmatprep.mubr.f32.mxu0 %v12055_v51  ;;  %4456 = vperm.xlu1 %7814, %v12082_v13   ;;  %v12098_v24 = vld [vmem:[#allocation41_spill] sm:$0xff]  ;;  %v12099_v20 = vld [vmem:[#allocation3_spill] sm:$0xff] }
 0x3b2   : > { %v12100_v34 = vld [vmem:[#allocation45_spill] sm:$0xff] }
 0x3b3   : > { %7847 = vrsqrt.f32 %v3204_v12  ;;  %v3202_v33 = vmax.f32 %v3199_v55, 0.0  ;;  %v12101_v12 = vld [vmem:[#allocation4_spill] sm:$0xff]  ;;  %v12103_v55 = vld [vmem:[#allocation5_spill] sm:$0xff] }
 0x3b5   : > { %v3205_v28 = vadd.f32 1e-08, %v3202_v33  ;;  %7815 = vset.pattern.permute.xlu1 %v12084_v7  ;;  %v12104_v33 = vld [vmem:[#allocation58_spill] sm:$0xff] }
 0x3b6   : > { %4482 = vperm.xlu1 %7815, %v12082_v13   ;;  %v12108_v13 = vld [vmem:[#allocation7_spill] sm:$0xff] }
 0x3b7   : > { %7849 = vrsqrt.f32 %v3205_v28  ;;  %v12105_v28 = vld [vmem:[#allocation6_spill] sm:$0xff] }
 0x3ba   : > { %7817 = vset.pattern.permute.xlu1 %v12085_v39  ;;  %v12127_v39 = vld [vmem:[#allocation101_spill] sm:$0xff] }
 0x3bb   : > { %4434 = vperm.xlu1 %7817, %v9578_v47  }
 0x3bc   : > { %v7846_v44 = vpop.eup %7845 }
 0x3bd   : > { %v3209_v6 = vsel %vm2078_vm3, %v3166_v11, %v7846_v44  ;;  %v12107_v44 = vld [vmem:[#allocation64_spill] sm:$0xff] }
 0x3be   : > { %v3217_v52 = vsel %vm1302_vm1, %v3209_v6, 0  ;;  %v12109_v6 = vld [vmem:[#allocation67_spill] sm:$0xff] }
 0x3bf   : > { %v9672_v54 = vand.u32 4294901760, %v3217_v52  ;;  %7818 = vset.pattern.permute.xlu1 %v12083_v62 }
 0x3c0   : > { %v7848_v18 = vpop.eup %7847  ;;  %4460 = vperm.xlu1 %7818, %v9578_v47   ;;  %v12091_v47 = vld [vmem:[#allocation2_spill] sm:$0xff] }
 0x3c1   : > { %3449 = vmatmul.mubr.f32.gmra.mxu1 %v9672_v54  ;;  %v3220_v37 = vsel %vm1302_vm1, %v7848_v18, 0  ;;  %v3317_v5 = vsub.f32 %v3217_v52, %v9672_v54  ;;  %v12110_v52 = vld [vmem:[#allocation8_spill] sm:$0xff]  ;;  %v12111_v18 = vld [vmem:[#allocation70_spill] sm:$0xff] }
 0x3c2   : > { %3454 = vmatprep.mubr.f32.mxu1 %v12055_v51  ;;  %v9680_v25 = vand.u32 4294901760, %v3220_v37 }
 0x3c3   : > { %v3318_v11 = vand.u32 4294901760, %v3317_v5 }
 0x3c4   : > { %v7850_v63 = vpop.eup %7849  ;;  %v3328_v42 = vsub.f32 %v3220_v37, %v9680_v25  ;;  %7820 = vset.pattern.permute.xlu1 %v12090_v19  ;;  %v12113_v37 = vld [vmem:[#allocation80_spill] sm:$0xff]  ;;  %v12132_v19 = vld [vmem:[#allocation31_spill] sm:$0xff] }
 0x3c5   : > { %3456 = vmatmul.mubr.f32.gmra.mxu1 %v9680_v25  ;;  %v3319_v26 = vsub.f32 %v3317_v5, %v3318_v11  ;;  %v3223_v22 = vsel %vm1302_vm1, %v7850_v63, 0  ;;  %v12116_v63 = vld [vmem:[#allocation84_spill] sm:$0xff] }
 0x3c6   : > { %3461 = vmatprep.mubr.f32.mxu1 %v12055_v51  ;;  %v9687_v49 = vand.u32 4294901760, %v3223_v22  ;;  %v3329_v27 = vand.u32 4294901760, %v3328_v42 }
 0x3c7   : > { %v3320_v48 = vand.u32 4294901760, %v3319_v26  ;;  %v12118_v26 = vld [vmem:[#allocation90_spill] sm:$0xff] }
 0x3c8   : > { %v3330_v17 = vsub.f32 %v3328_v42, %v3329_v27  ;;  %v3339_v30 = vsub.f32 %v3223_v22, %v9687_v49  ;;  %v12120_v22 = vld [vmem:[#allocation93_spill] sm:$0xff] }
 0x3c9   : > { %3321 = vmatmul.mubr.f32.gmra.mxu0 %v3320_v48  ;;  %3463 = vmatmul.mubr.f32.gmra.mxu1 %v9687_v49  ;;  %v12122_v48 = vld [vmem:[#allocation96_spill] sm:$0xff] }
 0x3ca   : > { %3326 = vmatprep.mubr.f32.mxu0 %v12055_v51  ;;  %3650 = vmatprep.mubr.f32.mxu1 %v12055_v51  ;;  %v3331_v43 = vand.u32 4294901760, %v3330_v17  ;;  %v3340_v35 = vand.u32 4294901760, %v3339_v30 }
 0x3cc   : > { %v3341_v60 = vsub.f32 %v3339_v30, %v3340_v35 }
 0x3cd   : > { %3332 = vmatmul.mubr.f32.gmra.mxu0 %v3331_v43  ;;  %3654 = vmatmul.mubr.f32.vlgmr.msra.gmra.mxu1 %v3296_v10  ;;  %v12086_v10 = vld [vmem:[#allocation29_spill] sm:$0xff]  ;;  %v12125_v43 = vld [vmem:[#allocation99_spill] sm:$0xff] }
 0x3ce   : > { %3337 = vmatprep.mubr.f32.mxu0 %v12055_v51  ;;  %3659 = vmatprep.mubr.f32.mxu1 %v12055_v51  ;;  %v3342_v61 = vand.u32 4294901760, %v3341_v60  ;;  %v12129_v60 = vld [vmem:[#allocation104_spill] sm:$0xff] }
 0x3cf   : > { %3839 = vmatpush1.msra.mxu1 %v12052_v1 }
 0x3d0   : > { %3841 = vmatprep.subr.mxu1 %v12053_v8 }
 0x3d1   : > { %3343 = vmatmul.mubr.f32.gmra.mxu0 %v3342_v61  ;;  %3663 = vmatmul.mubr.f32.gmra.mxu1 %v3307_v38  ;;  %v12088_v38 = vld [vmem:[#allocation140_spill] sm:$0xff]  ;;  %v12130_v61 = vld [vmem:[#allocation26_spill] sm:$0xff] }
 0x3d2   : > { %3541 = vmatprep.mubr.f32.mxu0 %v12055_v51  ;;  %3668 = vmatprep.mubr.f32.mxu1 %v12055_v51 }
 0x3d3   : > { %3843 = vmatpush1.msra.mxu1 %v12054_v0 }
 0x3d4   : > { %7487 = vmatprep.subr.mxu1 %v12086_v10  ;;  %v12131_v10 = vld [vmem:[#allocation108_spill] sm:$0xff] }
 0x3d5   : > { %3544 = vmatmul.mubr.f32.vlgmr.msra.gmra.mxu0 %v9626_v29  ;;  %3672 = vmatmul.mubr.f32.gmra.mxu1 %v3318_v11  ;;  %v9724_v29 = vld [vmem:[%s11134_s7] sm:$0x1f]  ;;  %v9773_v11 = vpop.permute.xlu1 %3982 }
 0x3d6   : > { %3731 = vmatpush1.msra.mxu0 %v12087_v58  ;;  %3549 = vmatprep.mubr.f32.mxu0 %v12055_v51  ;;  %12115 = vst [vmem:[#allocation159_spill] sm:$0xff] %v9773_v11 }
 0x3d7   : > { %3677 = vmatprep.mubr.f32.mxu1 %v12055_v51  ;;  %3735 = vmatprep.subr.mxu0 %v12088_v38 }
 0x3d8   : > { %3739 = vmatpush1.msra.mxu0 %v12089_v56  ;;  %6532 = vperm.xlu1 %7820, %v9724_v29  }
 0x3d9   : > { %3552 = vmatmul.mubr.f32.gmra.mxu0 %v9645_v4  ;;  %3681 = vmatmul.mubr.f32.gmra.mxu1 %v3329_v27  ;;  %v12092_v4 = vmov 1   ;;  %v12121_v27 = vld [vmem:[#allocation14_spill] sm:$0xff]  ;;  %v9783_v17 = vpop.permute.xlu1 %4010 }
 0x3da   : > { %3557 = vmatprep.mubr.f32.mxu0 %v12055_v51  ;;  %3686 = vmatprep.mubr.f32.mxu1 %v12055_v51  ;;  %12123 = vst [vmem:[#allocation29_spill] sm:$0xff] %v9783_v17 }
 0x3db   : > { %7440 = vmatprep.subr.mxu0 %v12091_v47 }
 0x3dc   : > { %7821 = vset.pattern.permute.xlu1 %v12092_v4  ;;  %v12133_v4 = vld [vmem:[#allocation110_spill] sm:$0xff] }
 0x3dd   : > { %3560 = vmatmul.mubr.f32.gmra.mxu0 %v3317_v5  ;;  %3690 = vmatmul.mubr.f32.gmra.mxu1 %v3340_v35  ;;  %v12114_v5 = vld [vmem:[#allocation9_spill] sm:$0xff]  ;;  %v12126_v35 = vld [vmem:[#allocation19_spill] sm:$0xff] }
 0x3de   : > { %3565 = vmatprep.mubr.f32.mxu0 %v12055_v51  ;;  %3876 = vmatprep.mubr.f32.mxu1 %v12055_v51 }
 0x3df   : > { %6546 = vperm.xlu1 %7821, %v9724_v29  }
 0x3e1   : > { %3568 = vmatmul.mubr.f32.gmra.mxu0 %v3328_v42  ;;  %3878 = vmatmul.mubr.f32.vlgmr.msra.gmra.mxu1 %v9621_v2  ;;  %v12117_v42 = vld [vmem:[#allocation10_spill] sm:$0xff] }
 0x3e2   : > { %3573 = vmatprep.mubr.f32.mxu0 %v12055_v51  ;;  %3883 = vmatprep.mubr.f32.mxu1 %v12055_v51 }
 0x3e3   : > { %7488 = vmatpush3.msra.mxu1 %v12093_v41  ;;  %7823 = vset.pattern.permute.xlu1 %v12095_v3  ;;  %v12134_v41 = vld [vmem:[#allocation37_spill] sm:$0xff]  ;;  %v9797_v3 = vpop.permute.xlu1 %4062 }
 0x3e4   : > { %7489 = vmatprep.subr.mxu1 %v12094_v50  ;;  %6574 = vperm.xlu1 %7823, %v9724_v29   ;;  %v12135_v50 = vld [vmem:[#allocation114_spill] sm:$0xff]  ;;  %12136 = vst [vmem:[#allocation32_spill] sm:$0xff] %v9797_v3 }
 0x3e5   : > { %3576 = vmatmul.mubr.f32.gmra.mxu0 %v3339_v30  ;;  %3885 = vmatmul.mubr.f32.gmra.mxu1 %v9633_v21  ;;  %v12124_v30 = vld [vmem:[#allocation17_spill] sm:$0xff] }
 0x3e6   : > { %3772 = vmatprep.mubr.f32.mxu0 %v12055_v51  ;;  %3890 = vmatprep.mubr.f32.mxu1 %v12055_v51 }
 0x3e7   : > { %7490 = vmatpush3.msra.mxu1 %v12096_v9  ;;  %v12137_v9 = vld [vmem:[#allocation40_spill] sm:$0xff] }
 0x3e8   : > { %7491 = vmatprep.subr.mxu1 %v12097_v32  ;;  %v12138_v32 = vld [vmem:[#allocation117_spill] sm:$0xff] }
 0x3e9   : > { %3774 = vmatmul.mubr.f32.vlgmr.msra.gmra.mxu0 %v9621_v2  ;;  %3892 = vmatmul.mubr.f32.gmra.mxu1 %v9672_v54  ;;  %v12102_v2 = vld [vmem:[#allocation55_spill] sm:$0xff] }
 0x3ea   : > { %3779 = vmatprep.mubr.f32.mxu0 %v12055_v51  ;;  %3897 = vmatprep.mubr.f32.mxu1 %v12055_v51 }
 0x3eb   : > { %7492 = vmatpush3.msra.mxu1 %v12098_v24  ;;  %7441 = vmatpush3.msra.mxu0 %v12099_v20  ;;  %v12139_v24 = vld [vmem:[#allocation44_spill] sm:$0xff] }
 0x3ec   : > { %7493 = vmatprep.subr.mxu1 %v12100_v34  ;;  %7442 = vmatprep.subr.mxu0 %v12101_v12  ;;  %v12140_v34 = vld [vmem:[#allocation122_spill] sm:$0xff] }
 0x3ed   : > { %3781 = vmatmul.mubr.f32.gmra.mxu0 %v9633_v21  ;;  %3899 = vmatmul.mubr.f32.gmra.mxu1 %v9680_v25  ;;  %v12106_v21 = vld [vmem:[#allocation61_spill] sm:$0xff] }
 0x3ee   : > { %3786 = vmatprep.mubr.f32.mxu0 %v12055_v51  ;;  %3904 = vmatprep.mubr.f32.mxu1 %v12055_v51 }
 0x3ef   : > { %7494 = vmatpush3.msra.mxu1 %v12102_v2  ;;  %7443 = vmatpush3.msra.mxu0 %v12103_v55  ;;  %v12141_v2 = vld [vmem:[#allocation48_spill] sm:$0xff] }
 0x3f0   : > { %7495 = vmatprep.subr.mxu1 %v12104_v33  ;;  %7444 = vmatprep.subr.mxu0 %v12105_v28  ;;  %v12142_v33 = vld [vmem:[#allocation125_spill] sm:$0xff] }
 0x3f1   : > { %3788 = vmatmul.mubr.f32.gmra.mxu0 %v9672_v54  ;;  %3906 = vmatmul.mubr.f32.gmra.mxu1 %v9687_v49  ;;  %v12112_v54 = vld [vmem:[#allocation74_spill] sm:$0xff] }
 0x3f2   : > { %3793 = vmatprep.mubr.f32.mxu0 %v12055_v51  ;;  %7496 = vmatpush3.msra.mxu1 %v12106_v21  ;;  %v12143_v21 = vld [vmem:[#allocation51_spill] sm:$0xff] }
 0x3f3   : > { %7497 = vmatprep.subr.mxu1 %v12107_v44  ;;  %7445 = vmatpush3.msra.mxu0 %v12108_v13  ;;  %v12144_v44 = vld [vmem:[#allocation127_spill] sm:$0xff] }
 0x3f4   : > { %7498 = vmatpush3.msra.mxu1 %v12109_v6  ;;  %7446 = vmatprep.subr.mxu0 %v12110_v52  ;;  %v12145_v6 = vld [vmem:[#allocation54_spill] sm:$0xff] }
 0x3f5   : > { %3795 = vmatmul.mubr.f32.gmra.mxu0 %v9680_v25  ;;  %7499 = vmatprep.subr.mxu1 %v12111_v18  ;;  %v12119_v25 = vld [vmem:[#allocation12_spill] sm:$0xff] }
 0x3f6   : > { %3800 = vmatprep.mubr.f32.mxu0 %v12055_v51  ;;  %7500 = vmatpush3.msra.mxu1 %v12112_v54  ;;  %v12146_v18 = vld [vmem:[#allocation128_spill] sm:$0xff]  ;;  %v9891_v51 = vpop.permute.xlu0 %3987 }
 0x3f7   : > { %7501 = vmatprep.subr.mxu1 %v12113_v37  ;;  %7447 = vmatpush3.msra.mxu0 %v12114_v5  ;;  %v12147_v54 = vld [vmem:[#allocation60_spill] sm:$0xff]  ;;  %v12148_v37 = vld [vmem:[#allocation129_spill] sm:$0xff] }
 0x3f8   : > { %7502 = vmatpush3.msra.mxu1 %v12116_v63  ;;  %7448 = vmatprep.subr.mxu0 %v12117_v42  ;;  %v9811_v63 = vpop.permute.xlu1 %4088 }
 0x3f9   : > { %3802 = vmatmul.mubr.f32.gmra.mxu0 %v9687_v49  ;;  %7503 = vmatprep.subr.mxu1 %v12118_v26  ;;  %v12128_v49 = vld [vmem:[#allocation23_spill] sm:$0xff]  ;;  %12149 = vst [vmem:[#allocation33_spill] sm:$0xff] %v9811_v63  ;;  %v12150_v26 = vld [vmem:[#allocation65_spill] sm:$0xff] }
 0x3fa   : > { %7449 = vmatpush3.msra.mxu0 %v12119_v25  ;;  %7504 = vmatpush3.msra.mxu1 %v12120_v22  ;;  %v12151_v22 = vld [vmem:[#allocation130_spill] sm:$0xff] }
 0x3fb   : > { %7450 = vmatprep.subr.mxu0 %v12121_v27  ;;  %7505 = vmatprep.subr.mxu1 %v12122_v48  ;;  %v12152_v48 = vld [vmem:[#allocation69_spill] sm:$0xff] }
 0x3fc   : > { %7451 = vmatpush3.msra.mxu0 %v12124_v30  ;;  %7506 = vmatpush3.msra.mxu1 %v12125_v43  ;;  %v12153_v43 = vld [vmem:[#allocation73_spill] sm:$0xff] }
 0x3fd   : > { %7452 = vmatprep.subr.mxu0 %v12126_v35  ;;  %7507 = vmatprep.subr.mxu1 %v12127_v39  ;;  %v12154_v39 = vmov 4  }
 0x3fe   : > { %7453 = vmatpush3.msra.mxu0 %v12128_v49  ;;  %7508 = vmatpush3.msra.mxu1 %v12129_v60  ;;  %v12155_v60 = vld [vmem:[#allocation76_spill] sm:$0xff] }
 0x3ff   : > { %7454 = vmatprep.subr.mxu0 %v12130_v61  ;;  %7509 = vmatprep.subr.mxu1 %v12131_v10  ;;  %v12156_v10 = vld [vmem:[#allocation79_spill] sm:$0xff] }
 0x400   : > { %7455 = vmatpush3.msra.mxu0 %v12132_v19  ;;  %7510 = vmatpush3.msra.mxu1 %v12133_v4  ;;  %v12157_v4 = vld [vmem:[#allocation83_spill] sm:$0xff] }
 0x401   : > { %7456 = vmatprep.subr.mxu0 %v12134_v41  ;;  %7511 = vmatprep.subr.mxu1 %v12135_v50  ;;  %v9823_v50 = vpop.permute.xlu1 %4140 }
 0x402   : > { %7457 = vmatpush3.msra.mxu0 %v12137_v9  ;;  %7512 = vmatpush3.msra.mxu1 %v12138_v32  ;;  %12158 = vst [vmem:[#allocation35_spill] sm:$0xff] %v9823_v50  ;;  %v12159_v32 = vld [vmem:[#allocation88_spill] sm:$0xff] }
 0x403   : > { %7458 = vmatprep.subr.mxu0 %v12139_v24  ;;  %7513 = vmatprep.subr.mxu1 %v12140_v34  ;;  %v12160_v34 = vld [vmem:[#allocation92_spill] sm:$0xff] }
 0x404   : > { %7459 = vmatpush3.msra.mxu0 %v12141_v2  ;;  %7514 = vmatpush3.msra.mxu1 %v12142_v33  ;;  %v12161_v33 = vmov 6  }
 0x405   : > { %7460 = vmatprep.subr.mxu0 %v12143_v21  ;;  %7515 = vmatprep.subr.mxu1 %v12144_v44  ;;  %v12162_v44 = vld [vmem:[#allocation97_spill] sm:$0xff] }
 0x406   : > { %7461 = vmatpush3.msra.mxu0 %v12145_v6  ;;  %7516 = vmatpush3.msra.mxu1 %v12146_v18  ;;  %v12163_v18 = vld [vmem:[#allocation11_spill] sm:$0xff] }
 0x407   : > { %7462 = vmatprep.subr.mxu0 %v12147_v54  ;;  %7517 = vmatprep.subr.mxu1 %v12148_v37  ;;  %v9831_v37 = vpop.permute.xlu1 %4166 }
 0x408   : > { %7463 = vmatpush3.msra.mxu0 %v12150_v26  ;;  %7518 = vmatpush3.msra.mxu1 %v12151_v22  ;;  %12164 = vst [vmem:[#allocation38_spill] sm:$0xff] %v9831_v37 }
 0x409   : > { %7464 = vmatprep.subr.mxu0 %v12152_v48  ;;  %7581 = vmatprep.subr.mxu1 %v12091_v47  ;;  %v9897_v47 = vpop.permute.xlu0 %4066 }
 0x40a   : > { %7465 = vmatpush3.msra.mxu0 %v12153_v43  ;;  %7824 = vset.pattern.permute.xlu1 %v12154_v39  ;;  %12183 = vst [vmem:[#allocation110_spill] sm:$0xff] %v9897_v47 }
 0x40b   : > { %7466 = vmatprep.subr.mxu0 %v12155_v60  ;;  %6588 = vperm.xlu1 %7824, %v9724_v29   ;;  %v9836_v22 = vpop.permute.xlu1 %4218 }
 0x40c   : > { %7467 = vmatpush3.msra.mxu0 %v12156_v10  ;;  %12165 = vst [vmem:[#allocation41_spill] sm:$0xff] %v9836_v22 }
 0x40d   : > { %7468 = vmatprep.subr.mxu0 %v12157_v4  ;;  %v9905_v43 = vpop.permute.xlu0 %4144 }
 0x40e   : > { %7469 = vmatpush3.msra.mxu0 %v12159_v32  ;;  %12185 = vst [vmem:[#allocation117_spill] sm:$0xff] %v9905_v43 }
 0x40f   : > { %7470 = vmatprep.subr.mxu0 %v12160_v34  ;;  %7826 = vset.pattern.permute.xlu1 %v12161_v33  ;;  %v9841_v39 = vpop.permute.xlu1 %4244 }
 0x410   : > { %7471 = vmatpush3.msra.mxu0 %v12162_v44  ;;  %6616 = vperm.xlu1 %7826, %v9724_v29   ;;  %12166 = vst [vmem:[#allocation45_spill] sm:$0xff] %v9841_v39 }
 0x411   : > { %7534 = vmatprep.subr.mxu0 %v12163_v18  ;;  %v9913_v9 = vpop.permute.xlu0 %4222 }
 0x412   : > { %12187 = vst [vmem:[#allocation125_spill] sm:$0xff] %v9913_v9 }
 0x413   : > { %v9845_v33 = vpop.permute.xlu1 %4296 }
 0x414   : > { %7827 = vset.pattern.permute.xlu1 %v12067_v36  ;;  %12167 = vst [vmem:[#allocation55_spill] sm:$0xff] %v9845_v33 }
 0x415   : > { %6630 = vperm.xlu1 %7827, %v9724_v29   ;;  %v9923_v25 = vpop.permute.xlu0 %4300 }
 0x416   : > { %12189 = vst [vmem:[#allocation128_spill] sm:$0xff] %v9923_v25 }
 0x417   : > { %v9849_v36 = vpop.permute.xlu1 %4322 }
 0x418   : > { %12168 = vst [vmem:[#allocation58_spill] sm:$0xff] %v9849_v36 }
 0x419   : > { %7829 = vset.pattern.permute.xlu1 %v12057_v57  ;;  %v9927_v20 = vpop.permute.xlu0 %4378 }
 0x41a   : > { %6658 = vperm.xlu1 %7829, %v9724_v29   ;;  %12191 = vst [vmem:[#allocation130_spill] sm:$0xff] %v9927_v20 }
 0x41e   : > { %7830 = vset.pattern.permute.xlu1 %v12069_v59  ;;  %v9853_v59 = vpop.permute.xlu1 %4374 }
 0x41f   : > { %6672 = vperm.xlu1 %7830, %v9724_v29   ;;  %12169 = vst [vmem:[#allocation61_spill] sm:$0xff] %v9853_v59 }
 0x422   : > { %v9858_v57 = vpop.permute.xlu1 %4400 }
 0x423   : > { %7832 = vset.pattern.permute.xlu1 %v12058_v46  ;;  %12170 = vst [vmem:[#allocation64_spill] sm:$0xff] %v9858_v57 }
 0x424   : > { %6700 = vperm.xlu1 %7832, %v9724_v29  }
 0x428   : > { %7833 = vset.pattern.permute.xlu1 %v12071_v45  ;;  %v9863_v45 = vpop.permute.xlu1 %4452 }
 0x429   : > { %6714 = vperm.xlu1 %7833, %v9724_v29   ;;  %12171 = vst [vmem:[#allocation67_spill] sm:$0xff] %v9863_v45 }
 0x42c   : > { %v9865_v46 = vpop.permute.xlu1 %4478 }
 0x42d   : > { %7835 = vset.pattern.permute.xlu1 %v12080_v23  ;;  %12172 = vst [vmem:[#allocation70_spill] sm:$0xff] %v9865_v46 }
 0x42e   : > { %6742 = vperm.xlu1 %7835, %v9724_v29  }
 0x430   : > { %v9867_v23 = vpop.permute.xlu1 %4014 }
 0x431   : > { %12173 = vst [vmem:[#allocation74_spill] sm:$0xff] %v9867_v23 }
 0x432   : > { %7836 = vset.pattern.permute.xlu1 %v12081_v53 }
 0x433   : > { %6756 = vperm.xlu1 %7836, %v9724_v29  }
 0x434   : > { %v9869_v18 = vpop.permute.xlu1 %4040 }
 0x435   : > { %12174 = vst [vmem:[#allocation80_spill] sm:$0xff] %v9869_v18 }
 0x437   : > { %7838 = vset.pattern.permute.xlu1 %v12083_v62 }
 0x438   : > { %6784 = vperm.xlu1 %7838, %v9724_v29   ;;  %v9871_v53 = vpop.permute.xlu1 %4092 }
 0x439   : > { %12175 = vst [vmem:[#allocation84_spill] sm:$0xff] %v9871_v53 }
 0x43c   : > { %7839 = vset.pattern.permute.xlu1 %v12084_v7  ;;  %v9873_v56 = vpop.permute.xlu1 %4118 }
 0x43d   : > { %6798 = vperm.xlu1 %7839, %v9724_v29   ;;  %12176 = vst [vmem:[#allocation90_spill] sm:$0xff] %v9873_v56 }
 0x440   : > { %v9875_v62 = vpop.permute.xlu1 %4170 }
 0x441   : > { %12177 = vst [vmem:[#allocation93_spill] sm:$0xff] %v9875_v62 }
 0x444   : > { %v9877_v38 = vpop.permute.xlu1 %4196 }
 0x445   : > { %12178 = vst [vmem:[#allocation96_spill] sm:$0xff] %v9877_v38 }
 0x448   : > { %v9879_v58 = vpop.permute.xlu1 %4248 }
 0x449   : > { %12179 = vst [vmem:[#allocation99_spill] sm:$0xff] %v9879_v58 }
 0x44c   : > { %v9883_v29 = vpop.permute.xlu1 %4274 }
 0x44d   : > { %12180 = vst [vmem:[#allocation101_spill] sm:$0xff] %v9883_v29 }
 0x450   : > { %v9887_v14 = vpop.permute.xlu1 %4326 }
 0x451   : > { %12181 = vst [vmem:[#allocation104_spill] sm:$0xff] %v9887_v14  ;;  %v9937_v14 = vpop.permute.xlu0 %4036 }
 0x452   : > { %12193 = vst [vmem:[#allocation160_spill] sm:$0xff] %v9937_v14 }
 0x454   : > { %v9895_v1 = vpop.permute.xlu1 %4352 }
 0x455   : > { %12182 = vst [vmem:[#allocation108_spill] sm:$0xff] %v9895_v1  ;;  %v9945_v39 = vpop.permute.xlu0 %4044 }
 0x456   : > { %12195 = vst [vmem:[#allocation162_spill] sm:$0xff] %v9945_v39 }
 0x458   : > { %v9901_v4 = vpop.permute.xlu1 %3992 }
 0x459   : > { %12184 = vst [vmem:[#allocation114_spill] sm:$0xff] %v9901_v4  ;;  %v9952_v56 = vpop.permute.xlu0 %4114 }
 0x45a   : > { %12197 = vst [vmem:[#allocation164_spill] sm:$0xff] %v9952_v56 }
 0x45c   : > { %v9911_v21 = vpop.permute.xlu1 %4018 }
 0x45d   : > { %12186 = vst [vmem:[#allocation122_spill] sm:$0xff] %v9911_v21 }
 0x460   : > { %v9919_v35 = vpop.permute.xlu1 %4070 }
 0x461   : > { %12188 = vst [vmem:[#allocation127_spill] sm:$0xff] %v9919_v35 }
 0x464   : > { %v9881_v7 = vpop.f32.mrf.mxu1  ;;  %v9925_v28 = vpop.permute.xlu1 %4096 }
 0x465   : > { %12190 = vst [vmem:[#allocation129_spill] sm:$0xff] %v9925_v28 }
 0x466   : > { %v9885_v31 = vpop.f32.mrf.mxu1 }
 0x468   : > { %v9889_v16 = vpop.f32.mrf.mxu1  ;;  %v9933_v57 = vpop.permute.xlu1 %4148 }
 0x469   : > { %12192 = vst [vmem:[#allocation11_spill] sm:$0xff] %v9933_v57 }
 0x46a   : > { %v9893_v0 = vpop.f32.mrf.mxu1 }
 0x46c   : > { %v3300_v15 = vpop.f32.mrf.mxu0  ;;  %v9941_v29 = vpop.permute.xlu1 %4174 }
 0x46d   : > { %12194 = vst [vmem:[#allocation161_spill] sm:$0xff] %v9941_v29  ;;  %v3437_v43 = vadd.f32 %v9881_v7, %v3300_v15 }
 0x46e   : > { %v3302_v8 = vpop.f32.mrf.mxu0 }
 0x46f   : > { %v3439_v63 = vadd.f32 %v9885_v31, %v3302_v8 }
 0x470   : > { %v9899_v44 = vpop.f32.mrf.mxu0  ;;  %v9949_v37 = vpop.permute.xlu1 %4226 }
 0x471   : > { %12196 = vst [vmem:[#allocation163_spill] sm:$0xff] %v9949_v37  ;;  %v3444_v23 = vadd.f32 %v9889_v16, %v9899_v44 }
 0x472   : > { %v9903_v10 = vpop.f32.mrf.mxu0 }
 0x474   : > { %v9957_v15 = vpop.permute.xlu1 %4252 }
 0x475   : > { %12198 = vst [vmem:[#allocation165_spill] sm:$0xff] %v9957_v15 }
 0x481   : > { %v3450_v40 = vpop.f32.mrf.mxu1 }
 0x483   : > { %v3452_v34 = vpop.f32.mrf.mxu1 }
 0x485   : > { %v3457_v32 = vpop.f32.mrf.mxu1 }
 0x487   : > { %v3459_v60 = vpop.f32.mrf.mxu1 }
 0x489   : > { %v3322_v48 = vpop.f32.mrf.mxu0  ;;  %v9907_v26 = vpop.f32.mrf.mxu1 }
 0x48a   : > { %v3451_v62 = vadd.f32 %v3450_v40, %v3322_v48 }
 0x48b   : > { %v3324_v54 = vpop.f32.mrf.mxu0  ;;  %v9909_v6 = vpop.f32.mrf.mxu1 }
 0x48c   : > { %v3453_v53 = vadd.f32 %v3452_v34, %v3324_v54  ;;  %v3446_v54 = vadd.f32 %v9893_v0, %v9903_v10 }
 0x48d   : > { %v3333_v2 = vpop.f32.mrf.mxu0  ;;  %v3655_v24 = vpop.f32.mrf.mxu1 }
 0x48e   : > { %v3458_v18 = vadd.f32 %v3457_v32, %v3333_v2 }
 0x48f   : > { %v3335_v41 = vpop.f32.mrf.mxu0  ;;  %v9915_v19 = vpop.f32.mrf.mxu1 }
 0x490   : > { %v3460_v37 = vadd.f32 %v3459_v60, %v3335_v41 }
 0x491   : > { %v3344_v61 = vpop.f32.mrf.mxu0  ;;  %v9917_v49 = vpop.f32.mrf.mxu1 }
 0x492   : > { %v3465_v2 = vadd.f32 %v9907_v26, %v3344_v61  ;;  %v9967_v61 = vpop.permute.xlu1 %4304 }
 0x493   : > { %v3346_v30 = vpop.f32.mrf.mxu0  ;;  %v9921_v27 = vpop.f32.mrf.mxu1  ;;  %12200 = vst [vmem:[#allocation167_spill] sm:$0xff] %v9967_v61 }
 0x494   : > { %v3467_v41 = vadd.f32 %v9909_v6, %v3346_v30 }
 0x495   : > { %v3545_v42 = vpop.f32.mrf.mxu0  ;;  %v3673_v5 = vpop.f32.mrf.mxu1 }
 0x496   : > { %v3546_v47 = vadd.f32 %v3545_v42, %v3437_v43  ;;  %v9961_v43 = vpop.permute.xlu0 %4122 }
 0x497   : > { %v3547_v52 = vpop.f32.mrf.mxu0  ;;  %v3675_v13 = vpop.f32.mrf.mxu1  ;;  %12199 = vst [vmem:[#allocation166_spill] sm:$0xff] %v9961_v43 }
 0x498   : > { %v3548_v40 = vadd.f32 %v3547_v52, %v3439_v63  ;;  %v3656_v8 = vadd.f32 %v3655_v24, %v3546_v47 }
 0x499   : > { %v3553_v55 = vpop.f32.mrf.mxu0  ;;  %v3682_v12 = vpop.f32.mrf.mxu1 }
 0x49a   : > { %v3554_v34 = vadd.f32 %v3553_v55, %v3444_v23  ;;  %v9971_v26 = vpop.permute.xlu0 %4192 }
 0x49b   : > { %v3555_v21 = vpop.f32.mrf.mxu0  ;;  %v9929_v4 = vpop.f32.mrf.mxu1  ;;  %12201 = vst [vmem:[#allocation168_spill] sm:$0xff] %v9971_v26 }
 0x49c   : > { %v3556_v63 = vadd.f32 %v3555_v21, %v3446_v54  ;;  %v3665_v10 = vadd.f32 %v9917_v49, %v3554_v34 }
 0x49d   : > { %v3561_v46 = vpop.f32.mrf.mxu0  ;;  %v9931_v35 = vpop.f32.mrf.mxu1 }
 0x49e   : > { %v3562_v29 = vadd.f32 %v3561_v46, %v3451_v62 }
 0x49f   : > { %v3563_v59 = vpop.f32.mrf.mxu0  ;;  %v9935_v1 = vpop.f32.mrf.mxu1 }
 0x4a0   : > { %v3564_v14 = vadd.f32 %v3563_v59, %v3453_v53  ;;  %v3674_v7 = vadd.f32 %v3673_v5, %v3562_v29  ;;  %v3658_v5 = vadd.f32 %v9915_v19, %v3548_v40  ;;  %v3667_v19 = vadd.f32 %v9921_v27, %v3556_v63  ;;  %v12203_v53 = vld [vmem:[#allocation152_spill] sm:$0xff]  ;;  %v12204_v29 = vld [vmem:[#allocation150_spill] sm:$0xff] }
 0x4a1   : > { %v3569_v36 = vpop.f32.mrf.mxu0  ;;  %v3879_v25 = vpop.f32.mrf.mxu1  ;;  %v12208_v63 = vld [vmem:[#allocation156_spill] sm:$0xff] }
 0x4a2   : > { %v3570_v45 = vadd.f32 %v3569_v36, %v3458_v18  ;;  %v3676_v52 = vadd.f32 %v3675_v13, %v3564_v14 }
 0x4a3   : > { %v3571_v28 = vpop.f32.mrf.mxu0  ;;  %v9939_v33 = vpop.f32.mrf.mxu1 }
 0x4a4   : > { %v3572_v32 = vadd.f32 %v3571_v28, %v3460_v37  ;;  %v3683_v55 = vadd.f32 %v3682_v12, %v3570_v45 }
 0x4a5   : > { %v3577_v20 = vpop.f32.mrf.mxu0  ;;  %v9943_v58 = vpop.f32.mrf.mxu1 }
 0x4a6   : > { %v3578_v36 = vadd.f32 %v3577_v20, %v3465_v2  ;;  %v3685_v13 = vadd.f32 %v9929_v4, %v3572_v32 }
 0x4a7   : > { %v3579_v9 = vpop.f32.mrf.mxu0  ;;  %v9947_v22 = vpop.f32.mrf.mxu1 }
 0x4a8   : > { %v3580_v47 = vadd.f32 %v3579_v9, %v3467_v41  ;;  %v3692_v49 = vadd.f32 %v9931_v35, %v3578_v36  ;;  %v9992_v41 = vpop.permute.xlu0 %4200 }
 0x4a9   : > { %v3775_v57 = vpop.f32.mrf.mxu0  ;;  %v3893_v38 = vpop.f32.mrf.mxu1 }
 0x4aa   : > { %v3776_v60 = vadd.f32 %v3775_v57, %v3656_v8  ;;  %v3694_v27 = vadd.f32 %v9935_v1, %v3580_v47  ;;  %v12206_v1 = vld [vmem:[#allocation155_spill] sm:$0xff] }
 0x4ab   : > { %v3777_v50 = vpop.f32.mrf.mxu0  ;;  %v3895_v3 = vpop.f32.mrf.mxu1  ;;  %12207 = vst [vmem:[#allocation155_spill] sm:$0xff] %v9992_v41  ;;  %v12260_v41 = vld [vmem:[#allocation117_spill] sm:$0xff] }
 0x4ac   : > { %v3778_v24 = vadd.f32 %v3777_v50, %v3658_v5  ;;  %v3880_v30 = vadd.f32 %v3879_v25, %v3776_v60  ;;  %v12202_v25 = vld [vmem:[#allocation149_spill] sm:$0xff] }
 0x4ad   : > { %v3782_v39 = vpop.f32.mrf.mxu0  ;;  %v3900_v31 = vpop.f32.mrf.mxu1 }
 0x4ae   : > { %v3783_v21 = vadd.f32 %v3782_v39, %v3665_v10  ;;  %v3882_v50 = vadd.f32 %v9939_v33, %v3778_v24  ;;  %v3912_v62 = vsub.f32 %v12203_v53, %v3880_v30  ;;  %v12210_v10 = vld [vmem:[#allocation154_spill] sm:$0xff] }
 0x4af   : > { %v3784_v48 = vpop.f32.mrf.mxu0  ;;  %v3902_v59 = vpop.f32.mrf.mxu1  ;;  %v12211_v30 = vld [vmem:[#allocation158_spill] sm:$0xff] }
 0x4b0   : > { %v3785_v37 = vadd.f32 %v3784_v48, %v3667_v19  ;;  %v3887_v35 = vadd.f32 %v9943_v58, %v3783_v21  ;;  %v7864_v58 = vld [vmem:[%s11128_s1 + $0x8] sm:$0x3f] }
 0x4b1   : > { %v3789_v42 = vpop.f32.mrf.mxu0  ;;  %v3907_v57 = vpop.f32.mrf.mxu1  ;;  %v3967_v24 = vrot.slane %v7864_v58, %v12204_v29 }
 0x4b2   : > { %v3790_v16 = vadd.f32 %v3789_v42, %v3674_v7  ;;  %v9983_v7 = vpop.permute.xlu1 %4330  ;;  %v3913_v42 = vsub.f32 %v12206_v1, %v3882_v50  ;;  %v3889_v2 = vadd.f32 %v9947_v22, %v3785_v37 }
 0x4b3   : > { %v3791_v44 = vpop.f32.mrf.mxu0  ;;  %12205 = vst [vmem:[#allocation152_spill] sm:$0xff] %v9983_v7  ;;  %v3909_v32 = vpop.f32.mrf.mxu1  ;;  %v12254_v7 = vld [vmem:[#allocation90_spill] sm:$0xff] }
 0x4b4   : > { %v3792_v0 = vadd.f32 %v3791_v44, %v3676_v52  ;;  %v3894_v28 = vadd.f32 %v3893_v38, %v3790_v16  ;;  %v7863_v38 = vld [vmem:[%s11128_s1] sm:$0x3f]  ;;  %v3953_v52 = vrot.slane %v7864_v58, %v12202_v25  ;;  %v3915_v21 = vsub.f32 %v12211_v30, %v3889_v2  ;;  %v12235_v30 = vld [vmem:[#allocation151_spill] sm:$0xff] }
 0x4b5   : > { %v3796_v46 = vpop.f32.mrf.mxu0  ;;  %v3949_v4 = vrot.slane %v7863_v38, %v12202_v25  ;;  %v3963_v40 = vrot.slane %v7863_v38, %v12204_v29  ;;  %v10004_v38 = vpop.permute.xlu0 %4270  ;;  %v12221_v2 = vld [vmem:[#allocation146_spill] sm:$0xff] }
 0x4b6   : > { %v3797_v14 = vadd.f32 %v3796_v46, %v3683_v55  ;;  %v3896_v6 = vadd.f32 %v3895_v3, %v3792_v0  ;;  %v3924_v3 = vrot.slane %v3894_v28, 4  ;;  %v3916_v60 = vsub.f32 %v12208_v63, %v3894_v28  ;;  %v12209_v0 = vld [vmem:[#allocation157_spill] sm:$0xff] }
 0x4b7   : > { %v3798_v20 = vpop.f32.mrf.mxu0  ;;  %v3914_v55 = vsub.f32 %v12209_v0, %v3887_v35  ;;  %12213 = vst [vmem:[#allocation157_spill] sm:$0xff] %v10004_v38 }
 0x4b8   : > { %v3901_v12 = vadd.f32 %v3900_v31, %v3797_v14  ;;  %v3799_v9 = vadd.f32 %v3798_v20, %v3685_v13  ;;  %v3927_v33 = vrot.slane %v3896_v6, 4 }
 0x4b9   : > { %v3803_v39 = vpop.f32.mrf.mxu0 }
 0x4ba   : > { %v3925_v45 = vrot.slane %v3901_v12, 4  ;;  %v3903_v23 = vadd.f32 %v3902_v59, %v3799_v9  ;;  %v3804_v18 = vadd.f32 %v3803_v39, %v3692_v49  ;;  %v3917_v59 = vsub.f32 %v12210_v10, %v3896_v6  ;;  %v10001_v12 = vpop.permute.xlu1 %4382 }
 0x4bb   : > { %v3805_v48 = vpop.f32.mrf.mxu0  ;;  %12212 = vst [vmem:[#allocation156_spill] sm:$0xff] %v10001_v12 }
 0x4bc   : > { %v3926_v54 = vsel %vm2078_vm3, %v3924_v3, %v3925_v45  ;;  %v3928_v34 = vrot.slane %v3903_v23, 4  ;;  %v3908_v8 = vadd.f32 %v3907_v57, %v3804_v18  ;;  %v3806_v31 = vadd.f32 %v3805_v48, %v3694_v27 }
 0x4bd   : > { %v3940_v16 = vmul.f32 %v3926_v54, %v3912_v62 }
 0x4be   : > { %v3929_v5 = vsel %vm2078_vm3, %v3927_v33, %v3928_v34  ;;  %v3930_v44 = vrot.slane %v3908_v8, 4  ;;  %v3910_v36 = vadd.f32 %v3909_v32, %v3806_v31  ;;  %v10008_v62 = vpop.permute.xlu1 %4404  ;;  %v12214_v33 = vld [vmem:[#allocation147_spill] sm:$0xff]  ;;  %v10015_v8 = vpop.permute.xlu0 %4278  ;;  %v12218_v31 = vld [vmem:[#allocation148_spill] sm:$0xff]  ;;  %v10031_v32 = vsub.s32 6, %v12221_v2 }
 0x4bf   : > { %v3954_v47 = vmul.f32 %v3949_v4, %v3940_v16  ;;  %v3941_v22 = vmul.f32 %v3929_v5, %v3913_v42  ;;  %12216 = vst [vmem:[#allocation158_spill] sm:$0xff] %v10015_v8  ;;  %v10034_v16 = vsub.s32 7, %v12221_v2  ;;  %v12259_v8 = vld [vmem:[#allocation35_spill] sm:$0xff] }
 0x4c0   : > { %v3931_v46 = vsel %vm2078_vm3, %v3925_v45, %v3930_v44  ;;  %v3944_v14 = vmul.f32 %v3930_v44, %v3916_v60  ;;  %v3932_v13 = vrot.slane %v3910_v36, 4  ;;  %12223 = vst [vmem:[#allocation172_spill] sm:$0xff] %v10031_v32 }
 0x4c1   : > { %v3968_v19 = vadd.f32 %v3963_v40, %v3954_v47  ;;  %v3955_v28 = vmul.f32 %v3953_v52, %v3941_v22  ;;  %v3942_v20 = vmul.f32 %v3931_v46, %v3914_v55  ;;  %12224 = vst [vmem:[#allocation173_spill] sm:$0xff] %v10034_v16 }
 0x4c2   : > { %v3958_v9 = vmul.f32 %v3949_v4, %v3944_v14  ;;  %v3933_v49 = vsel %vm2078_vm3, %v3928_v34, %v3932_v13  ;;  %v3945_v50 = vmul.f32 %v3932_v13, %v3917_v59  ;;  %v4457_v55 = vpop.permute.xlu1 %4456  ;;  %v12231_v59 = vld [vmem:[#allocation67_spill] sm:$0xff]  ;;  %v12234_v13 = vld [vmem:[#allocation74_spill] sm:$0xff] }
 0x4c3   : > { %v3969_v37 = vadd.f32 %v3967_v24, %v3955_v28  ;;  %v3943_v57 = vmul.f32 %v3933_v49, %v3915_v21  ;;  %v3974_v6 = vmax.f32 %v3968_v19, 0.0  ;;  %v3956_v39 = vmul.f32 %v3949_v4, %v3942_v20  ;;  %v10089_v19 = vpop.permute.xlu0 %4348  ;;  %v12238_v20 = vld [vmem:[#allocation160_spill] sm:$0xff] }
 0x4c4   : > { %v3972_v27 = vadd.f32 %v3963_v40, %v3958_v9  ;;  %v3959_v3 = vmul.f32 %v3953_v52, %v3945_v50  ;;  %12237 = vst [vmem:[#allocation182_spill] sm:$0xff] %v10089_v19 }
 0x4c5   : > { %v3957_v45 = vmul.f32 %v3953_v52, %v3943_v57  ;;  %v3975_v23 = vmax.f32 %v3969_v37, 0.0  ;;  %v3970_v35 = vadd.f32 %v3963_v40, %v3956_v39  ;;  %v10011_v48 = vrot.slane %v3974_v6, %v12214_v33  ;;  %v12242_v57 = vld [vmem:[#allocation80_spill] sm:$0xff] }
 0x4c6   : > { %v3973_v18 = vadd.f32 %v3967_v24, %v3959_v3  ;;  %v10006_v53 = vmax.f32 %v3972_v27, 0.0  ;;  %v10021_v1 = vrot.slane %v3974_v6, %v12218_v31  ;;  %v10028_v40 = vsub.s32 5, %v12221_v2 }
 0x4c7   : > { %12215 = vst [vmem:[#allocation154_spill] sm:$0xff] %v10011_v48  ;;  %v3971_v54 = vadd.f32 %v3967_v24, %v3957_v45  ;;  %v10018_v4 = vrot.slane %v3975_v23, %v12214_v33  ;;  %v10036_v58 = vmax.f32 %v3970_v35, 0.0  ;;  %v10040_v52 = vmul.f32 %v10011_v48, %v9773_v11  ;;  %v12244_v45 = vld [vmem:[#allocation32_spill] sm:$0xff]  ;;  %v12245_v35 = vld [vmem:[#allocation110_spill] sm:$0xff] }
 0x4c8   : > { %v10013_v34 = vmax.f32 %v3973_v18, 0.0  ;;  %12219 = vst [vmem:[#allocation170_spill] sm:$0xff] %v10021_v1  ;;  %v10025_v42 = vrot.slane %v10006_v53, %v12202_v25  ;;  %12222 = vst [vmem:[#allocation146_spill] sm:$0xff] %v10028_v40  ;;  %v10043_v63 = vrot.slane %v3975_v23, %v12218_v31  ;;  %v10046_v60 = vrot.slane %v3974_v6, %v12202_v25 }
 0x4c9   : > { %12217 = vst [vmem:[#allocation169_spill] sm:$0xff] %v10018_v4  ;;  %v10048_v5 = vmax.f32 %v3971_v54, 0.0  ;;  %v10056_v36 = vmul.f32 %v10011_v48, %v9891_v51  ;;  %v10059_v0 = vrot.slane %v3975_v23, %v12202_v25  ;;  %v10063_v47 = vmul.f32 %v10018_v4, %v9891_v51 }
 0x4ca   : > { %12220 = vst [vmem:[#allocation171_spill] sm:$0xff] %v10025_v42  ;;  %12225 = vst [vmem:[#allocation174_spill] sm:$0xff] %v10043_v63  ;;  %v10052_v44 = vrot.slane %v10013_v34, %v12202_v25  ;;  %v10067_v22 = vmul.f32 %v10021_v1, %v9783_v17  ;;  %v10070_v24 = vrot.slane %v3974_v6, %v12204_v29 }
 0x4cb   : > { %12226 = vst [vmem:[#allocation175_spill] sm:$0xff] %v10046_v60  ;;  %12228 = vst [vmem:[#allocation177_spill] sm:$0xff] %v10059_v0  ;;  %v10073_v10 = vrot.slane %v3975_v23, %v12204_v29  ;;  %v10077_v46 = vmul.f32 %v10025_v42, %v12231_v59  ;;  %v10080_v14 = vmul.f32 %v10025_v42, %v4457_v55 }
 0x4cc   : > { %12227 = vst [vmem:[#allocation176_spill] sm:$0xff] %v10052_v44  ;;  %12229 = vst [vmem:[#allocation178_spill] sm:$0xff] %v10070_v24  ;;  %v10084_v51 = vmul.f32 %v10021_v1, %v12234_v13  ;;  %v10087_v21 = vrot.slane %v3974_v6, %v12235_v30  ;;  %v10093_v28 = vmul.f32 %v10043_v63, %v12234_v13  ;;  %v12247_v13 = vld [vmem:[#allocation33_spill] sm:$0xff] }
 0x4cd   : > { %12230 = vst [vmem:[#allocation179_spill] sm:$0xff] %v10073_v10  ;;  %12232 = vst [vmem:[#allocation180_spill] sm:$0xff] %v10077_v46  ;;  %v10097_v9 = vmul.f32 %v10046_v60, %v12238_v20  ;;  %v10100_v49 = vrot.slane %v3975_v23, %v12235_v30  ;;  %v10103_v50 = vrot.slane %v3974_v6, %v10028_v40  ;;  %v12248_v20 = vld [vmem:[#allocation84_spill] sm:$0xff]  ;;  %v12274_v1 = vld [vmem:[#allocation45_spill] sm:$0xff] }
 0x4ce   : > { %12233 = vst [vmem:[#allocation181_spill] sm:$0xff] %v10080_v14  ;;  %12236 = vst [vmem:[#allocation74_spill] sm:$0xff] %v10087_v21  ;;  %v10106_v37 = vmul.f32 %v10052_v44, %v4457_v55  ;;  %v10110_v39 = vmul.f32 %v10046_v60, %v12242_v57  ;;  %v10114_v27 = vmul.f32 %v10059_v0, %v12242_v57  ;;  %v12271_v60 = vld [vmem:[#allocation41_spill] sm:$0xff] }
 0x4cf   : > { %12239 = vst [vmem:[#allocation183_spill] sm:$0xff] %v10100_v49  ;;  %12240 = vst [vmem:[#allocation184_spill] sm:$0xff] %v10103_v50  ;;  %v10117_v3 = vrot.slane %v3975_v23, %v10028_v40  ;;  %v10121_v18 = vmul.f32 %v10070_v24, %v12244_v45  ;;  %v10125_v54 = vmul.f32 %v10070_v24, %v12245_v35 }
 0x4d0   : > { %12241 = vst [vmem:[#allocation185_spill] sm:$0xff] %v10106_v37  ;;  %v10129_v2 = vmul.f32 %v10073_v10, %v12245_v35  ;;  %v10132_v55 = vrot.slane %v3974_v6, %v10031_v32  ;;  %v10136_v57 = vmul.f32 %v10087_v21, %v12247_v13  ;;  %v10140_v17 = vmul.f32 %v10087_v21, %v12248_v20  ;;  %v12267_v21 = vld [vmem:[#allocation93_spill] sm:$0xff] }
 0x4d1   : > { %12243 = vst [vmem:[#allocation80_spill] sm:$0xff] %v10117_v3  ;;  %v10143_v45 = vrot.slane %v3975_v23, %v10031_v32  ;;  %v10146_v11 = vrot.slane %v3974_v6, %v10034_v16  ;;  %v10150_v35 = vmul.f32 %v10100_v49, %v12248_v20  ;;  %v10154_v42 = vmul.f32 %v10103_v50, %v9952_v56  ;;  %v10179_v56 = vpop.permute.xlu0 %4356 }
 0x4d2   : > { %12246 = vst [vmem:[#allocation110_spill] sm:$0xff] %v10132_v55  ;;  %v10157_v13 = vrot.slane %v3975_v23, %v10034_v16  ;;  %v10161_v12 = vrot.slane %v10036_v58, %v12214_v33  ;;  %v10165_v61 = vmul.f32 %v10103_v50, %v12254_v7  ;;  %v10169_v6 = vmul.f32 %v10117_v3, %v12254_v7 }
 0x4d3   : > { %12249 = vst [vmem:[#allocation84_spill] sm:$0xff] %v10143_v45  ;;  %12250 = vst [vmem:[#allocation186_spill] sm:$0xff] %v10146_v11  ;;  %v10173_v20 = vrot.slane %v10048_v5, %v12214_v33  ;;  %v10177_v23 = vrot.slane %v10036_v58, %v12218_v31  ;;  %v10183_v15 = vmul.f32 %v10132_v55, %v12259_v8 }
 0x4d4   : > { %12251 = vst [vmem:[#allocation187_spill] sm:$0xff] %v10150_v35  ;;  %12252 = vst [vmem:[#allocation188_spill] sm:$0xff] %v10157_v13  ;;  %v10187_v50 = vmul.f32 %v10132_v55, %v12260_v41  ;;  %v10191_v7 = vrot.slane %v10048_v5, %v12218_v31  ;;  %v10195_v3 = vrot.slane %v10036_v58, %v12202_v25 }
 0x4d5   : > { %12253 = vst [vmem:[#allocation189_spill] sm:$0xff] %v10161_v12  ;;  %12255 = vst [vmem:[#allocation90_spill] sm:$0xff] %v10169_v6  ;;  %v10199_v43 = vmul.f32 %v10143_v45, %v12260_v41  ;;  %v10205_v49 = vrot.slane %v10048_v5, %v12202_v25  ;;  %v10209_v55 = vrot.slane %v10036_v58, %v12204_v29  ;;  %v12270_v25 = vld [vmem:[#allocation96_spill] sm:$0xff] }
 0x4d6   : > { %12256 = vst [vmem:[#allocation190_spill] sm:$0xff] %v10173_v20  ;;  %12257 = vst [vmem:[#allocation191_spill] sm:$0xff] %v10177_v23  ;;  %v4187_v10 = vmul.f32 %v10146_v11, %v12267_v21  ;;  %v10215_v24 = vmul.f32 %v10157_v13, %v12267_v21  ;;  %v4211_v41 = vmul.f32 %v10161_v12, %v9971_v26  ;;  %v12273_v13 = vld [vmem:[#allocation125_spill] sm:$0xff] }
 0x4d7   : > { %12258 = vst [vmem:[#allocation192_spill] sm:$0xff] %v10179_v56  ;;  %12261 = vst [vmem:[#allocation117_spill] sm:$0xff] %v10191_v7  ;;  %v12264_v56 = vld [vmem:[#allocation38_spill] sm:$0xff]  ;;  %v4213_v45 = vmul.f32 %v10161_v12, %v12270_v25  ;;  %v4214_v0 = vmul.f32 %v10173_v20, %v12270_v25  ;;  %v10231_v21 = vrot.slane %v10036_v58, %v12235_v30  ;;  %v12275_v12 = vld [vmem:[#allocation99_spill] sm:$0xff] }
 0x4d8   : > { %12262 = vst [vmem:[#allocation193_spill] sm:$0xff] %v10195_v3  ;;  %12263 = vst [vmem:[#allocation194_spill] sm:$0xff] %v10199_v43  ;;  %v4185_v8 = vmul.f32 %v10146_v11, %v12264_v56  ;;  %v10221_v56 = vrot.slane %v10048_v5, %v12204_v29  ;;  %v4237_v11 = vmul.f32 %v10177_v23, %v12271_v60 }
 0x4d9   : > { %12265 = vst [vmem:[#allocation195_spill] sm:$0xff] %v10205_v49  ;;  %12266 = vst [vmem:[#allocation196_spill] sm:$0xff] %v10209_v55  ;;  %v4239_v26 = vmul.f32 %v10177_v23, %v12273_v13  ;;  %v4240_v63 = vmul.f32 %v10191_v7, %v12273_v13  ;;  %v4263_v4 = vmul.f32 %v10195_v3, %v12274_v1  ;;  %v10253_v13 = vpop.permute.xlu0 %4426  ;;  %v12279_v1 = vld [vmem:[#allocation101_spill] sm:$0xff] }
 0x4da   : > { %12268 = vst [vmem:[#allocation93_spill] sm:$0xff] %v10215_v24  ;;  %12269 = vst [vmem:[#allocation197_spill] sm:$0xff] %v10221_v56  ;;  %v4265_v48 = vmul.f32 %v10195_v3, %v12275_v12  ;;  %v4266_v25 = vmul.f32 %v10205_v49, %v12275_v12  ;;  %v4289_v60 = vmul.f32 %v10209_v55, %v10004_v38  ;;  %v12282_v38 = vld [vmem:[#allocation55_spill] sm:$0xff]  ;;  %v12294_v24 = vld [vmem:[#allocation61_spill] sm:$0xff] }
 0x4db   : > { %12272 = vst [vmem:[#allocation96_spill] sm:$0xff] %v10231_v21  ;;  %v10247_v20 = vrot.slane %v10048_v5, %v12235_v30  ;;  %v10251_v23 = vrot.slane %v10036_v58, %v10028_v40  ;;  %12278 = vst [vmem:[#allocation198_spill] sm:$0xff] %v10253_v13  ;;  %v4291_v7 = vmul.f32 %v10209_v55, %v12279_v1 }
 0x4dc   : > { %v4292_v3 = vmul.f32 %v10221_v56, %v12279_v1  ;;  %v10261_v12 = vrot.slane %v10048_v5, %v10028_v40  ;;  %v10265_v30 = vrot.slane %v10036_v58, %v10031_v32  ;;  %v4315_v49 = vmul.f32 %v10231_v21, %v12282_v38  ;;  %v12286_v40 = vld [vmem:[#allocation128_spill] sm:$0xff] }
 0x4dd   : > { %12276 = vst [vmem:[#allocation125_spill] sm:$0xff] %v10247_v20  ;;  %12277 = vst [vmem:[#allocation99_spill] sm:$0xff] %v10251_v23  ;;  %v10271_v14 = vrot.slane %v10048_v5, %v10031_v32  ;;  %v10275_v55 = vrot.slane %v10036_v58, %v10034_v16  ;;  %v10279_v1 = vrot.slane %v10048_v5, %v10034_v16  ;;  %v12289_v5 = vld [vmem:[#allocation58_spill] sm:$0xff]  ;;  %v4431_v35 = vpop.permute.xlu0 %4430 }
 0x4de   : > { %12280 = vst [vmem:[#allocation101_spill] sm:$0xff] %v10261_v12  ;;  %12281 = vst [vmem:[#allocation199_spill] sm:$0xff] %v10265_v30  ;;  %v4317_v56 = vmul.f32 %v10231_v21, %v12286_v40  ;;  %v10285_v44 = vrot.slane %v10006_v53, %v12214_v33  ;;  %v10289_v38 = vrot.slane %v10013_v34, %v12214_v33  ;;  %v12292_v33 = vld [vmem:[#allocation104_spill] sm:$0xff] }
 0x4df   : > { %12283 = vst [vmem:[#allocation200_spill] sm:$0xff] %v10271_v14  ;;  %12284 = vst [vmem:[#allocation201_spill] sm:$0xff] %v10275_v55  ;;  %v10293_v32 = vrot.slane %v10006_v53, %v12218_v31  ;;  %v4318_v58 = vmul.f32 %v10247_v20, %v12286_v40  ;;  %v4341_v16 = vmul.f32 %v10251_v23, %v12289_v5  ;;  %v12293_v20 = vld [vmem:[#allocation108_spill] sm:$0xff] }
 0x4e0   : > { %12285 = vst [vmem:[#allocation202_spill] sm:$0xff] %v10279_v1  ;;  %12287 = vst [vmem:[#allocation128_spill] sm:$0xff] %v10289_v38  ;;  %v10301_v21 = vrot.slane %v10013_v34, %v12218_v31  ;;  %v10305_v59 = vrot.slane %v10006_v53, %v12204_v29  ;;  %v4343_v37 = vmul.f32 %v10251_v23, %v12292_v33  ;;  %v12295_v53 = vld [vmem:[#allocation130_spill] sm:$0xff] }
 0x4e1   : > { %12288 = vst [vmem:[#allocation203_spill] sm:$0xff] %v10293_v32  ;;  %v4344_v46 = vmul.f32 %v10261_v12, %v12292_v33  ;;  %v4367_v40 = vmul.f32 %v10265_v30, %v10089_v19  ;;  %v4369_v5 = vmul.f32 %v10265_v30, %v12293_v20  ;;  %v4370_v31 = vmul.f32 %v10271_v14, %v12293_v20  ;;  %v12296_v33 = vld [vmem:[#allocation64_spill] sm:$0xff] }
 0x4e2   : > { %12290 = vst [vmem:[#allocation204_spill] sm:$0xff] %v10301_v21  ;;  %12291 = vst [vmem:[#allocation205_spill] sm:$0xff] %v10305_v59  ;;  %v4393_v43 = vmul.f32 %v10275_v55, %v12294_v24  ;;  %v4395_v6 = vmul.f32 %v10275_v55, %v12295_v53  ;;  %v4396_v23 = vmul.f32 %v10279_v1, %v12295_v53  ;;  %v12298_v53 = vld [vmem:[#allocation70_spill] sm:$0xff] }
 0x4e3   : > { %v4419_v12 = vmul.f32 %v10285_v44, %v12296_v33  ;;  %v10327_v19 = vmul.f32 %v10289_v38, %v12296_v33  ;;  %v4422_v20 = vmul.f32 %v10289_v38, %v10008_v62  ;;  %v4445_v24 = vmul.f32 %v10293_v32, %v10253_v13 }
 0x4e4   : > { %v4448_v14 = vmul.f32 %v10301_v21, %v4431_v35  ;;  %v10336_v55 = vrot.slane %v10013_v34, %v12204_v29  ;;  %v4497_v1 = vmul.f32 %v10305_v59, %v12298_v53  ;;  %v4503_v30 = vadd.f32 %v10067_v22, %v10040_v52  ;;  %v4483_v21 = vpop.permute.xlu1 %4482 }
 0x4e5   : > { %12297 = vst [vmem:[#allocation104_spill] sm:$0xff] %v10327_v19  ;;  %v4505_v33 = vadd.f32 %v10084_v51, %v10056_v36  ;;  %v4506_v19 = vadd.f32 %v10093_v28, %v10063_v47  ;;  %v4509_v38 = vadd.f32 %v10121_v18, %v10097_v9  ;;  %v4511_v32 = vadd.f32 %v10125_v54, %v10110_v39 }
 0x4e6   : > { %v4515_v34 = vadd.f32 %v10154_v42, %v10136_v57  ;;  %v4517_v29 = vadd.f32 %v10165_v61, %v10140_v17  ;;  %v4521_v52 = vadd.f32 %v4185_v8, %v10183_v15  ;;  %v4523_v22 = vadd.f32 %v4187_v10, %v10187_v50  ;;  %v12299_v15 = vld [vmem:[#allocation187_spill] sm:$0xff]  ;;  %v12300_v61 = vld [vmem:[#allocation90_spill] sm:$0xff]  ;;  %v12302_v8 = vld [vmem:[#allocation93_spill] sm:$0xff] }
 0x4e7   : > { %v4527_v36 = vadd.f32 %v4237_v11, %v4211_v41  ;;  %v4529_v51 = vadd.f32 %v4239_v26, %v4213_v45  ;;  %v4533_v53 = vadd.f32 %v4289_v60, %v4263_v4  ;;  %v4535_v47 = vadd.f32 %v4291_v7, %v4265_v48  ;;  %v12301_v26 = vld [vmem:[#allocation194_spill] sm:$0xff] }
 0x4e8   : > { %v4539_v28 = vadd.f32 %v4341_v16, %v4315_v49  ;;  %v4541_v59 = vadd.f32 %v4343_v37, %v4317_v56  ;;  %v4545_v9 = vadd.f32 %v4393_v43, %v4367_v40  ;;  %v4547_v18 = vadd.f32 %v4395_v6, %v4369_v5  ;;  %v4409_v40 = vpop.permute.xlu0 %4408 }
 0x4e9   : > { %v4530_v39 = vadd.f32 %v4240_v63, %v4214_v0  ;;  %v4536_v54 = vadd.f32 %v4292_v3, %v4266_v25  ;;  %v4542_v13 = vadd.f32 %v4344_v46, %v4318_v58  ;;  %v4548_v42 = vadd.f32 %v4396_v23, %v4370_v31  ;;  %v12303_v46 = vld [vmem:[#allocation198_spill] sm:$0xff]  ;;  %v12304_v49 = vld [vmem:[#allocation204_spill] sm:$0xff]  ;;  %v12305_v3 = vld [vmem:[#allocation203_spill] sm:$0xff] }
 0x4ea   : > { %v4500_v57 = vmul.f32 %v10336_v55, %v4483_v21  ;;  %v4512_v17 = vadd.f32 %v10129_v2, %v10114_v27  ;;  %v4518_v11 = vadd.f32 %v12300_v61, %v12299_v15  ;;  %v4524_v48 = vadd.f32 %v12302_v8, %v12301_v26  ;;  %v12306_v2 = vld [vmem:[#allocation205_spill] sm:$0xff] }
 0x4eb   : > { %v4563_v4 = vadd.f32 %v4509_v38, %v4503_v30  ;;  %v4565_v56 = vadd.f32 %v4511_v32, %v4505_v33  ;;  %v4571_v43 = vadd.f32 %v4523_v22, %v4517_v29  ;;  %v4575_v16 = vadd.f32 %v4533_v53, %v4527_v36  ;;  %v12308_v58 = vld [vmem:[#allocation185_spill] sm:$0xff] }
 0x4ec   : > { %v4569_v60 = vadd.f32 %v4521_v52, %v4515_v34  ;;  %v4577_v63 = vadd.f32 %v4535_v47, %v4529_v51  ;;  %v4581_v0 = vadd.f32 %v4545_v9, %v4539_v28  ;;  %v4583_v10 = vadd.f32 %v4547_v18, %v4541_v59  ;;  %v12307_v59 = vld [vmem:[#allocation180_spill] sm:$0xff]  ;;  %v12319_v47 = vld [vmem:[#allocation181_spill] sm:$0xff] }
 0x4ed   : > { %v4421_v31 = vmul.f32 %v10285_v44, %v10008_v62  ;;  %v4446_v50 = vmul.f32 %v12304_v49, %v12303_v46  ;;  %v4578_v37 = vadd.f32 %v4536_v54, %v4530_v39  ;;  %v4584_v27 = vadd.f32 %v4548_v42, %v4542_v13  ;;  %v4435_v13 = vpop.permute.xlu1 %4434  ;;  %v12311_v34 = vld [vmem:[#allocation176_spill] sm:$0xff]  ;;  %v12327_v61 = vld [vmem:[#allocation169_spill] sm:$0xff]  ;;  %v12337_v46 = vld [vmem:[#allocation178_spill] sm:$0xff] }
 0x4ee   : > { %v4447_v45 = vmul.f32 %v12305_v3, %v4431_v35  ;;  %v4499_v6 = vmul.f32 %v12306_v2, %v4483_v21  ;;  %v4551_v38 = vadd.f32 %v4445_v24, %v4419_v12  ;;  %v4566_v32 = vadd.f32 %v4512_v17, %v4506_v19  ;;  %v12310_v35 = vld [vmem:[#allocation67_spill] sm:$0xff]  ;;  %v12313_v19 = vld [vmem:[#allocation128_spill] sm:$0xff]  ;;  %v12326_v17 = vld [vmem:[#allocation154_spill] sm:$0xff] }
 0x4ef   : > { %v4572_v29 = vadd.f32 %v4524_v48, %v4518_v11  ;;  %v4595_v30 = vadd.f32 %v4571_v43, %v4565_v56  ;;  %v4599_v23 = vadd.f32 %v4581_v0, %v4575_v16  ;;  %v4601_v7 = vadd.f32 %v4583_v10, %v4577_v63  ;;  %v12330_v48 = vld [vmem:[#allocation122_spill] sm:$0xff]  ;;  %v12335_v0 = vld [vmem:[#allocation177_spill] sm:$0xff] }
 0x4f0   : > { %v4554_v41 = vadd.f32 %v4448_v14, %v4422_v20  ;;  %v4557_v25 = vadd.f32 %v4497_v1, %v12307_v59  ;;  %v4560_v62 = vadd.f32 %v4500_v57, %v12308_v58  ;;  %v4593_v5 = vadd.f32 %v4569_v60, %v4563_v4  ;;  %v12314_v14 = vld [vmem:[#allocation70_spill] sm:$0xff]  ;;  %v12316_v20 = vld [vmem:[#allocation104_spill] sm:$0xff]  ;;  %v12334_v60 = vld [vmem:[#allocation175_spill] sm:$0xff] }
 0x4f1   : > { %v4602_v53 = vadd.f32 %v4584_v27, %v4578_v37  ;;  %v10371_v33 = vadd.f32 %v4601_v7, %v4595_v30  ;;  %v10375_v21 = vmul.f32 %v12311_v34, %v12310_v35  ;;  %v4424_v12 = vmul.f32 %v12313_v19, %v4409_v40  ;;  %v12325_v57 = vld [vmem:[#allocation114_spill] sm:$0xff]  ;;  %v12339_v27 = vld [vmem:[#allocation129_spill] sm:$0xff]  ;;  %v12347_v58 = vld [vmem:[#allocation84_spill] sm:$0xff] }
 0x4f2   : > { %v4605_v24 = vadd.f32 %v4599_v23, %v4593_v5  ;;  %v4450_v52 = vmul.f32 %v12304_v49, %v4435_v13  ;;  %v10381_v1 = vmul.f32 %v10336_v55, %v12314_v14  ;;  %v10384_v22 = vadd.f32 %v4446_v50, %v12316_v20  ;;  %v12331_v4 = vld [vmem:[#allocation170_spill] sm:$0xff]  ;;  %v12338_v50 = vld [vmem:[#allocation179_spill] sm:$0xff]  ;;  %v12344_v23 = vld [vmem:[#allocation80_spill] sm:$0xff] }
 0x4f3   : > { %12309 = vst [vmem:[#allocation108_spill] sm:$0xff] %v10371_v33  ;;  %12312 = vst [vmem:[#allocation130_spill] sm:$0xff] %v10375_v21  ;;  %v10386_v36 = vadd.f32 %v4447_v45, %v4421_v31  ;;  %v4596_v51 = vadd.f32 %v4572_v29, %v4566_v32  ;;  %v10389_v28 = vadd.f32 %v4499_v6, %v12319_v47  ;;  %v12333_v16 = vld [vmem:[#allocation162_spill] sm:$0xff]  ;;  %v12336_v31 = vld [vmem:[#allocation127_spill] sm:$0xff]  ;;  %v4487_v21 = vpop.permute.xlu0 %4486 }
 0x4f4   : > { %12315 = vst [vmem:[#allocation64_spill] sm:$0xff] %v10381_v1  ;;  %12317 = vst [vmem:[#allocation187_spill] sm:$0xff] %v10384_v22  ;;  %v4587_v9 = vadd.f32 %v4557_v25, %v4551_v38  ;;  %v10391_v18 = vadd.f32 %v4560_v62, %v4554_v41  ;;  %v10394_v39 = vmul.f32 %v10285_v44, %v4409_v40  ;;  %v12332_v44 = vld [vmem:[#allocation174_spill] sm:$0xff]  ;;  %v12341_v6 = vld [vmem:[#allocation183_spill] sm:$0xff]  ;;  %v4461_v22 = vpop.permute.xlu1 %4460 }
 0x4f5   : > { %12318 = vst [vmem:[#allocation90_spill] sm:$0xff] %v10386_v36  ;;  %12320 = vst [vmem:[#allocation194_spill] sm:$0xff] %v10389_v28  ;;  %v10396_v54 = vadd.f32 %v4602_v53, %v4596_v51  ;;  %v10399_v42 = vmul.f32 %v12305_v3, %v4435_v13  ;;  %v4007_v15 = vmul.f32 %v12326_v17, %v12325_v57  ;;  %v12340_v3 = vld [vmem:[#allocation74_spill] sm:$0xff]  ;;  %v12343_v29 = vld [vmem:[#allocation184_spill] sm:$0xff] }
 0x4f6   : > { %12321 = vst [vmem:[#allocation93_spill] sm:$0xff] %v10391_v18  ;;  %12322 = vst [vmem:[#allocation198_spill] sm:$0xff] %v10394_v39  ;;  %v4008_v11 = vmul.f32 %v12327_v61, %v12325_v57  ;;  %v10405_v26 = vadd.f32 %v4605_v24, %v4587_v9  ;;  %v10407_v8 = vadd.f32 %v4450_v52, %v4424_v12  ;;  %v12342_v32 = vld [vmem:[#allocation166_spill] sm:$0xff]  ;;  %v12345_v41 = vld [vmem:[#allocation11_spill] sm:$0xff] }
 0x4f7   : > { %12323 = vst [vmem:[#allocation204_spill] sm:$0xff] %v10396_v54  ;;  %12324 = vst [vmem:[#allocation203_spill] sm:$0xff] %v10399_v42  ;;  %v4033_v56 = vmul.f32 %v12331_v4, %v12330_v48  ;;  %v4034_v43 = vmul.f32 %v12332_v44, %v12330_v48  ;;  %v4059_v63 = vmul.f32 %v12334_v60, %v12333_v16  ;;  %v12346_v59 = vld [vmem:[#allocation110_spill] sm:$0xff]  ;;  %v12348_v5 = vld [vmem:[#allocation161_spill] sm:$0xff] }
 0x4f8   : > { %12328 = vst [vmem:[#allocation205_spill] sm:$0xff] %v10405_v26  ;;  %12329 = vst [vmem:[#allocation180_spill] sm:$0xff] %v10407_v8  ;;  %v4060_v10 = vmul.f32 %v12335_v0, %v12333_v16  ;;  %v4085_v49 = vmul.f32 %v12337_v46, %v12336_v31  ;;  %v4086_v37 = vmul.f32 %v12338_v50, %v12336_v31  ;;  %v12349_v40 = vld [vmem:[#allocation186_spill] sm:$0xff]  ;;  %v12350_v13 = vld [vmem:[#allocation188_spill] sm:$0xff] }
 0x4f9   : > { %v4111_v45 = vmul.f32 %v12340_v3, %v12339_v27  ;;  %v4112_v38 = vmul.f32 %v12341_v6, %v12339_v27  ;;  %v4137_v30 = vmul.f32 %v12343_v29, %v12342_v32  ;;  %v4138_v7 = vmul.f32 %v12344_v23, %v12342_v32  ;;  %v12351_v24 = vld [vmem:[#allocation155_spill] sm:$0xff]  ;;  %v12352_v19 = vld [vmem:[#allocation189_spill] sm:$0xff]  ;;  %v12353_v52 = vld [vmem:[#allocation190_spill] sm:$0xff] }
 0x4fa   : > { %v4163_v25 = vmul.f32 %v12346_v59, %v12345_v41  ;;  %v4164_v62 = vmul.f32 %v12347_v58, %v12345_v41  ;;  %v4189_v53 = vmul.f32 %v12349_v40, %v12348_v5  ;;  %v4190_v35 = vmul.f32 %v12350_v13, %v12348_v5  ;;  %v12354_v20 = vld [vmem:[#allocation163_spill] sm:$0xff]  ;;  %v12356_v9 = vld [vmem:[#allocation117_spill] sm:$0xff]  ;;  %v12360_v31 = vld [vmem:[#allocation158_spill] sm:$0xff] }
 0x4fb   : > { %v4215_v12 = vmul.f32 %v12352_v19, %v12351_v24  ;;  %v4216_v14 = vmul.f32 %v12353_v52, %v12351_v24  ;;  %v12355_v51 = vld [vmem:[#allocation191_spill] sm:$0xff]  ;;  %v4242_v57 = vmul.f32 %v12356_v9, %v12354_v20  ;;  %v12357_v17 = vld [vmem:[#allocation165_spill] sm:$0xff]  ;;  %v12361_v46 = vld [vmem:[#allocation196_spill] sm:$0xff]  ;;  %v4508_v36 = vadd.f32 %v4034_v43, %v4008_v11 }
 0x4fc   : > { %v4241_v47 = vmul.f32 %v12355_v51, %v12354_v20  ;;  %v12358_v48 = vld [vmem:[#allocation193_spill] sm:$0xff]  ;;  %v12359_v16 = vld [vmem:[#allocation195_spill] sm:$0xff]  ;;  %v4293_v27 = vmul.f32 %v12361_v46, %v12360_v31  ;;  %v12364_v41 = vld [vmem:[#allocation96_spill] sm:$0xff]  ;;  %v4513_v1 = vadd.f32 %v4085_v49, %v4059_v63  ;;  %v4520_v54 = vadd.f32 %v4138_v7, %v4112_v38 }
 0x4fd   : > { %v4267_v4 = vmul.f32 %v12358_v48, %v12357_v17  ;;  %v4268_v60 = vmul.f32 %v12359_v16, %v12357_v17  ;;  %v12362_v3 = vld [vmem:[#allocation197_spill] sm:$0xff]  ;;  %v12363_v29 = vld [vmem:[#allocation167_spill] sm:$0xff]  ;;  %v12366_v24 = vld [vmem:[#allocation152_spill] sm:$0xff]  ;;  %v4532_v18 = vadd.f32 %v4242_v57, %v4216_v14  ;;  %v4525_v16 = vadd.f32 %v4189_v53, %v4163_v25 }
 0x4fe   : > { %v4294_v32 = vmul.f32 %v12362_v3, %v12360_v31  ;;  %v4319_v59 = vmul.f32 %v12364_v41, %v12363_v29  ;;  %v12365_v5 = vld [vmem:[#allocation125_spill] sm:$0xff]  ;;  %v12367_v19 = vld [vmem:[#allocation99_spill] sm:$0xff]  ;;  %v12369_v17 = vld [vmem:[#allocation192_spill] sm:$0xff]  ;;  %v4476_v3 = vmul.f32 %v12311_v34, %v4461_v22 }
 0x4ff   : > { %v4320_v40 = vmul.f32 %v12365_v5, %v12363_v29  ;;  %v4345_v20 = vmul.f32 %v12367_v19, %v12366_v24  ;;  %v12368_v51 = vld [vmem:[#allocation101_spill] sm:$0xff]  ;;  %v12370_v8 = vld [vmem:[#allocation199_spill] sm:$0xff]  ;;  %v12371_v46 = vld [vmem:[#allocation200_spill] sm:$0xff]  ;;  %v4507_v29 = vadd.f32 %v4033_v56, %v4007_v15  ;;  %v4514_v19 = vadd.f32 %v4086_v37, %v4060_v10 }
 0x500   : > { %v4346_v48 = vmul.f32 %v12368_v51, %v12366_v24  ;;  %v4371_v33 = vmul.f32 %v12370_v8, %v12369_v17  ;;  %v4372_v26 = vmul.f32 %v12371_v46, %v12369_v17  ;;  %v12372_v31 = vld [vmem:[#allocation156_spill] sm:$0xff]  ;;  %v12373_v42 = vld [vmem:[#allocation201_spill] sm:$0xff]  ;;  %v12374_v41 = vld [vmem:[#allocation202_spill] sm:$0xff]  ;;  %v4526_v24 = vadd.f32 %v4190_v35, %v4164_v62 }
 0x501   : > { %v4397_v39 = vmul.f32 %v12373_v42, %v12372_v31  ;;  %v4398_v28 = vmul.f32 %v12374_v41, %v12372_v31  ;;  %v4538_v51 = vadd.f32 %v4294_v32, %v4268_v60  ;;  %v12375_v5 = vld [vmem:[#allocation171_spill] sm:$0xff]  ;;  %v4501_v17 = vmul.f32 %v12306_v2, %v4487_v21  ;;  %v12377_v34 = vld [vmem:[#allocation29_spill] sm:$0xff]  ;;  %v12394_v32 = vld [vmem:[#allocation182_spill] sm:$0xff] }
 0x502   : > { %v4475_v8 = vmul.f32 %v12375_v5, %v4461_v22  ;;  %v4502_v42 = vmul.f32 %v10336_v55, %v4487_v21  ;;  %v4519_v46 = vadd.f32 %v4137_v30, %v4111_v45  ;;  %v4531_v31 = vadd.f32 %v4241_v47, %v4215_v12  ;;  %v12376_v7 = vld [vmem:[#allocation159_spill] sm:$0xff]  ;;  %v12378_v22 = vld [vmem:[#allocation160_spill] sm:$0xff]  ;;  %v12380_v30 = vld [vmem:[#allocation33_spill] sm:$0xff] }
 0x503   : > { %v4537_v15 = vadd.f32 %v4293_v27, %v4267_v4  ;;  %v4543_v11 = vadd.f32 %v4345_v20, %v4319_v59  ;;  %v4544_v56 = vadd.f32 %v4346_v48, %v4320_v40  ;;  %v4549_v43 = vadd.f32 %v4397_v39, %v4371_v33  ;;  %v12379_v21 = vld [vmem:[#allocation32_spill] sm:$0xff]  ;;  %v12383_v39 = vld [vmem:[#allocation38_spill] sm:$0xff]  ;;  %v12387_v53 = vld [vmem:[#allocation195_spill] sm:$0xff] }
 0x504   : > { %v4550_v63 = vadd.f32 %v4398_v28, %v4372_v26  ;;  %v4567_v10 = vadd.f32 %v4513_v1, %v4507_v29  ;;  %v4568_v49 = vadd.f32 %v4514_v19, %v4508_v36  ;;  %v4574_v37 = vadd.f32 %v4526_v24, %v4520_v54  ;;  %v12381_v28 = vld [vmem:[#allocation164_spill] sm:$0xff]  ;;  %v12382_v36 = vld [vmem:[#allocation35_spill] sm:$0xff]  ;;  %v12388_v12 = vld [vmem:[#allocation157_spill] sm:$0xff] }
 0x505   : > { %v4580_v38 = vadd.f32 %v4538_v51, %v4532_v18  ;;  %v4004_v62 = vmul.f32 %v12327_v61, %v12376_v7  ;;  %v4030_v2 = vmul.f32 %v12332_v44, %v12377_v34  ;;  %v4056_v55 = vmul.f32 %v12335_v0, %v12378_v22  ;;  %v12384_v26 = vld [vmem:[#allocation168_spill] sm:$0xff]  ;;  %v12385_v0 = vld [vmem:[#allocation41_spill] sm:$0xff]  ;;  %v12390_v47 = vld [vmem:[#allocation55_spill] sm:$0xff] }
 0x506   : > { %v4082_v45 = vmul.f32 %v12338_v50, %v12379_v21  ;;  %v4108_v33 = vmul.f32 %v12341_v6, %v12380_v30  ;;  %v4134_v1 = vmul.f32 %v12344_v23, %v12381_v28  ;;  %v4160_v18 = vmul.f32 %v12347_v58, %v12382_v36  ;;  %v12386_v50 = vld [vmem:[#allocation45_spill] sm:$0xff]  ;;  %v12392_v4 = vld [vmem:[#allocation58_spill] sm:$0xff]  ;;  %v12395_v59 = vld [vmem:[#allocation200_spill] sm:$0xff] }
 0x507   : > { %v4186_v54 = vmul.f32 %v12350_v13, %v12383_v39  ;;  %v4586_v61 = vadd.f32 %v4550_v63, %v4544_v56  ;;  %v4212_v44 = vmul.f32 %v12353_v52, %v12384_v26  ;;  %v4238_v25 = vmul.f32 %v12356_v9, %v12385_v0  ;;  %v12389_v14 = vld [vmem:[#allocation197_spill] sm:$0xff]  ;;  %v12398_v63 = vld [vmem:[#allocation204_spill] sm:$0xff] }
 0x508   : > { %v4264_v35 = vmul.f32 %v12387_v53, %v12386_v50  ;;  %v4579_v6 = vadd.f32 %v4537_v15, %v4531_v31  ;;  %v4290_v23 = vmul.f32 %v12389_v14, %v12388_v12  ;;  %v12391_v57 = vld [vmem:[#allocation125_spill] sm:$0xff]  ;;  %v4585_v27 = vadd.f32 %v4549_v43, %v4543_v11 }
 0x509   : > { %v4316_v58 = vmul.f32 %v12391_v57, %v12390_v47  ;;  %v12393_v60 = vld [vmem:[#allocation101_spill] sm:$0xff]  ;;  %v4368_v52 = vmul.f32 %v12395_v59, %v12394_v32  ;;  %v4504_v40 = vadd.f32 %v4030_v2, %v4004_v62  ;;  %v4573_v20 = vadd.f32 %v4525_v16, %v4519_v46  ;;  %v12400_v62 = vld [vmem:[#allocation130_spill] sm:$0xff]  ;;  %v12401_v16 = vld [vmem:[#allocation64_spill] sm:$0xff] }
 0x50a   : > { %v4342_v13 = vmul.f32 %v12393_v60, %v12392_v4  ;;  %v12396_v5 = vld [vmem:[#allocation61_spill] sm:$0xff]  ;;  %v4510_v51 = vadd.f32 %v4082_v45, %v4056_v55  ;;  %v4516_v48 = vadd.f32 %v4134_v1, %v4108_v33  ;;  %v4522_v29 = vadd.f32 %v4186_v54, %v4160_v18  ;;  %v12402_v2 = vld [vmem:[#allocation90_spill] sm:$0xff]  ;;  %v12405_v33 = vld [vmem:[#allocation203_spill] sm:$0xff] }
 0x50b   : > { %v4394_v9 = vmul.f32 %v12374_v41, %v12396_v5  ;;  %v4604_v19 = vadd.f32 %v4586_v61, %v4580_v38  ;;  %v4528_v24 = vadd.f32 %v4238_v25, %v4212_v44  ;;  %v4534_v31 = vadd.f32 %v4290_v23, %v4264_v35  ;;  %v12397_v56 = vld [vmem:[#allocation93_spill] sm:$0xff]  ;;  %v12403_v55 = vld [vmem:[#allocation194_spill] sm:$0xff]  ;;  %v12409_v44 = vld [vmem:[#allocation180_spill] sm:$0xff] }
 0x50c   : > { %v4540_v15 = vadd.f32 %v4342_v13, %v4316_v58  ;;  %v10507_v7 = vadd.f32 %v12398_v63, %v12397_v56  ;;  %v4564_v43 = vadd.f32 %v4510_v51, %v4504_v40  ;;  %v4570_v34 = vadd.f32 %v4522_v29, %v4516_v48  ;;  %v12404_v45 = vld [vmem:[#allocation198_spill] sm:$0xff]  ;;  %v12406_v54 = vld [vmem:[#allocation205_spill] sm:$0xff]  ;;  %v12414_v51 = vld [vmem:[#allocation3_spill] sm:$0xff] }
 0x50d   : > { %v4546_v11 = vadd.f32 %v4394_v9, %v4368_v52  ;;  %v4562_v22 = vadd.f32 %v4502_v42, %v4476_v3  ;;  %v4598_v21 = vadd.f32 %v4574_v37, %v4568_v49  ;;  %v4603_v30 = vadd.f32 %v4585_v27, %v4579_v6  ;;  %v12407_v3 = vld [vmem:[#allocation108_spill] sm:$0xff] }
 0x50e   : > { %12399 = vst [vmem:[#allocation185_spill] sm:$0xff] %v10507_v7  ;;  %v4576_v41 = vadd.f32 %v4534_v31, %v4528_v24  ;;  %v4558_v46 = vadd.f32 %v12401_v16, %v12400_v62  ;;  %v4589_v38 = vadd.f32 %v12403_v55, %v12402_v2  ;;  %v4555_v28 = vadd.f32 %v12405_v33, %v12404_v45  ;;  %v12419_v45 = vld [vmem:[#allocation8_spill] sm:$0xff] }
 0x50f   : > { %v4582_v1 = vadd.f32 %v4546_v11, %v4540_v15  ;;  %v4561_v36 = vadd.f32 %v4501_v17, %v4475_v8  ;;  %v4597_v18 = vadd.f32 %v4573_v20, %v4567_v10  ;;  %v4610_v39 = vadd.f32 %v4604_v19, %v4598_v21  ;;  %v12410_v8 = vld [vmem:[#allocation187_spill] sm:$0xff]  ;;  %v12415_v15 = vld [vmem:[#allocation4_spill] sm:$0xff] }
 0x510   : > { %v10516_v61 = vand.u32 4294901760, %v12406_v54  ;;  %v10519_v42 = vadd.f32 %v12407_v3, %v4589_v38  ;;  %v4594_v49 = vadd.f32 %v4570_v34, %v4564_v43  ;;  %v4617_v26 = vmul.f32 %v12406_v54, %v12406_v54  ;;  %v12416_v34 = vld [vmem:[#allocation5_spill] sm:$0xff]  ;;  %v12421_v3 = vld [vmem:[#allocation10_spill] sm:$0xff] }
 0x511   : > { %v4600_v37 = vadd.f32 %v4582_v1, %v4576_v41  ;;  %v4592_v0 = vadd.f32 %v4562_v22, %v12409_v44  ;;  %v4609_v25 = vadd.f32 %v4603_v30, %v4597_v18  ;;  %v10525_v50 = vand.u32 4294901760, %v10507_v7  ;;  %v12417_v30 = vld [vmem:[#allocation6_spill] sm:$0xff] }
 0x512   : > { %12408 = vst [vmem:[#allocation67_spill] sm:$0xff] %v10519_v42  ;;  %v4588_v17 = vadd.f32 %v4558_v46, %v12410_v8  ;;  %v4620_v53 = vmul.f32 %v10507_v7, %v10507_v7  ;;  %v4591_v35 = vadd.f32 %v4561_v36, %v4555_v28  ;;  %v10534_v12 = vsub.f32 %v12406_v54, %v10516_v61  ;;  %v12418_v46 = vld [vmem:[#allocation7_spill] sm:$0xff]  ;;  %v12420_v36 = vld [vmem:[#allocation9_spill] sm:$0xff] }
 0x513   : > { %v4606_v10 = vadd.f32 %v4600_v37, %v4594_v49  ;;  %v10530_v6 = vadd.f32 %v4610_v39, %v4592_v0  ;;  %v10539_v23 = vand.u32 4294901760, %v10519_v42  ;;  %v4629_v47 = vrot.slane %v4617_v26, 4  ;;  %v12422_v0 = vld [vmem:[#allocation13_spill] sm:$0xff] }
 0x514   : > { %v10541_v57 = vadd.f32 %v4609_v25, %v4591_v35  ;;  %v10545_v58 = vsub.f32 %v10507_v7, %v10525_v50  ;;  %v4633_v13 = vrot.slane %v4620_v53, 4  ;;  %v4619_v27 = vmul.f32 %v10519_v42, %v10519_v42  ;;  %v12423_v25 = vld [vmem:[#allocation12_spill] sm:$0xff]  ;;  %v12424_v53 = vld [vmem:[#allocation15_spill] sm:$0xff]  ;;  %v12425_v35 = vld [vmem:[#allocation14_spill] sm:$0xff] }
 0x515   : > { %12411 = vst [vmem:[#allocation176_spill] sm:$0xff] %v10530_v6  ;;  %v10536_v14 = vadd.f32 %v4606_v10, %v4588_v17  ;;  %v4622_v32 = vmul.f32 %v10530_v6, %v10530_v6  ;;  %v4751_v59 = vand.u32 4294901760, %v10534_v12  ;;  %v10566_v40 = vsub.f32 %v10519_v42, %v10539_v23 }
 0x516   : > { %12413 = vst [vmem:[#allocation70_spill] sm:$0xff] %v10541_v57  ;;  %v4645_v9 = vsel %vm2078_vm3, %v10541_v57, %v4629_v47  ;;  %v4760_v20 = vand.u32 4294901760, %v10545_v58  ;;  %v4631_v24 = vrot.slane %v4619_v27, 4  ;;  %v4621_v31 = vmul.f32 %v10541_v57, %v10541_v57 }
 0x517   : > { %12412 = vst [vmem:[#allocation128_spill] sm:$0xff] %v10536_v14  ;;  %v10548_v4 = vand.u32 4294901760, %v10536_v14  ;;  %v4618_v60 = vmul.f32 %v10536_v14, %v10536_v14  ;;  %v4752_v63 = vsub.f32 %v10534_v12, %v4751_v59  ;;  %v10584_v11 = vand.u32 4294901760, %v4645_v9 }
 0x518   : > { %v4637_v43 = vrot.slane %v4622_v32, 4  ;;  %v11673_v21 = vand.u32 4294901760, %v10566_v40  ;;  %v4761_v41 = vsub.f32 %v10545_v58, %v4760_v20  ;;  %v4632_v55 = vsel %vm2078_vm3, %v4629_v47, %v4631_v24  ;;  %v12426_v47 = vld [vmem:[#allocation18_spill] sm:$0xff] }
 0x519   : > { %5044 = vmatprep.mubr.f32.mxu1 %v10548_v4  ;;  %v4630_v52 = vrot.slane %v4618_v60, 4  ;;  %v10560_v5 = vsub.f32 %v10536_v14, %v10548_v4  ;;  %v4635_v38 = vrot.slane %v4621_v31, 4  ;;  %v4753_v33 = vand.u32 4294901760, %v4752_v63  ;;  %v12430_v63 = vld [vmem:[#allocation25_spill] sm:$0xff] }
 0x51a   : > { %5046 = vmatmul.mubr.f32.vlgmr.msra.gmra.mxu1 %v10516_v61  ;;  %v10607_v1 = vsub.f32 %v4645_v9, %v10584_v11  ;;  %v4767_v18 = vsub.f32 %v10566_v40, %v11673_v21  ;;  %v4638_v39 = vsel %vm2078_vm3, %v4633_v13, %v4637_v43  ;;  %v4762_v49 = vand.u32 4294901760, %v4761_v41  ;;  %v12428_v9 = vld [vmem:[#allocation22_spill] sm:$0xff]  ;;  %v12431_v43 = vld [vmem:[#allocation23_spill] sm:$0xff] }
 0x51b   : > { %7582 = vmatpush3.msra.mxu1 %v12414_v51  ;;  %5051 = vmatprep.mubr.f32.mxu1 %v10525_v50  ;;  %v4646_v48 = vsel %vm2078_vm3, %v10530_v6, %v4630_v52  ;;  %v4745_v29 = vand.u32 4294901760, %v10560_v5  ;;  %v4634_v19 = vsel %vm2078_vm3, %v4630_v52, %v4633_v13  ;;  %v10615_v37 = vand.u32 4294901760, %v4632_v55  ;;  %v12427_v52 = vld [vmem:[#allocation17_spill] sm:$0xff]  ;;  %v12468_v21 = vld [vmem:[#allocation103_spill] sm:$0xff] }
 0x51c   : > { %7583 = vmatprep.subr.mxu1 %v12415_v15  ;;  %v10579_v56 = vand.u32 4294901760, %v4646_v48  ;;  %v10596_v62 = vand.u32 4294901760, %v4634_v19  ;;  %v10626_v8 = vand.u32 4294901760, %v4638_v39  ;;  %v11671_v17 = vand.u32 4294901760, %v10607_v1 }
 0x51d   : > { %7584 = vmatpush3.msra.mxu1 %v12416_v34  ;;  %v4746_v22 = vsub.f32 %v10560_v5, %v4745_v29  ;;  %v4636_v10 = vsel %vm2078_vm3, %v4631_v24, %v4635_v38  ;;  %v4768_v60 = vand.u32 4294901760, %v4767_v18  ;;  %v10636_v32 = vsub.f32 %v4632_v55, %v10615_v37  ;;  %v12433_v38 = vld [vmem:[#allocation26_spill] sm:$0xff] }
 0x51e   : > { %7585 = vmatprep.subr.mxu1 %v12417_v30  ;;  %5053 = vmatmul.mubr.f32.gmra.mxu1 %v10539_v23  ;;  %v10599_v16 = vsub.f32 %v4646_v48, %v10579_v56  ;;  %v10621_v44 = vsub.f32 %v4634_v19, %v10596_v62  ;;  %v10640_v48 = vand.u32 4294901760, %v4636_v10  ;;  %v12429_v19 = vld [vmem:[#allocation19_spill] sm:$0xff]  ;;  %v4782_v24 = vsub.f32 %v10607_v1, %v11671_v17  ;;  %v12462_v17 = vld [vmem:[#allocation89_spill] sm:$0xff] }
 0x51f   : > { %7586 = vmatpush3.msra.mxu1 %v12418_v46  ;;  %5058 = vmatprep.mubr.f32.mxu1 %v10579_v56  ;;  %v4747_v2 = vand.u32 4294901760, %v4746_v22  ;;  %v10647_v31 = vsub.f32 %v4638_v39, %v10626_v8  ;;  %v11668_v41 = vand.u32 4294901760, %v10636_v32 }
 0x520   : > { %7587 = vmatprep.subr.mxu1 %v12419_v45  ;;  %v11672_v28 = vand.u32 4294901760, %v10599_v16  ;;  %v11669_v27 = vand.u32 4294901760, %v10621_v44  ;;  %v10659_v55 = vsub.f32 %v4636_v10, %v10640_v48  ;;  %v4783_v18 = vand.u32 4294901760, %v4782_v24  ;;  %v12440_v24 = vld [vmem:[#allocation47_spill] sm:$0xff] }
 0x521   : > { %7588 = vmatpush3.msra.mxu1 %v12420_v36  ;;  %4748 = vmatprep.mubr.f32.mxu0 %v4747_v2  ;;  %v12432_v2 = vld [vmem:[#allocation28_spill] sm:$0xff]  ;;  %v11667_v39 = vand.u32 4294901760, %v10647_v31  ;;  %v4797_v10 = vsub.f32 %v10636_v32, %v11668_v41  ;;  %v12451_v41 = vld [vmem:[#allocation65_spill] sm:$0xff] }
 0x522   : > { %7589 = vmatprep.subr.mxu1 %v12421_v3  ;;  %4754 = vmatmul.mubr.f32.vlgmr.msra.gmra.mxu0 %v4753_v33  ;;  %v4776_v26 = vsub.f32 %v10599_v16, %v11672_v28  ;;  %v4791_v22 = vsub.f32 %v10621_v44, %v11669_v27  ;;  %v12434_v33 = vld [vmem:[#allocation36_spill] sm:$0xff] }
 0x523   : > { %5060 = vmatmul.mubr.f32.gmra.mxu1 %v10584_v11  ;;  %7535 = vmatpush3.msra.mxu0 %v12422_v0  ;;  %v12437_v0 = vld [vmem:[#allocation37_spill] sm:$0xff]  ;;  %v12452_v27 = vld [vmem:[#allocation72_spill] sm:$0xff] }
 0x524   : > { %7590 = vmatpush3.msra.mxu1 %v12423_v25  ;;  %4763 = vmatprep.mubr.f32.mxu0 %v4762_v49  ;;  %v4777_v13 = vand.u32 4294901760, %v4776_v26  ;;  %v12435_v49 = vld [vmem:[#allocation31_spill] sm:$0xff]  ;;  %v12465_v28 = vld [vmem:[#allocation92_spill] sm:$0xff] }
 0x525   : > { %5065 = vmatprep.mubr.f32.mxu1 %v10596_v62  ;;  %7536 = vmatprep.subr.mxu0 %v12424_v53  ;;  %v12436_v26 = vld [vmem:[#allocation39_spill] sm:$0xff]  ;;  %v4792_v53 = vand.u32 4294901760, %v4791_v22  ;;  %v12442_v22 = vld [vmem:[#allocation50_spill] sm:$0xff] }
 0x526   : > { %7591 = vmatprep.subr.mxu1 %v12425_v35  ;;  %7537 = vmatpush3.msra.mxu0 %v12426_v47  ;;  %v12438_v47 = vld [vmem:[#allocation43_spill] sm:$0xff] }
 0x527   : > { %7592 = vmatpush3.msra.mxu1 %v12427_v52  ;;  %7538 = vmatprep.subr.mxu0 %v12428_v9  ;;  %v4806_v9 = vsub.f32 %v10647_v31, %v11667_v39  ;;  %v12447_v39 = vld [vmem:[#allocation54_spill] sm:$0xff] }
 0x528   : > { %7593 = vmatprep.subr.mxu1 %v12429_v19  ;;  %4769 = vmatmul.mubr.f32.gmra.mxu0 %v4768_v60  ;;  %v11670_v60 = vand.u32 4294901760, %v10659_v55 }
 0x529   : > { %5067 = vmatmul.mubr.f32.gmra.mxu1 %v10615_v37  ;;  %7539 = vmatpush3.msra.mxu0 %v12430_v63  ;;  %v12441_v63 = vld [vmem:[#allocation44_spill] sm:$0xff] }
 0x52a   : > { %7594 = vmatpush3.msra.mxu1 %v12431_v43  ;;  %4778 = vmatprep.mubr.f32.mxu0 %v4777_v13  ;;  %v12439_v13 = vld [vmem:[#allocation40_spill] sm:$0xff] }
 0x52b   : > { %5072 = vmatprep.mubr.f32.mxu1 %v10626_v8  ;;  %7540 = vmatprep.subr.mxu0 %v12432_v2  ;;  %v4798_v2 = vand.u32 4294901760, %v4797_v10  ;;  %v12449_v10 = vld [vmem:[#allocation60_spill] sm:$0xff] }
 0x52c   : > { %7595 = vmatprep.subr.mxu1 %v12433_v38  ;;  %7541 = vmatpush3.msra.mxu0 %v12434_v33  ;;  %v12443_v33 = vld [vmem:[#allocation48_spill] sm:$0xff] }
 0x52d   : > { %7596 = vmatpush3.msra.mxu1 %v12435_v49  ;;  %7542 = vmatprep.subr.mxu0 %v12436_v26  ;;  %v4812_v26 = vsub.f32 %v10659_v55, %v11670_v60  ;;  %v12453_v60 = vld [vmem:[#allocation69_spill] sm:$0xff] }
 0x52e   : > { %7597 = vmatprep.subr.mxu1 %v12437_v0  ;;  %4784 = vmatmul.mubr.f32.gmra.mxu0 %v4783_v18  ;;  %v12444_v18 = vld [vmem:[#allocation53_spill] sm:$0xff] }
 0x52f   : > { %5074 = vmatmul.mubr.f32.gmra.mxu1 %v10640_v48  ;;  %7543 = vmatpush3.msra.mxu0 %v12438_v47  ;;  %v4807_v47 = vand.u32 4294901760, %v4806_v9  ;;  %v12454_v9 = vld [vmem:[#allocation75_spill] sm:$0xff] }
 0x530   : > { %7598 = vmatpush3.msra.mxu1 %v12439_v13  ;;  %4793 = vmatprep.mubr.f32.mxu0 %v4792_v53  ;;  %v12445_v53 = vld [vmem:[#allocation51_spill] sm:$0xff] }
 0x531   : > { %7544 = vmatprep.subr.mxu0 %v12440_v24  ;;  %7599 = vmatprep.subr.mxu1 %v12441_v63  ;;  %v12446_v24 = vld [vmem:[#allocation57_spill] sm:$0xff] }
 0x532   : > { %5352 = vmatprep.mubr.f32.mxu1 %v4745_v29  ;;  %7545 = vmatpush3.msra.mxu0 %v12442_v22  ;;  %v12448_v29 = vld [vmem:[#allocation63_spill] sm:$0xff]  ;;  %v12450_v22 = vld [vmem:[#allocation66_spill] sm:$0xff] }
 0x533   : > { %7600 = vmatpush3.msra.mxu1 %v12443_v33  ;;  %7546 = vmatprep.subr.mxu0 %v12444_v18  ;;  %v4813_v18 = vand.u32 4294901760, %v4812_v26  ;;  %v12459_v26 = vld [vmem:[#allocation79_spill] sm:$0xff] }
 0x534   : > { %7601 = vmatprep.subr.mxu1 %v12445_v53  ;;  %4799 = vmatmul.mubr.f32.gmra.mxu0 %v4798_v2  ;;  %v12455_v2 = vld [vmem:[#allocation73_spill] sm:$0xff] }
 0x535   : > { %7547 = vmatpush3.msra.mxu0 %v12446_v24  ;;  %7602 = vmatpush3.msra.mxu1 %v12447_v39  ;;  %v12456_v24 = vld [vmem:[#allocation78_spill] sm:$0xff] }
 0x536   : > { %4808 = vmatprep.mubr.f32.mxu0 %v4807_v47  ;;  %7548 = vmatprep.subr.mxu0 %v12448_v29  ;;  %v12457_v47 = vld [vmem:[#allocation76_spill] sm:$0xff]  ;;  %v12458_v29 = vld [vmem:[#allocation82_spill] sm:$0xff] }
 0x537   : > { %7603 = vmatprep.subr.mxu1 %v12449_v10  ;;  %7549 = vmatpush3.msra.mxu0 %v12450_v22  ;;  %v12460_v22 = vld [vmem:[#allocation86_spill] sm:$0xff] }
 0x538   : > { %7604 = vmatpush3.msra.mxu1 %v12451_v41  ;;  %7550 = vmatprep.subr.mxu0 %v12452_v27  ;;  %v12461_v27 = vld [vmem:[#allocation83_spill] sm:$0xff] }
 0x539   : > { %7605 = vmatprep.subr.mxu1 %v12453_v60  ;;  %4814 = vmatmul.mubr.f32.gmra.mxu0 %v4813_v18  ;;  %v12463_v18 = vld [vmem:[#allocation88_spill] sm:$0xff] }
 0x53a   : > { %7551 = vmatpush3.msra.mxu0 %v12454_v9  ;;  %7606 = vmatpush3.msra.mxu1 %v12455_v2  ;;  %v12464_v9 = vld [vmem:[#allocation95_spill] sm:$0xff] }
 0x53b   : > { %7552 = vmatprep.subr.mxu0 %v12456_v24  ;;  %5209 = vmatprep.mubr.f32.mxu0 %v10560_v5  ;;  %v12466_v24 = vld [vmem:[#allocation98_spill] sm:$0xff]  ;;  %v12467_v5 = vld [vmem:[#allocation97_spill] sm:$0xff] }
 0x53c   : > { %7607 = vmatprep.subr.mxu1 %v12457_v47  ;;  %7553 = vmatpush3.msra.mxu0 %v12458_v29  ;;  %v12469_v29 = vld [vmem:[#allocation2_spill] sm:$0xff] }
 0x53d   : > { %7608 = vmatpush3.msra.mxu1 %v12459_v26  ;;  %7554 = vmatprep.subr.mxu0 %v12460_v22  ;;  %v12470_v22 = vld [vmem:[#allocation105_spill] sm:$0xff] }
 0x53e   : > { %7609 = vmatprep.subr.mxu1 %v12461_v27  ;;  %7555 = vmatpush3.msra.mxu0 %v12462_v17  ;;  %v12471_v17 = vld [vmem:[#allocation107_spill] sm:$0xff] }
 0x53f   : > { %7610 = vmatpush3.msra.mxu1 %v12463_v18  ;;  %7556 = vmatprep.subr.mxu0 %v12464_v9  ;;  %v12472_v9 = vld [vmem:[#allocation113_spill] sm:$0xff] }
 0x540   : > { %7611 = vmatprep.subr.mxu1 %v12465_v28  ;;  %7557 = vmatpush3.msra.mxu0 %v12466_v24  ;;  %v12475_v24 = vld [vmem:[#allocation116_spill] sm:$0xff] }
 0x541   : > { %7612 = vmatpush3.msra.mxu1 %v12467_v5  ;;  %7558 = vmatprep.subr.mxu0 %v12468_v21  ;;  %v12473_v21 = vld [vmem:[#allocation115_spill] sm:$0xff] }
 0x542   : > { %5356 = vmatmul.mubr.f32.vlgmr.msra.gmra.mxu1 %v4751_v59  ;;  %7675 = vmatprep.subr.mxu1 %v12469_v29  ;;  %v12474_v59 = vand.u32 4294901760, %v10566_v40  ;;  %v12482_v29 = vld [vmem:[#allocation20_spill] sm:$0xff] }
 0x543   : > { %7559 = vmatpush3.msra.mxu0 %v12470_v22  ;;  %5363 = vmatprep.mubr.f32.mxu1 %v4760_v20  ;;  %v12476_v20 = vand.u32 4294901760, %v10599_v16  ;;  %v12519_v22 = vld [vmem:[#allocation145_spill] sm:$0xff] }
 0x544   : > { %7676 = vmatpush3.msra.mxu1 %v12414_v51  ;;  %7560 = vmatprep.subr.mxu0 %v12471_v17  ;;  %v12477_v51 = vld [vmem:[#allocation121_spill] sm:$0xff]  ;;  %v12520_v17 = vld [vmem:[#allocation111_spill] sm:$0xff] }
 0x545   : > { %7677 = vmatprep.subr.mxu1 %v12415_v15  ;;  %7561 = vmatpush3.msra.mxu0 %v12472_v9  ;;  %v12478_v15 = vld [vmem:[#allocation123_spill] sm:$0xff] }
 0x546   : > { %7678 = vmatpush3.msra.mxu1 %v12416_v34  ;;  %7562 = vmatprep.subr.mxu0 %v12473_v21  ;;  %v12479_v34 = vand.u32 4294901760, %v10607_v1  ;;  %v12521_v9 = vld [vmem:[#allocation131_spill] sm:$0xff]  ;;  %v12522_v21 = vld [vmem:[#allocation132_spill] sm:$0xff] }
 0x547   : > { %5367 = vmatmul.mubr.f32.gmra.mxu1 %v12474_v59  ;;  %7679 = vmatprep.subr.mxu1 %v12417_v30  ;;  %v12480_v30 = vld [vmem:[#allocation16_spill] sm:$0xff]  ;;  %v12525_v59 = vmov 0.0  }
 0x548   : > { %7563 = vmatpush3.msra.mxu0 %v12475_v24  ;;  %5374 = vmatprep.mubr.f32.mxu1 %v12476_v20 }
 0x549   : > { %7680 = vmatpush3.msra.mxu1 %v12418_v46  ;;  %7564 = vmatprep.subr.mxu0 %v12477_v51  ;;  %v12481_v46 = vand.u32 4294901760, %v10621_v44 }
 0x54a   : > { %7681 = vmatprep.subr.mxu1 %v12419_v45  ;;  %7565 = vmatpush3.msra.mxu0 %v12478_v15  ;;  %v12483_v45 = vld [vmem:[#allocation21_spill] sm:$0xff] }
 0x54b   : > { %7682 = vmatpush3.msra.mxu1 %v12420_v36  ;;  %5212 = vmatmul.mubr.f32.vlgmr.msra.gmra.mxu0 %v10534_v12  ;;  %v12484_v12 = vld [vmem:[#allocation24_spill] sm:$0xff]  ;;  %v12485_v36 = vand.u32 4294901760, %v10636_v32 }
 0x54c   : > { %5378 = vmatmul.mubr.f32.gmra.mxu1 %v12479_v34  ;;  %7628 = vmatprep.subr.mxu0 %v12480_v30 }
 0x54d   : > { %7683 = vmatprep.subr.mxu1 %v12421_v3  ;;  %5218 = vmatprep.mubr.f32.mxu0 %v10545_v58  ;;  %v12486_v58 = vld [vmem:[#allocation27_spill] sm:$0xff]  ;;  %v12487_v3 = vand.u32 4294901760, %v10647_v31 }
 0x54e   : > { %5385 = vmatprep.mubr.f32.mxu1 %v12481_v46  ;;  %7629 = vmatpush3.msra.mxu0 %v12482_v29 }
 0x54f   : > { %7684 = vmatpush3.msra.mxu1 %v12423_v25  ;;  %7630 = vmatprep.subr.mxu0 %v12483_v45  ;;  %v12488_v25 = vld [vmem:[#allocation30_spill] sm:$0xff] }
 0x550   : > { %7685 = vmatprep.subr.mxu1 %v12425_v35  ;;  %7631 = vmatpush3.msra.mxu0 %v12484_v12  ;;  %v12489_v35 = vld [vmem:[#allocation34_spill] sm:$0xff] }
 0x551   : > { %7686 = vmatpush3.msra.mxu1 %v12427_v52  ;;  %5221 = vmatmul.mubr.f32.gmra.mxu0 %v10566_v40  ;;  %v12490_v40 = vld [vmem:[#allocation42_spill] sm:$0xff]  ;;  %v12491_v52 = vand.u32 4294901760, %v10659_v55 }
 0x552   : > { %5389 = vmatmul.mubr.f32.gmra.mxu1 %v12485_v36  ;;  %7632 = vmatprep.subr.mxu0 %v12486_v58 }
 0x553   : > { %7687 = vmatprep.subr.mxu1 %v12429_v19  ;;  %5227 = vmatprep.mubr.f32.mxu0 %v10599_v16  ;;  %v12492_v16 = vld [vmem:[#allocation46_spill] sm:$0xff]  ;;  %v12493_v19 = vld [vmem:[#allocation49_spill] sm:$0xff] }
 0x554   : > { %5396 = vmatprep.mubr.f32.mxu1 %v12487_v3  ;;  %7633 = vmatpush3.msra.mxu0 %v12488_v25 }
 0x555   : > { %7688 = vmatpush3.msra.mxu1 %v12431_v43  ;;  %7634 = vmatprep.subr.mxu0 %v12489_v35  ;;  %v12494_v43 = vld [vmem:[#allocation52_spill] sm:$0xff] }
 0x556   : > { %7689 = vmatprep.subr.mxu1 %v12433_v38  ;;  %7635 = vmatpush3.msra.mxu0 %v12490_v40  ;;  %v12496_v38 = vld [vmem:[#allocation59_spill] sm:$0xff] }
 0x557   : > { %7690 = vmatpush3.msra.mxu1 %v12435_v49  ;;  %5230 = vmatmul.mubr.f32.gmra.mxu0 %v10607_v1  ;;  %v12495_v1 = vld [vmem:[#allocation56_spill] sm:$0xff] }
 0x558   : > { %5400 = vmatmul.mubr.f32.gmra.mxu1 %v12491_v52  ;;  %7636 = vmatprep.subr.mxu0 %v12492_v16  ;;  %v12498_v49 = vld [vmem:[#allocation68_spill] sm:$0xff] }
 0x559   : > { %7691 = vmatprep.subr.mxu1 %v12437_v0  ;;  %5236 = vmatprep.mubr.f32.mxu0 %v10621_v44  ;;  %v12497_v44 = vld [vmem:[#allocation62_spill] sm:$0xff]  ;;  %v12499_v0 = vld [vmem:[#allocation71_spill] sm:$0xff] }
 0x55a   : > { %7637 = vmatpush3.msra.mxu0 %v12493_v19  ;;  %7692 = vmatpush3.msra.mxu1 %v12439_v13  ;;  %v12501_v13 = vld [vmem:[#allocation81_spill] sm:$0xff] }
 0x55b   : > { %5698 = vmatprep.mubr.f32.mxu1 %v10548_v4  ;;  %7638 = vmatprep.subr.mxu0 %v12494_v43 }
 0x55c   : > { %7693 = vmatprep.subr.mxu1 %v12441_v63  ;;  %7639 = vmatpush3.msra.mxu0 %v12495_v1  ;;  %v12508_v63 = vld [vmem:[#allocation106_spill] sm:$0xff] }
 0x55d   : > { %7694 = vmatpush3.msra.mxu1 %v12443_v33  ;;  %5239 = vmatmul.mubr.f32.gmra.mxu0 %v10636_v32  ;;  %v12500_v32 = vld [vmem:[#allocation77_spill] sm:$0xff] }
 0x55e   : > { %7640 = vmatprep.subr.mxu0 %v12496_v38  ;;  %7695 = vmatprep.subr.mxu1 %v12445_v53  ;;  %v12509_v33 = vld [vmem:[#allocation109_spill] sm:$0xff]  ;;  %v12510_v53 = vld [vmem:[#allocation112_spill] sm:$0xff] }
 0x55f   : > { %5245 = vmatprep.mubr.f32.mxu0 %v10647_v31  ;;  %7641 = vmatpush3.msra.mxu0 %v12497_v44  ;;  %v12502_v31 = vld [vmem:[#allocation85_spill] sm:$0xff] }
 0x560   : > { %7696 = vmatpush3.msra.mxu1 %v12447_v39  ;;  %7642 = vmatprep.subr.mxu0 %v12498_v49  ;;  %v12503_v39 = vld [vmem:[#allocation87_spill] sm:$0xff] }
 0x561   : > { %7697 = vmatprep.subr.mxu1 %v12449_v10  ;;  %7643 = vmatpush3.msra.mxu0 %v12499_v0  ;;  %v12511_v10 = vld [vmem:[#allocation118_spill] sm:$0xff] }
 0x562   : > { %7698 = vmatpush3.msra.mxu1 %v12451_v41  ;;  %5248 = vmatmul.mubr.f32.gmra.mxu0 %v10659_v55  ;;  %v12504_v41 = vld [vmem:[#allocation91_spill] sm:$0xff]  ;;  %v12505_v55 = vld [vmem:[#allocation94_spill] sm:$0xff] }
 0x563   : > { %7644 = vmatprep.subr.mxu0 %v12500_v32  ;;  %7699 = vmatprep.subr.mxu1 %v12453_v60  ;;  %v12506_v60 = vld [vmem:[#allocation100_spill] sm:$0xff] }
 0x564   : > { %7645 = vmatpush3.msra.mxu0 %v12501_v13  ;;  %5566 = vmatprep.mubr.f32.mxu0 %v10548_v4  ;;  %v12507_v4 = vld [vmem:[#allocation102_spill] sm:$0xff] }
 0x565   : > { %7700 = vmatpush3.msra.mxu1 %v12455_v2  ;;  %7646 = vmatprep.subr.mxu0 %v12502_v31  ;;  %v12512_v2 = vld [vmem:[#allocation142_spill] sm:$0xff] }
 0x566   : > { %7701 = vmatprep.subr.mxu1 %v12457_v47  ;;  %7647 = vmatpush3.msra.mxu0 %v12503_v39  ;;  %v12513_v47 = vld [vmem:[#allocation119_spill] sm:$0xff] }
 0x567   : > { %7702 = vmatpush3.msra.mxu1 %v12459_v26  ;;  %7648 = vmatprep.subr.mxu0 %v12504_v41  ;;  %v12515_v26 = vld [vmem:[#allocation120_spill] sm:$0xff] }
 0x568   : > { %7703 = vmatprep.subr.mxu1 %v12461_v27  ;;  %7649 = vmatpush3.msra.mxu0 %v12505_v55  ;;  %v12516_v27 = vld [vmem:[#allocation124_spill] sm:$0xff] }
 0x569   : > { %7704 = vmatpush3.msra.mxu1 %v12463_v18  ;;  %7650 = vmatprep.subr.mxu0 %v12506_v60  ;;  %v12517_v18 = vld [vmem:[#allocation126_spill] sm:$0xff] }
 0x56a   : > { %7705 = vmatprep.subr.mxu1 %v12465_v28  ;;  %7651 = vmatpush3.msra.mxu0 %v12507_v4  ;;  %v12514_v28 = vld [vmem:[#allocation143_spill] sm:$0xff] }
 0x56b   : > { %7706 = vmatpush3.msra.mxu1 %v12467_v5  ;;  %7652 = vmatprep.subr.mxu0 %v12508_v63  ;;  %v12518_v5 = vld [vmem:[#allocation144_spill] sm:$0xff] }
 0x56c   : > { %5700 = vmatmul.mubr.f32.vlgmr.msra.gmra.mxu1 %v10516_v61  ;;  %7653 = vmatpush3.msra.mxu0 %v12509_v33 }
 0x56d   : > { %5705 = vmatprep.mubr.f32.mxu1 %v10525_v50  ;;  %7654 = vmatprep.subr.mxu0 %v12510_v53 }
 0x56e   : > { %7655 = vmatpush3.msra.mxu0 %v12511_v10  ;;  %5932 = vmatprep.subr.mxu1 %v12512_v2 }
 0x56f   : > { %7656 = vmatprep.subr.mxu0 %v12513_v47  ;;  %5938 = vmatpush1.msra.mxu1 %v12514_v28 }
 0x570   : > { %5707 = vmatmul.mubr.f32.gmra.mxu1 %v10539_v23  ;;  %7657 = vmatpush3.msra.mxu0 %v12515_v26 }
 0x571   : > { %5712 = vmatprep.mubr.f32.mxu1 %v10579_v56  ;;  %7658 = vmatprep.subr.mxu0 %v12516_v27 }
 0x572   : > { %7659 = vmatpush3.msra.mxu0 %v12517_v18  ;;  %5944 = vmatprep.subr.mxu1 %v12518_v5 }
 0x573   : > { %5568 = vmatmul.mubr.f32.vlgmr.msra.gmra.mxu0 %v10516_v61  ;;  %5950 = vmatpush1.msra.mxu1 %v12519_v22  ;;  %v12523_v61 = vld [vmem:[#allocation133_spill] sm:$0xff] }
 0x574   : > { %5714 = vmatmul.mubr.f32.gmra.mxu1 %v10584_v11  ;;  %5573 = vmatprep.mubr.f32.mxu0 %v10525_v50  ;;  %v12524_v50 = vld [vmem:[#allocation134_spill] sm:$0xff] }
 0x575   : > { %5719 = vmatprep.mubr.f32.mxu1 %v10596_v62  ;;  %5804 = vmatprep.subr.mxu0 %v12520_v17 }
 0x576   : > { %5806 = vmatpush1.msra.mxu0 %v12521_v9  ;;  %6161 = vmatprep.subr.mxu1 %v12520_v17 }
 0x577   : > { %5575 = vmatmul.mubr.f32.gmra.mxu0 %v10539_v23  ;;  %5808 = vmatprep.subr.mxu0 %v12522_v21 }
 0x578   : > { %5721 = vmatmul.mubr.f32.gmra.mxu1 %v10615_v37  ;;  %5580 = vmatprep.mubr.f32.mxu0 %v10579_v56 }
 0x579   : > { %5726 = vmatprep.mubr.f32.mxu1 %v10626_v8  ;;  %5810 = vmatpush1.msra.mxu0 %v12523_v61 }
 0x57a   : > { %6049 = vmatprep.subr.mxu0 %v12524_v50 }
 0x57b   : > { %5582 = vmatmul.mubr.f32.gmra.mxu0 %v10584_v11 }
 0x57c   : > { %5728 = vmatmul.mubr.f32.gmra.mxu1 %v10640_v48  ;;  %5587 = vmatprep.mubr.f32.mxu0 %v10596_v62 }
 0x57d   : > { %5983 = vmatprep.mubr.f32.mxu1 %v12525_v59 }
 0x57f   : > { %5589 = vmatmul.mubr.f32.gmra.mxu0 %v10615_v37 }
 0x580   : > { %5594 = vmatprep.mubr.f32.mxu0 %v10626_v8 }
 0x583   : > { %5596 = vmatmul.mubr.f32.gmra.mxu0 %v10640_v48 }
 0x584   : > { %5843 = vmatprep.mubr.f32.mxu0 %v12525_v59 }
 0x5da   : > { %v7519_v23 = vpop.f32.mrf.mxu1 }
 0x5dc   : > { %v7520_v56 = vpop.f32.mrf.mxu1 }
 0x5dd   : > { %v7521_v33 = vadd.f32 %v7520_v56, %v7519_v23 }
 0x5de   : > { %v7522_v20 = vpop.f32.mrf.mxu1 }
 0x5e0   : > { %v7523_v11 = vpop.f32.mrf.mxu1 }
 0x5e1   : > { %v7524_v27 = vadd.f32 %v7523_v11, %v7522_v20 }
 0x5e2   : > { %v7472_v24 = vpop.f32.mrf.mxu0 }
 0x5e3   : > { %v7525_v34 = vpop.f32.mrf.mxu1 }
 0x5e4   : > { %v7473_v51 = vpop.f32.mrf.mxu0 }
 0x5e5   : > { %v7526_v62 = vpop.f32.mrf.mxu1  ;;  %v7474_v60 = vadd.f32 %v7473_v51, %v7472_v24 }
 0x5e6   : > { %v7527_v14 = vadd.f32 %v7526_v62, %v7525_v34 }
 0x5e7   : > { %v5048_v2 = vadd.f32 %v7521_v33, %v7474_v60 }
 0x5e8   : > { %v7475_v15 = vpop.f32.mrf.mxu0 }
 0x5e9   : > { %v7528_v29 = vpop.f32.mrf.mxu1 }
 0x5ea   : > { %v7476_v30 = vpop.f32.mrf.mxu0 }
 0x5eb   : > { %v7529_v37 = vpop.f32.mrf.mxu1  ;;  %v7477_v47 = vadd.f32 %v7476_v30, %v7475_v15 }
 0x5ed   : > { %v5055_v6 = vadd.f32 %v7524_v27, %v7477_v47 }
 0x5ee   : > { %v7478_v46 = vpop.f32.mrf.mxu0 }
 0x5ef   : > { %v10842_v8 = vpop.f32.mrf.mxu1 }
 0x5f0   : > { %v7479_v45 = vpop.f32.mrf.mxu0 }
 0x5f1   : > { %v10844_v36 = vpop.f32.mrf.mxu1  ;;  %v7480_v50 = vadd.f32 %v7479_v45, %v7478_v46 }
 0x5f4   : > { %v7481_v12 = vpop.f32.mrf.mxu0 }
 0x5f6   : > { %v7482_v48 = vpop.f32.mrf.mxu0 }
 0x5f7   : > { %v7483_v15 = vadd.f32 %v7482_v48, %v7481_v12  ;;  %v7533_v48 = vadd.f32 %v10844_v36, %v10842_v8 }
 0x5f9   : > { %v7484_v3 = vpop.f32.mrf.mxu0 }
 0x5fb   : > { %v7485_v35 = vpop.f32.mrf.mxu0 }
 0x602   : > { %v7613_v58 = vpop.f32.mrf.mxu1 }
 0x604   : > { %v7614_v25 = vpop.f32.mrf.mxu1 }
 0x605   : > { %v7615_v42 = vadd.f32 %v7614_v25, %v7613_v58 }
 0x607   : > { %v7616_v52 = vpop.f32.mrf.mxu1 }
 0x609   : > { %v7617_v19 = vpop.f32.mrf.mxu1 }
 0x60a   : > { %v7618_v60 = vadd.f32 %v7617_v19, %v7616_v52 }
 0x60b   : > { %v7566_v40 = vpop.f32.mrf.mxu0 }
 0x60c   : > { %v7619_v1 = vpop.f32.mrf.mxu1 }
 0x60d   : > { %v7567_v16 = vpop.f32.mrf.mxu0 }
 0x60e   : > { %v7620_v44 = vpop.f32.mrf.mxu1  ;;  %v7568_v53 = vadd.f32 %v7567_v16, %v7566_v40  ;;  %v5062_v16 = vadd.f32 %v7527_v14, %v7480_v50 }
 0x610   : > { %v5214_v18 = vadd.f32 %v7568_v53, %v5048_v2 }
 0x611   : > { %v7569_v43 = vpop.f32.mrf.mxu0 }
 0x612   : > { %v10846_v0 = vpop.f32.mrf.mxu1  ;;  %v5358_v23 = vadd.f32 %v7615_v42, %v5214_v18 }
 0x613   : > { %v7570_v38 = vpop.f32.mrf.mxu0 }
 0x614   : > { %v10848_v13 = vpop.f32.mrf.mxu1  ;;  %v7571_v5 = vadd.f32 %v7570_v38, %v7569_v43  ;;  %v7530_v43 = vadd.f32 %v7529_v37, %v7528_v29 }
 0x616   : > { %v5223_v54 = vadd.f32 %v7571_v5, %v5055_v6  ;;  %v5069_v62 = vadd.f32 %v7530_v43, %v7483_v15  ;;  %v7621_v6 = vadd.f32 %v7620_v44, %v7619_v1 }
 0x617   : > { %v7572_v49 = vpop.f32.mrf.mxu0 }
 0x618   : > { %v10850_v39 = vpop.f32.mrf.mxu1  ;;  %v5369_v25 = vadd.f32 %v7618_v60, %v5223_v54 }
 0x619   : > { %v7573_v32 = vpop.f32.mrf.mxu0 }
 0x61a   : > { %v10852_v55 = vpop.f32.mrf.mxu1  ;;  %v7574_v24 = vadd.f32 %v7573_v32, %v7572_v49  ;;  %v7486_v49 = vadd.f32 %v7485_v35, %v7484_v3  ;;  %v7624_v35 = vadd.f32 %v10848_v13, %v10846_v0 }
 0x61b   : > { %v7627_v18 = vadd.f32 %v10852_v55, %v10850_v39 }
 0x61c   : > { %v5232_v38 = vadd.f32 %v7574_v24, %v5062_v16  ;;  %v5076_v3 = vadd.f32 %v7533_v48, %v7486_v49 }
 0x61d   : > { %v7575_v31 = vpop.f32.mrf.mxu0 }
 0x61e   : > { %v5380_v19 = vadd.f32 %v7621_v6, %v5232_v38 }
 0x61f   : > { %v7576_v41 = vpop.f32.mrf.mxu0 }
 0x620   : > { %v7577_v46 = vadd.f32 %v7576_v41, %v7575_v31 }
 0x622   : > { %v7578_v63 = vpop.f32.mrf.mxu0  ;;  %v5241_v52 = vadd.f32 %v7577_v46, %v5069_v62  ;;  %v12527_v62 = vld [vmem:[#allocation136_spill] sm:$0xff] }
 0x624   : > { %v7579_v26 = vpop.f32.mrf.mxu0  ;;  %v5391_v13 = vadd.f32 %v7624_v35, %v5241_v52 }
 0x625   : > { %v7580_v31 = vadd.f32 %v7579_v26, %v7578_v63 }
 0x62c   : > { %v7707_v4 = vpop.f32.mrf.mxu1 }
 0x62e   : > { %v7708_v10 = vpop.f32.mrf.mxu1 }
 0x62f   : > { %v7709_v20 = vadd.f32 %v7708_v10, %v7707_v4 }
 0x630   : > { %v7710_v28 = vpop.f32.mrf.mxu1 }
 0x632   : > { %v7711_v22 = vpop.f32.mrf.mxu1 }
 0x633   : > { %v7660_v7 = vpop.f32.mrf.mxu0 }
 0x634   : > { %v7713_v57 = vpop.f32.mrf.mxu1 }
 0x635   : > { %v7661_v51 = vpop.f32.mrf.mxu0 }
 0x636   : > { %v7662_v56 = vadd.f32 %v7661_v51, %v7660_v7  ;;  %v7714_v40 = vpop.f32.mrf.mxu1  ;;  %v7712_v7 = vadd.f32 %v7711_v22, %v7710_v28  ;;  %v5250_v28 = vadd.f32 %v7580_v31, %v5076_v3 }
 0x637   : > { %v7663_v30 = vpop.f32.mrf.mxu0  ;;  %v7715_v8 = vadd.f32 %v7714_v40, %v7713_v57 }
 0x638   : > { %v5570_v11 = vadd.f32 %v7662_v56, %v5358_v23  ;;  %v7716_v45 = vpop.f32.mrf.mxu1 }
 0x639   : > { %v7664_v33 = vpop.f32.mrf.mxu0 }
 0x63a   : > { %v5702_v58 = vadd.f32 %v7709_v20, %v5570_v11  ;;  %v7665_v34 = vadd.f32 %v7664_v33, %v7663_v30  ;;  %v7717_v37 = vpop.f32.mrf.mxu1  ;;  %v5402_v20 = vadd.f32 %v7627_v18, %v5250_v28 }
 0x63b   : > { %v7666_v42 = vpop.f32.mrf.mxu0  ;;  %v7718_v51 = vadd.f32 %v7717_v37, %v7716_v45 }
 0x63c   : > { %v5761_v14 = vsel %vm1302_vm1, %v5702_v58, 0  ;;  %v5577_v12 = vadd.f32 %v7665_v34, %v5369_v25  ;;  %v5733_v54 = vmul.f32 %v5702_v58, %v5702_v58  ;;  %v7719_v0 = vpop.f32.mrf.mxu1  ;;  %v12526_v25 = vld [vmem:[#allocation135_spill] sm:$0xff] }
 0x63d   : > { %v10857_v29 = vand.u32 4294901760, %v5761_v14  ;;  %v7667_v32 = vpop.f32.mrf.mxu0 }
 0x63e   : > { %v5709_v41 = vadd.f32 %v7712_v7, %v5577_v12  ;;  %v7668_v4 = vadd.f32 %v7667_v32, %v7666_v42  ;;  %v5739_v26 = vrot.slane %v5733_v54, 4  ;;  %v7720_v55 = vpop.f32.mrf.mxu1  ;;  %v12528_v42 = vld [vmem:[#allocation137_spill] sm:$0xff] }
 0x63f   : > { %v10862_v1 = vsub.f32 %v5761_v14, %v10857_v29  ;;  %v7669_v44 = vpop.f32.mrf.mxu0  ;;  %5985 = vmatmul.mubr.f32.vlgmr.msra.gmra.mxu1 %v10857_v29  ;;  %v7721_v45 = vadd.f32 %v7720_v55, %v7719_v0  ;;  %v12529_v14 = vld [vmem:[#allocation138_spill] sm:$0xff] }
 0x640   : > { %v5734_v36 = vmul.f32 %v5709_v41, %v5709_v41  ;;  %v5764_v53 = vsel %vm1302_vm1, %v5709_v41, 0  ;;  %v5584_v10 = vadd.f32 %v7668_v4, %v5380_v19  ;;  %5990 = vmatprep.mubr.f32.mxu1 %v12525_v59  ;;  %6163 = vmatpush1.msra.mxu1 %v12521_v9 }
 0x641   : > { %v5846_v63 = vand.u32 4294901760, %v10862_v1  ;;  %v10869_v2 = vand.u32 4294901760, %v5764_v53  ;;  %v7670_v47 = vpop.f32.mrf.mxu0  ;;  %6165 = vmatprep.subr.mxu1 %v12522_v21 }
 0x642   : > { %v5716_v57 = vadd.f32 %v7715_v8, %v5584_v10  ;;  %v7671_v27 = vadd.f32 %v7670_v47, %v7669_v44  ;;  %6167 = vmatpush1.msra.mxu1 %v12523_v61  ;;  %v5740_v22 = vrot.slane %v5734_v36, 4 }
 0x643   : > { %v5847_v5 = vsub.f32 %v10862_v1, %v5846_v63  ;;  %v10879_v50 = vsub.f32 %v5764_v53, %v10869_v2  ;;  %v7672_v24 = vpop.f32.mrf.mxu0  ;;  %5992 = vmatmul.mubr.f32.gmra.mxu1 %v10869_v2  ;;  %6387 = vmatprep.subr.mxu1 %v12520_v17 }
 0x644   : > { %v5735_v23 = vmul.f32 %v5716_v57, %v5716_v57  ;;  %v5747_v56 = vsub.f32 %v5716_v57, %v5739_v26  ;;  %v5591_v40 = vadd.f32 %v7671_v27, %v5391_v13  ;;  %5997 = vmatprep.mubr.f32.mxu1 %v12525_v59  ;;  %v5741_v38 = vsel %vm2078_vm3, %v5739_v26, %v5740_v22 }
 0x645   : > { %v5848_v39 = vand.u32 4294901760, %v5847_v5  ;;  %v7673_v16 = vpop.f32.mrf.mxu0  ;;  %v5857_v15 = vand.u32 4294901760, %v10879_v50 }
 0x646   : > { %v5750_v30 = vmax.f32 %v5747_v56, 0.0  ;;  %v5723_v60 = vadd.f32 %v7718_v51, %v5591_v40  ;;  %v7674_v11 = vadd.f32 %v7673_v16, %v7672_v24  ;;  %v5742_v43 = vrot.slane %v5735_v23, 4 }
 0x647   : > { %5849 = vmatmul.mubr.f32.vlgmr.msra.gmra.mxu0 %v5848_v39  ;;  %v5858_v17 = vsub.f32 %v10879_v50, %v5857_v15 }
 0x648   : > { %v5753_v46 = vadd.f32 1e-08, %v5750_v30  ;;  %v5748_v33 = vsub.f32 %v5723_v60, %v5741_v38  ;;  %v5598_v58 = vadd.f32 %v7674_v11, %v5402_v20  ;;  %5854 = vmatprep.mubr.f32.mxu0 %v12525_v59  ;;  %6052 = vmatpush1.msra.mxu0 %v12526_v25  ;;  %v5743_v7 = vsel %vm2078_vm3, %v5740_v22, %v5742_v43 }
 0x649   : > { %v5859_v34 = vand.u32 4294901760, %v5858_v17  ;;  %6055 = vmatprep.subr.mxu0 %v12527_v62 }
 0x64a   : > { %7851 = vrsqrt.f32 %v5753_v46  ;;  %v5751_v49 = vmax.f32 %v5748_v33, 0.0  ;;  %v5730_v6 = vadd.f32 %v7721_v45, %v5598_v58  ;;  %6058 = vmatpush1.msra.mxu0 %v12528_v42 }
 0x64b   : > { %5860 = vmatmul.mubr.f32.gmra.mxu0 %v5859_v34  ;;  %6277 = vmatprep.subr.mxu0 %v12529_v14 }
 0x64c   : > { %v5754_v12 = vadd.f32 1e-08, %v5751_v49  ;;  %v5749_v48 = vsub.f32 %v5730_v6, %v5743_v7  ;;  %5865 = vmatprep.mubr.f32.mxu0 %v12525_v59 }
 0x64e   : > { %7853 = vrsqrt.f32 %v5754_v12  ;;  %v5752_v52 = vmax.f32 %v5749_v48, 0.0 }
 0x650   : > { %v5755_v37 = vadd.f32 1e-08, %v5752_v52 }
 0x652   : > { %7855 = vrsqrt.f32 %v5755_v37 }
 0x657   : > { %v7852_v19 = vpop.eup %7851 }
 0x658   : > { %v5759_v32 = vsel %vm2078_vm3, %v5716_v57, %v7852_v19 }
 0x659   : > { %v5767_v31 = vsel %vm1302_vm1, %v5759_v32, 0 }
 0x65a   : > { %v10898_v54 = vand.u32 4294901760, %v5767_v31 }
 0x65b   : > { %v7854_v41 = vpop.eup %7853 }
 0x65c   : > { %v5867_v4 = vsub.f32 %v5767_v31, %v10898_v54  ;;  %5999 = vmatmul.mubr.f32.gmra.mxu1 %v10898_v54  ;;  %v5770_v3 = vsel %vm1302_vm1, %v7854_v41, 0 }
 0x65d   : > { %6004 = vmatprep.mubr.f32.mxu1 %v12525_v59  ;;  %v10904_v35 = vand.u32 4294901760, %v5770_v3 }
 0x65e   : > { %v5868_v44 = vand.u32 4294901760, %v5867_v4 }
 0x65f   : > { %v7856_v8 = vpop.eup %7855  ;;  %v5878_v36 = vsub.f32 %v5770_v3, %v10904_v35 }
 0x660   : > { %6006 = vmatmul.mubr.f32.gmra.mxu1 %v10904_v35  ;;  %v5869_v53 = vsub.f32 %v5867_v4, %v5868_v44  ;;  %v5773_v10 = vsel %vm1302_vm1, %v7856_v8, 0 }
 0x661   : > { %6011 = vmatprep.mubr.f32.mxu1 %v12525_v59  ;;  %v5888_v0 = vand.u32 4294901760, %v5773_v10  ;;  %v5879_v13 = vand.u32 4294901760, %v5878_v36 }
 0x662   : > { %v5870_v47 = vand.u32 4294901760, %v5869_v53 }
 0x663   : > { %v5889_v28 = vsub.f32 %v5773_v10, %v5888_v0  ;;  %v5880_v26 = vsub.f32 %v5878_v36, %v5879_v13 }
 0x664   : > { %5871 = vmatmul.mubr.f32.gmra.mxu0 %v5870_v47  ;;  %6013 = vmatmul.mubr.f32.gmra.mxu1 %v5888_v0 }
 0x665   : > { %5876 = vmatprep.mubr.f32.mxu0 %v12525_v59  ;;  %6200 = vmatprep.mubr.f32.mxu1 %v12525_v59  ;;  %v5881_v57 = vand.u32 4294901760, %v5880_v26  ;;  %v5890_v27 = vand.u32 4294901760, %v5889_v28 }
 0x667   : > { %v5891_v18 = vsub.f32 %v5889_v28, %v5890_v27 }
 0x668   : > { %5882 = vmatmul.mubr.f32.gmra.mxu0 %v5881_v57  ;;  %6204 = vmatmul.mubr.f32.vlgmr.msra.gmra.mxu1 %v5846_v63  ;;  %v12530_v63 = vld [vmem:[#allocation139_spill] sm:$0xff] }
 0x669   : > { %5887 = vmatprep.mubr.f32.mxu0 %v12525_v59  ;;  %6209 = vmatprep.mubr.f32.mxu1 %v12525_v59  ;;  %v5892_v5 = vand.u32 4294901760, %v5891_v18 }
 0x66a   : > { %6389 = vmatpush1.msra.mxu1 %v12521_v9  ;;  %v12531_v9 = vld [vmem:[#allocation140_spill] sm:$0xff] }
 0x66b   : > { %6391 = vmatprep.subr.mxu1 %v12522_v21  ;;  %v12532_v21 = vld [vmem:[#allocation141_spill] sm:$0xff] }
 0x66c   : > { %5893 = vmatmul.mubr.f32.gmra.mxu0 %v5892_v5  ;;  %6213 = vmatmul.mubr.f32.gmra.mxu1 %v5857_v15 }
 0x66d   : > { %6091 = vmatprep.mubr.f32.mxu0 %v12525_v59  ;;  %6218 = vmatprep.mubr.f32.mxu1 %v12525_v59 }
 0x66e   : > { %6393 = vmatpush1.msra.mxu1 %v12523_v61 }
 0x670   : > { %6094 = vmatmul.mubr.f32.vlgmr.msra.gmra.mxu0 %v10862_v1  ;;  %6222 = vmatmul.mubr.f32.gmra.mxu1 %v5868_v44 }
 0x671   : > { %6281 = vmatpush1.msra.mxu0 %v12530_v63  ;;  %6099 = vmatprep.mubr.f32.mxu0 %v12525_v59 }
 0x672   : > { %6227 = vmatprep.mubr.f32.mxu1 %v12525_v59  ;;  %6285 = vmatprep.subr.mxu0 %v12531_v9 }
 0x673   : > { %6289 = vmatpush1.msra.mxu0 %v12532_v21 }
 0x674   : > { %6102 = vmatmul.mubr.f32.gmra.mxu0 %v10879_v50  ;;  %6231 = vmatmul.mubr.f32.gmra.mxu1 %v5879_v13 }
 0x675   : > { %6107 = vmatprep.mubr.f32.mxu0 %v12525_v59  ;;  %6236 = vmatprep.mubr.f32.mxu1 %v12525_v59 }
 0x678   : > { %6110 = vmatmul.mubr.f32.gmra.mxu0 %v5867_v4  ;;  %6240 = vmatmul.mubr.f32.gmra.mxu1 %v5890_v27 }
 0x679   : > { %6115 = vmatprep.mubr.f32.mxu0 %v12525_v59  ;;  %6426 = vmatprep.mubr.f32.mxu1 %v12525_v59 }
 0x67c   : > { %6118 = vmatmul.mubr.f32.gmra.mxu0 %v5878_v36  ;;  %6428 = vmatmul.mubr.f32.vlgmr.msra.gmra.mxu1 %v10857_v29 }
 0x67d   : > { %6123 = vmatprep.mubr.f32.mxu0 %v12525_v59  ;;  %6433 = vmatprep.mubr.f32.mxu1 %v12525_v59 }
 0x680   : > { %6126 = vmatmul.mubr.f32.gmra.mxu0 %v5889_v28  ;;  %6435 = vmatmul.mubr.f32.gmra.mxu1 %v10869_v2 }
 0x681   : > { %6322 = vmatprep.mubr.f32.mxu0 %v12525_v59  ;;  %6440 = vmatprep.mubr.f32.mxu1 %v12525_v59 }
 0x684   : > { %6324 = vmatmul.mubr.f32.vlgmr.msra.gmra.mxu0 %v10857_v29  ;;  %6442 = vmatmul.mubr.f32.gmra.mxu1 %v10898_v54 }
 0x685   : > { %6329 = vmatprep.mubr.f32.mxu0 %v12525_v59  ;;  %6447 = vmatprep.mubr.f32.mxu1 %v12525_v59 }
 0x688   : > { %6331 = vmatmul.mubr.f32.gmra.mxu0 %v10869_v2  ;;  %6449 = vmatmul.mubr.f32.gmra.mxu1 %v10904_v35 }
 0x689   : > { %6336 = vmatprep.mubr.f32.mxu0 %v12525_v59  ;;  %6454 = vmatprep.mubr.f32.mxu1 %v12525_v59 }
 0x68c   : > { %6338 = vmatmul.mubr.f32.gmra.mxu0 %v10898_v54  ;;  %6456 = vmatmul.mubr.f32.gmra.mxu1 %v5888_v0 }
 0x68d   : > { %6343 = vmatprep.mubr.f32.mxu0 %v12525_v59 }
 0x690   : > { %6345 = vmatmul.mubr.f32.gmra.mxu0 %v10904_v35 }
 0x691   : > { %6350 = vmatprep.mubr.f32.mxu0 %v12525_v59  ;;  %v10956_v59 = vpop.permute.xlu1 %6532 }
 0x692   : > { %12533 = vst [vmem:[#allocation104_spill] sm:$0xff] %v10956_v59 }
 0x694   : > { %6352 = vmatmul.mubr.f32.gmra.mxu0 %v5888_v0 }
 0x695   : > { %v10960_v46 = vpop.permute.xlu1 %6546 }
 0x696   : > { %12534 = vst [vmem:[#allocation181_spill] sm:$0xff] %v10960_v46 }
 0x699   : > { %v10964_v49 = vpop.permute.xlu1 %6574 }
 0x69a   : > { %12535 = vst [vmem:[#allocation114_spill] sm:$0xff] %v10964_v49 }
 0x69d   : > { %v10968_v52 = vpop.permute.xlu1 %6588 }
 0x69e   : > { %12536 = vst [vmem:[#allocation154_spill] sm:$0xff] %v10968_v52 }
 0x6a1   : > { %v10972_v4 = vpop.permute.xlu1 %6616 }
 0x6a2   : > { %12537 = vst [vmem:[#allocation169_spill] sm:$0xff] %v10972_v4 }
 0x6a5   : > { %v10978_v0 = vpop.permute.xlu1 %6630 }
 0x6a9   : > { %v10980_v59 = vpop.permute.xlu1 %6658 }
 0x6ff   : > { %v5986_v61 = vpop.f32.mrf.mxu1 }
 0x701   : > { %v5988_v29 = vpop.f32.mrf.mxu1 }
 0x703   : > { %v5993_v1 = vpop.f32.mrf.mxu1 }
 0x705   : > { %v10952_v22 = vpop.f32.mrf.mxu1 }
 0x707   : > { %v5850_v2 = vpop.f32.mrf.mxu0 }
 0x708   : > { %v5987_v13 = vadd.f32 %v5986_v61, %v5850_v2 }
 0x709   : > { %v5852_v50 = vpop.f32.mrf.mxu0 }
 0x70a   : > { %v5989_v57 = vadd.f32 %v5988_v29, %v5852_v50 }
 0x70b   : > { %v5861_v51 = vpop.f32.mrf.mxu0 }
 0x70c   : > { %v5994_v21 = vadd.f32 %v5993_v1, %v5861_v51 }
 0x70d   : > { %v5863_v40 = vpop.f32.mrf.mxu0 }
 0x71c   : > { %v6000_v24 = vpop.f32.mrf.mxu1 }
 0x71e   : > { %v6002_v23 = vpop.f32.mrf.mxu1 }
 0x720   : > { %v6007_v56 = vpop.f32.mrf.mxu1 }
 0x722   : > { %v6009_v39 = vpop.f32.mrf.mxu1 }
 0x724   : > { %v5872_v55 = vpop.f32.mrf.mxu0  ;;  %v6014_v16 = vpop.f32.mrf.mxu1 }
 0x725   : > { %v6001_v10 = vadd.f32 %v6000_v24, %v5872_v55  ;;  %v5996_v55 = vadd.f32 %v10952_v22, %v5863_v40 }
 0x726   : > { %v5874_v15 = vpop.f32.mrf.mxu0  ;;  %v10954_v30 = vpop.f32.mrf.mxu1 }
 0x727   : > { %v6003_v28 = vadd.f32 %v6002_v23, %v5874_v15 }
 0x728   : > { %v5883_v60 = vpop.f32.mrf.mxu0  ;;  %v6205_v20 = vpop.f32.mrf.mxu1 }
 0x729   : > { %v6008_v63 = vadd.f32 %v6007_v56, %v5883_v60 }
 0x72a   : > { %v5885_v11 = vpop.f32.mrf.mxu0  ;;  %v6207_v43 = vpop.f32.mrf.mxu1 }
 0x72b   : > { %v6010_v49 = vadd.f32 %v6009_v39, %v5885_v11 }
 0x72c   : > { %v5894_v38 = vpop.f32.mrf.mxu0  ;;  %v10958_v17 = vpop.f32.mrf.mxu1 }
 0x72d   : > { %v6015_v29 = vadd.f32 %v6014_v16, %v5894_v38 }
 0x72e   : > { %v5896_v45 = vpop.f32.mrf.mxu0  ;;  %v10962_v33 = vpop.f32.mrf.mxu1 }
 0x72f   : > { %v6017_v56 = vadd.f32 %v10954_v30, %v5896_v45 }
 0x730   : > { %v6095_v58 = vpop.f32.mrf.mxu0  ;;  %v6223_v25 = vpop.f32.mrf.mxu1 }
 0x731   : > { %v6096_v27 = vadd.f32 %v6095_v58, %v5987_v13 }
 0x732   : > { %v6097_v34 = vpop.f32.mrf.mxu0  ;;  %v6225_v62 = vpop.f32.mrf.mxu1 }
 0x733   : > { %v6098_v4 = vadd.f32 %v6097_v34, %v5989_v57  ;;  %v6206_v2 = vadd.f32 %v6205_v20, %v6096_v27 }
 0x734   : > { %v6103_v6 = vpop.f32.mrf.mxu0  ;;  %v6232_v42 = vpop.f32.mrf.mxu1 }
 0x735   : > { %v6104_v61 = vadd.f32 %v6103_v6, %v5994_v21  ;;  %v6208_v60 = vadd.f32 %v6207_v43, %v6098_v4  ;;  %v10985_v6 = vpop.permute.xlu0 %6560  ;;  %v10988_v43 = vpop.permute.xlu1 %6672 }
 0x736   : > { %v6105_v7 = vpop.f32.mrf.mxu0  ;;  %v6234_v14 = vpop.f32.mrf.mxu1 }
 0x737   : > { %v6106_v1 = vadd.f32 %v6105_v7, %v5996_v55  ;;  %v6215_v22 = vadd.f32 %v10958_v17, %v6104_v61 }
 0x738   : > { %v6111_v12 = vpop.f32.mrf.mxu0  ;;  %v10966_v48 = vpop.f32.mrf.mxu1 }
 0x739   : > { %v6112_v26 = vadd.f32 %v6111_v12, %v6001_v10  ;;  %v6217_v45 = vadd.f32 %v10962_v33, %v6106_v1 }
 0x73a   : > { %v6113_v37 = vpop.f32.mrf.mxu0  ;;  %v10970_v19 = vpop.f32.mrf.mxu1 }
 0x73b   : > { %v6114_v9 = vadd.f32 %v6113_v37, %v6003_v28  ;;  %v6224_v24 = vadd.f32 %v6223_v25, %v6112_v26  ;;  %v12539_v26 = vld [vmem:[#allocation205_spill] sm:$0xff] }
 0x73c   : > { %v6119_v32 = vpop.f32.mrf.mxu0  ;;  %v6429_v31 = vpop.f32.mrf.mxu1 }
 0x73d   : > { %v6120_v46 = vadd.f32 %v6119_v32, %v6008_v63  ;;  %v6226_v12 = vadd.f32 %v6225_v62, %v6114_v9 }
 0x73e   : > { %v6121_v54 = vpop.f32.mrf.mxu0  ;;  %v6431_v41 = vpop.f32.mrf.mxu1 }
 0x73f   : > { %v6122_v50 = vadd.f32 %v6121_v54, %v6010_v49  ;;  %v6233_v37 = vadd.f32 %v6232_v42, %v6120_v46 }
 0x740   : > { %v6127_v3 = vpop.f32.mrf.mxu0  ;;  %v10974_v35 = vpop.f32.mrf.mxu1 }
 0x741   : > { %v6128_v11 = vadd.f32 %v6127_v3, %v6015_v29  ;;  %v6235_v62 = vadd.f32 %v6234_v14, %v6122_v50  ;;  %v12538_v14 = vld [vmem:[#allocation151_spill] sm:$0xff]  ;;  %v12542_v50 = vld [vmem:[#allocation70_spill] sm:$0xff] }
 0x742   : > { %v6129_v44 = vpop.f32.mrf.mxu0  ;;  %v10976_v8 = vpop.f32.mrf.mxu1 }
 0x743   : > { %v6130_v25 = vadd.f32 %v6129_v44, %v6017_v56  ;;  %v6242_v4 = vadd.f32 %v10966_v48, %v6128_v11 }
 0x744   : > { %v6325_v36 = vpop.f32.mrf.mxu0  ;;  %v6443_v53 = vpop.f32.mrf.mxu1 }
 0x745   : > { %v6326_v51 = vadd.f32 %v6325_v36, %v6206_v2  ;;  %v7865_v36 = vld [vmem:[%s11128_s1] sm:$0x3f]  ;;  %v6244_v33 = vadd.f32 %v10970_v19, %v6130_v25  ;;  %v12541_v19 = vld [vmem:[#allocation128_spill] sm:$0xff] }
 0x746   : > { %v6327_v47 = vpop.f32.mrf.mxu0  ;;  %v6445_v18 = vpop.f32.mrf.mxu1 }
 0x747   : > { %v6328_v32 = vadd.f32 %v6327_v47, %v6208_v60  ;;  %v6430_v49 = vadd.f32 %v6429_v31, %v6326_v51  ;;  %v6499_v31 = vrot.slane %v7865_v36, %v12538_v14  ;;  %v12543_v51 = vld [vmem:[#allocation67_spill] sm:$0xff] }
 0x748   : > { %v6332_v5 = vpop.f32.mrf.mxu0  ;;  %v6450_v23 = vpop.f32.mrf.mxu1 }
 0x749   : > { %v6333_v30 = vadd.f32 %v6332_v5, %v6215_v22  ;;  %v6432_v17 = vadd.f32 %v6431_v41, %v6328_v32  ;;  %v6462_v57 = vsub.f32 %v12539_v26, %v6430_v49  ;;  %v10999_v5 = vpop.permute.xlu0 %6602  ;;  %v12546_v26 = vld [vmem:[#allocation147_spill] sm:$0xff] }
 0x74a   : > { %v6334_v52 = vpop.f32.mrf.mxu0  ;;  %v6452_v40 = vpop.f32.mrf.mxu1 }
 0x74b   : > { %v6335_v3 = vadd.f32 %v6334_v52, %v6217_v45  ;;  %v6437_v48 = vadd.f32 %v10974_v35, %v6333_v30  ;;  %v12540_v52 = vld [vmem:[#allocation146_spill] sm:$0xff]  ;;  %v6463_v55 = vsub.f32 %v12541_v19, %v6432_v17  ;;  %v7866_v35 = vld [vmem:[%s11128_s1 + $0x8] sm:$0x3f] }
 0x74c   : > { %v6339_v15 = vpop.f32.mrf.mxu0  ;;  %v6457_v44 = vpop.f32.mrf.mxu1  ;;  %v6513_v27 = vrot.slane %v7865_v36, %v12540_v52  ;;  %v6503_v29 = vrot.slane %v7866_v35, %v12538_v14  ;;  %v6517_v11 = vrot.slane %v7866_v35, %v12540_v52 }
 0x74d   : > { %v6340_v58 = vadd.f32 %v6339_v15, %v6224_v24  ;;  %v6439_v61 = vadd.f32 %v10976_v8, %v6335_v3  ;;  %v6464_v60 = vsub.f32 %v12543_v51, %v6437_v48  ;;  %v6645_v49 = vpop.permute.xlu0 %6644 }
 0x74e   : > { %v6341_v39 = vpop.f32.mrf.mxu0  ;;  %v6459_v2 = vpop.f32.mrf.mxu1 }
 0x74f   : > { %v6342_v34 = vadd.f32 %v6341_v39, %v6226_v12  ;;  %v6444_v16 = vadd.f32 %v6443_v53, %v6340_v58 }
 0x750   : > { %v6346_v20 = vpop.f32.mrf.mxu0 }
 0x751   : > { %v6347_v38 = vadd.f32 %v6346_v20, %v6233_v37  ;;  %v6446_v7 = vadd.f32 %v6445_v18, %v6342_v34  ;;  %v6474_v10 = vrot.slane %v6444_v16, 4  ;;  %v6466_v58 = vsub.f32 %v12542_v50, %v6444_v16  ;;  %v12544_v34 = vld [vmem:[#allocation176_spill] sm:$0xff]  ;;  %v6687_v48 = vpop.permute.xlu0 %6686 }
 0x752   : > { %v6348_v54 = vpop.f32.mrf.mxu0  ;;  %v12550_v50 = vld [vmem:[#allocation172_spill] sm:$0xff] }
 0x753   : > { %v6451_v46 = vadd.f32 %v6450_v23, %v6347_v38  ;;  %v6349_v42 = vadd.f32 %v6348_v54, %v6235_v62  ;;  %v6477_v41 = vrot.slane %v6446_v7, 4  ;;  %v11004_v23 = vpop.permute.xlu1 %6700  ;;  %v6467_v37 = vsub.f32 %v12544_v34, %v6446_v7 }
 0x754   : > { %v6353_v53 = vpop.f32.mrf.mxu0 }
 0x755   : > { %v6475_v13 = vrot.slane %v6451_v46, 4  ;;  %v6453_v47 = vadd.f32 %v6452_v40, %v6349_v42  ;;  %v6354_v28 = vadd.f32 %v6353_v53, %v6242_v4  ;;  %v12545_v40 = vld [vmem:[#allocation185_spill] sm:$0xff] }
 0x756   : > { %v6355_v18 = vpop.f32.mrf.mxu0  ;;  %v6465_v20 = vsub.f32 %v12545_v40, %v6439_v61 }
 0x757   : > { %v6476_v63 = vsel %vm2078_vm3, %v6474_v10, %v6475_v13  ;;  %v6478_v9 = vrot.slane %v6453_v47, 4  ;;  %v6458_v21 = vadd.f32 %v6457_v44, %v6354_v28  ;;  %v6356_v24 = vadd.f32 %v6355_v18, %v6244_v33  ;;  %v6715_v4 = vpop.permute.xlu1 %6714  ;;  %v12547_v18 = vld [vmem:[#allocation148_spill] sm:$0xff] }
 0x758   : > { %v6490_v15 = vmul.f32 %v6476_v63, %v6462_v57 }
 0x759   : > { %v6479_v12 = vsel %vm2078_vm3, %v6477_v41, %v6478_v9  ;;  %v6480_v56 = vrot.slane %v6458_v21, 4  ;;  %v6460_v1 = vadd.f32 %v6459_v2, %v6356_v24  ;;  %v12549_v2 = vld [vmem:[#allocation150_spill] sm:$0xff] }
 0x75a   : > { %v6504_v39 = vmul.f32 %v6499_v31, %v6490_v15  ;;  %v6491_v8 = vmul.f32 %v6479_v12, %v6463_v55  ;;  %v12548_v55 = vld [vmem:[#allocation149_spill] sm:$0xff] }
 0x75b   : > { %v6481_v25 = vsel %vm2078_vm3, %v6475_v13, %v6480_v56  ;;  %v6494_v32 = vmul.f32 %v6480_v56, %v6466_v58  ;;  %v6482_v22 = vrot.slane %v6460_v1, 4  ;;  %v6743_v21 = vpop.permute.xlu1 %6742 }
 0x75c   : > { %v6518_v38 = vadd.f32 %v6513_v27, %v6504_v39  ;;  %v6505_v16 = vmul.f32 %v6503_v29, %v6491_v8  ;;  %v6492_v62 = vmul.f32 %v6481_v25, %v6464_v60 }
 0x75d   : > { %v6508_v30 = vmul.f32 %v6499_v31, %v6494_v32  ;;  %v6483_v45 = vsel %vm2078_vm3, %v6478_v9, %v6482_v22  ;;  %v6495_v54 = vmul.f32 %v6482_v22, %v6467_v37  ;;  %v6729_v22 = vpop.permute.xlu0 %6728 }
 0x75e   : > { %v11018_v46 = vmax.f32 %v6518_v38, 0.0  ;;  %v6519_v42 = vadd.f32 %v6517_v11, %v6505_v16  ;;  %v6506_v17 = vmul.f32 %v6499_v31, %v6492_v62  ;;  %v6493_v7 = vmul.f32 %v6483_v45, %v6465_v20 }
 0x75f   : > { %v6522_v3 = vadd.f32 %v6513_v27, %v6508_v30  ;;  %v6509_v44 = vmul.f32 %v6503_v29, %v6495_v54  ;;  %v12551_v54 = vld [vmem:[#allocation173_spill] sm:$0xff] }
 0x760   : > { %v6520_v36 = vadd.f32 %v6513_v27, %v6506_v17  ;;  %v6507_v53 = vmul.f32 %v6503_v29, %v6493_v7  ;;  %v11022_v13 = vmax.f32 %v6519_v42, 0.0  ;;  %v6538_v57 = vrot.slane %v11018_v46, %v12546_v26  ;;  %v6757_v42 = vpop.permute.xlu1 %6756 }
 0x761   : > { %v11020_v33 = vmax.f32 %v6522_v3, 0.0  ;;  %v6523_v10 = vadd.f32 %v6517_v11, %v6509_v44  ;;  %v6552_v63 = vrot.slane %v11018_v46, %v12547_v18 }
 0x762   : > { %v6526_v47 = vmax.f32 %v6520_v36, 0.0  ;;  %v6521_v28 = vadd.f32 %v6517_v11, %v6507_v53 }
 0x763   : > { %v11026_v41 = vmax.f32 %v6523_v10, 0.0  ;;  %v6762_v31 = vrot.slane %v11020_v33, %v12546_v26  ;;  %v6776_v27 = vrot.slane %v11020_v33, %v12547_v18 }
 0x764   : > { %v6527_v9 = vmax.f32 %v6521_v28, 0.0  ;;  %v6650_v24 = vrot.slane %v6526_v47, %v12546_v26  ;;  %v6664_v19 = vrot.slane %v6526_v47, %v12547_v18  ;;  %v6678_v61 = vrot.slane %v6526_v47, %v12548_v55 }
 0x765   : > { %v6692_v15 = vrot.slane %v6526_v47, %v12549_v2  ;;  %v6706_v35 = vrot.slane %v6526_v47, %v12538_v14  ;;  %v6720_v29 = vrot.slane %v6526_v47, %v12540_v52  ;;  %v6734_v58 = vrot.slane %v6526_v47, %v12550_v50 }
 0x766   : > { %v6654_v12 = vrot.slane %v6527_v9, %v12546_v26  ;;  %v6655_v56 = vmul.f32 %v6650_v24, %v6645_v49  ;;  %v6668_v1 = vrot.slane %v6527_v9, %v12547_v18  ;;  %v6669_v51 = vmul.f32 %v6664_v19, %v10980_v59 }
 0x767   : > { %v6682_v60 = vrot.slane %v6527_v9, %v12548_v55  ;;  %v6683_v39 = vmul.f32 %v6678_v61, %v10988_v43  ;;  %v6696_v8 = vrot.slane %v6527_v9, %v12549_v2  ;;  %v6697_v11 = vmul.f32 %v6692_v15, %v6687_v48  ;;  %v12552_v15 = vld [vmem:[#allocation104_spill] sm:$0xff] }
 0x768   : > { %v6656_v34 = vmul.f32 %v6654_v12, %v6645_v49  ;;  %v6670_v37 = vmul.f32 %v6668_v1, %v10980_v59  ;;  %v6710_v25 = vrot.slane %v6527_v9, %v12538_v14  ;;  %v6711_v32 = vmul.f32 %v6706_v35, %v11004_v23  ;;  %v6785_v1 = vpop.permute.xlu1 %6784 }
 0x769   : > { %v6684_v40 = vmul.f32 %v6682_v60, %v10988_v43  ;;  %v6698_v20 = vmul.f32 %v6696_v8, %v6687_v48  ;;  %v6724_v38 = vrot.slane %v6527_v9, %v12540_v52  ;;  %v6725_v16 = vmul.f32 %v6720_v29, %v6715_v4  ;;  %v6771_v29 = vpop.permute.xlu0 %6770 }
 0x76a   : > { %v6712_v62 = vmul.f32 %v6710_v25, %v11004_v23  ;;  %v6738_v30 = vrot.slane %v6527_v9, %v12550_v50  ;;  %v6739_v45 = vmul.f32 %v6734_v58, %v6729_v22  ;;  %v6748_v49 = vrot.slane %v6526_v47, %v12551_v54 }
 0x76b   : > { %v6726_v59 = vmul.f32 %v6724_v38, %v6715_v4  ;;  %v6752_v17 = vrot.slane %v6527_v9, %v12551_v54  ;;  %v6819_v7 = vadd.f32 %v6669_v51, %v6655_v56  ;;  %v6820_v3 = vadd.f32 %v6670_v37, %v6656_v34 }
 0x76c   : > { %v6740_v44 = vmul.f32 %v6738_v30, %v6729_v22  ;;  %v6753_v36 = vmul.f32 %v6748_v49, %v6743_v21  ;;  %v6821_v43 = vadd.f32 %v6697_v11, %v6683_v39  ;;  %v6822_v53 = vadd.f32 %v6698_v20, %v6684_v40  ;;  %v12555_v49 = vld [vmem:[#allocation154_spill] sm:$0xff] }
 0x76d   : > { %v6754_v10 = vmul.f32 %v6752_v17, %v6743_v21  ;;  %v6823_v28 = vadd.f32 %v6725_v16, %v6711_v32  ;;  %v6766_v23 = vrot.slane %v11026_v41, %v12546_v26  ;;  %v6790_v48 = vrot.slane %v11020_v33, %v12548_v55  ;;  %v6799_v17 = vpop.permute.xlu1 %6798 }
 0x76e   : > { %v6824_v24 = vadd.f32 %v6726_v59, %v6712_v62  ;;  %v6825_v47 = vadd.f32 %v6753_v36, %v6739_v45  ;;  %v6542_v4 = vrot.slane %v11022_v13, %v12546_v26  ;;  %v6566_v9 = vrot.slane %v11018_v46, %v12548_v55  ;;  %v12554_v62 = vld [vmem:[#allocation114_spill] sm:$0xff] }
 0x76f   : > { %v6826_v19 = vadd.f32 %v6754_v10, %v6740_v44  ;;  %v6835_v61 = vadd.f32 %v6821_v43, %v6819_v7  ;;  %v6780_v21 = vrot.slane %v11026_v41, %v12547_v18  ;;  %v6543_v35 = vmul.f32 %v6538_v57, %v12552_v15 }
 0x770   : > { %v6836_v58 = vadd.f32 %v6822_v53, %v6820_v3  ;;  %v6767_v12 = vmul.f32 %v6762_v31, %v6757_v42  ;;  %v6768_v56 = vmul.f32 %v6766_v23, %v6757_v42  ;;  %v6794_v51 = vrot.slane %v11026_v41, %v12548_v55  ;;  %v12553_v31 = vld [vmem:[#allocation181_spill] sm:$0xff] }
 0x771   : > { %v6837_v60 = vadd.f32 %v6825_v47, %v6823_v28  ;;  %v6781_v26 = vmul.f32 %v6776_v27, %v6771_v29  ;;  %v6795_v39 = vmul.f32 %v6790_v48, %v6785_v1  ;;  %v6556_v8 = vrot.slane %v11022_v13, %v12547_v18 }
 0x772   : > { %v6838_v11 = vadd.f32 %v6826_v19, %v6824_v24  ;;  %v6782_v34 = vmul.f32 %v6780_v21, %v6771_v29  ;;  %v6544_v37 = vmul.f32 %v6542_v4, %v12552_v15  ;;  %v6570_v57 = vrot.slane %v11022_v13, %v12548_v55 }
 0x773   : > { %v6796_v25 = vmul.f32 %v6794_v51, %v6785_v1  ;;  %v6557_v32 = vmul.f32 %v6552_v63, %v12553_v31  ;;  %v6558_v22 = vmul.f32 %v6556_v8, %v12553_v31  ;;  %v6571_v27 = vmul.f32 %v6566_v9, %v10985_v6  ;;  %v12557_v31 = vld [vmem:[#allocation153_spill] sm:$0xff] }
 0x774   : > { %v6572_v40 = vmul.f32 %v6570_v57, %v10985_v6  ;;  %v6580_v20 = vrot.slane %v11018_v46, %v12549_v2  ;;  %v6584_v38 = vrot.slane %v11022_v13, %v12549_v2  ;;  %v6594_v55 = vrot.slane %v11018_v46, %v12538_v14 }
 0x775   : > { %v6598_v16 = vrot.slane %v11022_v13, %v12538_v14  ;;  %v6608_v18 = vrot.slane %v11018_v46, %v12540_v52  ;;  %v6612_v63 = vrot.slane %v11022_v13, %v12540_v52  ;;  %v6622_v6 = vrot.slane %v11018_v46, %v12550_v50  ;;  %v12556_v52 = vld [vmem:[#allocation169_spill] sm:$0xff] }
 0x776   : > { %v6585_v30 = vmul.f32 %v6580_v20, %v12554_v62  ;;  %v6586_v45 = vmul.f32 %v6584_v38, %v12554_v62  ;;  %v6599_v42 = vmul.f32 %v6594_v55, %v12555_v49  ;;  %v6626_v59 = vrot.slane %v11022_v13, %v12550_v50 }
 0x777   : > { %v6600_v14 = vmul.f32 %v6598_v16, %v12555_v49  ;;  %v6613_v7 = vmul.f32 %v6608_v18, %v10999_v5  ;;  %v6614_v3 = vmul.f32 %v6612_v63, %v10999_v5  ;;  %v6627_v44 = vmul.f32 %v6622_v6, %v12556_v52 }
 0x778   : > { %v6628_v36 = vmul.f32 %v6626_v59, %v12556_v52  ;;  %v6636_v43 = vrot.slane %v11018_v46, %v12551_v54  ;;  %v6640_v53 = vrot.slane %v11022_v13, %v12551_v54  ;;  %v6804_v50 = vrot.slane %v11020_v33, %v12549_v2 }
 0x779   : > { %v6808_v10 = vrot.slane %v11026_v41, %v12549_v2  ;;  %v6811_v28 = vadd.f32 %v6557_v32, %v6543_v35  ;;  %v6812_v23 = vadd.f32 %v6558_v22, %v6544_v37  ;;  %v6813_v48 = vadd.f32 %v6585_v30, %v6571_v27  ;;  %v6852_v2 = vpop.permute.xlu0 %6851 }
 0x77a   : > { %v6641_v5 = vmul.f32 %v6636_v43, %v10978_v0  ;;  %v6642_v24 = vmul.f32 %v6640_v53, %v10978_v0  ;;  %v6809_v47 = vmul.f32 %v6804_v50, %v6799_v17  ;;  %v6814_v4 = vadd.f32 %v6586_v45, %v6572_v40 }
 0x77b   : > { %v6810_v9 = vmul.f32 %v6808_v10, %v6799_v17  ;;  %v6815_v46 = vadd.f32 %v6613_v7, %v6599_v42  ;;  %v6816_v19 = vadd.f32 %v6614_v3, %v6600_v14  ;;  %v6831_v54 = vadd.f32 %v6813_v48, %v6811_v28 }
 0x77c   : > { %v6817_v21 = vadd.f32 %v6641_v5, %v6627_v44  ;;  %v6818_v13 = vadd.f32 %v6642_v24, %v6628_v36  ;;  %v6832_v15 = vadd.f32 %v6814_v4, %v6812_v23  ;;  %v6843_v33 = vadd.f32 %v6837_v60, %v6835_v61 }
 0x77d   : > { %v6844_v29 = vadd.f32 %v6838_v11, %v6836_v58  ;;  %v6827_v1 = vadd.f32 %v6781_v26, %v6767_v12  ;;  %v6828_v41 = vadd.f32 %v6782_v34, %v6768_v56  ;;  %v6829_v35 = vadd.f32 %v6809_v47, %v6795_v39  ;;  %v7867_v39 = vld [vmem:[%s8410_s12] sm:$0x1f]  ;;  %v7868_v34 = vld [vmem:[%s8410_s12 + $0x8] sm:$0x1f] }
 0x77e   : > { %v6830_v51 = vadd.f32 %v6810_v9, %v6796_v25  ;;  %v6833_v8 = vadd.f32 %v6817_v21, %v6815_v46  ;;  %v6834_v0 = vadd.f32 %v6818_v13, %v6816_v19  ;;  %v6853_v32 = vrot.slane %v12557_v31, 4 }
 0x77f   : > { %v6854_v22 = vrot.slane %v6852_v2, 4  ;;  %v6839_v27 = vadd.f32 %v6829_v35, %v6827_v1 }
 0x780   : > { %v6841_v37 = vadd.f32 %v6833_v8, %v6831_v54  ;;  %v6842_v57 = vadd.f32 %v6834_v0, %v6832_v15  ;;  %v6840_v40 = vadd.f32 %v6830_v51, %v6828_v41 }
 0x781   : > { %v6855_v56 = vsel %vm2078_vm3, %v6853_v32, %v6854_v22 }
 0x782   : > { %v6845_v20 = vadd.f32 %v6843_v33, %v6841_v37  ;;  %v6846_v61 = vadd.f32 %v6844_v29, %v6842_v57 }
 0x784   : > { %v6847_v58 = vadd.f32 %v6845_v20, %v6839_v27  ;;  %v6848_v12 = vadd.f32 %v6846_v61, %v6840_v40 }
 0x786   : > { %v6857_v60 = vadd.f32 %v6855_v56, %v6847_v58  ;;  %v6858_v26 = vadd.f32 %v6855_v56, %v6848_v12 }
 0x788   : > { %v6859_v11 = vadd.f32 %v7867_v39, %v6857_v60  ;;  %v6860_v25 = vadd.f32 %v7868_v34, %v6858_v26 }
 0x78a   : > { %6861 = vst [vmem:[%s307_s13] sm:$0x1f] %v6859_v11  ;;  %6862 = vst [vmem:[%s307_s13 + $0x8] sm:$0x1f] %v6860_v25 }
 0x78b PF: > { %s18_s27 = sadd.s32 1, %s7875_s27  }
 0x78c   : > { %p15_p4 = scmp.ge.s32.totalorder %s18_s27, 4  }
 0x78e   :  { %17 = sbr.rel (!%p15_p4) target bundleno = 1 (0x1), region = 82 }

</bundles_post_ra>
